<compile_context>
chip_gen: v7x
topology: tpu7x:2x2x1
jax: 0.10.0
libtpu: 0.0.40
codegen_flags: <defaults>
</compile_context>

<pallas_src>
import jax
import jax.numpy as jnp
from jax import lax
from jax.experimental import pallas as pl
from jax.experimental.pallas import tpu as pltpu

# class_to_idx is empty in the source script (num_classes = 0, which is degenerate);
# we pick a small deterministic value instead.
NUM_CLASSES = 5
EPS = 1e-5
IN_FEATURES = 224 * 224 * 3          # 150528
N1_PAD = 128                         # fc1 out features 125 -> padded to lane width 128
DIMS = [IN_FEATURES, 125, 75, 25, 20, 15, NUM_CLASSES]
TAIL_COLS = 128                      # lane width of the packed tail-constant slab


# ----------------------- Static layout of the packed tail slab -----------------------
def _tail_layout():
    entries = [
        ("s1", 1, N1_PAD), ("b1", 1, N1_PAD),          # fc1 dequant scale + folded bias
        ("w2", N1_PAD, DIMS[2]), ("b2", 1, DIMS[2]),
        ("w3", DIMS[2], DIMS[3]), ("b3", 1, DIMS[3]),
        ("w4", DIMS[3], DIMS[4]), ("b4", 1, DIMS[4]),
        ("w5", DIMS[4], DIMS[5]), ("b5", 1, DIMS[5]),
        ("w6", DIMS[5], DIMS[6]), ("b6", 1, DIMS[6]),
    ]
    layout = {}
    off = 0
    for name, r, c in entries:
        layout[name] = (off, r, c)
        off += r
        off += (-off) % 8            # sublane-align each section
    return layout, off


TAIL_LAYOUT, TAIL_ROWS = _tail_layout()   # TAIL_ROWS = 336 -> slab is 336x128 f32 (~172 KB)


# ------------------------------ Fused fc1 + tail kernel -------------------------------
def fused_kernel(x_ref, w1_ref, tail_ref, o_ref, acc_ref):
    k = pl.program_id(0)

    @pl.when(k == 0)
    def _init():
        acc_ref[...] = jnp.zeros_like(acc_ref)

    # fc1 partial product: int8 weight stream upcast to bf16, bf16 x tile, f32 MXU acc.
    acc_ref[...] += jnp.dot(
        x_ref[...], w1_ref[...].astype(jnp.bfloat16),
        preferred_element_type=jnp.float32,
    )

    @pl.when(k == pl.num_programs(0) - 1)
    def _epilogue():
        # bn1..bn5 are folded into the linears; dropout1/dropout2 are identity (eval).
        def tail(name):
            off, r, c = TAIL_LAYOUT[name]
            return tail_ref[off:off + r, 0:c]           # static slice of the const slab

        s1 = tail("s1")                                  # (1, 128) per-column dequant scale
        b1 = tail("b1")                                  # (1, 128) folded fc1/bn1 bias
        h = jnp.maximum(acc_ref[...] * s1 + b1, 0.0)     # dequant + fc1 + bn1 + relu1

        def linear_relu(h, wname, bname):
            y = jnp.dot(h, tail(wname), preferred_element_type=jnp.float32) + tail(bname)
            return jnp.maximum(y, 0.0)

        h = linear_relu(h, "w2", "b2")                   # fc2 + bn2 + relu2
        h = linear_relu(h, "w3", "b3")                   # fc3 + bn3 + relu3
        h = linear_relu(h, "w4", "b4")                   # fc4 + bn4 + relu4
        h = linear_relu(h, "w5", "b5")                   # fc5 + bn5 + relu5
        o_ref[...] = (
            jnp.dot(h, tail("w6"), preferred_element_type=jnp.float32) + tail("b6")
        )


def vehicle_net5_forward(x_nchw, prepared, *, tk=37632):
    w1_i8, tail_slab = prepared

    B = x_nchw.shape[0]
    x_flat = x_nchw.reshape(B, -1).astype(jnp.bfloat16)   # nn.Flatten (NCHW row-major), bf16 stream
    K = x_flat.shape[1]
    assert K % tk == 0, (K, tk)
    n_k = K // tk

    cost = pl.CostEstimate(
        flops=2 * B * K * N1_PAD,                                     # ~7.7e7
        transcendentals=0,
        bytes_accessed=int(w1_i8.size + 2 * x_flat.size               # int8 w1 + bf16 x
                           + 4 * tail_slab.size + 4 * B * NUM_CLASSES),
    )

    return pl.pallas_call(
        fused_kernel,
        out_shape=jax.ShapeDtypeStruct((B, NUM_CLASSES), jnp.float32),
        grid_spec=pltpu.PrefetchScalarGridSpec(
            num_scalar_prefetch=0,
            grid=(n_k,),
            in_specs=[
                pl.BlockSpec((B, tk), lambda k: (0, k)),                    # x (bf16) stream
                pl.BlockSpec((tk, N1_PAD), lambda k: (k, 0)),               # w1 (int8) hot stream
                pl.BlockSpec((TAIL_ROWS, TAIL_COLS), lambda k: (0, 0)),     # packed tail consts
            ],
            out_specs=pl.BlockSpec((B, NUM_CLASSES), lambda k: (0, 0)),
            scratch_shapes=[pltpu.VMEM((B, N1_PAD), jnp.float32)],
        ),
        compiler_params=pltpu.CompilerParams(
            dimension_semantics=("arbitrary",),          # single K-reduction axis
            vmem_limit_bytes=48 * 1024 * 1024,           # ~10 MiB used; safe on v7x's 64 MiB
        ),
        cost_estimate=cost,
    )(x_flat, w1_i8, tail_slab)


# ------------------------------ Deterministic raw params ------------------------------
def init_params(key):
    keys = iter(jax.random.split(key, 64))

    def lin(fan_in, fan_out):
        bound = 1.0 / jnp.sqrt(jnp.float32(fan_in))
        w = jax.random.uniform(next(keys), (fan_in, fan_out), jnp.float32, -bound, bound)
        b = jax.random.uniform(next(keys), (fan_out,), jnp.float32, -bound, bound)
        return w, b

    def bn(c):
        gamma = jax.random.uniform(next(keys), (c,), jnp.float32, 0.5, 1.5)
        beta = 0.1 * jax.random.normal(next(keys), (c,), jnp.float32)
        mean = 0.1 * jax.random.normal(next(keys), (c,), jnp.float32)
        var = jax.random.uniform(next(keys), (c,), jnp.float32, 0.5, 1.5)
        return (gamma, beta, mean, var)

    layers = []
    for i in range(1, 6):
        w, b = lin(DIMS[i - 1], DIMS[i])
        layers.append((w, b, bn(DIMS[i])))
    w6, b6 = lin(DIMS[5], DIMS[6])
    return layers, (w6, b6)


# ------------- Param prep: fold BN, pad fc1, int8-quantize w1, pack tail slab ----------
def prepare_params(raw):
    layers, (w6, b6) = raw

    def fold_bn(w, b, bn_p):
        gamma, beta, mean, var = bn_p
        scale = gamma * lax.rsqrt(var + EPS)
        return w * scale[None, :], (b - mean) * scale + beta

    folded = [fold_bn(w, b, bn_p) for (w, b, bn_p) in layers]

    # fc1: pad out-dim 125 -> 128, symmetric per-output-column int8 quantization.
    w1, b1 = folded[0]
    pad1 = N1_PAD - w1.shape[1]
    w1p = jnp.pad(w1, ((0, 0), (0, pad1)))                         # (K, 128) f32
    amax = jnp.max(jnp.abs(w1p), axis=0)                           # (128,)
    s1 = jnp.where(amax > 0.0, amax / 127.0, 1.0)                  # dequant scale per column
    w1_i8 = jnp.clip(jnp.round(w1p / s1[None, :]), -127.0, 127.0).astype(jnp.int8)
    b1p = jnp.pad(b1, ((0, pad1),))                                # padded cols stay 0 after relu

    # fc2: pad in-dim to match (zero rows -> padded h1 columns contribute nothing).
    w2, b2 = folded[1]
    w2p = jnp.pad(w2, ((0, pad1), (0, 0)))
    w3, b3 = folded[2]
    w4, b4 = folded[3]
    w5, b5 = folded[4]

    tensors = {
        "s1": s1.reshape(1, -1), "b1": b1p.reshape(1, -1),
        "w2": w2p, "b2": b2.reshape(1, -1),
        "w3": w3, "b3": b3.reshape(1, -1),
        "w4": w4, "b4": b4.reshape(1, -1),
        "w5": w5, "b5": b5.reshape(1, -1),
        "w6": w6, "b6": b6.reshape(1, -1),
    }
    slab = jnp.zeros((TAIL_ROWS, TAIL_COLS), jnp.float32)
    for name, (off, r, c) in TAIL_LAYOUT.items():
        a = tensors[name]
        assert a.shape == (r, c), (name, a.shape, (r, c))
        slab = slab.at[off:off + r, 0:c].set(a)

    return w1_i8, slab


# ------------------------------- Pure-JAX f32 reference --------------------------------
def reference_forward(x_nchw, raw):
    layers, (w6, b6) = raw
    h = x_nchw.reshape(x_nchw.shape[0], -1)
    for (w, b, (gamma, beta, mean, var)) in layers:
        h = h @ w + b
        h = (h - mean) * gamma / jnp.sqrt(var + EPS) + beta
        h = jnp.maximum(h, 0.0)
    return h @ w6 + b6


if __name__ == "__main__":
    key = jax.random.PRNGKey(0)
    kx, kp = jax.random.split(key)
    x = jax.random.normal(kx, (2, 3, 224, 224), dtype=jnp.float32)   # NCHW
    raw = init_params(kp)
    prepared = prepare_params(raw)

    fwd = jax.jit(vehicle_net5_forward)
    out = jax.block_until_ready(fwd(x, prepared))
    ref = jax.block_until_ready(reference_forward(x, raw))

    assert out.shape == (2, NUM_CLASSES), out.shape
    assert jnp.allclose(out, ref, rtol=2e-2, atol=2e-2), (out, ref)
    print("KERNEL_OK")
</pallas_src>

<mosaic_0001>
module attributes {stable_mosaic.version = 11 : i64} {
  func.func @fused_kernel(%arg0: i32, %arg1: memref<2x37632xbf16, #tpu.memory_space<vmem>>, %arg2: memref<37632x128xi8, #tpu.memory_space<vmem>>, %arg3: memref<336x128xf32, #tpu.memory_space<vmem>>, %arg4: memref<2x5xf32, #tpu.memory_space<vmem>>, %arg5: memref<2x128xf32, #tpu.memory_space<vmem>>) attributes {dimension_semantics = [#tpu.dimension_semantics<arbitrary>], iteration_bounds = array<i64: 4>, scalar_prefetch = 0 : i64, scratch_operands = 1 : i64, tpu.core_type = #tpu.core_type<tc>, window_params = [{transform_indices = @transform_0, window_bounds = array<i64: 2, 37632>}, {transform_indices = @transform_1, window_bounds = array<i64: 37632, 128>}, {pipeline_mode = #tpu.pipeline_mode<synchronous>, transform_indices = @transform_2, window_bounds = array<i64: 336, 128>}, {pipeline_mode = #tpu.pipeline_mode<synchronous>, transform_indices = @transform_3, window_bounds = array<i64: 2, 5>}]} {
    %c0_i32 = arith.constant 0 : i32
    %0 = arith.cmpi eq, %arg0, %c0_i32 : i32
    %1 = arith.extui %0 : i1 to i32
    %c0_i32_0 = arith.constant 0 : i32
    %2 = arith.cmpi ne, %1, %c0_i32_0 : i32
    scf.if %2 {
      %cst_9 = arith.constant 0.000000e+00 : f32
      %13 = vector.broadcast %cst_9 : f32 to vector<2x128xf32>
      %c0_10 = arith.constant 0 : index
      %c0_11 = arith.constant 0 : index
      %14 = vector.load %arg5[%c0_10, %c0_11] : memref<2x128xf32, #tpu.memory_space<vmem>>, vector<2x128xf32>
      tpu.vector_store %arg5[%c0_10, %c0_11], %13 {strides = array<i32>} : memref<2x128xf32, #tpu.memory_space<vmem>>, vector<2x128xf32>,
    } else {
    }
    %c0 = arith.constant 0 : index
    %c0_1 = arith.constant 0 : index
    %3 = vector.load %arg5[%c0, %c0_1] : memref<2x128xf32, #tpu.memory_space<vmem>>, vector<2x128xf32>
    %c0_2 = arith.constant 0 : index
    %c0_3 = arith.constant 0 : index
    %4 = vector.load %arg1[%c0_2, %c0_3] : memref<2x37632xbf16, #tpu.memory_space<vmem>>, vector<2x37632xbf16>
    %c0_4 = arith.constant 0 : index
    %c0_5 = arith.constant 0 : index
    %5 = vector.load %arg2[%c0_4, %c0_5] : memref<37632x128xi8, #tpu.memory_space<vmem>>, vector<37632x128xi8>
    %6 = arith.sitofp %5 : vector<37632x128xi8> to vector<37632x128xbf16>
    %cst = arith.constant dense<0.000000e+00> : vector<2x128xf32>
    %7 = tpu.matmul %4, %6, %cst {dimension_numbers = #tpu.dot_dimension_numbers<[1], [0], [0], [1], [0, 0, 1, 1], [], []>} : vector<2x37632xbf16>, vector<37632x128xbf16>, vector<2x128xf32> -> vector<2x128xf32>
    %8 = arith.addf %3, %7 : vector<2x128xf32>
    %c0_6 = arith.constant 0 : index
    %c0_7 = arith.constant 0 : index
    %9 = vector.load %arg5[%c0_6, %c0_7] : memref<2x128xf32, #tpu.memory_space<vmem>>, vector<2x128xf32>
    tpu.vector_store %arg5[%c0_6, %c0_7], %8 {strides = array<i32>} : memref<2x128xf32, #tpu.memory_space<vmem>>, vector<2x128xf32>,
    %c3_i32 = arith.constant 3 : i32
    %10 = arith.cmpi eq, %arg0, %c3_i32 : i32
    %11 = arith.extui %10 : i1 to i32
    %c0_i32_8 = arith.constant 0 : i32
    %12 = arith.cmpi ne, %11, %c0_i32_8 : i32
    scf.if %12 {
      %c0_9 = arith.constant 0 : index
      %c0_10 = arith.constant 0 : index
      %13 = vector.load %arg3[%c0_9, %c0_10] : memref<336x128xf32, #tpu.memory_space<vmem>>, vector<1x128xf32>
      %c8 = arith.constant 8 : index
      %c0_11 = arith.constant 0 : index
      %14 = vector.load %arg3[%c8, %c0_11] : memref<336x128xf32, #tpu.memory_space<vmem>>, vector<1x128xf32>
      %c0_12 = arith.constant 0 : index
      %c0_13 = arith.constant 0 : index
      %15 = vector.load %arg5[%c0_12, %c0_13] : memref<2x128xf32, #tpu.memory_space<vmem>>, vector<2x128xf32>
      %16 = vector.broadcast %13 : vector<1x128xf32> to vector<2x128xf32>
      %17 = arith.mulf %15, %16 : vector<2x128xf32>
      %18 = vector.broadcast %14 : vector<1x128xf32> to vector<2x128xf32>
      %19 = arith.addf %17, %18 : vector<2x128xf32>
      %cst_14 = arith.constant 0.000000e+00 : f32
      %20 = vector.broadcast %cst_14 : f32 to vector<2x128xf32>
      %21 = arith.maximumf %19, %20 : vector<2x128xf32>
      %c16 = arith.constant 16 : index
      %c0_15 = arith.constant 0 : index
      %22 = vector.load %arg3[%c16, %c0_15] : memref<336x128xf32, #tpu.memory_space<vmem>>, vector<128x75xf32>
      %cst_16 = arith.constant dense<0.000000e+00> : vector<2x75xf32>
      %23 = tpu.matmul %21, %22, %cst_16 {dimension_numbers = #tpu.dot_dimension_numbers<[1], [0], [0], [1], [0, 0, 1, 1], [], []>} : vector<2x128xf32>, vector<128x75xf32>, vector<2x75xf32> -> vector<2x75xf32>
      %c144 = arith.constant 144 : index
      %c0_17 = arith.constant 0 : index
      %24 = vector.load %arg3[%c144, %c0_17] : memref<336x128xf32, #tpu.memory_space<vmem>>, vector<1x75xf32>
      %25 = vector.broadcast %24 : vector<1x75xf32> to vector<2x75xf32>
      %26 = arith.addf %23, %25 : vector<2x75xf32>
      %cst_18 = arith.constant 0.000000e+00 : f32
      %27 = vector.broadcast %cst_18 : f32 to vector<2x75xf32>
      %28 = arith.maximumf %26, %27 : vector<2x75xf32>
      %c152 = arith.constant 152 : index
      %c0_19 = arith.constant 0 : index
      %29 = vector.load %arg3[%c152, %c0_19] : memref<336x128xf32, #tpu.memory_space<vmem>>, vector<75x25xf32>
      %cst_20 = arith.constant dense<0.000000e+00> : vector<2x25xf32>
      %30 = tpu.matmul %28, %29, %cst_20 {dimension_numbers = #tpu.dot_dimension_numbers<[1], [0], [0], [1], [0, 0, 1, 1], [], []>} : vector<2x75xf32>, vector<75x25xf32>, vector<2x25xf32> -> vector<2x25xf32>
      %c232 = arith.constant 232 : index
      %c0_21 = arith.constant 0 : index
      %31 = vector.load %arg3[%c232, %c0_21] : memref<336x128xf32, #tpu.memory_space<vmem>>, vector<1x25xf32>
      %32 = vector.broadcast %31 : vector<1x25xf32> to vector<2x25xf32>
      %33 = arith.addf %30, %32 : vector<2x25xf32>
      %cst_22 = arith.constant 0.000000e+00 : f32
      %34 = vector.broadcast %cst_22 : f32 to vector<2x25xf32>
      %35 = arith.maximumf %33, %34 : vector<2x25xf32>
      %c240 = arith.constant 240 : index
      %c0_23 = arith.constant 0 : index
      %36 = vector.load %arg3[%c240, %c0_23] : memref<336x128xf32, #tpu.memory_space<vmem>>, vector<25x20xf32>
      %cst_24 = arith.constant dense<0.000000e+00> : vector<2x20xf32>
      %37 = tpu.matmul %35, %36, %cst_24 {dimension_numbers = #tpu.dot_dimension_numbers<[1], [0], [0], [1], [0, 0, 1, 1], [], []>} : vector<2x25xf32>, vector<25x20xf32>, vector<2x20xf32> -> vector<2x20xf32>
      %c272 = arith.constant 272 : index
      %c0_25 = arith.constant 0 : index
      %38 = vector.load %arg3[%c272, %c0_25] : memref<336x128xf32, #tpu.memory_space<vmem>>, vector<1x20xf32>
      %39 = vector.broadcast %38 : vector<1x20xf32> to vector<2x20xf32>
      %40 = arith.addf %37, %39 : vector<2x20xf32>
      %cst_26 = arith.constant 0.000000e+00 : f32
      %41 = vector.broadcast %cst_26 : f32 to vector<2x20xf32>
      %42 = arith.maximumf %40, %41 : vector<2x20xf32>
      %c280 = arith.constant 280 : index
      %c0_27 = arith.constant 0 : index
      %43 = vector.load %arg3[%c280, %c0_27] : memref<336x128xf32, #tpu.memory_space<vmem>>, vector<20x15xf32>
      %cst_28 = arith.constant dense<0.000000e+00> : vector<2x15xf32>
      %44 = tpu.matmul %42, %43, %cst_28 {dimension_numbers = #tpu.dot_dimension_numbers<[1], [0], [0], [1], [0, 0, 1, 1], [], []>} : vector<2x20xf32>, vector<20x15xf32>, vector<2x15xf32> -> vector<2x15xf32>
      %c304 = arith.constant 304 : index
      %c0_29 = arith.constant 0 : index
      %45 = vector.load %arg3[%c304, %c0_29] : memref<336x128xf32, #tpu.memory_space<vmem>>, vector<1x15xf32>
      %46 = vector.broadcast %45 : vector<1x15xf32> to vector<2x15xf32>
      %47 = arith.addf %44, %46 : vector<2x15xf32>
      %cst_30 = arith.constant 0.000000e+00 : f32
      %48 = vector.broadcast %cst_30 : f32 to vector<2x15xf32>
      %49 = arith.maximumf %47, %48 : vector<2x15xf32>
      %c312 = arith.constant 312 : index
      %c0_31 = arith.constant 0 : index
      %50 = vector.load %arg3[%c312, %c0_31] : memref<336x128xf32, #tpu.memory_space<vmem>>, vector<15x5xf32>
      %cst_32 = arith.constant dense<0.000000e+00> : vector<2x5xf32>
      %51 = tpu.matmul %49, %50, %cst_32 {dimension_numbers = #tpu.dot_dimension_numbers<[1], [0], [0], [1], [0, 0, 1, 1], [], []>} : vector<2x15xf32>, vector<15x5xf32>, vector<2x5xf32> -> vector<2x5xf32>
      %c328 = arith.constant 328 : index
      %c0_33 = arith.constant 0 : index
      %52 = vector.load %arg3[%c328, %c0_33] : memref<336x128xf32, #tpu.memory_space<vmem>>, vector<1x5xf32>
      %53 = vector.broadcast %52 : vector<1x5xf32> to vector<2x5xf32>
      %54 = arith.addf %51, %53 : vector<2x5xf32>
      %c0_34 = arith.constant 0 : index
      %c0_35 = arith.constant 0 : index
      %55 = vector.load %arg4[%c0_34, %c0_35] : memref<2x5xf32, #tpu.memory_space<vmem>>, vector<2x5xf32>
      tpu.vector_store %arg4[%c0_34, %c0_35], %54 {strides = array<i32>} : memref<2x5xf32, #tpu.memory_space<vmem>>, vector<2x5xf32>,
    } else {
    }
    return
  }
  func.func @transform_0(%arg0: i32) -> (i32, i32) {
    %c0_i32 = arith.constant 0 : i32
    %c0_i32_0 = arith.constant 0 : i32
    return %c0_i32, %arg0 : i32, i32
  }
  func.func @transform_1(%arg0: i32) -> (i32, i32) {
    %c0_i32 = arith.constant 0 : i32
    %c0_i32_0 = arith.constant 0 : i32
    return %arg0, %c0_i32 : i32, i32
  }
  func.func @transform_2(%arg0: i32) -> (i32, i32) {
    %c0_i32 = arith.constant 0 : i32
    %c0_i32_0 = arith.constant 0 : i32
    %c0_i32_1 = arith.constant 0 : i32
    return %c0_i32, %c0_i32_0 : i32, i32
  }
  func.func @transform_3(%arg0: i32) -> (i32, i32) {
    %c0_i32 = arith.constant 0 : i32
    %c0_i32_0 = arith.constant 0 : i32
    %c0_i32_1 = arith.constant 0 : i32
    return %c0_i32, %c0_i32_0 : i32, i32
  }
}

</mosaic_0001>

<bundles_post_ra>
// kernel: vehicle_net5_forward.1
= control target key start
LH: loop header
LB: loop body
LE: loop exit
PB: predicated region body
PF: predicated region fallthrough
CT: control target
= control target key end

     0   :  { %8 = vsyncpa [#allocation4], 0  ;;  %s18441_s0 = inlined_call_operand.vmem [shape: bf16[2,150528], index: 0, kind: input, shape index: {}]   ;;  %s18442_s1 = inlined_call_operand.hbm [shape: s8[150528,128], index: 1, kind: input, shape index: {}]   ;;  %s18443_s2 = inlined_call_operand.hbm [shape: f32[336,128], index: 2, kind: input, shape index: {}]   ;;  %s18444_s3 = inlined_call_operand.hbm [shape: f32[2,5], index: 3, kind: output, shape index: {}]  }
   0x1   :  { %10 = vsyncpa [#allocation4 + $0x1], 0 }
   0x2   :  { %11 = vsyncpa [#allocation7], 0 }
   0x3   :  { %12 = vsyncpa [#allocation5], 0  ;;  %s16055_s12 = smov 0   ;;  %s16057_s13 = smov 0  }
   0x4   :  { %s16059_s14 = smov 0   ;;  %s16061_s15 = smov 0  }
   0x5 LB: > { %s16074_s16 = sadd.s32 4294967295, %s16022_s15   ;;  %p64_p0 = scmp.ne.s32.totalorder %s16014_s13, %s16010_s12  ;;  %s16022_s15 = sphi %s16061_s15, %s18460_s15   ;;  %s16018_s14 = sphi %s16059_s14, %s18459_s14   ;;  %s16014_s13 = sphi %s16057_s13, %s18458_s13   ;;  %s16010_s12 = sphi %s16055_s12, %s18457_s12  }
   0x6   : > { %p18445_p1 = scmp.eq.s32.totalorder %s16074_s16, 0  ;;  %p12351_p2 = scmp.ge.s32.totalorder %s16022_s15, 1 }
   0x7   : > { %p117_p3 = scmp.lt.s32.totalorder %s16022_s15, 5  ;;  %s16024_s19 = smov [#allocation6]  }
   0x8   : > { %p16083_p5 = por %p18445_p1, %p64_p0  ;;  %s129_s20 = sshll.u32 %s16024_s19, 4  ;;  %s130_s20 = int_to_ptr.vmem [resolvable:$true] %s129_s20 }
   0x9   : > { %p16087_p6 = pnand %p12351_p2, %p117_p3  ;;  %s16100_s22 = sadd.s32 1, %s16022_s15  }
   0xa   : > { %s18448_s17 = scalar_select %p16083_p5, 1, 0 }
   0xb   : > { %s18449_s18 = scalar_select %p16087_p6, 1, 0 }
   0xc   : > { %p15804_p7 = pneg %p16087_p6  ;;  %s51_s23 = sadd.s32 1, %s16018_s14 }
   0xd   : > { %s48_s24 = ssub.s32 %s16022_s15, %s16100_s22  ;;  %s15896_s27 = scalar_lea.hbm %s18443_s2, 5376 }
   0xe   : > { %p16095_p8 = pnand %p15804_p7, %p18445_p1  ;;  %p15897_p9 = scmp.ne.s32.totalorder %s18443_s2, %s15896_s27 }
   0xf   : > { %p15903_p13 = scmp.lt.u32.totalorder %s15896_s27, %s18443_s2 }
  0x10   : > { %p15898_p10 = pneg %p16095_p8 }
  0x12   : > { %p15899_p11 = pnand %p15898_p10, %p15897_p9 }
  0x14   : > { %p15900_p12 = pneg %p15899_p11 }
  0x16   : > { %p15905_p0 = pnand %p15903_p13, %p15900_p12 }
  0x18   : > { %15908 = shalt.err (!%p15905_p0)
}
  0x19   : > { %s15909_s5 = scalar_lea.vmem %s130_s20, 5376  ;;  %p15917_p4 = scmp.lt.s32.totalorder %s130_s20, %s130_s20 }
  0x1a   : > { %p15910_p2 = scmp.ne.s32.totalorder %s130_s20, %s15909_s5  ;;  %p15918_p1 = scmp.lt.s32.totalorder %s15909_s5, %s15909_s5 }
  0x1c   : > { %p15912_p3 = pnand %p15910_p2, %p15898_p10  ;;  %p15919_p5 = por %p15918_p1, %p15917_p4 }
  0x1e   : > { %p15913_p7 = pneg %p15912_p3 }
  0x20   : > { %p15920_p6 = pnand %p15919_p5, %p15913_p7 }
  0x22   : > { %15923 = shalt.err (!%p15920_p6)
}
  0x23   : > { %s16025_s6 = smov 128   ;;  %s16026_s7 = smov 8  }
  0x24   : > { %15807 = dma.hbm_to_vmem [thread:$0]  (!%p16095_p8), %s18443_s2, 5376, %s130_s20, [#allocation7], %s16025_s6, %s16025_s6, %s16026_s7  }
  0x25   : > { %p49_p1 = scmp.eq.s32.totalorder %s48_s24, 0  ;;  %p58_p4 = scmp.ne.s32.totalorder %s16018_s14, %s16014_s13 }
  0x26   : > { %p59_p5 = scmp.eq.s32.totalorder %s16022_s15, 0  ;;  %p15813_p6 = scmp.lt.s32.totalorder %s16022_s15, 4 }
  0x27   : > { %s16129_s10 = scalar_select %p49_p1, %s16018_s14, %s51_s23  }
  0x28   : > { %p60_p9 = por %p59_p5, %p58_p4  ;;  %s151_s11 = sand.u32 1, %s16018_s14  }
  0x29   : > { %s15792_s12 = smul.u32 9408, %s151_s11  ;;  %s15929_s30 = scalar_lea.hbm %s18442_s1, 602112 }
  0x2a   : > { %s12378_s19 = smul.u32 150528, %s16022_s15  ;;  %p16133_p10 = pnand %p15813_p6, %p60_p9 }
  0x2b   : > { %s155_s23 = scalar_lea.vmem [#allocation3], %s15792_s12  ;;  %s16144_s15 = scalar_lea.sflag [#allocation4], %s151_s11 }
  0x2c   : > { %s16140_s20 = scalar_lea.hbm %s18442_s1, %s12378_s19  ;;  %s162_s24 = sshll.u32 %s155_s23, 4  ;;  %s16142_s24 = int_to_ptr.vmem [resolvable:$true] %s162_s24 }
  0x2d   : > { %s15924_s27 = scalar_lea.hbm %s16140_s20, 150528  ;;  %p15926_p11 = pneg %p16133_p10 }
  0x2e   : > { %p15925_p8 = scmp.ne.s32.totalorder %s16140_s20, %s15924_s27  ;;  %p15930_p0 = scmp.lt.u32.totalorder %s16140_s20, %s18442_s1 }
  0x2f   : > { %p15931_p2 = scmp.lt.u32.totalorder %s15929_s30, %s15924_s27  ;;  %p15933_p7 = scmp.lt.u32.totalorder %s15924_s27, %s16140_s20 }
  0x30   : > { %p15927_p12 = pnand %p15926_p11, %p15925_p8 }
  0x31   : > { %p15932_p3 = por %p15931_p2, %p15930_p0 }
  0x32   : > { %p15928_p13 = pneg %p15927_p12 }
  0x33   : > { %p15934_p1 = por %p15933_p7, %p15932_p3 }
  0x35   : > { %p15935_p4 = pnand %p15934_p1, %p15928_p13 }
  0x37   : > { %15938 = shalt.err (!%p15935_p4)
}
  0x38   : > { %s15939_s8 = scalar_lea.vmem %s16142_s24, 150528  ;;  %s16027_s9 = smov [#allocation3]  }
  0x39   : > { %p15940_p5 = scmp.ne.s32.totalorder %s16142_s24, %s15939_s8  ;;  %s15944_s11 = sshll.u32 %s16027_s9, 4  ;;  %s15945_s11 = int_to_ptr.vmem [resolvable:$false] %s15944_s11 }
  0x3a   : > { %s15946_s12 = scalar_lea.vmem %s15945_s11, 301056  ;;  %p15947_p8 = scmp.lt.s32.totalorder %s16142_s24, %s15945_s11 }
  0x3b   : > { %p15942_p6 = pnand %p15940_p5, %p15926_p11  ;;  %p15948_p12 = scmp.lt.s32.totalorder %s15946_s12, %s15939_s8 }
  0x3d   : > { %p15943_p9 = pneg %p15942_p6  ;;  %p15949_p0 = por %p15948_p12, %p15947_p8 }
  0x3f   : > { %p15950_p2 = pnand %p15949_p0, %p15943_p9 }
  0x41   : > { %15953 = shalt.err (!%p15950_p2)
}
  0x42   : > { %15811 = dma.hbm_to_vmem [thread:$0]  (!%p16133_p10), %s16140_s20, 150528, %s16142_s24, %s16144_s15, %s16025_s6, %s16025_s6, %s16026_s7  }
  0x43   : > { %p18452_p11 = scmp.ne.s32.totalorder %s18449_s18, 0 }
  0x44   : > { %s176_s19 = sand.u32 (!%p18452_p11), 1, %s16014_s13   ;;  %p18453_p13 = scmp.ne.s32.totalorder (!%p18452_p11), %s18448_s17, 0 }
  0x45   : > { %174 = sbr.rel (%p18452_p11) target bundleno = 3798 (0xed6), region = 32  ;;  %s177_s26 = scalar_lea.sflag (!%p18452_p11), [#allocation4], %s176_s19 }
  0x46   : > { %s15793_s21 = smul.u32 (!%p18452_p11), 9408, %s176_s19 }
  0x48   : > { %s16178_s23 = scalar_lea.vmem (!%p18452_p11), [#allocation3], %s15793_s21 }
  0x4c   : > { %15997 = dma.done.wait (%p18453_p13), %s177_s26, 150528  }
  0x4d   : > { %15999 = vsyncadd (%p18453_p13), %s177_s26, 4294816768  ;;  %p18454_p3 = scmp.eq.s32.totalorder %s16074_s16, 0 }
  0x4f   : > { %16001 = dma.done.wait (%p18454_p3), [#allocation7], 5376   ;;  %p18455_p10 = pmov %p18454_p3 }
  0x50   : > { %s206_s18 = smul.u32 294, %s16074_s16  ;;  %p18456_p1 = scmp.ne.s32.totalorder %s16074_s16, 0 }
  0x51   : > { %16003 = vsyncadd (%p18455_p10), [#allocation7], 4294961920  ;;  %v16028_v0 = vmov (!%p18456_p1), 0.0  }
  0x52   : > { %p207_p7 = scmp.lt.s32.totalorder %s206_s18, 1175  ;;  %216 = sbr.rel (%p18456_p1) target bundleno = 89 (0x59), region = 44  ;;  %217 = vst [vmem:[#allocation2] sm:$0x3] (!%p18456_p1), %v16028_v0 }
  0x54   : > { %s18462_s18 = smov (!%p207_p7, %s206_s18), 1175 }
  0x55   : > { %s16192_s25 = scalar_lea.vmem %s18441_s0, %s18462_s18 }
  0x59 PF: > { %v260_v1 = vld [vmem:[%s16178_s23 + $0x20] sm:$0xff]  ;;  %v261_v11 = vld [vmem:[%s16178_s23 + $0x28] sm:$0xff]  ;;  %v3825_v19 = vlaneseq  ;;  %v16029_v24 = vmov 1966171168   ;;  %v262_v27 = vld [vmem:[%s16178_s23 + $0x30] sm:$0xff]  ;;  %p12358_p4 = scmp.ne.s32.totalorder %s16074_s16, 3 }
  0x5a   : > { %v268_v2 = vld [vmem:[%s16178_s23 + $0x60] sm:$0xff]  ;;  %v1440_v4 = vunpack.c.l.s8.bf16 %v260_v1  ;;  %v1441_v5 = vunpack.c.h.s8.bf16 %v260_v1  ;;  %v269_v12 = vld [vmem:[%s16178_s23 + $0x68] sm:$0xff]  ;;  %v1442_v15 = vunpack.c.l.s8.bf16 %v261_v11  ;;  %v1443_v22 = vunpack.c.h.s8.bf16 %v261_v11  ;;  %v270_v28 = vld [vmem:[%s16178_s23 + $0x70] sm:$0xff] }
  0x5b   : > { %v256_v3 = vld [vmem:[%s16178_s23] sm:$0xff]  ;;  %v1456_v6 = vunpack.c.l.s8.bf16 %v268_v2  ;;  %v1457_v7 = vunpack.c.h.s8.bf16 %v268_v2  ;;  %v1458_v16 = vunpack.c.l.s8.bf16 %v269_v12  ;;  %v257_v17 = vld [vmem:[%s16178_s23 + $0x8] sm:$0xff]  ;;  %v1459_v23 = vunpack.c.h.s8.bf16 %v269_v12  ;;  %v258_v35 = vld [vmem:[%s16178_s23 + $0x10] sm:$0xff] }
  0x5c   : > { %v264_v8 = vld [vmem:[%s16178_s23 + $0x40] sm:$0xff]  ;;  %v1432_v9 = vunpack.c.l.s8.bf16 %v256_v3  ;;  %12379 = vmatprep.subr.bf16.mxu0 %v1440_v4  ;;  %v1433_v13 = vunpack.c.h.s8.bf16 %v256_v3  ;;  %v265_v18 = vld [vmem:[%s16178_s23 + $0x48] sm:$0xff]  ;;  %v1434_v20 = vunpack.c.l.s8.bf16 %v257_v17  ;;  %v3823_v25 = vunpack.c.l.s4 %v16029_v24  ;;  %v266_v36 = vld [vmem:[%s16178_s23 + $0x50] sm:$0xff] }
  0x5d   : > { %v1448_v10 = vunpack.c.l.s8.bf16 %v264_v8  ;;  %12401 = vmatprep.subr.bf16.mxu1 %v1456_v6  ;;  %v1449_v14 = vunpack.c.h.s8.bf16 %v264_v8  ;;  %v1450_v21 = vunpack.c.l.s8.bf16 %v265_v18  ;;  %v3826_v26 = vshrl.u32 %v3825_v19, 7  ;;  %v219_v32 = vld [vmem:[%s16192_s25] sm:$0xff]  ;;  %v277_v12 = vld [vmem:[%s16178_s23 + $0xa8] sm:$0xff] }
  0x5e   : > { %12380 = vmatpush3.bf16.msra.mxu0 %v1432_v9  ;;  %v3824_v29 = vunpack.c.0.s8 %v3823_v25  ;;  %v1435_v30 = vunpack.c.h.s8.bf16 %v257_v17  ;;  %v1451_v31 = vunpack.c.h.s8.bf16 %v265_v18  ;;  %v1444_v33 = vunpack.c.l.s8.bf16 %v262_v27  ;;  %v263_v44 = vld [vmem:[%s16178_s23 + $0x38] sm:$0xff]  ;;  %v276_v60 = vld [vmem:[%s16178_s23 + $0xa0] sm:$0xff]  ;;  %v273_v18 = vld [vmem:[%s16178_s23 + $0x88] sm:$0xff] }
  0x5f   : > { %12402 = vmatpush3.bf16.msra.mxu1 %v1448_v10  ;;  %12381 = vmatprep.subr.bf16.mxu0 %v1441_v5  ;;  %v1460_v34 = vunpack.c.l.s8.bf16 %v270_v28  ;;  %v1436_v39 = vunpack.c.l.s8.bf16 %v258_v35  ;;  %v1452_v40 = vunpack.c.l.s8.bf16 %v266_v36  ;;  %v1445_v41 = vunpack.c.h.s8.bf16 %v262_v27  ;;  %v271_v45 = vld [vmem:[%s16178_s23 + $0x78] sm:$0xff]  ;;  %v284_v61 = vld [vmem:[%s16178_s23 + $0xe0] sm:$0xff]  ;;  %v278_v25 = vld [vmem:[%s16178_s23 + $0xb0] sm:$0xff] }
  0x60   : > { %12403 = vmatprep.subr.bf16.mxu1 %v1457_v7  ;;  %v16209_v37 = vsub.s32 %v3824_v29, %v3826_v26  ;;  %v1461_v42 = vunpack.c.h.s8.bf16 %v270_v28  ;;  %v3821_v46 = vcombine.high %v219_v32, %v219_v32  ;;  %v1437_v48 = vunpack.c.h.s8.bf16 %v258_v35  ;;  %v259_v52 = vld [vmem:[%s16178_s23 + $0x18] sm:$0xff]  ;;  %v272_v3 = vld [vmem:[%s16178_s23 + $0x80] sm:$0xff]  ;;  %v286_v26 = vld [vmem:[%s16178_s23 + $0xf0] sm:$0xff] }
  0x61   : > { %v1453_v49 = vunpack.c.h.s8.bf16 %v266_v36  ;;  %v1446_v50 = vunpack.c.l.s8.bf16 %v263_v44  ;;  %v1462_v51 = vunpack.c.l.s8.bf16 %v271_v45  ;;  %v267_v53 = vld [vmem:[%s16178_s23 + $0x58] sm:$0xff]  ;;  %v1438_v56 = vunpack.c.l.s8.bf16 %v259_v52  ;;  %v280_v5 = vld [vmem:[%s16178_s23 + $0xc0] sm:$0xff] }
  0x62   : > { %12382 = vmatpush3.bf16.msra.mxu0 %v1433_v13  ;;  %v3828_v38 = vrot.slane %v219_v32, %v16209_v37  ;;  %v16218_v55 = vrot.slane %v3821_v46, %v16209_v37  ;;  %v1454_v57 = vunpack.c.l.s8.bf16 %v267_v53  ;;  %v1447_v58 = vunpack.c.h.s8.bf16 %v263_v44  ;;  %v285_v13 = vld [vmem:[%s16178_s23 + $0xe8] sm:$0xff]  ;;  %v282_v32 = vld [vmem:[%s16178_s23 + $0xd0] sm:$0xff]  ;;  %v275_v44 = vld [vmem:[%s16178_s23 + $0x98] sm:$0xff] }
  0x63   : > { %12404 = vmatpush3.bf16.msra.mxu1 %v1449_v14  ;;  %12383 = vmatprep.subr.bf16.mxu0 %v1442_v15  ;;  %v1463_v59 = vunpack.c.h.s8.bf16 %v271_v45  ;;  %v1439_v0 = vunpack.c.h.s8.bf16 %v259_v52  ;;  %v1455_v1 = vunpack.c.h.s8.bf16 %v267_v53  ;;  %v1472_v2 = vunpack.c.l.s8.bf16 %v276_v60  ;;  %v283_v46 = vld [vmem:[%s16178_s23 + $0xd8] sm:$0xff]  ;;  %v292_v52 = vld [vmem:[%s16178_s23 + $0x120] sm:$0xff] }
  0x64   : > { %12405 = vmatprep.subr.bf16.mxu1 %v1458_v16  ;;  %v3836_v43 = vcombine.high %v3828_v38, %v3828_v38  ;;  %v3837_v62 = vcombine.high %v16218_v55, %v16218_v55  ;;  %v3844_v63 = vrot.slane %v3828_v38, %v16209_v37  ;;  %v1488_v4 = vunpack.c.l.s8.bf16 %v284_v61  ;;  %v279_v38 = vld [vmem:[%s16178_s23 + $0xb8] sm:$0xff]  ;;  %v300_v53 = vld [vmem:[%s16178_s23 + $0x160] sm:$0xff] }
  0x65   : > { %v1464_v8 = vunpack.c.l.s8.bf16 %v272_v3  ;;  %v1480_v9 = vunpack.c.l.s8.bf16 %v280_v5  ;;  %v1473_v10 = vunpack.c.h.s8.bf16 %v276_v60  ;;  %v1489_v11 = vunpack.c.h.s8.bf16 %v284_v61  ;;  %v288_v60 = vld [vmem:[%s16178_s23 + $0x100] sm:$0xff] }
  0x66   : > { %12384 = vmatpush3.bf16.msra.mxu0 %v1434_v20  ;;  %v3858_v47 = vrot.slane %v3836_v43, %v16209_v37  ;;  %v3865_v6 = vrot.slane %v3837_v62, %v16209_v37  ;;  %v3866_v7 = vcombine.high %v3844_v63, %v3844_v63  ;;  %v1465_v15 = vunpack.c.h.s8.bf16 %v272_v3  ;;  %v281_v20 = vld [vmem:[%s16178_s23 + $0xc8] sm:$0xff]  ;;  %v296_v62 = vld [vmem:[%s16178_s23 + $0x140] sm:$0xff] }
  0x67   : > { %12406 = vmatpush3.bf16.msra.mxu1 %v1450_v21  ;;  %12385 = vmatprep.subr.bf16.mxu0 %v1443_v22  ;;  %v1481_v16 = vunpack.c.h.s8.bf16 %v280_v5  ;;  %v1474_v17 = vunpack.c.l.s8.bf16 %v277_v12  ;;  %v1490_v19 = vunpack.c.l.s8.bf16 %v285_v13  ;;  %v1466_v21 = vunpack.c.l.s8.bf16 %v273_v18  ;;  %v301_v5 = vld [vmem:[%s16178_s23 + $0x168] sm:$0xff] }
  0x68   : > { %12407 = vmatprep.subr.bf16.mxu1 %v1459_v23  ;;  %v3868_v54 = vcombine.high %v3858_v47, %v3858_v47  ;;  %5958 = vmatprep.mubr.bf16.mxu0 %v3858_v47  ;;  %v3869_v14 = vcombine.high %v3865_v6, %v3865_v6  ;;  %v1482_v22 = vunpack.c.l.s8.bf16 %v281_v20  ;;  %v1475_v23 = vunpack.c.h.s8.bf16 %v277_v12  ;;  %v297_v12 = vld [vmem:[%s16178_s23 + $0x148] sm:$0xff] }
  0x69   : > { %v1491_v24 = vunpack.c.h.s8.bf16 %v285_v13  ;;  %v1467_v27 = vunpack.c.h.s8.bf16 %v273_v18  ;;  %v1483_v28 = vunpack.c.h.s8.bf16 %v281_v20  ;;  %v1476_v29 = vunpack.c.l.s8.bf16 %v278_v25  ;;  %v302_v18 = vld [vmem:[%s16178_s23 + $0x170] sm:$0xff] }
  0x6a   : > { %12386 = vmatpush3.bf16.msra.mxu0 %v1435_v30  ;;  %5998 = vmatprep.mubr.bf16.mxu1 %v3868_v54  ;;  %v274_v30 = vld [vmem:[%s16178_s23 + $0x90] sm:$0xff]  ;;  %v1477_v35 = vunpack.c.h.s8.bf16 %v278_v25  ;;  %v1493_v36 = vunpack.c.h.s8.bf16 %v286_v26  ;;  %v1478_v43 = vunpack.c.l.s8.bf16 %v279_v38  ;;  %v1520_v61 = vunpack.c.l.s8.bf16 %v300_v53 }
  0x6b   : > { %12408 = vmatpush3.bf16.msra.mxu1 %v1451_v31  ;;  %12387 = vmatprep.subr.bf16.mxu0 %v1444_v33  ;;  %v1492_v31 = vunpack.c.l.s8.bf16 %v286_v26  ;;  %v1468_v33 = vunpack.c.l.s8.bf16 %v274_v30  ;;  %v1521_v3 = vunpack.c.h.s8.bf16 %v300_v53  ;;  %v1515_v20 = vunpack.c.h.s8.bf16 %v297_v12 }
  0x6c   : > { %12409 = vmatprep.subr.bf16.mxu1 %v1460_v34  ;;  %v1484_v34 = vunpack.c.l.s8.bf16 %v282_v32  ;;  %vm16031_vm0 = vmmov (!%p12358_p4), 0   ;;  %vm11937_vm1 = vcmask (!%p12358_p4), 1042432   ;;  %vm16033_vm2 = vmmov (!%p12358_p4), 1  }
  0x6d   : > { %vm15776_vm3 = vmpackc.low (!%p12358_p4), %vm11937_vm1, %vm16033_vm2  ;;  %vm11933_vm4 = vcmask (!%p12358_p4), 613376   ;;  %vm12025_vm5 = vcmask (!%p12358_p4), 1040384   ;;  %vm12021_vm7 = vcmask (!%p12358_p4), 203776   ;;  %vm12112_vm8 = vcmask (!%p12358_p4), 1043456  }
  0x6e   : > { %12388 = vmatpush3.bf16.msra.mxu0 %v1436_v39  ;;  %v287_v39 = vld [vmem:[%s16178_s23 + $0xf8] sm:$0xff]  ;;  %vm15783_vm6 = vmpackc.low (!%p12358_p4), %vm12025_vm5, %vm16033_vm2  ;;  %vm12108_vm9 = vcmask (!%p12358_p4), 162816   ;;  %vm12198_vm10 = vcmask (!%p12358_p4), 1046528   ;;  %vm12194_vm12 = vcmask (!%p12358_p4), 121856   ;;  %vm12272_vm13 = vcmask (!%p12358_p4), 33792  }
  0x6f   : > { %12410 = vmatpush3.bf16.msra.mxu1 %v1452_v40  ;;  %12389 = vmatprep.subr.bf16.mxu0 %v1445_v41  ;;  %v16239_v40 = vld [vmem:[%s16192_s25 + $0x8] sm:$0xff]  ;;  %v1469_v41 = vunpack.c.h.s8.bf16 %v274_v30  ;;  %v1494_v45 = vunpack.c.l.s8.bf16 %v287_v39  ;;  %v303_v30 = vld [vmem:[%s16178_s23 + $0x178] sm:$0xff]  ;;  %vm15790_vm11 = vmpackc.low (!%p12358_p4), %vm12198_vm10, %vm16033_vm2 }
  0x70   : > { %12411 = vmatprep.subr.bf16.mxu1 %v1461_v42  ;;  %v1485_v42 = vunpack.c.h.s8.bf16 %v282_v32  ;;  %v16245_v47 = vrot.slane %v16239_v40, %v16209_v37 }
  0x72   : > { %12390 = vmatpush3.bf16.msra.mxu0 %v1437_v48  ;;  %v1470_v48 = vunpack.c.l.s8.bf16 %v275_v44  ;;  %v3885_v54 = vcombine.high %v16245_v47, %v16245_v47 }
  0x73   : > { %12412 = vmatpush3.bf16.msra.mxu1 %v1453_v49  ;;  %12391 = vmatprep.subr.bf16.mxu0 %v1446_v50  ;;  %v1486_v49 = vunpack.c.l.s8.bf16 %v283_v46  ;;  %v1479_v50 = vunpack.c.h.s8.bf16 %v279_v38  ;;  %v299_v38 = vld [vmem:[%s16178_s23 + $0x158] sm:$0xff] }
  0x74   : > { %12413 = vmatprep.subr.bf16.mxu1 %v1462_v51  ;;  %v1495_v51 = vunpack.c.h.s8.bf16 %v287_v39 }
  0x76   : > { %12392 = vmatpush3.bf16.msra.mxu0 %v1438_v56  ;;  %v3851_v56 = vrot.slane %v16218_v55, %v16209_v37  ;;  %v1505_v55 = vunpack.c.h.s8.bf16 %v292_v52 }
  0x77   : > { %12414 = vmatpush3.bf16.msra.mxu1 %v1454_v57  ;;  %12393 = vmatprep.subr.bf16.mxu0 %v1447_v58  ;;  %v1471_v57 = vunpack.c.h.s8.bf16 %v275_v44  ;;  %v1487_v58 = vunpack.c.h.s8.bf16 %v283_v46  ;;  %v308_v44 = vld [vmem:[%s16178_s23 + $0x1a0] sm:$0xff] }
  0x78   : > { %12415 = vmatprep.subr.bf16.mxu1 %v1463_v59  ;;  %v1504_v59 = vunpack.c.l.s8.bf16 %v292_v52  ;;  %v304_v52 = vld [vmem:[%s16178_s23 + $0x180] sm:$0xff] }
  0x7a   : > { %12394 = vmatpush3.bf16.msra.mxu0 %v1439_v0  ;;  %v3867_v0 = vcombine.high %v3851_v56, %v3851_v56 }
  0x7b   : > { %12416 = vmatpush3.bf16.msra.mxu1 %v1455_v1  ;;  %12423 = vmatprep.subr.bf16.mxu0 %v1472_v2  ;;  %v1496_v1 = vunpack.c.l.s8.bf16 %v288_v60  ;;  %v1512_v2 = vunpack.c.l.s8.bf16 %v296_v62 }
  0x7c   : > { %12445 = vmatprep.subr.bf16.mxu1 %v1488_v4  ;;  %v293_v4 = vld [vmem:[%s16178_s23 + $0x128] sm:$0xff] }
  0x7d   : > { %5959 = vmatmul.mubr.bf16.vlgmr.msra.gmra.mrb[0].mxu0 %v3844_v63  ;;  %v3907_v63 = vrot.slane %v3885_v54, %v16209_v37  ;;  %v312_v54 = vld [vmem:[%s16178_s23 + $0x1c0] sm:$0xff] }
  0x7e   : > { %5999 = vmatmul.mubr.bf16.vlgmr.msra.gmra.mrb[0].mxu1 %v3866_v7  ;;  %12424 = vmatpush3.bf16.msra.mxu0 %v1464_v8  ;;  %v1497_v7 = vunpack.c.h.s8.bf16 %v288_v60  ;;  %v1513_v8 = vunpack.c.h.s8.bf16 %v296_v62  ;;  %v317_v62 = vld [vmem:[%s16178_s23 + $0x1e8] sm:$0xff] }
  0x7f   : > { %12446 = vmatpush3.bf16.msra.mxu1 %v1480_v9  ;;  %12425 = vmatprep.subr.bf16.mxu0 %v1473_v10  ;;  %v1506_v9 = vunpack.c.l.s8.bf16 %v293_v4  ;;  %v289_v10 = vld [vmem:[%s16178_s23 + $0x108] sm:$0xff] }
  0x80   : > { %12447 = vmatprep.subr.bf16.mxu1 %v1489_v11  ;;  %6038 = vmatprep.mubr.bf16.mxu0 %v3865_v6  ;;  %v3917_v6 = vcombine.high %v3907_v63, %v3907_v63  ;;  %v1522_v11 = vunpack.c.l.s8.bf16 %v301_v5  ;;  %v1498_v13 = vunpack.c.l.s8.bf16 %v289_v10 }
  0x81   : > { %6078 = vmatprep.mubr.bf16.mxu1 %v3869_v14  ;;  %v1514_v14 = vunpack.c.l.s8.bf16 %v297_v12 }
  0x82   : > { %12426 = vmatpush3.bf16.msra.mxu0 %v1465_v15  ;;  %v1507_v15 = vunpack.c.h.s8.bf16 %v293_v4  ;;  %v313_v4 = vld [vmem:[%s16178_s23 + $0x1c8] sm:$0xff] }
  0x83   : > { %12448 = vmatpush3.bf16.msra.mxu1 %v1481_v16  ;;  %12427 = vmatprep.subr.bf16.mxu0 %v1474_v17  ;;  %v1523_v16 = vunpack.c.h.s8.bf16 %v301_v5  ;;  %v294_v17 = vld [vmem:[%s16178_s23 + $0x130] sm:$0xff]  ;;  %v1547_v12 = vunpack.c.h.s8.bf16 %v313_v4 }
  0x84   : > { %12449 = vmatprep.subr.bf16.mxu1 %v1490_v19  ;;  %v1499_v19 = vunpack.c.h.s8.bf16 %v289_v10  ;;  %v318_v10 = vld [vmem:[%s16178_s23 + $0x1f0] sm:$0xff] }
  0x86   : > { %12428 = vmatpush3.bf16.msra.mxu0 %v1466_v21  ;;  %v1508_v21 = vunpack.c.l.s8.bf16 %v294_v17 }
  0x87   : > { %12450 = vmatpush3.bf16.msra.mxu1 %v1482_v22  ;;  %12429 = vmatprep.subr.bf16.mxu0 %v1475_v23  ;;  %v290_v22 = vld [vmem:[%s16178_s23 + $0x110] sm:$0xff]  ;;  %v1524_v23 = vunpack.c.l.s8.bf16 %v302_v18 }
  0x88   : > { %12451 = vmatprep.subr.bf16.mxu1 %v1491_v24  ;;  %v298_v24 = vld [vmem:[%s16178_s23 + $0x150] sm:$0xff]  ;;  %v1500_v25 = vunpack.c.l.s8.bf16 %v290_v22  ;;  %v1501_v32 = vunpack.c.h.s8.bf16 %v290_v22  ;;  %v319_v22 = vld [vmem:[%s16178_s23 + $0x1f8] sm:$0xff] }
  0x89   : > { %v1516_v26 = vunpack.c.l.s8.bf16 %v298_v24 }
  0x8a   : > { %12430 = vmatpush3.bf16.msra.mxu0 %v1467_v27  ;;  %v1509_v27 = vunpack.c.h.s8.bf16 %v294_v17 }
  0x8b   : > { %12452 = vmatpush3.bf16.msra.mxu1 %v1483_v28  ;;  %12431 = vmatprep.subr.bf16.mxu0 %v1476_v29  ;;  %v1525_v28 = vunpack.c.h.s8.bf16 %v302_v18  ;;  %v295_v29 = vld [vmem:[%s16178_s23 + $0x138] sm:$0xff] }
  0x8c   : > { %12453 = vmatprep.subr.bf16.mxu1 %v1492_v31  ;;  %v3870_v31 = vcombine.high %v16239_v40, %v16239_v40  ;;  %v1511_v40 = vunpack.c.h.s8.bf16 %v295_v29 }
  0x8e   : > { %12432 = vmatpush3.bf16.msra.mxu0 %v1468_v33  ;;  %v1517_v33 = vunpack.c.h.s8.bf16 %v298_v24  ;;  %v16271_v39 = vrot.slane %v3870_v31, %v16209_v37 }
  0x8f   : > { %12454 = vmatpush3.bf16.msra.mxu1 %v1484_v34  ;;  %12433 = vmatprep.subr.bf16.mxu0 %v1477_v35  ;;  %v1510_v34 = vunpack.c.l.s8.bf16 %v295_v29  ;;  %v291_v35 = vld [vmem:[%s16178_s23 + $0x118] sm:$0xff] }
  0x90   : > { %12455 = vmatprep.subr.bf16.mxu1 %v1493_v36  ;;  %v1526_v36 = vunpack.c.l.s8.bf16 %v303_v30  ;;  %v3886_v46 = vcombine.high %v16271_v39, %v16271_v39  ;;  %v315_v29 = vld [vmem:[%s16178_s23 + $0x1d8] sm:$0xff] }
  0x92   : > { %12434 = vmatpush3.bf16.msra.mxu0 %v1469_v41  ;;  %v1502_v41 = vunpack.c.l.s8.bf16 %v291_v35 }
  0x93   : > { %12456 = vmatpush3.bf16.msra.mxu1 %v1485_v42  ;;  %12435 = vmatprep.subr.bf16.mxu0 %v1478_v43  ;;  %v1518_v42 = vunpack.c.l.s8.bf16 %v299_v38  ;;  %v1527_v43 = vunpack.c.h.s8.bf16 %v303_v30 }
  0x94   : > { %12457 = vmatprep.subr.bf16.mxu1 %v1494_v45  ;;  %v316_v45 = vld [vmem:[%s16178_s23 + $0x1e0] sm:$0xff] }
  0x95   : > { %v1552_v53 = vunpack.c.l.s8.bf16 %v316_v45  ;;  %v1553_v60 = vunpack.c.h.s8.bf16 %v316_v45 }
  0x96   : > { %12436 = vmatpush3.bf16.msra.mxu0 %v1470_v48  ;;  %v3893_v48 = vrot.slane %v16245_v47, %v16209_v37  ;;  %v1537_v47 = vunpack.c.h.s8.bf16 %v308_v44 }
  0x97   : > { %12458 = vmatpush3.bf16.msra.mxu1 %v1486_v49  ;;  %12437 = vmatprep.subr.bf16.mxu0 %v1479_v50  ;;  %v1503_v49 = vunpack.c.h.s8.bf16 %v291_v35  ;;  %v1519_v50 = vunpack.c.h.s8.bf16 %v299_v38  ;;  %v324_v35 = vld [vmem:[%s16178_s23 + $0x220] sm:$0xff] }
  0x98   : > { %12459 = vmatprep.subr.bf16.mxu1 %v1495_v51  ;;  %v1536_v51 = vunpack.c.l.s8.bf16 %v308_v44  ;;  %v320_v44 = vld [vmem:[%s16178_s23 + $0x200] sm:$0xff] }
  0x9a   : > { %12438 = vmatpush3.bf16.msra.mxu0 %v1471_v57  ;;  %v3915_v57 = vcombine.high %v3893_v48, %v3893_v48 }
  0x9b   : > { %12460 = vmatpush3.bf16.msra.mxu1 %v1487_v58  ;;  %12467 = vmatprep.subr.bf16.mxu0 %v1504_v59  ;;  %v1528_v58 = vunpack.c.l.s8.bf16 %v304_v52  ;;  %v1544_v59 = vunpack.c.l.s8.bf16 %v312_v54 }
  0x9c   : > { %12489 = vmatprep.subr.bf16.mxu1 %v1520_v61  ;;  %v309_v61 = vld [vmem:[%s16178_s23 + $0x1a8] sm:$0xff] }
  0x9d   : > { %6039 = vmatmul.mubr.bf16.vlgmr.msra.gmra.mrb[4].mxu0 %v3851_v56  ;;  %v3914_v56 = vrot.slane %v3886_v46, %v16209_v37  ;;  %v328_v46 = vld [vmem:[%s16178_s23 + $0x240] sm:$0xff] }
  0x9e   : > { %6079 = vmatmul.mubr.bf16.vlgmr.msra.gmra.mrb[4].mxu1 %v3867_v0  ;;  %12468 = vmatpush3.bf16.msra.mxu0 %v1496_v1  ;;  %v1529_v0 = vunpack.c.h.s8.bf16 %v304_v52  ;;  %v1545_v1 = vunpack.c.h.s8.bf16 %v312_v54  ;;  %v333_v54 = vld [vmem:[%s16178_s23 + $0x268] sm:$0xff] }
  0x9f   : > { %12490 = vmatpush3.bf16.msra.mxu1 %v1512_v2  ;;  %12469 = vmatprep.subr.bf16.mxu0 %v1505_v55  ;;  %v1538_v2 = vunpack.c.l.s8.bf16 %v309_v61  ;;  %v305_v55 = vld [vmem:[%s16178_s23 + $0x188] sm:$0xff] }
  0xa0   : > { %12491 = vmatprep.subr.bf16.mxu1 %v1521_v3  ;;  %6118 = vmatprep.mubr.bf16.mxu0 %v3907_v63  ;;  %v3918_v63 = vcombine.high %v3914_v56, %v3914_v56  ;;  %v1554_v3 = vunpack.c.l.s8.bf16 %v317_v62  ;;  %v1530_v5 = vunpack.c.l.s8.bf16 %v305_v55 }
  0xa1   : > { %6158 = vmatprep.mubr.bf16.mxu1 %v3917_v6  ;;  %v1546_v6 = vunpack.c.l.s8.bf16 %v313_v4 }
  0xa2   : > { %12470 = vmatpush3.bf16.msra.mxu0 %v1497_v7  ;;  %v1539_v7 = vunpack.c.h.s8.bf16 %v309_v61  ;;  %v329_v61 = vld [vmem:[%s16178_s23 + $0x248] sm:$0xff] }
  0xa3   : > { %12492 = vmatpush3.bf16.msra.mxu1 %v1513_v8  ;;  %12471 = vmatprep.subr.bf16.mxu0 %v1506_v9  ;;  %v1555_v8 = vunpack.c.h.s8.bf16 %v317_v62  ;;  %v310_v9 = vld [vmem:[%s16178_s23 + $0x1b0] sm:$0xff]  ;;  %v1579_v4 = vunpack.c.h.s8.bf16 %v329_v61 }
  0xa4   : > { %12493 = vmatprep.subr.bf16.mxu1 %v1522_v11  ;;  %v1531_v11 = vunpack.c.h.s8.bf16 %v305_v55  ;;  %v334_v55 = vld [vmem:[%s16178_s23 + $0x270] sm:$0xff] }
  0xa6   : > { %12472 = vmatpush3.bf16.msra.mxu0 %v1498_v13  ;;  %v1540_v13 = vunpack.c.l.s8.bf16 %v310_v9 }
  0xa7   : > { %12494 = vmatpush3.bf16.msra.mxu1 %v1514_v14  ;;  %12473 = vmatprep.subr.bf16.mxu0 %v1507_v15  ;;  %v306_v14 = vld [vmem:[%s16178_s23 + $0x190] sm:$0xff]  ;;  %v1556_v15 = vunpack.c.l.s8.bf16 %v318_v10 }
  0xa8   : > { %12495 = vmatprep.subr.bf16.mxu1 %v1523_v16  ;;  %v314_v16 = vld [vmem:[%s16178_s23 + $0x1d0] sm:$0xff]  ;;  %v1532_v17 = vunpack.c.l.s8.bf16 %v306_v14  ;;  %v1533_v24 = vunpack.c.h.s8.bf16 %v306_v14  ;;  %v335_v14 = vld [vmem:[%s16178_s23 + $0x278] sm:$0xff] }
  0xa9   : > { %v1548_v18 = vunpack.c.l.s8.bf16 %v314_v16 }
  0xaa   : > { %12474 = vmatpush3.bf16.msra.mxu0 %v1499_v19  ;;  %v1541_v19 = vunpack.c.h.s8.bf16 %v310_v9 }
  0xab   : > { %12496 = vmatpush3.bf16.msra.mxu1 %v1515_v20  ;;  %12475 = vmatprep.subr.bf16.mxu0 %v1508_v21  ;;  %v1557_v20 = vunpack.c.h.s8.bf16 %v318_v10  ;;  %v311_v21 = vld [vmem:[%s16178_s23 + $0x1b8] sm:$0xff] }
  0xac   : > { %12497 = vmatprep.subr.bf16.mxu1 %v1524_v23  ;;  %v16293_v23 = vld [vmem:[%s16192_s25 + $0x10] sm:$0xff] }
  0xad   : > { %v16299_v30 = vrot.slane %v16293_v23, %v16209_v37 }
  0xae   : > { %12476 = vmatpush3.bf16.msra.mxu0 %v1500_v25  ;;  %v1549_v25 = vunpack.c.h.s8.bf16 %v314_v16 }
  0xaf   : > { %12498 = vmatpush3.bf16.msra.mxu1 %v1516_v26  ;;  %12477 = vmatprep.subr.bf16.mxu0 %v1509_v27  ;;  %v1542_v26 = vunpack.c.l.s8.bf16 %v311_v21  ;;  %v307_v27 = vld [vmem:[%s16178_s23 + $0x198] sm:$0xff]  ;;  %v3934_v38 = vcombine.high %v16299_v30, %v16299_v30 }
  0xb0   : > { %12499 = vmatprep.subr.bf16.mxu1 %v1525_v28  ;;  %v1558_v28 = vunpack.c.l.s8.bf16 %v319_v22  ;;  %v1534_v31 = vunpack.c.l.s8.bf16 %v307_v27 }
  0xb2   : > { %12478 = vmatpush3.bf16.msra.mxu0 %v1501_v32  ;;  %v1550_v32 = vunpack.c.l.s8.bf16 %v315_v29 }
  0xb3   : > { %12500 = vmatpush3.bf16.msra.mxu1 %v1517_v33  ;;  %12479 = vmatprep.subr.bf16.mxu0 %v1510_v34  ;;  %v1543_v33 = vunpack.c.h.s8.bf16 %v311_v21  ;;  %v1559_v34 = vunpack.c.h.s8.bf16 %v319_v22  ;;  %v331_v21 = vld [vmem:[%s16178_s23 + $0x258] sm:$0xff] }
  0xb4   : > { %12501 = vmatprep.subr.bf16.mxu1 %v1526_v36  ;;  %v332_v36 = vld [vmem:[%s16178_s23 + $0x260] sm:$0xff] }
  0xb5   : > { %v1584_v45 = vunpack.c.l.s8.bf16 %v332_v36  ;;  %v1585_v52 = vunpack.c.h.s8.bf16 %v332_v36 }
  0xb6   : > { %12480 = vmatpush3.bf16.msra.mxu0 %v1502_v41  ;;  %v3900_v41 = vrot.slane %v16271_v39, %v16209_v37  ;;  %v1569_v39 = vunpack.c.h.s8.bf16 %v324_v35 }
  0xb7   : > { %12502 = vmatpush3.bf16.msra.mxu1 %v1518_v42  ;;  %12481 = vmatprep.subr.bf16.mxu0 %v1511_v40  ;;  %v1535_v42 = vunpack.c.h.s8.bf16 %v307_v27  ;;  %v1551_v40 = vunpack.c.h.s8.bf16 %v315_v29  ;;  %v340_v27 = vld [vmem:[%s16178_s23 + $0x2a0] sm:$0xff] }
  0xb8   : > { %12503 = vmatprep.subr.bf16.mxu1 %v1527_v43  ;;  %v1568_v43 = vunpack.c.l.s8.bf16 %v324_v35  ;;  %v336_v35 = vld [vmem:[%s16178_s23 + $0x280] sm:$0xff] }
  0xba   : > { %12482 = vmatpush3.bf16.msra.mxu0 %v1503_v49  ;;  %v3916_v49 = vcombine.high %v3900_v41, %v3900_v41 }
  0xbb   : > { %12504 = vmatpush3.bf16.msra.mxu1 %v1519_v50  ;;  %12511 = vmatprep.subr.bf16.mxu0 %v1536_v51  ;;  %v1560_v50 = vunpack.c.l.s8.bf16 %v320_v44  ;;  %v1576_v51 = vunpack.c.l.s8.bf16 %v328_v46 }
  0xbc   : > { %12533 = vmatprep.subr.bf16.mxu1 %v1552_v53  ;;  %v325_v53 = vld [vmem:[%s16178_s23 + $0x228] sm:$0xff] }
  0xbd   : > { %6119 = vmatmul.mubr.bf16.vlgmr.msra.gmra.mrb[8].mxu0 %v3893_v48  ;;  %v3956_v48 = vrot.slane %v3934_v38, %v16209_v37  ;;  %v344_v38 = vld [vmem:[%s16178_s23 + $0x2c0] sm:$0xff] }
  0xbe   : > { %6159 = vmatmul.mubr.bf16.vlgmr.msra.gmra.mrb[8].mxu1 %v3915_v57  ;;  %12512 = vmatpush3.bf16.msra.mxu0 %v1528_v58  ;;  %v1561_v57 = vunpack.c.h.s8.bf16 %v320_v44  ;;  %v1577_v58 = vunpack.c.h.s8.bf16 %v328_v46  ;;  %v349_v46 = vld [vmem:[%s16178_s23 + $0x2e8] sm:$0xff] }
  0xbf   : > { %12534 = vmatpush3.bf16.msra.mxu1 %v1544_v59  ;;  %12513 = vmatprep.subr.bf16.mxu0 %v1537_v47  ;;  %v1570_v59 = vunpack.c.l.s8.bf16 %v325_v53  ;;  %v321_v47 = vld [vmem:[%s16178_s23 + $0x208] sm:$0xff] }
  0xc0   : > { %12535 = vmatprep.subr.bf16.mxu1 %v1553_v60  ;;  %6198 = vmatprep.mubr.bf16.mxu0 %v3914_v56  ;;  %v3966_v56 = vcombine.high %v3956_v48, %v3956_v48  ;;  %v1586_v60 = vunpack.c.l.s8.bf16 %v333_v54  ;;  %v1562_v62 = vunpack.c.l.s8.bf16 %v321_v47 }
  0xc1   : > { %6238 = vmatprep.mubr.bf16.mxu1 %v3918_v63  ;;  %v1578_v63 = vunpack.c.l.s8.bf16 %v329_v61 }
  0xc2   : > { %12514 = vmatpush3.bf16.msra.mxu0 %v1529_v0  ;;  %v1571_v0 = vunpack.c.h.s8.bf16 %v325_v53  ;;  %v345_v53 = vld [vmem:[%s16178_s23 + $0x2c8] sm:$0xff] }
  0xc3   : > { %12536 = vmatpush3.bf16.msra.mxu1 %v1545_v1  ;;  %12515 = vmatprep.subr.bf16.mxu0 %v1538_v2  ;;  %v1587_v1 = vunpack.c.h.s8.bf16 %v333_v54  ;;  %v326_v2 = vld [vmem:[%s16178_s23 + $0x230] sm:$0xff]  ;;  %v1611_v61 = vunpack.c.h.s8.bf16 %v345_v53 }
  0xc4   : > { %12537 = vmatprep.subr.bf16.mxu1 %v1554_v3  ;;  %v1563_v3 = vunpack.c.h.s8.bf16 %v321_v47  ;;  %v350_v47 = vld [vmem:[%s16178_s23 + $0x2f0] sm:$0xff] }
  0xc6   : > { %12516 = vmatpush3.bf16.msra.mxu0 %v1530_v5  ;;  %v1572_v5 = vunpack.c.l.s8.bf16 %v326_v2 }
  0xc7   : > { %12538 = vmatpush3.bf16.msra.mxu1 %v1546_v6  ;;  %12517 = vmatprep.subr.bf16.mxu0 %v1539_v7  ;;  %v322_v6 = vld [vmem:[%s16178_s23 + $0x210] sm:$0xff]  ;;  %v1588_v7 = vunpack.c.l.s8.bf16 %v334_v55 }
  0xc8   : > { %12539 = vmatprep.subr.bf16.mxu1 %v1555_v8  ;;  %v330_v8 = vld [vmem:[%s16178_s23 + $0x250] sm:$0xff]  ;;  %v1564_v9 = vunpack.c.l.s8.bf16 %v322_v6  ;;  %v1565_v16 = vunpack.c.h.s8.bf16 %v322_v6  ;;  %v351_v6 = vld [vmem:[%s16178_s23 + $0x2f8] sm:$0xff] }
  0xc9   : > { %v1580_v10 = vunpack.c.l.s8.bf16 %v330_v8 }
  0xca   : > { %12518 = vmatpush3.bf16.msra.mxu0 %v1531_v11  ;;  %v1573_v11 = vunpack.c.h.s8.bf16 %v326_v2 }
  0xcb   : > { %12540 = vmatpush3.bf16.msra.mxu1 %v1547_v12  ;;  %12519 = vmatprep.subr.bf16.mxu0 %v1540_v13  ;;  %v1589_v12 = vunpack.c.h.s8.bf16 %v334_v55  ;;  %v327_v13 = vld [vmem:[%s16178_s23 + $0x238] sm:$0xff] }
  0xcc   : > { %12541 = vmatprep.subr.bf16.mxu1 %v1556_v15  ;;  %v3919_v15 = vcombine.high %v16293_v23, %v16293_v23  ;;  %v1575_v23 = vunpack.c.h.s8.bf16 %v327_v13 }
  0xce   : > { %12520 = vmatpush3.bf16.msra.mxu0 %v1532_v17  ;;  %v1581_v17 = vunpack.c.h.s8.bf16 %v330_v8  ;;  %v16325_v22 = vrot.slane %v3919_v15, %v16209_v37 }
  0xcf   : > { %12542 = vmatpush3.bf16.msra.mxu1 %v1548_v18  ;;  %12521 = vmatprep.subr.bf16.mxu0 %v1541_v19  ;;  %v1574_v18 = vunpack.c.l.s8.bf16 %v327_v13  ;;  %v323_v19 = vld [vmem:[%s16178_s23 + $0x218] sm:$0xff] }
  0xd0   : > { %12543 = vmatprep.subr.bf16.mxu1 %v1557_v20  ;;  %v1590_v20 = vunpack.c.l.s8.bf16 %v335_v14  ;;  %v3935_v29 = vcombine.high %v16325_v22, %v16325_v22  ;;  %v347_v13 = vld [vmem:[%s16178_s23 + $0x2d8] sm:$0xff] }
  0xd2   : > { %12522 = vmatpush3.bf16.msra.mxu0 %v1533_v24  ;;  %v1566_v24 = vunpack.c.l.s8.bf16 %v323_v19 }
  0xd3   : > { %12544 = vmatpush3.bf16.msra.mxu1 %v1549_v25  ;;  %12523 = vmatprep.subr.bf16.mxu0 %v1542_v26  ;;  %v1582_v25 = vunpack.c.l.s8.bf16 %v331_v21  ;;  %v1591_v26 = vunpack.c.h.s8.bf16 %v335_v14 }
  0xd4   : > { %12545 = vmatprep.subr.bf16.mxu1 %v1558_v28  ;;  %v348_v28 = vld [vmem:[%s16178_s23 + $0x2e0] sm:$0xff] }
  0xd5   : > { %v1616_v36 = vunpack.c.l.s8.bf16 %v348_v28  ;;  %v1617_v44 = vunpack.c.h.s8.bf16 %v348_v28 }
  0xd6   : > { %12524 = vmatpush3.bf16.msra.mxu0 %v1534_v31  ;;  %v3942_v31 = vrot.slane %v16299_v30, %v16209_v37  ;;  %v1601_v30 = vunpack.c.h.s8.bf16 %v340_v27 }
  0xd7   : > { %12546 = vmatpush3.bf16.msra.mxu1 %v1550_v32  ;;  %12525 = vmatprep.subr.bf16.mxu0 %v1543_v33  ;;  %v1567_v32 = vunpack.c.h.s8.bf16 %v323_v19  ;;  %v1583_v33 = vunpack.c.h.s8.bf16 %v331_v21  ;;  %v356_v19 = vld [vmem:[%s16178_s23 + $0x320] sm:$0xff] }
  0xd8   : > { %12547 = vmatprep.subr.bf16.mxu1 %v1559_v34  ;;  %v1600_v34 = vunpack.c.l.s8.bf16 %v340_v27  ;;  %v352_v27 = vld [vmem:[%s16178_s23 + $0x300] sm:$0xff] }
  0xda   : > { %12526 = vmatpush3.bf16.msra.mxu0 %v1535_v42  ;;  %v3964_v42 = vcombine.high %v3942_v31, %v3942_v31 }
  0xdb   : > { %12548 = vmatpush3.bf16.msra.mxu1 %v1551_v40  ;;  %12555 = vmatprep.subr.bf16.mxu0 %v1568_v43  ;;  %v1592_v40 = vunpack.c.l.s8.bf16 %v336_v35  ;;  %v1608_v43 = vunpack.c.l.s8.bf16 %v344_v38 }
  0xdc   : > { %12577 = vmatprep.subr.bf16.mxu1 %v1584_v45  ;;  %v341_v45 = vld [vmem:[%s16178_s23 + $0x2a8] sm:$0xff] }
  0xdd   : > { %6199 = vmatmul.mubr.bf16.vlgmr.msra.gmra.mrb[12].mxu0 %v3900_v41  ;;  %v3963_v41 = vrot.slane %v3935_v29, %v16209_v37  ;;  %v360_v29 = vld [vmem:[%s16178_s23 + $0x340] sm:$0xff] }
  0xde   : > { %6239 = vmatmul.mubr.bf16.vlgmr.msra.gmra.mrb[12].mxu1 %v3916_v49  ;;  %12556 = vmatpush3.bf16.msra.mxu0 %v1560_v50  ;;  %v1593_v49 = vunpack.c.h.s8.bf16 %v336_v35  ;;  %v1609_v50 = vunpack.c.h.s8.bf16 %v344_v38  ;;  %v365_v38 = vld [vmem:[%s16178_s23 + $0x368] sm:$0xff] }
  0xdf   : > { %12578 = vmatpush3.bf16.msra.mxu1 %v1576_v51  ;;  %12557 = vmatprep.subr.bf16.mxu0 %v1569_v39  ;;  %v1602_v51 = vunpack.c.l.s8.bf16 %v341_v45  ;;  %v337_v39 = vld [vmem:[%s16178_s23 + $0x288] sm:$0xff] }
  0xe0   : > { %12579 = vmatprep.subr.bf16.mxu1 %v1585_v52  ;;  %6278 = vmatprep.mubr.bf16.mxu0 %v3956_v48  ;;  %v3967_v48 = vcombine.high %v3963_v41, %v3963_v41  ;;  %v1618_v52 = vunpack.c.l.s8.bf16 %v349_v46  ;;  %v1594_v54 = vunpack.c.l.s8.bf16 %v337_v39 }
  0xe1   : > { %6318 = vmatprep.mubr.bf16.mxu1 %v3966_v56  ;;  %v1610_v56 = vunpack.c.l.s8.bf16 %v345_v53 }
  0xe2   : > { %12558 = vmatpush3.bf16.msra.mxu0 %v1561_v57  ;;  %v1603_v57 = vunpack.c.h.s8.bf16 %v341_v45  ;;  %v361_v45 = vld [vmem:[%s16178_s23 + $0x348] sm:$0xff] }
  0xe3   : > { %12580 = vmatpush3.bf16.msra.mxu1 %v1577_v58  ;;  %12559 = vmatprep.subr.bf16.mxu0 %v1570_v59  ;;  %v1619_v58 = vunpack.c.h.s8.bf16 %v349_v46  ;;  %v342_v59 = vld [vmem:[%s16178_s23 + $0x2b0] sm:$0xff]  ;;  %v1643_v53 = vunpack.c.h.s8.bf16 %v361_v45 }
  0xe4   : > { %12581 = vmatprep.subr.bf16.mxu1 %v1586_v60  ;;  %v1595_v60 = vunpack.c.h.s8.bf16 %v337_v39  ;;  %v366_v39 = vld [vmem:[%s16178_s23 + $0x370] sm:$0xff] }
  0xe6   : > { %12560 = vmatpush3.bf16.msra.mxu0 %v1562_v62  ;;  %v1604_v62 = vunpack.c.l.s8.bf16 %v342_v59 }
  0xe7   : > { %12582 = vmatpush3.bf16.msra.mxu1 %v1578_v63  ;;  %12561 = vmatprep.subr.bf16.mxu0 %v1571_v0  ;;  %v338_v63 = vld [vmem:[%s16178_s23 + $0x290] sm:$0xff]  ;;  %v1620_v0 = vunpack.c.l.s8.bf16 %v350_v47 }
  0xe8   : > { %12583 = vmatprep.subr.bf16.mxu1 %v1587_v1  ;;  %v346_v1 = vld [vmem:[%s16178_s23 + $0x2d0] sm:$0xff]  ;;  %v1596_v2 = vunpack.c.l.s8.bf16 %v338_v63  ;;  %v1597_v8 = vunpack.c.h.s8.bf16 %v338_v63  ;;  %v367_v63 = vld [vmem:[%s16178_s23 + $0x378] sm:$0xff] }
  0xe9   : > { %v1612_v55 = vunpack.c.l.s8.bf16 %v346_v1 }
  0xea   : > { %12562 = vmatpush3.bf16.msra.mxu0 %v1563_v3  ;;  %v1605_v3 = vunpack.c.h.s8.bf16 %v342_v59 }
  0xeb   : > { %12584 = vmatpush3.bf16.msra.mxu1 %v1579_v4  ;;  %12563 = vmatprep.subr.bf16.mxu0 %v1572_v5  ;;  %v1621_v4 = vunpack.c.h.s8.bf16 %v350_v47  ;;  %v343_v5 = vld [vmem:[%s16178_s23 + $0x2b8] sm:$0xff] }
  0xec   : > { %12585 = vmatprep.subr.bf16.mxu1 %v1588_v7  ;;  %v16347_v7 = vld [vmem:[%s16192_s25 + $0x18] sm:$0xff] }
  0xed   : > { %v16353_v14 = vrot.slane %v16347_v7, %v16209_v37 }
  0xee   : > { %12564 = vmatpush3.bf16.msra.mxu0 %v1564_v9  ;;  %v1613_v9 = vunpack.c.h.s8.bf16 %v346_v1 }
  0xef   : > { %12586 = vmatpush3.bf16.msra.mxu1 %v1580_v10  ;;  %12565 = vmatprep.subr.bf16.mxu0 %v1573_v11  ;;  %v1606_v10 = vunpack.c.l.s8.bf16 %v343_v5  ;;  %v339_v11 = vld [vmem:[%s16178_s23 + $0x298] sm:$0xff]  ;;  %v3983_v21 = vcombine.high %v16353_v14, %v16353_v14 }
  0xf0   : > { %12587 = vmatprep.subr.bf16.mxu1 %v1589_v12  ;;  %v1622_v12 = vunpack.c.l.s8.bf16 %v351_v6  ;;  %v1598_v15 = vunpack.c.l.s8.bf16 %v339_v11 }
  0xf2   : > { %12566 = vmatpush3.bf16.msra.mxu0 %v1565_v16  ;;  %v1614_v16 = vunpack.c.l.s8.bf16 %v347_v13 }
  0xf3   : > { %12588 = vmatpush3.bf16.msra.mxu1 %v1581_v17  ;;  %12567 = vmatprep.subr.bf16.mxu0 %v1574_v18  ;;  %v1607_v17 = vunpack.c.h.s8.bf16 %v343_v5  ;;  %v1623_v18 = vunpack.c.h.s8.bf16 %v351_v6  ;;  %v363_v5 = vld [vmem:[%s16178_s23 + $0x358] sm:$0xff] }
  0xf4   : > { %12589 = vmatprep.subr.bf16.mxu1 %v1590_v20  ;;  %v364_v20 = vld [vmem:[%s16178_s23 + $0x360] sm:$0xff] }
  0xf5   : > { %v1648_v28 = vunpack.c.l.s8.bf16 %v364_v20  ;;  %v1649_v35 = vunpack.c.h.s8.bf16 %v364_v20 }
  0xf6   : > { %12568 = vmatpush3.bf16.msra.mxu0 %v1566_v24  ;;  %v3949_v24 = vrot.slane %v16325_v22, %v16209_v37  ;;  %v1633_v22 = vunpack.c.h.s8.bf16 %v356_v19 }
  0xf7   : > { %12590 = vmatpush3.bf16.msra.mxu1 %v1582_v25  ;;  %12569 = vmatprep.subr.bf16.mxu0 %v1575_v23  ;;  %v1599_v25 = vunpack.c.h.s8.bf16 %v339_v11  ;;  %v1615_v23 = vunpack.c.h.s8.bf16 %v347_v13  ;;  %v372_v11 = vld [vmem:[%s16178_s23 + $0x3a0] sm:$0xff] }
  0xf8   : > { %12591 = vmatprep.subr.bf16.mxu1 %v1591_v26  ;;  %v1632_v26 = vunpack.c.l.s8.bf16 %v356_v19  ;;  %v368_v19 = vld [vmem:[%s16178_s23 + $0x380] sm:$0xff] }
  0xfa   : > { %12570 = vmatpush3.bf16.msra.mxu0 %v1567_v32  ;;  %v3965_v32 = vcombine.high %v3949_v24, %v3949_v24 }
  0xfb   : > { %12592 = vmatpush3.bf16.msra.mxu1 %v1583_v33  ;;  %12599 = vmatprep.subr.bf16.mxu0 %v1600_v34  ;;  %v1624_v33 = vunpack.c.l.s8.bf16 %v352_v27  ;;  %v1640_v34 = vunpack.c.l.s8.bf16 %v360_v29 }
  0xfc   : > { %12621 = vmatprep.subr.bf16.mxu1 %v1616_v36  ;;  %v357_v36 = vld [vmem:[%s16178_s23 + $0x328] sm:$0xff] }
  0xfd   : > { %6279 = vmatmul.mubr.bf16.vlgmr.msra.gmra.mrb[16].mxu0 %v3942_v31  ;;  %v4005_v31 = vrot.slane %v3983_v21, %v16209_v37  ;;  %v376_v21 = vld [vmem:[%s16178_s23 + $0x3c0] sm:$0xff] }
  0xfe   : > { %6319 = vmatmul.mubr.bf16.vlgmr.msra.gmra.mrb[16].mxu1 %v3964_v42  ;;  %12600 = vmatpush3.bf16.msra.mxu0 %v1592_v40  ;;  %v1625_v42 = vunpack.c.h.s8.bf16 %v352_v27  ;;  %v1641_v40 = vunpack.c.h.s8.bf16 %v360_v29  ;;  %v381_v29 = vld [vmem:[%s16178_s23 + $0x3e8] sm:$0xff] }
  0xff   : > { %12622 = vmatpush3.bf16.msra.mxu1 %v1608_v43  ;;  %12601 = vmatprep.subr.bf16.mxu0 %v1601_v30  ;;  %v1634_v43 = vunpack.c.l.s8.bf16 %v357_v36  ;;  %v353_v30 = vld [vmem:[%s16178_s23 + $0x308] sm:$0xff] }
 0x100   : > { %12623 = vmatprep.subr.bf16.mxu1 %v1617_v44  ;;  %6358 = vmatprep.mubr.bf16.mxu0 %v3963_v41  ;;  %v4015_v41 = vcombine.high %v4005_v31, %v4005_v31  ;;  %v1650_v44 = vunpack.c.l.s8.bf16 %v365_v38  ;;  %v1626_v46 = vunpack.c.l.s8.bf16 %v353_v30 }
 0x101   : > { %6398 = vmatprep.mubr.bf16.mxu1 %v3967_v48  ;;  %v1642_v48 = vunpack.c.l.s8.bf16 %v361_v45 }
 0x102   : > { %12602 = vmatpush3.bf16.msra.mxu0 %v1593_v49  ;;  %v1635_v49 = vunpack.c.h.s8.bf16 %v357_v36  ;;  %v377_v36 = vld [vmem:[%s16178_s23 + $0x3c8] sm:$0xff] }
 0x103   : > { %12624 = vmatpush3.bf16.msra.mxu1 %v1609_v50  ;;  %12603 = vmatprep.subr.bf16.mxu0 %v1602_v51  ;;  %v1651_v50 = vunpack.c.h.s8.bf16 %v365_v38  ;;  %v358_v51 = vld [vmem:[%s16178_s23 + $0x330] sm:$0xff]  ;;  %v1675_v45 = vunpack.c.h.s8.bf16 %v377_v36 }
 0x104   : > { %12625 = vmatprep.subr.bf16.mxu1 %v1618_v52  ;;  %v1627_v52 = vunpack.c.h.s8.bf16 %v353_v30  ;;  %v382_v30 = vld [vmem:[%s16178_s23 + $0x3f0] sm:$0xff] }
 0x106   : > { %12604 = vmatpush3.bf16.msra.mxu0 %v1594_v54  ;;  %v1636_v54 = vunpack.c.l.s8.bf16 %v358_v51 }
 0x107   : > { %12626 = vmatpush3.bf16.msra.mxu1 %v1610_v56  ;;  %12605 = vmatprep.subr.bf16.mxu0 %v1603_v57  ;;  %v354_v56 = vld [vmem:[%s16178_s23 + $0x310] sm:$0xff]  ;;  %v1652_v57 = vunpack.c.l.s8.bf16 %v366_v39 }
 0x108   : > { %12627 = vmatprep.subr.bf16.mxu1 %v1619_v58  ;;  %v362_v58 = vld [vmem:[%s16178_s23 + $0x350] sm:$0xff]  ;;  %v1628_v59 = vunpack.c.l.s8.bf16 %v354_v56  ;;  %v1629_v1 = vunpack.c.h.s8.bf16 %v354_v56  ;;  %v383_v56 = vld [vmem:[%s16178_s23 + $0x3f8] sm:$0xff] }
 0x109   : > { %v1644_v47 = vunpack.c.l.s8.bf16 %v362_v58 }
 0x10a   : > { %12606 = vmatpush3.bf16.msra.mxu0 %v1595_v60  ;;  %v1637_v60 = vunpack.c.h.s8.bf16 %v358_v51 }
 0x10b   : > { %12628 = vmatpush3.bf16.msra.mxu1 %v1611_v61  ;;  %12607 = vmatprep.subr.bf16.mxu0 %v1604_v62  ;;  %v1653_v61 = vunpack.c.h.s8.bf16 %v366_v39  ;;  %v359_v62 = vld [vmem:[%s16178_s23 + $0x338] sm:$0xff] }
 0x10c   : > { %12629 = vmatprep.subr.bf16.mxu1 %v1620_v0  ;;  %v3968_v0 = vcombine.high %v16347_v7, %v16347_v7  ;;  %v1639_v7 = vunpack.c.h.s8.bf16 %v359_v62 }
 0x10e   : > { %12608 = vmatpush3.bf16.msra.mxu0 %v1596_v2  ;;  %v1645_v2 = vunpack.c.h.s8.bf16 %v362_v58  ;;  %v16379_v6 = vrot.slane %v3968_v0, %v16209_v37 }
 0x10f   : > { %12630 = vmatpush3.bf16.msra.mxu1 %v1612_v55  ;;  %12609 = vmatprep.subr.bf16.mxu0 %v1605_v3  ;;  %v1638_v55 = vunpack.c.l.s8.bf16 %v359_v62  ;;  %v355_v3 = vld [vmem:[%s16178_s23 + $0x318] sm:$0xff] }
 0x110   : > { %12631 = vmatprep.subr.bf16.mxu1 %v1621_v4  ;;  %v1654_v4 = vunpack.c.l.s8.bf16 %v367_v63  ;;  %v3984_v13 = vcombine.high %v16379_v6, %v16379_v6  ;;  %v379_v62 = vld [vmem:[%s16178_s23 + $0x3d8] sm:$0xff] }
 0x112   : > { %12610 = vmatpush3.bf16.msra.mxu0 %v1597_v8  ;;  %v1630_v8 = vunpack.c.l.s8.bf16 %v355_v3 }
 0x113   : > { %12632 = vmatpush3.bf16.msra.mxu1 %v1613_v9  ;;  %12611 = vmatprep.subr.bf16.mxu0 %v1606_v10  ;;  %v1646_v9 = vunpack.c.l.s8.bf16 %v363_v5  ;;  %v1655_v10 = vunpack.c.h.s8.bf16 %v367_v63 }
 0x114   : > { %12633 = vmatprep.subr.bf16.mxu1 %v1622_v12  ;;  %v380_v12 = vld [vmem:[%s16178_s23 + $0x3e0] sm:$0xff] }
 0x115   : > { %v1680_v20 = vunpack.c.l.s8.bf16 %v380_v12  ;;  %v1681_v27 = vunpack.c.h.s8.bf16 %v380_v12  ;;  %v1687_v12 = vunpack.c.h.s8.bf16 %v383_v56 }
 0x116   : > { %12612 = vmatpush3.bf16.msra.mxu0 %v1598_v15  ;;  %v3991_v15 = vrot.slane %v16353_v14, %v16209_v37  ;;  %v1665_v14 = vunpack.c.h.s8.bf16 %v372_v11 }
 0x117   : > { %12634 = vmatpush3.bf16.msra.mxu1 %v1614_v16  ;;  %12613 = vmatprep.subr.bf16.mxu0 %v1607_v17  ;;  %v1631_v16 = vunpack.c.h.s8.bf16 %v355_v3  ;;  %v1647_v17 = vunpack.c.h.s8.bf16 %v363_v5 }
 0x118   : > { %12635 = vmatprep.subr.bf16.mxu1 %v1623_v18  ;;  %v1664_v18 = vunpack.c.l.s8.bf16 %v372_v11 }
 0x11a   : > { %12614 = vmatpush3.bf16.msra.mxu0 %v1599_v25  ;;  %v4013_v25 = vcombine.high %v3991_v15, %v3991_v15 }
 0x11b   : > { %12636 = vmatpush3.bf16.msra.mxu1 %v1615_v23  ;;  %12643 = vmatprep.subr.bf16.mxu0 %v1632_v26  ;;  %v1656_v23 = vunpack.c.l.s8.bf16 %v368_v19  ;;  %v1672_v26 = vunpack.c.l.s8.bf16 %v376_v21 }
 0x11c   : > { %12665 = vmatprep.subr.bf16.mxu1 %v1648_v28  ;;  %v373_v28 = vld [vmem:[%s16178_s23 + $0x3a8] sm:$0xff] }
 0x11d   : > { %6359 = vmatmul.mubr.bf16.vlgmr.msra.gmra.mrb[20].mxu0 %v3949_v24  ;;  %v4012_v24 = vrot.slane %v3984_v13, %v16209_v37 }
 0x11e   : > { %6399 = vmatmul.mubr.bf16.vlgmr.msra.gmra.mrb[20].mxu1 %v3965_v32  ;;  %12644 = vmatpush3.bf16.msra.mxu0 %v1624_v33  ;;  %v1657_v32 = vunpack.c.h.s8.bf16 %v368_v19  ;;  %v1673_v33 = vunpack.c.h.s8.bf16 %v376_v21  ;;  %v3998_v19 = vrot.slane %v16379_v6, %v16209_v37  ;;  %v1679_v21 = vunpack.c.h.s8.bf16 %v379_v62 }
 0x11f   : > { %12666 = vmatpush3.bf16.msra.mxu1 %v1640_v34  ;;  %12645 = vmatprep.subr.bf16.mxu0 %v1633_v22  ;;  %v1666_v34 = vunpack.c.l.s8.bf16 %v373_v28  ;;  %v369_v22 = vld [vmem:[%s16178_s23 + $0x388] sm:$0xff] }
 0x120   : > { %12667 = vmatprep.subr.bf16.mxu1 %v1649_v35  ;;  %6438 = vmatprep.mubr.bf16.mxu0 %v4005_v31  ;;  %v4016_v31 = vcombine.high %v4012_v24, %v4012_v24  ;;  %v1682_v35 = vunpack.c.l.s8.bf16 %v381_v29  ;;  %v1658_v38 = vunpack.c.l.s8.bf16 %v369_v22 }
 0x121   : > { %6478 = vmatprep.mubr.bf16.mxu1 %v4015_v41  ;;  %v1674_v41 = vunpack.c.l.s8.bf16 %v377_v36 }
 0x122   : > { %12646 = vmatpush3.bf16.msra.mxu0 %v1625_v42  ;;  %v1667_v42 = vunpack.c.h.s8.bf16 %v373_v28 }
 0x123   : > { %12668 = vmatpush3.bf16.msra.mxu1 %v1641_v40  ;;  %12647 = vmatprep.subr.bf16.mxu0 %v1634_v43  ;;  %v1683_v40 = vunpack.c.h.s8.bf16 %v381_v29  ;;  %v374_v43 = vld [vmem:[%s16178_s23 + $0x3b0] sm:$0xff] }
 0x124   : > { %12669 = vmatprep.subr.bf16.mxu1 %v1650_v44  ;;  %v1659_v44 = vunpack.c.h.s8.bf16 %v369_v22 }
 0x126   : > { %12648 = vmatpush3.bf16.msra.mxu0 %v1626_v46  ;;  %v1668_v46 = vunpack.c.l.s8.bf16 %v374_v43 }
 0x127   : > { %12670 = vmatpush3.bf16.msra.mxu1 %v1642_v48  ;;  %12649 = vmatprep.subr.bf16.mxu0 %v1635_v49  ;;  %v370_v48 = vld [vmem:[%s16178_s23 + $0x390] sm:$0xff]  ;;  %v1684_v49 = vunpack.c.l.s8.bf16 %v382_v30 }
 0x128   : > { %12671 = vmatprep.subr.bf16.mxu1 %v1651_v50  ;;  %v378_v50 = vld [vmem:[%s16178_s23 + $0x3d0] sm:$0xff]  ;;  %v1660_v51 = vunpack.c.l.s8.bf16 %v370_v48  ;;  %v1661_v58 = vunpack.c.h.s8.bf16 %v370_v48 }
 0x129   : > { %v1676_v39 = vunpack.c.l.s8.bf16 %v378_v50 }
 0x12a   : > { %12650 = vmatpush3.bf16.msra.mxu0 %v1627_v52  ;;  %v1669_v52 = vunpack.c.h.s8.bf16 %v374_v43 }
 0x12b   : > { %12672 = vmatpush3.bf16.msra.mxu1 %v1643_v53  ;;  %12651 = vmatprep.subr.bf16.mxu0 %v1636_v54  ;;  %v1685_v53 = vunpack.c.h.s8.bf16 %v382_v30  ;;  %v375_v54 = vld [vmem:[%s16178_s23 + $0x3b8] sm:$0xff] }
 0x12c   : > { %12673 = vmatprep.subr.bf16.mxu1 %v1652_v57  ;;  %v16401_v57 = vld [vmem:[%s16192_s25 + $0x20] sm:$0xff]  ;;  %v1671_v11 = vunpack.c.h.s8.bf16 %v375_v54 }
 0x12e   : > { %12652 = vmatpush3.bf16.msra.mxu0 %v1628_v59  ;;  %v1677_v59 = vunpack.c.h.s8.bf16 %v378_v50 }
 0x12f   : > { %12674 = vmatpush3.bf16.msra.mxu1 %v1644_v47  ;;  %12653 = vmatprep.subr.bf16.mxu0 %v1637_v60  ;;  %v1670_v47 = vunpack.c.l.s8.bf16 %v375_v54  ;;  %v371_v60 = vld [vmem:[%s16178_s23 + $0x398] sm:$0xff] }
 0x130   : > { %12675 = vmatprep.subr.bf16.mxu1 %v1653_v61  ;;  %v1686_v61 = vunpack.c.l.s8.bf16 %v383_v56 }
 0x132   : > { %12654 = vmatpush3.bf16.msra.mxu0 %v1629_v1  ;;  %v16407_v1 = vrot.slane %v16401_v57, %v16209_v37 }
 0x133   : > { %12676 = vmatpush3.bf16.msra.mxu1 %v1645_v2  ;;  %12655 = vmatprep.subr.bf16.mxu0 %v1638_v55 }
 0x134   : > { %12677 = vmatprep.subr.bf16.mxu1 %v1654_v4 }
 0x136   : > { %12656 = vmatpush3.bf16.msra.mxu0 %v1630_v8  ;;  %v1662_v8 = vunpack.c.l.s8.bf16 %v371_v60 }
 0x137   : > { %12678 = vmatpush3.bf16.msra.mxu1 %v1646_v9  ;;  %12657 = vmatprep.subr.bf16.mxu0 %v1639_v7  ;;  %v1678_v9 = vunpack.c.l.s8.bf16 %v379_v62 }
 0x138   : > { %12679 = vmatprep.subr.bf16.mxu1 %v1655_v10 }
 0x13a   : > { %12658 = vmatpush3.bf16.msra.mxu0 %v1631_v16  ;;  %v388_v16 = vld [vmem:[%s16178_s23 + $0x420] sm:$0xff] }
 0x13b   : > { %12680 = vmatpush3.bf16.msra.mxu1 %v1647_v17  ;;  %12687 = vmatprep.subr.bf16.mxu0 %v1664_v18  ;;  %v396_v17 = vld [vmem:[%s16178_s23 + $0x460] sm:$0xff]  ;;  %v4032_v18 = vcombine.high %v16407_v1, %v16407_v1  ;;  %v1697_v6 = vunpack.c.h.s8.bf16 %v388_v16 }
 0x13c   : > { %12709 = vmatprep.subr.bf16.mxu1 %v1680_v20  ;;  %v1663_v20 = vunpack.c.h.s8.bf16 %v371_v60  ;;  %v4017_v60 = vcombine.high %v16401_v57, %v16401_v57 }
 0x13d   : > { %6439 = vmatmul.mubr.bf16.vlgmr.msra.gmra.mrb[24].mxu0 %v3991_v15 }
 0x13e   : > { %6479 = vmatmul.mubr.bf16.vlgmr.msra.gmra.mrb[24].mxu1 %v4013_v25  ;;  %12688 = vmatpush3.bf16.msra.mxu0 %v1656_v23  ;;  %v384_v25 = vld [vmem:[%s16178_s23 + $0x400] sm:$0xff]  ;;  %v1712_v23 = vunpack.c.l.s8.bf16 %v396_v17 }
 0x13f   : > { %12710 = vmatpush3.bf16.msra.mxu1 %v1672_v26  ;;  %12689 = vmatprep.subr.bf16.mxu0 %v1665_v14  ;;  %v392_v26 = vld [vmem:[%s16178_s23 + $0x440] sm:$0xff]  ;;  %v4054_v14 = vrot.slane %v4032_v18, %v16209_v37  ;;  %v1688_v28 = vunpack.c.l.s8.bf16 %v384_v25  ;;  %v1689_v22 = vunpack.c.h.s8.bf16 %v384_v25 }
 0x140   : > { %12711 = vmatprep.subr.bf16.mxu1 %v1681_v27  ;;  %6518 = vmatprep.mubr.bf16.mxu0 %v4012_v24  ;;  %v1696_v24 = vunpack.c.l.s8.bf16 %v388_v16  ;;  %v4014_v27 = vcombine.high %v3998_v19, %v3998_v19  ;;  %v1704_v29 = vunpack.c.l.s8.bf16 %v392_v26 }
 0x141   : > { %6558 = vmatprep.mubr.bf16.mxu1 %v4016_v31  ;;  %v1713_v31 = vunpack.c.h.s8.bf16 %v396_v17 }
 0x142   : > { %12690 = vmatpush3.bf16.msra.mxu0 %v1657_v32  ;;  %v389_v32 = vld [vmem:[%s16178_s23 + $0x428] sm:$0xff] }
 0x143   : > { %12712 = vmatpush3.bf16.msra.mxu1 %v1673_v33  ;;  %12691 = vmatprep.subr.bf16.mxu0 %v1666_v34  ;;  %v397_v33 = vld [vmem:[%s16178_s23 + $0x468] sm:$0xff]  ;;  %v4064_v34 = vcombine.high %v4054_v14, %v4054_v14  ;;  %v1698_v36 = vunpack.c.l.s8.bf16 %v389_v32  ;;  %v1699_v30 = vunpack.c.h.s8.bf16 %v389_v32 }
 0x144   : > { %12713 = vmatprep.subr.bf16.mxu1 %v1682_v35  ;;  %v1705_v35 = vunpack.c.h.s8.bf16 %v392_v26 }
 0x146   : > { %12692 = vmatpush3.bf16.msra.mxu0 %v1658_v38  ;;  %v385_v38 = vld [vmem:[%s16178_s23 + $0x408] sm:$0xff] }
 0x147   : > { %12714 = vmatpush3.bf16.msra.mxu1 %v1674_v41  ;;  %12693 = vmatprep.subr.bf16.mxu0 %v1667_v42  ;;  %v1714_v41 = vunpack.c.l.s8.bf16 %v397_v33  ;;  %v393_v42 = vld [vmem:[%s16178_s23 + $0x448] sm:$0xff]  ;;  %v1691_v48 = vunpack.c.h.s8.bf16 %v385_v38 }
 0x148   : > { %12715 = vmatprep.subr.bf16.mxu1 %v1683_v40  ;;  %v1690_v40 = vunpack.c.l.s8.bf16 %v385_v38  ;;  %v1706_v43 = vunpack.c.l.s8.bf16 %v393_v42 }
 0x14a   : > { %12694 = vmatpush3.bf16.msra.mxu0 %v1659_v44  ;;  %v1715_v44 = vunpack.c.h.s8.bf16 %v397_v33 }
 0x14b   : > { %12716 = vmatpush3.bf16.msra.mxu1 %v1675_v45  ;;  %12695 = vmatprep.subr.bf16.mxu0 %v1668_v46  ;;  %v390_v45 = vld [vmem:[%s16178_s23 + $0x430] sm:$0xff] }
 0x14c   : > { %12717 = vmatprep.subr.bf16.mxu1 %v1684_v49  ;;  %v398_v46 = vld [vmem:[%s16178_s23 + $0x470] sm:$0xff]  ;;  %v1707_v49 = vunpack.c.h.s8.bf16 %v393_v42  ;;  %v1700_v50 = vunpack.c.l.s8.bf16 %v390_v45  ;;  %v1701_v56 = vunpack.c.h.s8.bf16 %v390_v45 }
 0x14e   : > { %12696 = vmatpush3.bf16.msra.mxu0 %v1660_v51  ;;  %v386_v51 = vld [vmem:[%s16178_s23 + $0x410] sm:$0xff] }
 0x14f   : > { %12718 = vmatpush3.bf16.msra.mxu1 %v1676_v39  ;;  %12697 = vmatprep.subr.bf16.mxu0 %v1669_v52  ;;  %v1716_v39 = vunpack.c.l.s8.bf16 %v398_v46  ;;  %v394_v52 = vld [vmem:[%s16178_s23 + $0x450] sm:$0xff] }
 0x150   : > { %12719 = vmatprep.subr.bf16.mxu1 %v1685_v53  ;;  %v12395_v63 = vpop.f32.mrb[0].mxu0  ;;  %v1692_v53 = vunpack.c.l.s8.bf16 %v386_v51  ;;  %v1708_v54 = vunpack.c.l.s8.bf16 %v394_v52  ;;  %v1709_v62 = vunpack.c.h.s8.bf16 %v394_v52 }
 0x151   : > { %v12417_v0 = vpop.f32.mrb[0].mxu1  ;;  %v12396_v2 = vpop.f32.mrb[1].mxu0 }
 0x152   : > { %v12418_v55 = vpop.f32.mrb[1].mxu1  ;;  %v12397_v3 = vadd.f32 %v12396_v2, %v12395_v63  ;;  %v12398_v5 = vpop.f32.mrb[2].mxu0  ;;  %12698 = vmatpush3.bf16.msra.mxu0 %v1661_v58  ;;  %v1717_v58 = vunpack.c.h.s8.bf16 %v398_v46 }
 0x153   : > { %v12419_v4 = vadd.f32 %v12418_v55, %v12417_v0  ;;  %12720 = vmatpush3.bf16.msra.mxu1 %v1677_v59  ;;  %v12420_v7 = vpop.f32.mrb[2].mxu1  ;;  %v12399_v10 = vpop.f32.mrb[3].mxu0  ;;  %12699 = vmatprep.subr.bf16.mxu0 %v1670_v47  ;;  %v391_v59 = vld [vmem:[%s16178_s23 + $0x438] sm:$0xff]  ;;  %v16435_v5 = vrot.slane %v4017_v60, %v16209_v37 }
 0x154   : > { %12721 = vmatprep.subr.bf16.mxu1 %v1686_v61  ;;  %v12421_v13 = vpop.f32.mrb[3].mxu1  ;;  %v399_v47 = vld [vmem:[%s16178_s23 + $0x478] sm:$0xff]  ;;  %v1693_v61 = vunpack.c.h.s8.bf16 %v386_v51  ;;  %v1702_v63 = vunpack.c.l.s8.bf16 %v391_v59  ;;  %v1703_v17 = vunpack.c.h.s8.bf16 %v391_v59  ;;  %v414_v51 = vld [vmem:[%s16178_s23 + $0x4f0] sm:$0xff] }
 0x155   : > { %v16409_v15 = vadd.f32 %v12419_v4, %v12397_v3  ;;  %v387_v0 = vld [vmem:[%s16178_s23 + $0x418] sm:$0xff]  ;;  %v1718_v2 = vunpack.c.l.s8.bf16 %v399_v47  ;;  %v1719_v18 = vunpack.c.h.s8.bf16 %v399_v47  ;;  %v4033_v25 = vcombine.high %v16435_v5, %v16435_v5 }
 0x156   : > { %12700 = vmatpush3.bf16.msra.mxu0 %v1662_v8  ;;  %v395_v55 = vld [vmem:[%s16178_s23 + $0x458] sm:$0xff] }
 0x157   : > { %12722 = vmatpush3.bf16.msra.mxu1 %v1678_v9  ;;  %12701 = vmatprep.subr.bf16.mxu0 %v1671_v11  ;;  %v1694_v11 = vunpack.c.l.s8.bf16 %v387_v0 }
 0x158   : > { %12723 = vmatprep.subr.bf16.mxu1 %v1687_v12  ;;  %v1710_v12 = vunpack.c.l.s8.bf16 %v395_v55 }
 0x15a   : > { %12702 = vmatpush3.bf16.msra.mxu0 %v1663_v20 }
 0x15b   : > { %12724 = vmatpush3.bf16.msra.mxu1 %v1679_v21  ;;  %12731 = vmatprep.subr.bf16.mxu0 %v1696_v24  ;;  %v404_v21 = vld [vmem:[%s16178_s23 + $0x4a0] sm:$0xff] }
 0x15c   : > { %12753 = vmatprep.subr.bf16.mxu1 %v1712_v23  ;;  %v412_v24 = vld [vmem:[%s16178_s23 + $0x4e0] sm:$0xff]  ;;  %v4040_v23 = vrot.slane %v16407_v1, %v16209_v37 }
 0x15d   : > { %6519 = vmatmul.mubr.bf16.vlgmr.msra.gmra.mrb[28].mxu0 %v3998_v19 }
 0x15e   : > { %6559 = vmatmul.mubr.bf16.vlgmr.msra.gmra.mrb[28].mxu1 %v4014_v27  ;;  %12732 = vmatpush3.bf16.msra.mxu0 %v1688_v28  ;;  %v1711_v27 = vunpack.c.h.s8.bf16 %v395_v55  ;;  %v1728_v28 = vunpack.c.l.s8.bf16 %v404_v21  ;;  %v4062_v32 = vcombine.high %v4040_v23, %v4040_v23 }
 0x15f   : > { %12754 = vmatpush3.bf16.msra.mxu1 %v1704_v29  ;;  %12733 = vmatprep.subr.bf16.mxu0 %v1697_v6  ;;  %v1744_v29 = vunpack.c.l.s8.bf16 %v412_v24  ;;  %v408_v6 = vld [vmem:[%s16178_s23 + $0x4c0] sm:$0xff] }
 0x160   : > { %12755 = vmatprep.subr.bf16.mxu1 %v1713_v31  ;;  %6598 = vmatprep.mubr.bf16.mxu0 %v4054_v14  ;;  %v1695_v14 = vunpack.c.h.s8.bf16 %v387_v0  ;;  %v4061_v31 = vrot.slane %v4033_v25, %v16209_v37  ;;  %v1736_v33 = vunpack.c.l.s8.bf16 %v408_v6  ;;  %v1737_v42 = vunpack.c.h.s8.bf16 %v408_v6  ;;  %v16460_v0 = vld [vmem:[%s16192_s25 + $0x28] sm:$0xff] }
 0x161   : > { %6638 = vmatprep.mubr.bf16.mxu1 %v4064_v34  ;;  %v1729_v34 = vunpack.c.h.s8.bf16 %v404_v21 }
 0x162   : > { %12734 = vmatpush3.bf16.msra.mxu0 %v1689_v22  ;;  %v1745_v22 = vunpack.c.h.s8.bf16 %v412_v24  ;;  %v4065_v38 = vcombine.high %v4061_v31, %v4061_v31 }
 0x163   : > { %12756 = vmatpush3.bf16.msra.mxu1 %v1705_v35  ;;  %12735 = vmatprep.subr.bf16.mxu0 %v1698_v36  ;;  %v405_v35 = vld [vmem:[%s16178_s23 + $0x4a8] sm:$0xff] }
 0x164   : > { %12757 = vmatprep.subr.bf16.mxu1 %v1714_v41  ;;  %v413_v36 = vld [vmem:[%s16178_s23 + $0x4e8] sm:$0xff] }
 0x166   : > { %12736 = vmatpush3.bf16.msra.mxu0 %v1690_v40  ;;  %v1730_v40 = vunpack.c.l.s8.bf16 %v405_v35 }
 0x167   : > { %12758 = vmatpush3.bf16.msra.mxu1 %v1706_v43  ;;  %12737 = vmatprep.subr.bf16.mxu0 %v1699_v30  ;;  %v401_v43 = vld [vmem:[%s16178_s23 + $0x488] sm:$0xff]  ;;  %v1746_v30 = vunpack.c.l.s8.bf16 %v413_v36 }
 0x168   : > { %12759 = vmatprep.subr.bf16.mxu1 %v1715_v44  ;;  %v409_v44 = vld [vmem:[%s16178_s23 + $0x4c8] sm:$0xff]  ;;  %v1722_v45 = vunpack.c.l.s8.bf16 %v401_v43 }
 0x169   : > { %v1738_v46 = vunpack.c.l.s8.bf16 %v409_v44  ;;  %v1739_v52 = vunpack.c.h.s8.bf16 %v409_v44 }
 0x16a   : > { %12738 = vmatpush3.bf16.msra.mxu0 %v1691_v48  ;;  %v1731_v48 = vunpack.c.h.s8.bf16 %v405_v35 }
 0x16b   : > { %12760 = vmatpush3.bf16.msra.mxu1 %v1707_v49  ;;  %12739 = vmatprep.subr.bf16.mxu0 %v1700_v50  ;;  %v1747_v49 = vunpack.c.h.s8.bf16 %v413_v36  ;;  %v406_v50 = vld [vmem:[%s16178_s23 + $0x4b0] sm:$0xff] }
 0x16c   : > { %12761 = vmatprep.subr.bf16.mxu1 %v1716_v39  ;;  %v1723_v39 = vunpack.c.h.s8.bf16 %v401_v43  ;;  %v1733_v60 = vunpack.c.h.s8.bf16 %v406_v50 }
 0x16e   : > { %12740 = vmatpush3.bf16.msra.mxu0 %v1692_v53  ;;  %v1732_v53 = vunpack.c.l.s8.bf16 %v406_v50 }
 0x16f   : > { %12762 = vmatpush3.bf16.msra.mxu1 %v1708_v54  ;;  %12741 = vmatprep.subr.bf16.mxu0 %v1701_v56  ;;  %v402_v54 = vld [vmem:[%s16178_s23 + $0x490] sm:$0xff]  ;;  %v1748_v56 = vunpack.c.l.s8.bf16 %v414_v51 }
 0x170   : > { %12763 = vmatprep.subr.bf16.mxu1 %v1717_v58  ;;  %v12439_v3 = vpop.f32.mrb[4].mxu0  ;;  %v410_v58 = vld [vmem:[%s16178_s23 + $0x4d0] sm:$0xff]  ;;  %v1724_v59 = vunpack.c.l.s8.bf16 %v402_v54 }
 0x171   : > { %v12461_v4 = vpop.f32.mrb[4].mxu1  ;;  %v12440_v8 = vpop.f32.mrb[5].mxu0  ;;  %v1740_v47 = vunpack.c.l.s8.bf16 %v410_v58  ;;  %v1741_v55 = vunpack.c.h.s8.bf16 %v410_v58 }
 0x172   : > { %v12462_v9 = vpop.f32.mrb[5].mxu1  ;;  %v12441_v7 = vadd.f32 %v12440_v8, %v12439_v3  ;;  %v12442_v57 = vpop.f32.mrb[6].mxu0  ;;  %12742 = vmatpush3.bf16.msra.mxu0 %v1693_v61  ;;  %v1749_v61 = vunpack.c.h.s8.bf16 %v414_v51 }
 0x173   : > { %v12463_v10 = vadd.f32 %v12462_v9, %v12461_v4  ;;  %12764 = vmatpush3.bf16.msra.mxu1 %v1709_v62  ;;  %v12464_v13 = vpop.f32.mrb[6].mxu1  ;;  %v12443_v16 = vpop.f32.mrb[7].mxu0  ;;  %12743 = vmatprep.subr.bf16.mxu0 %v1702_v63  ;;  %v407_v62 = vld [vmem:[%s16178_s23 + $0x4b8] sm:$0xff] }
 0x174   : > { %12765 = vmatprep.subr.bf16.mxu1 %v1718_v2  ;;  %v12465_v19 = vpop.f32.mrb[7].mxu1  ;;  %v6041_v20 = vadd.f32 %v12441_v7, %v16409_v15  ;;  %v400_v15 = vld [vmem:[%s16178_s23 + $0x480] sm:$0xff]  ;;  %v415_v63 = vld [vmem:[%s16178_s23 + $0x4f8] sm:$0xff]  ;;  %v1725_v2 = vunpack.c.h.s8.bf16 %v402_v54  ;;  %v1734_v3 = vunpack.c.l.s8.bf16 %v407_v62  ;;  %v1735_v24 = vunpack.c.h.s8.bf16 %v407_v62  ;;  %v430_v54 = vld [vmem:[%s16178_s23 + $0x570] sm:$0xff] }
 0x175   : > { %v1720_v1 = vunpack.c.l.s8.bf16 %v400_v15  ;;  %v1721_v41 = vunpack.c.h.s8.bf16 %v400_v15  ;;  %v403_v4 = vld [vmem:[%s16178_s23 + $0x498] sm:$0xff]  ;;  %v1750_v8 = vunpack.c.l.s8.bf16 %v415_v63  ;;  %v1751_v25 = vunpack.c.h.s8.bf16 %v415_v63 }
 0x176   : > { %v16444_v26 = vadd.f32 %v12463_v10, %v6041_v20  ;;  %12744 = vmatpush3.bf16.msra.mxu0 %v1694_v11  ;;  %v411_v9 = vld [vmem:[%s16178_s23 + $0x4d8] sm:$0xff]  ;;  %v16466_v10 = vrot.slane %v16460_v0, %v16209_v37 }
 0x177   : > { %12766 = vmatpush3.bf16.msra.mxu1 %v1710_v12  ;;  %12745 = vmatprep.subr.bf16.mxu0 %v1703_v17  ;;  %v1742_v19 = vunpack.c.l.s8.bf16 %v411_v9 }
 0x178   : > { %12767 = vmatprep.subr.bf16.mxu1 %v1719_v18  ;;  %v1726_v18 = vunpack.c.l.s8.bf16 %v403_v4  ;;  %v4081_v15 = vcombine.high %v16466_v10, %v16466_v10 }
 0x17a   : > { %12746 = vmatpush3.bf16.msra.mxu0 %v1695_v14 }
 0x17b   : > { %12768 = vmatpush3.bf16.msra.mxu1 %v1711_v27  ;;  %12775 = vmatprep.subr.bf16.mxu0 %v1728_v28  ;;  %v420_v27 = vld [vmem:[%s16178_s23 + $0x520] sm:$0xff] }
 0x17c   : > { %12797 = vmatprep.subr.bf16.mxu1 %v1744_v29  ;;  %v428_v28 = vld [vmem:[%s16178_s23 + $0x560] sm:$0xff]  ;;  %v4047_v29 = vrot.slane %v16435_v5, %v16209_v37 }
 0x17d   : > { %6599 = vmatmul.mubr.bf16.vlgmr.msra.gmra.mrb[32].mxu0 %v4040_v23 }
 0x17e   : > { %6639 = vmatmul.mubr.bf16.vlgmr.msra.gmra.mrb[32].mxu1 %v4062_v32  ;;  %12776 = vmatpush3.bf16.msra.mxu0 %v1720_v1  ;;  %v1743_v32 = vunpack.c.h.s8.bf16 %v411_v9  ;;  %v1760_v1 = vunpack.c.l.s8.bf16 %v420_v27  ;;  %v4063_v35 = vcombine.high %v4047_v29, %v4047_v29 }
 0x17f   : > { %12798 = vmatpush3.bf16.msra.mxu1 %v1736_v33  ;;  %12777 = vmatprep.subr.bf16.mxu0 %v1729_v34  ;;  %v1776_v33 = vunpack.c.l.s8.bf16 %v428_v28  ;;  %v424_v34 = vld [vmem:[%s16178_s23 + $0x540] sm:$0xff] }
 0x180   : > { %12799 = vmatprep.subr.bf16.mxu1 %v1745_v22  ;;  %6678 = vmatprep.mubr.bf16.mxu0 %v4061_v31  ;;  %v1727_v31 = vunpack.c.h.s8.bf16 %v403_v4  ;;  %v4103_v22 = vrot.slane %v4081_v15, %v16209_v37  ;;  %v1768_v36 = vunpack.c.l.s8.bf16 %v424_v34  ;;  %v1769_v44 = vunpack.c.h.s8.bf16 %v424_v34  ;;  %v431_v4 = vld [vmem:[%s16178_s23 + $0x578] sm:$0xff] }
 0x181   : > { %6718 = vmatprep.mubr.bf16.mxu1 %v4065_v38  ;;  %v1761_v38 = vunpack.c.h.s8.bf16 %v420_v27  ;;  %v1783_v15 = vunpack.c.h.s8.bf16 %v431_v4 }
 0x182   : > { %12778 = vmatpush3.bf16.msra.mxu0 %v1721_v41  ;;  %v1777_v41 = vunpack.c.h.s8.bf16 %v428_v28  ;;  %v4113_v43 = vcombine.high %v4103_v22, %v4103_v22 }
 0x183   : > { %12800 = vmatpush3.bf16.msra.mxu1 %v1737_v42  ;;  %12779 = vmatprep.subr.bf16.mxu0 %v1730_v40  ;;  %v421_v42 = vld [vmem:[%s16178_s23 + $0x528] sm:$0xff] }
 0x184   : > { %12801 = vmatprep.subr.bf16.mxu1 %v1746_v30  ;;  %v429_v40 = vld [vmem:[%s16178_s23 + $0x568] sm:$0xff] }
 0x186   : > { %12780 = vmatpush3.bf16.msra.mxu0 %v1722_v45  ;;  %v1762_v45 = vunpack.c.l.s8.bf16 %v421_v42 }
 0x187   : > { %12802 = vmatpush3.bf16.msra.mxu1 %v1738_v46  ;;  %12781 = vmatprep.subr.bf16.mxu0 %v1731_v48  ;;  %v417_v46 = vld [vmem:[%s16178_s23 + $0x508] sm:$0xff]  ;;  %v1778_v48 = vunpack.c.l.s8.bf16 %v429_v40 }
 0x188   : > { %12803 = vmatprep.subr.bf16.mxu1 %v1747_v49  ;;  %v425_v49 = vld [vmem:[%s16178_s23 + $0x548] sm:$0xff]  ;;  %v1754_v50 = vunpack.c.l.s8.bf16 %v417_v46 }
 0x189   : > { %v1770_v51 = vunpack.c.l.s8.bf16 %v425_v49  ;;  %v1771_v58 = vunpack.c.h.s8.bf16 %v425_v49 }
 0x18a   : > { %12782 = vmatpush3.bf16.msra.mxu0 %v1723_v39  ;;  %v1763_v39 = vunpack.c.h.s8.bf16 %v421_v42 }
 0x18b   : > { %12804 = vmatpush3.bf16.msra.mxu1 %v1739_v52  ;;  %12783 = vmatprep.subr.bf16.mxu0 %v1732_v53  ;;  %v1779_v52 = vunpack.c.h.s8.bf16 %v429_v40  ;;  %v422_v53 = vld [vmem:[%s16178_s23 + $0x530] sm:$0xff] }
 0x18c   : > { %12805 = vmatprep.subr.bf16.mxu1 %v1748_v56  ;;  %v1755_v56 = vunpack.c.h.s8.bf16 %v417_v46 }
 0x18e   : > { %12784 = vmatpush3.bf16.msra.mxu0 %v1724_v59  ;;  %v1764_v59 = vunpack.c.l.s8.bf16 %v422_v53 }
 0x18f   : > { %12806 = vmatpush3.bf16.msra.mxu1 %v1740_v47  ;;  %12785 = vmatprep.subr.bf16.mxu0 %v1733_v60  ;;  %v418_v47 = vld [vmem:[%s16178_s23 + $0x510] sm:$0xff]  ;;  %v1780_v60 = vunpack.c.l.s8.bf16 %v430_v54 }
 0x190   : > { %12807 = vmatprep.subr.bf16.mxu1 %v1749_v61  ;;  %v12483_v7 = vpop.f32.mrb[8].mxu0  ;;  %v426_v61 = vld [vmem:[%s16178_s23 + $0x550] sm:$0xff]  ;;  %v1756_v62 = vunpack.c.l.s8.bf16 %v418_v47  ;;  %v1757_v9 = vunpack.c.h.s8.bf16 %v418_v47 }
 0x191   : > { %v12505_v57 = vpop.f32.mrb[8].mxu1  ;;  %v12484_v11 = vpop.f32.mrb[9].mxu0  ;;  %v1772_v63 = vunpack.c.l.s8.bf16 %v426_v61  ;;  %v446_v47 = vld [vmem:[%s16178_s23 + $0x5f0] sm:$0xff] }
 0x192   : > { %v12506_v12 = vpop.f32.mrb[9].mxu1  ;;  %v12485_v13 = vadd.f32 %v12484_v11, %v12483_v7  ;;  %v12486_v16 = vpop.f32.mrb[10].mxu0  ;;  %12786 = vmatpush3.bf16.msra.mxu0 %v1725_v2  ;;  %v1765_v2 = vunpack.c.h.s8.bf16 %v422_v53  ;;  %v1773_v7 = vunpack.c.h.s8.bf16 %v426_v61  ;;  %v419_v11 = vld [vmem:[%s16178_s23 + $0x518] sm:$0xff] }
 0x193   : > { %v12507_v17 = vadd.f32 %v12506_v12, %v12505_v57  ;;  %12808 = vmatpush3.bf16.msra.mxu1 %v1741_v55  ;;  %v12508_v20 = vpop.f32.mrb[10].mxu1  ;;  %v12487_v21 = vpop.f32.mrb[11].mxu0  ;;  %12787 = vmatprep.subr.bf16.mxu0 %v1734_v3  ;;  %v1781_v55 = vunpack.c.h.s8.bf16 %v430_v54  ;;  %v423_v3 = vld [vmem:[%s16178_s23 + $0x538] sm:$0xff]  ;;  %v1782_v12 = vunpack.c.l.s8.bf16 %v431_v4 }
 0x194   : > { %12809 = vmatprep.subr.bf16.mxu1 %v1750_v8  ;;  %v12509_v23 = vpop.f32.mrb[11].mxu1  ;;  %v6121_v14 = vadd.f32 %v12485_v13, %v16444_v26  ;;  %v416_v26 = vld [vmem:[%s16178_s23 + $0x500] sm:$0xff]  ;;  %v4066_v8 = vcombine.high %v16460_v0, %v16460_v0  ;;  %v1766_v57 = vunpack.c.l.s8.bf16 %v423_v3  ;;  %v427_v13 = vld [vmem:[%s16178_s23 + $0x558] sm:$0xff]  ;;  %v1767_v28 = vunpack.c.h.s8.bf16 %v423_v3 }
 0x195   : > { %v1752_v5 = vunpack.c.l.s8.bf16 %v416_v26  ;;  %v1753_v30 = vunpack.c.h.s8.bf16 %v416_v26  ;;  %v1774_v23 = vunpack.c.l.s8.bf16 %v427_v13 }
 0x196   : > { %v16475_v6 = vadd.f32 %v12507_v17, %v6121_v14  ;;  %12788 = vmatpush3.bf16.msra.mxu0 %v1726_v18  ;;  %v16495_v18 = vrot.slane %v4066_v8, %v16209_v37 }
 0x197   : > { %12810 = vmatpush3.bf16.msra.mxu1 %v1742_v19  ;;  %12789 = vmatprep.subr.bf16.mxu0 %v1735_v24 }
 0x198   : > { %12811 = vmatprep.subr.bf16.mxu1 %v1751_v25  ;;  %v1758_v25 = vunpack.c.l.s8.bf16 %v419_v11  ;;  %v4082_v26 = vcombine.high %v16495_v18, %v16495_v18 }
 0x19a   : > { %12790 = vmatpush3.bf16.msra.mxu0 %v1727_v31 }
 0x19b   : > { %12812 = vmatpush3.bf16.msra.mxu1 %v1743_v32  ;;  %12819 = vmatprep.subr.bf16.mxu0 %v1760_v1  ;;  %v436_v32 = vld [vmem:[%s16178_s23 + $0x5a0] sm:$0xff] }
 0x19c   : > { %12841 = vmatprep.subr.bf16.mxu1 %v1776_v33  ;;  %v444_v1 = vld [vmem:[%s16178_s23 + $0x5e0] sm:$0xff]  ;;  %v4089_v33 = vrot.slane %v16466_v10, %v16209_v37 }
 0x19d   : > { %6679 = vmatmul.mubr.bf16.vlgmr.msra.gmra.mrb[36].mxu0 %v4047_v29 }
 0x19e   : > { %6719 = vmatmul.mubr.bf16.vlgmr.msra.gmra.mrb[36].mxu1 %v4063_v35  ;;  %12820 = vmatpush3.bf16.msra.mxu0 %v1752_v5  ;;  %v1775_v35 = vunpack.c.h.s8.bf16 %v427_v13  ;;  %v1792_v5 = vunpack.c.l.s8.bf16 %v436_v32  ;;  %v4111_v42 = vcombine.high %v4089_v33, %v4089_v33 }
 0x19f   : > { %12842 = vmatpush3.bf16.msra.mxu1 %v1768_v36  ;;  %12821 = vmatprep.subr.bf16.mxu0 %v1761_v38  ;;  %v1808_v36 = vunpack.c.l.s8.bf16 %v444_v1  ;;  %v440_v38 = vld [vmem:[%s16178_s23 + $0x5c0] sm:$0xff] }
 0x1a0   : > { %12843 = vmatprep.subr.bf16.mxu1 %v1777_v41  ;;  %6758 = vmatprep.mubr.bf16.mxu0 %v4103_v22  ;;  %v1759_v22 = vunpack.c.h.s8.bf16 %v419_v11  ;;  %v4110_v41 = vrot.slane %v4082_v26, %v16209_v37  ;;  %v1800_v40 = vunpack.c.l.s8.bf16 %v440_v38  ;;  %v1801_v49 = vunpack.c.h.s8.bf16 %v440_v38  ;;  %v16520_v11 = vld [vmem:[%s16192_s25 + $0x30] sm:$0xff] }
 0x1a1   : > { %6798 = vmatprep.mubr.bf16.mxu1 %v4113_v43  ;;  %v1793_v43 = vunpack.c.h.s8.bf16 %v436_v32 }
 0x1a2   : > { %12822 = vmatpush3.bf16.msra.mxu0 %v1753_v30  ;;  %v1809_v30 = vunpack.c.h.s8.bf16 %v444_v1  ;;  %v4114_v46 = vcombine.high %v4110_v41, %v4110_v41 }
 0x1a3   : > { %12844 = vmatpush3.bf16.msra.mxu1 %v1769_v44  ;;  %12823 = vmatprep.subr.bf16.mxu0 %v1762_v45  ;;  %v437_v44 = vld [vmem:[%s16178_s23 + $0x5a8] sm:$0xff] }
 0x1a4   : > { %12845 = vmatprep.subr.bf16.mxu1 %v1778_v48  ;;  %v445_v45 = vld [vmem:[%s16178_s23 + $0x5e8] sm:$0xff] }
 0x1a6   : > { %12824 = vmatpush3.bf16.msra.mxu0 %v1754_v50  ;;  %v1794_v50 = vunpack.c.l.s8.bf16 %v437_v44 }
 0x1a7   : > { %12846 = vmatpush3.bf16.msra.mxu1 %v1770_v51  ;;  %12825 = vmatprep.subr.bf16.mxu0 %v1763_v39  ;;  %v433_v51 = vld [vmem:[%s16178_s23 + $0x588] sm:$0xff]  ;;  %v1810_v39 = vunpack.c.l.s8.bf16 %v445_v45 }
 0x1a8   : > { %12847 = vmatprep.subr.bf16.mxu1 %v1779_v52  ;;  %v441_v52 = vld [vmem:[%s16178_s23 + $0x5c8] sm:$0xff]  ;;  %v1786_v53 = vunpack.c.l.s8.bf16 %v433_v51 }
 0x1a9   : > { %v1802_v54 = vunpack.c.l.s8.bf16 %v441_v52  ;;  %v1803_v61 = vunpack.c.h.s8.bf16 %v441_v52 }
 0x1aa   : > { %12826 = vmatpush3.bf16.msra.mxu0 %v1755_v56  ;;  %v1795_v56 = vunpack.c.h.s8.bf16 %v437_v44 }
 0x1ab   : > { %12848 = vmatpush3.bf16.msra.mxu1 %v1771_v58  ;;  %12827 = vmatprep.subr.bf16.mxu0 %v1764_v59  ;;  %v1811_v58 = vunpack.c.h.s8.bf16 %v445_v45  ;;  %v438_v59 = vld [vmem:[%s16178_s23 + $0x5b0] sm:$0xff] }
 0x1ac   : > { %12849 = vmatprep.subr.bf16.mxu1 %v1780_v60  ;;  %v1787_v60 = vunpack.c.h.s8.bf16 %v433_v51  ;;  %v1797_v8 = vunpack.c.h.s8.bf16 %v438_v59 }
 0x1ae   : > { %12828 = vmatpush3.bf16.msra.mxu0 %v1756_v62  ;;  %v1796_v62 = vunpack.c.l.s8.bf16 %v438_v59 }
 0x1af   : > { %12850 = vmatpush3.bf16.msra.mxu1 %v1772_v63  ;;  %12829 = vmatprep.subr.bf16.mxu0 %v1765_v2  ;;  %v434_v63 = vld [vmem:[%s16178_s23 + $0x590] sm:$0xff]  ;;  %v1812_v2 = vunpack.c.l.s8.bf16 %v446_v47 }
 0x1b0   : > { %12851 = vmatprep.subr.bf16.mxu1 %v1781_v55  ;;  %v12527_v16 = vpop.f32.mrb[12].mxu0  ;;  %v442_v55 = vld [vmem:[%s16178_s23 + $0x5d0] sm:$0xff]  ;;  %v1788_v3 = vunpack.c.l.s8.bf16 %v434_v63 }
 0x1b1   : > { %v12549_v17 = vpop.f32.mrb[12].mxu1  ;;  %v12528_v19 = vpop.f32.mrb[13].mxu0  ;;  %v1804_v4 = vunpack.c.l.s8.bf16 %v442_v55  ;;  %v1805_v13 = vunpack.c.h.s8.bf16 %v442_v55 }
 0x1b2   : > { %v12550_v20 = vpop.f32.mrb[13].mxu1  ;;  %v12529_v21 = vadd.f32 %v12528_v19, %v12527_v16  ;;  %v12530_v0 = vpop.f32.mrb[14].mxu0  ;;  %12830 = vmatpush3.bf16.msra.mxu0 %v1757_v9  ;;  %v1813_v9 = vunpack.c.h.s8.bf16 %v446_v47 }
 0x1b3   : > { %v12551_v24 = vadd.f32 %v12550_v20, %v12549_v17  ;;  %12852 = vmatpush3.bf16.msra.mxu1 %v1773_v7  ;;  %v12552_v14 = vpop.f32.mrb[14].mxu1  ;;  %v12531_v27 = vpop.f32.mrb[15].mxu0  ;;  %12831 = vmatprep.subr.bf16.mxu0 %v1766_v57  ;;  %v439_v7 = vld [vmem:[%s16178_s23 + $0x5b8] sm:$0xff] }
 0x1b4   : > { %12853 = vmatprep.subr.bf16.mxu1 %v1782_v12  ;;  %v12553_v29 = vpop.f32.mrb[15].mxu1  ;;  %v6201_v31 = vadd.f32 %v12529_v21, %v16475_v6  ;;  %v432_v6 = vld [vmem:[%s16178_s23 + $0x580] sm:$0xff]  ;;  %v447_v57 = vld [vmem:[%s16178_s23 + $0x5f8] sm:$0xff]  ;;  %v1789_v12 = vunpack.c.h.s8.bf16 %v434_v63  ;;  %v1798_v16 = vunpack.c.l.s8.bf16 %v439_v7  ;;  %v1799_v1 = vunpack.c.h.s8.bf16 %v439_v7  ;;  %v462_v63 = vld [vmem:[%s16178_s23 + $0x670] sm:$0xff] }
 0x1b5   : > { %v1784_v10 = vunpack.c.l.s8.bf16 %v432_v6  ;;  %v1785_v48 = vunpack.c.h.s8.bf16 %v432_v6  ;;  %v435_v17 = vld [vmem:[%s16178_s23 + $0x598] sm:$0xff]  ;;  %v1814_v19 = vunpack.c.l.s8.bf16 %v447_v57  ;;  %v1815_v26 = vunpack.c.h.s8.bf16 %v447_v57 }
 0x1b6   : > { %v16504_v34 = vadd.f32 %v12551_v24, %v6201_v31  ;;  %12832 = vmatpush3.bf16.msra.mxu0 %v1758_v25  ;;  %v443_v20 = vld [vmem:[%s16178_s23 + $0x5d8] sm:$0xff]  ;;  %v16526_v24 = vrot.slane %v16520_v11, %v16209_v37 }
 0x1b7   : > { %12854 = vmatpush3.bf16.msra.mxu1 %v1774_v23  ;;  %12833 = vmatprep.subr.bf16.mxu0 %v1767_v28  ;;  %v1806_v29 = vunpack.c.l.s8.bf16 %v443_v20 }
 0x1b8   : > { %12855 = vmatprep.subr.bf16.mxu1 %v1783_v15  ;;  %v1790_v15 = vunpack.c.l.s8.bf16 %v435_v17  ;;  %v4130_v6 = vcombine.high %v16526_v24, %v16526_v24 }
 0x1ba   : > { %12834 = vmatpush3.bf16.msra.mxu0 %v1759_v22 }
 0x1bb   : > { %12856 = vmatpush3.bf16.msra.mxu1 %v1775_v35  ;;  %12863 = vmatprep.subr.bf16.mxu0 %v1792_v5  ;;  %v452_v35 = vld [vmem:[%s16178_s23 + $0x620] sm:$0xff] }
 0x1bc   : > { %12885 = vmatprep.subr.bf16.mxu1 %v1808_v36  ;;  %v460_v5 = vld [vmem:[%s16178_s23 + $0x660] sm:$0xff]  ;;  %v4096_v36 = vrot.slane %v16495_v18, %v16209_v37 }
 0x1bd   : > { %6759 = vmatmul.mubr.bf16.vlgmr.msra.gmra.mrb[40].mxu0 %v4089_v33 }
 0x1be   : > { %6799 = vmatmul.mubr.bf16.vlgmr.msra.gmra.mrb[40].mxu1 %v4111_v42  ;;  %12864 = vmatpush3.bf16.msra.mxu0 %v1784_v10  ;;  %v1807_v42 = vunpack.c.h.s8.bf16 %v443_v20  ;;  %v1824_v10 = vunpack.c.l.s8.bf16 %v452_v35  ;;  %v4112_v44 = vcombine.high %v4096_v36, %v4096_v36 }
 0x1bf   : > { %12886 = vmatpush3.bf16.msra.mxu1 %v1800_v40  ;;  %12865 = vmatprep.subr.bf16.mxu0 %v1793_v43  ;;  %v1840_v40 = vunpack.c.l.s8.bf16 %v460_v5  ;;  %v456_v43 = vld [vmem:[%s16178_s23 + $0x640] sm:$0xff] }
 0x1c0   : > { %12887 = vmatprep.subr.bf16.mxu1 %v1809_v30  ;;  %6838 = vmatprep.mubr.bf16.mxu0 %v4110_v41  ;;  %v1791_v41 = vunpack.c.h.s8.bf16 %v435_v17  ;;  %v4152_v30 = vrot.slane %v4130_v6, %v16209_v37  ;;  %v1832_v45 = vunpack.c.l.s8.bf16 %v456_v43  ;;  %v1833_v52 = vunpack.c.h.s8.bf16 %v456_v43  ;;  %v463_v17 = vld [vmem:[%s16178_s23 + $0x678] sm:$0xff] }
 0x1c1   : > { %6878 = vmatprep.mubr.bf16.mxu1 %v4114_v46  ;;  %v1825_v46 = vunpack.c.h.s8.bf16 %v452_v35  ;;  %v1847_v6 = vunpack.c.h.s8.bf16 %v463_v17 }
 0x1c2   : > { %12866 = vmatpush3.bf16.msra.mxu0 %v1785_v48  ;;  %v1841_v48 = vunpack.c.h.s8.bf16 %v460_v5  ;;  %v4162_v51 = vcombine.high %v4152_v30, %v4152_v30 }
 0x1c3   : > { %12888 = vmatpush3.bf16.msra.mxu1 %v1801_v49  ;;  %12867 = vmatprep.subr.bf16.mxu0 %v1794_v50  ;;  %v453_v49 = vld [vmem:[%s16178_s23 + $0x628] sm:$0xff] }
 0x1c4   : > { %12889 = vmatprep.subr.bf16.mxu1 %v1810_v39  ;;  %v461_v50 = vld [vmem:[%s16178_s23 + $0x668] sm:$0xff] }
 0x1c6   : > { %12868 = vmatpush3.bf16.msra.mxu0 %v1786_v53  ;;  %v1826_v53 = vunpack.c.l.s8.bf16 %v453_v49 }
 0x1c7   : > { %12890 = vmatpush3.bf16.msra.mxu1 %v1802_v54  ;;  %12869 = vmatprep.subr.bf16.mxu0 %v1795_v56  ;;  %v449_v54 = vld [vmem:[%s16178_s23 + $0x608] sm:$0xff]  ;;  %v1842_v56 = vunpack.c.l.s8.bf16 %v461_v50 }
 0x1c8   : > { %12891 = vmatprep.subr.bf16.mxu1 %v1811_v58  ;;  %v457_v58 = vld [vmem:[%s16178_s23 + $0x648] sm:$0xff]  ;;  %v1818_v59 = vunpack.c.l.s8.bf16 %v449_v54 }
 0x1c9   : > { %v1834_v47 = vunpack.c.l.s8.bf16 %v457_v58  ;;  %v1835_v55 = vunpack.c.h.s8.bf16 %v457_v58 }
 0x1ca   : > { %12870 = vmatpush3.bf16.msra.mxu0 %v1787_v60  ;;  %v1827_v60 = vunpack.c.h.s8.bf16 %v453_v49 }
 0x1cb   : > { %12892 = vmatpush3.bf16.msra.mxu1 %v1803_v61  ;;  %12871 = vmatprep.subr.bf16.mxu0 %v1796_v62  ;;  %v1843_v61 = vunpack.c.h.s8.bf16 %v461_v50  ;;  %v454_v62 = vld [vmem:[%s16178_s23 + $0x630] sm:$0xff] }
 0x1cc   : > { %12893 = vmatprep.subr.bf16.mxu1 %v1812_v2  ;;  %v1819_v2 = vunpack.c.h.s8.bf16 %v449_v54 }
 0x1ce   : > { %12872 = vmatpush3.bf16.msra.mxu0 %v1788_v3  ;;  %v1828_v3 = vunpack.c.l.s8.bf16 %v454_v62 }
 0x1cf   : > { %12894 = vmatpush3.bf16.msra.mxu1 %v1804_v4  ;;  %12873 = vmatprep.subr.bf16.mxu0 %v1797_v8  ;;  %v450_v4 = vld [vmem:[%s16178_s23 + $0x610] sm:$0xff]  ;;  %v1844_v8 = vunpack.c.l.s8.bf16 %v462_v63 }
 0x1d0   : > { %12895 = vmatprep.subr.bf16.mxu1 %v1813_v9  ;;  %v12571_v21 = vpop.f32.mrb[16].mxu0  ;;  %v458_v9 = vld [vmem:[%s16178_s23 + $0x650] sm:$0xff]  ;;  %v1820_v7 = vunpack.c.l.s8.bf16 %v450_v4  ;;  %v1821_v20 = vunpack.c.h.s8.bf16 %v450_v4 }
 0x1d1   : > { %v12593_v0 = vpop.f32.mrb[16].mxu1  ;;  %v12572_v25 = vpop.f32.mrb[17].mxu0  ;;  %v1836_v57 = vunpack.c.l.s8.bf16 %v458_v9  ;;  %v478_v4 = vld [vmem:[%s16178_s23 + $0x6f0] sm:$0xff] }
 0x1d2   : > { %v12594_v23 = vpop.f32.mrb[17].mxu1  ;;  %v12573_v14 = vadd.f32 %v12572_v25, %v12571_v21  ;;  %v12574_v27 = vpop.f32.mrb[18].mxu0  ;;  %12874 = vmatpush3.bf16.msra.mxu0 %v1789_v12  ;;  %v1829_v12 = vunpack.c.h.s8.bf16 %v454_v62  ;;  %v1837_v21 = vunpack.c.h.s8.bf16 %v458_v9  ;;  %v451_v25 = vld [vmem:[%s16178_s23 + $0x618] sm:$0xff] }
 0x1d3   : > { %v12595_v28 = vadd.f32 %v12594_v23, %v12593_v0  ;;  %12896 = vmatpush3.bf16.msra.mxu1 %v1805_v13  ;;  %v12596_v31 = vpop.f32.mrb[18].mxu1  ;;  %v12575_v32 = vpop.f32.mrb[19].mxu0  ;;  %12875 = vmatprep.subr.bf16.mxu0 %v1798_v16  ;;  %v1845_v13 = vunpack.c.h.s8.bf16 %v462_v63  ;;  %v455_v16 = vld [vmem:[%s16178_s23 + $0x638] sm:$0xff]  ;;  %v1846_v23 = vunpack.c.l.s8.bf16 %v463_v17 }
 0x1d4   : > { %12897 = vmatprep.subr.bf16.mxu1 %v1814_v19  ;;  %v12597_v33 = vpop.f32.mrb[19].mxu1  ;;  %v6281_v22 = vadd.f32 %v12573_v14, %v16504_v34  ;;  %v448_v34 = vld [vmem:[%s16178_s23 + $0x600] sm:$0xff]  ;;  %v4115_v19 = vcombine.high %v16520_v11, %v16520_v11  ;;  %v1830_v0 = vunpack.c.l.s8.bf16 %v455_v16  ;;  %v459_v14 = vld [vmem:[%s16178_s23 + $0x658] sm:$0xff]  ;;  %v1831_v5 = vunpack.c.h.s8.bf16 %v455_v16 }
 0x1d5   : > { %v1816_v18 = vunpack.c.l.s8.bf16 %v448_v34  ;;  %v1817_v39 = vunpack.c.h.s8.bf16 %v448_v34  ;;  %v1838_v33 = vunpack.c.l.s8.bf16 %v459_v14 }
 0x1d6   : > { %v16535_v38 = vadd.f32 %v12595_v28, %v6281_v22  ;;  %12876 = vmatpush3.bf16.msra.mxu0 %v1790_v15  ;;  %v16555_v15 = vrot.slane %v4115_v19, %v16209_v37 }
 0x1d7   : > { %12898 = vmatpush3.bf16.msra.mxu1 %v1806_v29  ;;  %12877 = vmatprep.subr.bf16.mxu0 %v1799_v1 }
 0x1d8   : > { %12899 = vmatprep.subr.bf16.mxu1 %v1815_v26  ;;  %v1822_v26 = vunpack.c.l.s8.bf16 %v451_v25  ;;  %v4131_v34 = vcombine.high %v16555_v15, %v16555_v15 }
 0x1da   : > { %12878 = vmatpush3.bf16.msra.mxu0 %v1791_v41 }
 0x1db   : > { %12900 = vmatpush3.bf16.msra.mxu1 %v1807_v42  ;;  %12907 = vmatprep.subr.bf16.mxu0 %v1824_v10  ;;  %v468_v42 = vld [vmem:[%s16178_s23 + $0x6a0] sm:$0xff] }
 0x1dc   : > { %12929 = vmatprep.subr.bf16.mxu1 %v1840_v40  ;;  %v476_v10 = vld [vmem:[%s16178_s23 + $0x6e0] sm:$0xff]  ;;  %v4138_v40 = vrot.slane %v16526_v24, %v16209_v37 }
 0x1dd   : > { %6839 = vmatmul.mubr.bf16.vlgmr.msra.gmra.mrb[44].mxu0 %v4096_v36 }
 0x1de   : > { %6879 = vmatmul.mubr.bf16.vlgmr.msra.gmra.mrb[44].mxu1 %v4112_v44  ;;  %12908 = vmatpush3.bf16.msra.mxu0 %v1816_v18  ;;  %v1839_v44 = vunpack.c.h.s8.bf16 %v459_v14  ;;  %v1856_v18 = vunpack.c.l.s8.bf16 %v468_v42  ;;  %v4160_v49 = vcombine.high %v4138_v40, %v4138_v40 }
 0x1df   : > { %12930 = vmatpush3.bf16.msra.mxu1 %v1832_v45  ;;  %12909 = vmatprep.subr.bf16.mxu0 %v1825_v46  ;;  %v1872_v45 = vunpack.c.l.s8.bf16 %v476_v10  ;;  %v472_v46 = vld [vmem:[%s16178_s23 + $0x6c0] sm:$0xff] }
 0x1e0   : > { %12931 = vmatprep.subr.bf16.mxu1 %v1841_v48  ;;  %6918 = vmatprep.mubr.bf16.mxu0 %v4152_v30  ;;  %v1823_v30 = vunpack.c.h.s8.bf16 %v451_v25  ;;  %v4159_v48 = vrot.slane %v4131_v34, %v16209_v37  ;;  %v1864_v50 = vunpack.c.l.s8.bf16 %v472_v46  ;;  %v1865_v58 = vunpack.c.h.s8.bf16 %v472_v46  ;;  %v16580_v25 = vld [vmem:[%s16192_s25 + $0x38] sm:$0xff] }
 0x1e1   : > { %6958 = vmatprep.mubr.bf16.mxu1 %v4162_v51  ;;  %v1857_v51 = vunpack.c.h.s8.bf16 %v468_v42 }
 0x1e2   : > { %12910 = vmatpush3.bf16.msra.mxu0 %v1817_v39  ;;  %v1873_v39 = vunpack.c.h.s8.bf16 %v476_v10  ;;  %v4163_v54 = vcombine.high %v4159_v48, %v4159_v48 }
 0x1e3   : > { %12932 = vmatpush3.bf16.msra.mxu1 %v1833_v52  ;;  %12911 = vmatprep.subr.bf16.mxu0 %v1826_v53  ;;  %v469_v52 = vld [vmem:[%s16178_s23 + $0x6a8] sm:$0xff] }
 0x1e4   : > { %12933 = vmatprep.subr.bf16.mxu1 %v1842_v56  ;;  %v477_v53 = vld [vmem:[%s16178_s23 + $0x6e8] sm:$0xff] }
 0x1e6   : > { %12912 = vmatpush3.bf16.msra.mxu0 %v1818_v59  ;;  %v1858_v59 = vunpack.c.l.s8.bf16 %v469_v52 }
 0x1e7   : > { %12934 = vmatpush3.bf16.msra.mxu1 %v1834_v47  ;;  %12913 = vmatprep.subr.bf16.mxu0 %v1827_v60  ;;  %v465_v47 = vld [vmem:[%s16178_s23 + $0x688] sm:$0xff]  ;;  %v1874_v60 = vunpack.c.l.s8.bf16 %v477_v53 }
 0x1e8   : > { %12935 = vmatprep.subr.bf16.mxu1 %v1843_v61  ;;  %v473_v61 = vld [vmem:[%s16178_s23 + $0x6c8] sm:$0xff]  ;;  %v1850_v62 = vunpack.c.l.s8.bf16 %v465_v47 }
 0x1e9   : > { %v1866_v63 = vunpack.c.l.s8.bf16 %v473_v61  ;;  %v1867_v9 = vunpack.c.h.s8.bf16 %v473_v61 }
 0x1ea   : > { %12914 = vmatpush3.bf16.msra.mxu0 %v1819_v2  ;;  %v1859_v2 = vunpack.c.h.s8.bf16 %v469_v52 }
 0x1eb   : > { %12936 = vmatpush3.bf16.msra.mxu1 %v1835_v55  ;;  %12915 = vmatprep.subr.bf16.mxu0 %v1828_v3  ;;  %v1875_v55 = vunpack.c.h.s8.bf16 %v477_v53  ;;  %v470_v3 = vld [vmem:[%s16178_s23 + $0x6b0] sm:$0xff] }
 0x1ec   : > { %12937 = vmatprep.subr.bf16.mxu1 %v1844_v8  ;;  %v1851_v8 = vunpack.c.h.s8.bf16 %v465_v47  ;;  %v1861_v19 = vunpack.c.h.s8.bf16 %v470_v3 }
 0x1ee   : > { %12916 = vmatpush3.bf16.msra.mxu0 %v1820_v7  ;;  %v1860_v7 = vunpack.c.l.s8.bf16 %v470_v3 }
 0x1ef   : > { %12938 = vmatpush3.bf16.msra.mxu1 %v1836_v57  ;;  %12917 = vmatprep.subr.bf16.mxu0 %v1829_v12  ;;  %v466_v57 = vld [vmem:[%s16178_s23 + $0x690] sm:$0xff]  ;;  %v1876_v12 = vunpack.c.l.s8.bf16 %v478_v4 }
 0x1f0   : > { %12939 = vmatprep.subr.bf16.mxu1 %v1845_v13  ;;  %v12615_v27 = vpop.f32.mrb[20].mxu0  ;;  %v474_v13 = vld [vmem:[%s16178_s23 + $0x6d0] sm:$0xff]  ;;  %v1852_v16 = vunpack.c.l.s8.bf16 %v466_v57 }
 0x1f1   : > { %v12637_v28 = vpop.f32.mrb[20].mxu1  ;;  %v12616_v29 = vpop.f32.mrb[21].mxu0  ;;  %v1868_v17 = vunpack.c.l.s8.bf16 %v474_v13  ;;  %v1869_v14 = vunpack.c.h.s8.bf16 %v474_v13 }
 0x1f2   : > { %v12638_v31 = vpop.f32.mrb[21].mxu1  ;;  %v12617_v32 = vadd.f32 %v12616_v29, %v12615_v27  ;;  %v12618_v11 = vpop.f32.mrb[22].mxu0  ;;  %12918 = vmatpush3.bf16.msra.mxu0 %v1821_v20  ;;  %v1877_v20 = vunpack.c.h.s8.bf16 %v478_v4 }
 0x1f3   : > { %v12639_v1 = vadd.f32 %v12638_v31, %v12637_v28  ;;  %12940 = vmatpush3.bf16.msra.mxu1 %v1837_v21  ;;  %v12640_v22 = vpop.f32.mrb[22].mxu1  ;;  %v12619_v35 = vpop.f32.mrb[23].mxu0  ;;  %12919 = vmatprep.subr.bf16.mxu0 %v1830_v0  ;;  %v471_v21 = vld [vmem:[%s16178_s23 + $0x6b8] sm:$0xff] }
 0x1f4   : > { %12941 = vmatprep.subr.bf16.mxu1 %v1846_v23  ;;  %v12641_v36 = vpop.f32.mrb[23].mxu1  ;;  %v6361_v41 = vadd.f32 %v12617_v32, %v16535_v38  ;;  %v464_v38 = vld [vmem:[%s16178_s23 + $0x680] sm:$0xff]  ;;  %v479_v0 = vld [vmem:[%s16178_s23 + $0x6f8] sm:$0xff]  ;;  %v1853_v23 = vunpack.c.h.s8.bf16 %v466_v57  ;;  %v1862_v27 = vunpack.c.l.s8.bf16 %v471_v21  ;;  %v1863_v10 = vunpack.c.h.s8.bf16 %v471_v21  ;;  %v494_v57 = vld [vmem:[%s16178_s23 + $0x770] sm:$0xff] }
 0x1f5   : > { %v1848_v24 = vunpack.c.l.s8.bf16 %v464_v38  ;;  %v1849_v56 = vunpack.c.h.s8.bf16 %v464_v38  ;;  %v467_v28 = vld [vmem:[%s16178_s23 + $0x698] sm:$0xff]  ;;  %v1878_v29 = vunpack.c.l.s8.bf16 %v479_v0  ;;  %v1879_v34 = vunpack.c.h.s8.bf16 %v479_v0 }
 0x1f6   : > { %v16564_v43 = vadd.f32 %v12639_v1, %v6361_v41  ;;  %12920 = vmatpush3.bf16.msra.mxu0 %v1822_v26  ;;  %v475_v31 = vld [vmem:[%s16178_s23 + $0x6d8] sm:$0xff]  ;;  %v16586_v1 = vrot.slane %v16580_v25, %v16209_v37 }
 0x1f7   : > { %12942 = vmatpush3.bf16.msra.mxu1 %v1838_v33  ;;  %12921 = vmatprep.subr.bf16.mxu0 %v1831_v5  ;;  %v1870_v36 = vunpack.c.l.s8.bf16 %v475_v31 }
 0x1f8   : > { %12943 = vmatprep.subr.bf16.mxu1 %v1847_v6  ;;  %v1854_v6 = vunpack.c.l.s8.bf16 %v467_v28  ;;  %v4179_v38 = vcombine.high %v16586_v1, %v16586_v1 }
 0x1fa   : > { %12922 = vmatpush3.bf16.msra.mxu0 %v1823_v30 }
 0x1fb   : > { %12944 = vmatpush3.bf16.msra.mxu1 %v1839_v44  ;;  %12951 = vmatprep.subr.bf16.mxu0 %v1856_v18  ;;  %v484_v44 = vld [vmem:[%s16178_s23 + $0x720] sm:$0xff] }
 0x1fc   : > { %12973 = vmatprep.subr.bf16.mxu1 %v1872_v45  ;;  %v492_v18 = vld [vmem:[%s16178_s23 + $0x760] sm:$0xff]  ;;  %v4145_v45 = vrot.slane %v16555_v15, %v16209_v37 }
 0x1fd   : > { %6919 = vmatmul.mubr.bf16.vlgmr.msra.gmra.mrb[48].mxu0 %v4138_v40 }
 0x1fe   : > { %6959 = vmatmul.mubr.bf16.vlgmr.msra.gmra.mrb[48].mxu1 %v4160_v49  ;;  %12952 = vmatpush3.bf16.msra.mxu0 %v1848_v24  ;;  %v1871_v49 = vunpack.c.h.s8.bf16 %v475_v31  ;;  %v1888_v24 = vunpack.c.l.s8.bf16 %v484_v44  ;;  %v4161_v52 = vcombine.high %v4145_v45, %v4145_v45 }
 0x1ff   : > { %12974 = vmatpush3.bf16.msra.mxu1 %v1864_v50  ;;  %12953 = vmatprep.subr.bf16.mxu0 %v1857_v51  ;;  %v1904_v50 = vunpack.c.l.s8.bf16 %v492_v18  ;;  %v488_v51 = vld [vmem:[%s16178_s23 + $0x740] sm:$0xff] }
 0x200   : > { %12975 = vmatprep.subr.bf16.mxu1 %v1873_v39  ;;  %6998 = vmatprep.mubr.bf16.mxu0 %v4159_v48  ;;  %v1855_v48 = vunpack.c.h.s8.bf16 %v467_v28  ;;  %v4201_v39 = vrot.slane %v4179_v38, %v16209_v37  ;;  %v1896_v53 = vunpack.c.l.s8.bf16 %v488_v51  ;;  %v1897_v61 = vunpack.c.h.s8.bf16 %v488_v51  ;;  %v495_v28 = vld [vmem:[%s16178_s23 + $0x778] sm:$0xff] }
 0x201   : > { %7038 = vmatprep.mubr.bf16.mxu1 %v4163_v54  ;;  %v1889_v54 = vunpack.c.h.s8.bf16 %v484_v44  ;;  %v1911_v38 = vunpack.c.h.s8.bf16 %v495_v28 }
 0x202   : > { %12954 = vmatpush3.bf16.msra.mxu0 %v1849_v56  ;;  %v1905_v56 = vunpack.c.h.s8.bf16 %v492_v18  ;;  %v4211_v47 = vcombine.high %v4201_v39, %v4201_v39 }
 0x203   : > { %12976 = vmatpush3.bf16.msra.mxu1 %v1865_v58  ;;  %12955 = vmatprep.subr.bf16.mxu0 %v1858_v59  ;;  %v485_v58 = vld [vmem:[%s16178_s23 + $0x728] sm:$0xff] }
 0x204   : > { %12977 = vmatprep.subr.bf16.mxu1 %v1874_v60  ;;  %v493_v59 = vld [vmem:[%s16178_s23 + $0x768] sm:$0xff] }
 0x206   : > { %12956 = vmatpush3.bf16.msra.mxu0 %v1850_v62  ;;  %v1890_v62 = vunpack.c.l.s8.bf16 %v485_v58 }
 0x207   : > { %12978 = vmatpush3.bf16.msra.mxu1 %v1866_v63  ;;  %12957 = vmatprep.subr.bf16.mxu0 %v1859_v2  ;;  %v481_v63 = vld [vmem:[%s16178_s23 + $0x708] sm:$0xff]  ;;  %v1906_v2 = vunpack.c.l.s8.bf16 %v493_v59 }
 0x208   : > { %12979 = vmatprep.subr.bf16.mxu1 %v1875_v55  ;;  %v489_v55 = vld [vmem:[%s16178_s23 + $0x748] sm:$0xff]  ;;  %v1882_v3 = vunpack.c.l.s8.bf16 %v481_v63 }
 0x209   : > { %v1898_v4 = vunpack.c.l.s8.bf16 %v489_v55  ;;  %v1899_v13 = vunpack.c.h.s8.bf16 %v489_v55 }
 0x20a   : > { %12958 = vmatpush3.bf16.msra.mxu0 %v1851_v8  ;;  %v1891_v8 = vunpack.c.h.s8.bf16 %v485_v58 }
 0x20b   : > { %12980 = vmatpush3.bf16.msra.mxu1 %v1867_v9  ;;  %12959 = vmatprep.subr.bf16.mxu0 %v1860_v7  ;;  %v1907_v9 = vunpack.c.h.s8.bf16 %v493_v59  ;;  %v486_v7 = vld [vmem:[%s16178_s23 + $0x730] sm:$0xff] }
 0x20c   : > { %12981 = vmatprep.subr.bf16.mxu1 %v1876_v12  ;;  %v1883_v12 = vunpack.c.h.s8.bf16 %v481_v63 }
 0x20e   : > { %12960 = vmatpush3.bf16.msra.mxu0 %v1852_v16  ;;  %v1892_v16 = vunpack.c.l.s8.bf16 %v486_v7 }
 0x20f   : > { %12982 = vmatpush3.bf16.msra.mxu1 %v1868_v17  ;;  %12961 = vmatprep.subr.bf16.mxu0 %v1861_v19  ;;  %v482_v17 = vld [vmem:[%s16178_s23 + $0x710] sm:$0xff]  ;;  %v1908_v19 = vunpack.c.l.s8.bf16 %v494_v57 }
 0x210   : > { %12983 = vmatprep.subr.bf16.mxu1 %v1877_v20  ;;  %v12659_v32 = vpop.f32.mrb[24].mxu0  ;;  %v490_v20 = vld [vmem:[%s16178_s23 + $0x750] sm:$0xff]  ;;  %v1884_v21 = vunpack.c.l.s8.bf16 %v482_v17  ;;  %v1885_v31 = vunpack.c.h.s8.bf16 %v482_v17 }
 0x211   : > { %v12681_v11 = vpop.f32.mrb[24].mxu1  ;;  %v12660_v26 = vpop.f32.mrb[25].mxu0  ;;  %v1900_v0 = vunpack.c.l.s8.bf16 %v490_v20  ;;  %v510_v17 = vld [vmem:[%s16178_s23 + $0x7f0] sm:$0xff] }
 0x212   : > { %v12682_v33 = vpop.f32.mrb[25].mxu1  ;;  %v12661_v22 = vadd.f32 %v12660_v26, %v12659_v32  ;;  %v12662_v35 = vpop.f32.mrb[26].mxu0  ;;  %12962 = vmatpush3.bf16.msra.mxu0 %v1853_v23  ;;  %v1893_v23 = vunpack.c.h.s8.bf16 %v486_v7  ;;  %v1901_v32 = vunpack.c.h.s8.bf16 %v490_v20  ;;  %v483_v26 = vld [vmem:[%s16178_s23 + $0x718] sm:$0xff] }
 0x213   : > { %v12683_v5 = vadd.f32 %v12682_v33, %v12681_v11  ;;  %12984 = vmatpush3.bf16.msra.mxu1 %v1869_v14  ;;  %v12684_v41 = vpop.f32.mrb[26].mxu1  ;;  %v12663_v42 = vpop.f32.mrb[27].mxu0  ;;  %12963 = vmatprep.subr.bf16.mxu0 %v1862_v27  ;;  %v1909_v14 = vunpack.c.h.s8.bf16 %v494_v57  ;;  %v487_v27 = vld [vmem:[%s16178_s23 + $0x738] sm:$0xff]  ;;  %v1910_v33 = vunpack.c.l.s8.bf16 %v495_v28 }
 0x214   : > { %12985 = vmatprep.subr.bf16.mxu1 %v1878_v29  ;;  %v12685_v40 = vpop.f32.mrb[27].mxu1  ;;  %v6441_v30 = vadd.f32 %v12661_v22, %v16564_v43  ;;  %v480_v43 = vld [vmem:[%s16178_s23 + $0x700] sm:$0xff]  ;;  %v4164_v29 = vcombine.high %v16580_v25, %v16580_v25  ;;  %v1894_v11 = vunpack.c.l.s8.bf16 %v487_v27  ;;  %v491_v22 = vld [vmem:[%s16178_s23 + $0x758] sm:$0xff]  ;;  %v1895_v18 = vunpack.c.h.s8.bf16 %v487_v27 }
 0x215   : > { %v1880_v15 = vunpack.c.l.s8.bf16 %v480_v43  ;;  %v1881_v60 = vunpack.c.h.s8.bf16 %v480_v43  ;;  %v1902_v40 = vunpack.c.l.s8.bf16 %v491_v22 }
 0x216   : > { %v16595_v46 = vadd.f32 %v12683_v5, %v6441_v30  ;;  %12964 = vmatpush3.bf16.msra.mxu0 %v1854_v6  ;;  %v16615_v6 = vrot.slane %v4164_v29, %v16209_v37 }
 0x217   : > { %12986 = vmatpush3.bf16.msra.mxu1 %v1870_v36  ;;  %12965 = vmatprep.subr.bf16.mxu0 %v1863_v10 }
 0x218   : > { %12987 = vmatprep.subr.bf16.mxu1 %v1879_v34  ;;  %v1886_v34 = vunpack.c.l.s8.bf16 %v483_v26  ;;  %v4180_v43 = vcombine.high %v16615_v6, %v16615_v6 }
 0x21a   : > { %12966 = vmatpush3.bf16.msra.mxu0 %v1855_v48 }
 0x21b   : > { %12988 = vmatpush3.bf16.msra.mxu1 %v1871_v49  ;;  %12995 = vmatprep.subr.bf16.mxu0 %v1888_v24  ;;  %v500_v49 = vld [vmem:[%s16178_s23 + $0x7a0] sm:$0xff] }
 0x21c   : > { %13017 = vmatprep.subr.bf16.mxu1 %v1904_v50  ;;  %v508_v24 = vld [vmem:[%s16178_s23 + $0x7e0] sm:$0xff]  ;;  %v4187_v50 = vrot.slane %v16586_v1, %v16209_v37 }
 0x21d   : > { %6999 = vmatmul.mubr.bf16.vlgmr.msra.gmra.mrb[52].mxu0 %v4145_v45 }
 0x21e   : > { %7039 = vmatmul.mubr.bf16.vlgmr.msra.gmra.mrb[52].mxu1 %v4161_v52  ;;  %12996 = vmatpush3.bf16.msra.mxu0 %v1880_v15  ;;  %v1903_v52 = vunpack.c.h.s8.bf16 %v491_v22  ;;  %v1920_v15 = vunpack.c.l.s8.bf16 %v500_v49  ;;  %v4209_v58 = vcombine.high %v4187_v50, %v4187_v50 }
 0x21f   : > { %13018 = vmatpush3.bf16.msra.mxu1 %v1896_v53  ;;  %12997 = vmatprep.subr.bf16.mxu0 %v1889_v54  ;;  %v1936_v53 = vunpack.c.l.s8.bf16 %v508_v24  ;;  %v504_v54 = vld [vmem:[%s16178_s23 + $0x7c0] sm:$0xff] }
 0x220   : > { %13019 = vmatprep.subr.bf16.mxu1 %v1905_v56  ;;  %7078 = vmatprep.mubr.bf16.mxu0 %v4201_v39  ;;  %v1887_v39 = vunpack.c.h.s8.bf16 %v483_v26  ;;  %v4208_v56 = vrot.slane %v4180_v43, %v16209_v37  ;;  %v1928_v59 = vunpack.c.l.s8.bf16 %v504_v54  ;;  %v1929_v55 = vunpack.c.h.s8.bf16 %v504_v54  ;;  %v16640_v26 = vld [vmem:[%s16192_s25 + $0x40] sm:$0xff] }
 0x221   : > { %7118 = vmatprep.mubr.bf16.mxu1 %v4211_v47  ;;  %v1921_v47 = vunpack.c.h.s8.bf16 %v500_v49 }
 0x222   : > { %12998 = vmatpush3.bf16.msra.mxu0 %v1881_v60  ;;  %v1937_v60 = vunpack.c.h.s8.bf16 %v508_v24  ;;  %v4212_v63 = vcombine.high %v4208_v56, %v4208_v56 }
 0x223   : > { %13020 = vmatpush3.bf16.msra.mxu1 %v1897_v61  ;;  %12999 = vmatprep.subr.bf16.mxu0 %v1890_v62  ;;  %v501_v61 = vld [vmem:[%s16178_s23 + $0x7a8] sm:$0xff] }
 0x224   : > { %13021 = vmatprep.subr.bf16.mxu1 %v1906_v2  ;;  %v509_v62 = vld [vmem:[%s16178_s23 + $0x7e8] sm:$0xff] }
 0x226   : > { %13000 = vmatpush3.bf16.msra.mxu0 %v1882_v3  ;;  %v1922_v3 = vunpack.c.l.s8.bf16 %v501_v61 }
 0x227   : > { %13022 = vmatpush3.bf16.msra.mxu1 %v1898_v4  ;;  %13001 = vmatprep.subr.bf16.mxu0 %v1891_v8  ;;  %v497_v4 = vld [vmem:[%s16178_s23 + $0x788] sm:$0xff]  ;;  %v1938_v8 = vunpack.c.l.s8.bf16 %v509_v62 }
 0x228   : > { %13023 = vmatprep.subr.bf16.mxu1 %v1907_v9  ;;  %v505_v9 = vld [vmem:[%s16178_s23 + $0x7c8] sm:$0xff]  ;;  %v1914_v7 = vunpack.c.l.s8.bf16 %v497_v4 }
 0x229   : > { %v1930_v57 = vunpack.c.l.s8.bf16 %v505_v9  ;;  %v1931_v20 = vunpack.c.h.s8.bf16 %v505_v9 }
 0x22a   : > { %13002 = vmatpush3.bf16.msra.mxu0 %v1883_v12  ;;  %v1923_v12 = vunpack.c.h.s8.bf16 %v501_v61 }
 0x22b   : > { %13024 = vmatpush3.bf16.msra.mxu1 %v1899_v13  ;;  %13003 = vmatprep.subr.bf16.mxu0 %v1892_v16  ;;  %v1939_v13 = vunpack.c.h.s8.bf16 %v509_v62  ;;  %v502_v16 = vld [vmem:[%s16178_s23 + $0x7b0] sm:$0xff] }
 0x22c   : > { %13025 = vmatprep.subr.bf16.mxu1 %v1908_v19  ;;  %v1915_v19 = vunpack.c.h.s8.bf16 %v497_v4  ;;  %v1925_v29 = vunpack.c.h.s8.bf16 %v502_v16 }
 0x22e   : > { %13004 = vmatpush3.bf16.msra.mxu0 %v1884_v21  ;;  %v1924_v21 = vunpack.c.l.s8.bf16 %v502_v16 }
 0x22f   : > { %13026 = vmatpush3.bf16.msra.mxu1 %v1900_v0  ;;  %13005 = vmatprep.subr.bf16.mxu0 %v1893_v23  ;;  %v498_v0 = vld [vmem:[%s16178_s23 + $0x790] sm:$0xff]  ;;  %v1940_v23 = vunpack.c.l.s8.bf16 %v510_v17 }
 0x230   : > { %13027 = vmatprep.subr.bf16.mxu1 %v1909_v14  ;;  %v12703_v35 = vpop.f32.mrb[28].mxu0  ;;  %v506_v14 = vld [vmem:[%s16178_s23 + $0x7d0] sm:$0xff]  ;;  %v1916_v27 = vunpack.c.l.s8.bf16 %v498_v0 }
 0x231   : > { %v12725_v5 = vpop.f32.mrb[28].mxu1  ;;  %v12704_v36 = vpop.f32.mrb[29].mxu0  ;;  %v1932_v28 = vunpack.c.l.s8.bf16 %v506_v14  ;;  %v1933_v22 = vunpack.c.h.s8.bf16 %v506_v14 }
 0x232   : > { %v12726_v41 = vpop.f32.mrb[29].mxu1  ;;  %v12705_v42 = vadd.f32 %v12704_v36, %v12703_v35  ;;  %v12706_v25 = vpop.f32.mrb[30].mxu0  ;;  %13006 = vmatpush3.bf16.msra.mxu0 %v1885_v31  ;;  %v1941_v31 = vunpack.c.h.s8.bf16 %v510_v17 }
 0x233   : > { %v12727_v10 = vadd.f32 %v12726_v41, %v12725_v5  ;;  %13028 = vmatpush3.bf16.msra.mxu1 %v1901_v32  ;;  %v12728_v30 = vpop.f32.mrb[30].mxu1  ;;  %v12707_v44 = vpop.f32.mrb[31].mxu0  ;;  %13007 = vmatprep.subr.bf16.mxu0 %v1894_v11  ;;  %v503_v32 = vld [vmem:[%s16178_s23 + $0x7b8] sm:$0xff] }
 0x234   : > { %13029 = vmatprep.subr.bf16.mxu1 %v1910_v33  ;;  %v12729_v45 = vpop.f32.mrb[31].mxu1  ;;  %v6521_v48 = vadd.f32 %v12705_v42, %v16595_v46  ;;  %v496_v46 = vld [vmem:[%s16178_s23 + $0x780] sm:$0xff]  ;;  %v511_v11 = vld [vmem:[%s16178_s23 + $0x7f8] sm:$0xff]  ;;  %v1917_v33 = vunpack.c.h.s8.bf16 %v498_v0  ;;  %v1926_v35 = vunpack.c.l.s8.bf16 %v503_v32  ;;  %v1927_v24 = vunpack.c.h.s8.bf16 %v503_v32  ;;  %v526_v0 = vld [vmem:[%s16178_s23 + $0x870] sm:$0xff] }
 0x235   : > { %v1912_v1 = vunpack.c.l.s8.bf16 %v496_v46  ;;  %v1913_v2 = vunpack.c.h.s8.bf16 %v496_v46  ;;  %v499_v5 = vld [vmem:[%s16178_s23 + $0x798] sm:$0xff]  ;;  %v1942_v36 = vunpack.c.l.s8.bf16 %v511_v11  ;;  %v1943_v43 = vunpack.c.h.s8.bf16 %v511_v11 }
 0x236   : > { %v16624_v51 = vadd.f32 %v12727_v10, %v6521_v48  ;;  %13008 = vmatpush3.bf16.msra.mxu0 %v1886_v34  ;;  %v507_v41 = vld [vmem:[%s16178_s23 + $0x7d8] sm:$0xff]  ;;  %v16646_v10 = vrot.slane %v16640_v26, %v16209_v37 }
 0x237   : > { %13030 = vmatpush3.bf16.msra.mxu1 %v1902_v40  ;;  %13009 = vmatprep.subr.bf16.mxu0 %v1895_v18  ;;  %v1934_v45 = vunpack.c.l.s8.bf16 %v507_v41 }
 0x238   : > { %13031 = vmatprep.subr.bf16.mxu1 %v1911_v38  ;;  %v1918_v38 = vunpack.c.l.s8.bf16 %v499_v5  ;;  %v4228_v46 = vcombine.high %v16646_v10, %v16646_v10 }
 0x23a   : > { %13010 = vmatpush3.bf16.msra.mxu0 %v1887_v39 }
 0x23b   : > { %13032 = vmatpush3.bf16.msra.mxu1 %v1903_v52  ;;  %13039 = vmatprep.subr.bf16.mxu0 %v1920_v15  ;;  %v516_v52 = vld [vmem:[%s16178_s23 + $0x820] sm:$0xff] }
 0x23c   : > { %13061 = vmatprep.subr.bf16.mxu1 %v1936_v53  ;;  %v524_v15 = vld [vmem:[%s16178_s23 + $0x860] sm:$0xff]  ;;  %v4194_v53 = vrot.slane %v16615_v6, %v16209_v37 }
 0x23d   : > { %7079 = vmatmul.mubr.bf16.vlgmr.msra.gmra.mrb[56].mxu0 %v4187_v50 }
 0x23e   : > { %7119 = vmatmul.mubr.bf16.vlgmr.msra.gmra.mrb[56].mxu1 %v4209_v58  ;;  %13040 = vmatpush3.bf16.msra.mxu0 %v1912_v1  ;;  %v1935_v58 = vunpack.c.h.s8.bf16 %v507_v41  ;;  %v1952_v1 = vunpack.c.l.s8.bf16 %v516_v52  ;;  %v4210_v61 = vcombine.high %v4194_v53, %v4194_v53 }
 0x23f   : > { %13062 = vmatpush3.bf16.msra.mxu1 %v1928_v59  ;;  %13041 = vmatprep.subr.bf16.mxu0 %v1921_v47  ;;  %v1968_v59 = vunpack.c.l.s8.bf16 %v524_v15  ;;  %v520_v47 = vld [vmem:[%s16178_s23 + $0x840] sm:$0xff] }
 0x240   : > { %13063 = vmatprep.subr.bf16.mxu1 %v1937_v60  ;;  %7158 = vmatprep.mubr.bf16.mxu0 %v4208_v56  ;;  %v1919_v56 = vunpack.c.h.s8.bf16 %v499_v5  ;;  %v4250_v60 = vrot.slane %v4228_v46, %v16209_v37  ;;  %v1960_v62 = vunpack.c.l.s8.bf16 %v520_v47  ;;  %v1961_v9 = vunpack.c.h.s8.bf16 %v520_v47  ;;  %v527_v5 = vld [vmem:[%s16178_s23 + $0x878] sm:$0xff] }
 0x241   : > { %7198 = vmatprep.mubr.bf16.mxu1 %v4212_v63  ;;  %v1953_v63 = vunpack.c.h.s8.bf16 %v516_v52  ;;  %v1975_v46 = vunpack.c.h.s8.bf16 %v527_v5 }
 0x242   : > { %13042 = vmatpush3.bf16.msra.mxu0 %v1913_v2  ;;  %v1969_v2 = vunpack.c.h.s8.bf16 %v524_v15  ;;  %v4260_v4 = vcombine.high %v4250_v60, %v4250_v60 }
 0x243   : > { %13064 = vmatpush3.bf16.msra.mxu1 %v1929_v55  ;;  %13043 = vmatprep.subr.bf16.mxu0 %v1922_v3  ;;  %v517_v55 = vld [vmem:[%s16178_s23 + $0x828] sm:$0xff] }
 0x244   : > { %13065 = vmatprep.subr.bf16.mxu1 %v1938_v8  ;;  %v525_v3 = vld [vmem:[%s16178_s23 + $0x868] sm:$0xff] }
 0x246   : > { %13044 = vmatpush3.bf16.msra.mxu0 %v1914_v7  ;;  %v1954_v7 = vunpack.c.l.s8.bf16 %v517_v55 }
 0x247   : > { %13066 = vmatpush3.bf16.msra.mxu1 %v1930_v57  ;;  %13045 = vmatprep.subr.bf16.mxu0 %v1923_v12  ;;  %v513_v57 = vld [vmem:[%s16178_s23 + $0x808] sm:$0xff]  ;;  %v1970_v12 = vunpack.c.l.s8.bf16 %v525_v3 }
 0x248   : > { %13067 = vmatprep.subr.bf16.mxu1 %v1939_v13  ;;  %v521_v13 = vld [vmem:[%s16178_s23 + $0x848] sm:$0xff]  ;;  %v1946_v16 = vunpack.c.l.s8.bf16 %v513_v57 }
 0x249   : > { %v1962_v17 = vunpack.c.l.s8.bf16 %v521_v13  ;;  %v1963_v14 = vunpack.c.h.s8.bf16 %v521_v13 }
 0x24a   : > { %13046 = vmatpush3.bf16.msra.mxu0 %v1915_v19  ;;  %v1955_v19 = vunpack.c.h.s8.bf16 %v517_v55 }
 0x24b   : > { %13068 = vmatpush3.bf16.msra.mxu1 %v1931_v20  ;;  %13047 = vmatprep.subr.bf16.mxu0 %v1924_v21  ;;  %v1971_v20 = vunpack.c.h.s8.bf16 %v525_v3  ;;  %v518_v21 = vld [vmem:[%s16178_s23 + $0x830] sm:$0xff] }
 0x24c   : > { %13069 = vmatprep.subr.bf16.mxu1 %v1940_v23  ;;  %v1947_v23 = vunpack.c.h.s8.bf16 %v513_v57 }
 0x24e   : > { %13048 = vmatpush3.bf16.msra.mxu0 %v1916_v27  ;;  %v1956_v27 = vunpack.c.l.s8.bf16 %v518_v21 }
 0x24f   : > { %13070 = vmatpush3.bf16.msra.mxu1 %v1932_v28  ;;  %13049 = vmatprep.subr.bf16.mxu0 %v1925_v29  ;;  %v514_v28 = vld [vmem:[%s16178_s23 + $0x810] sm:$0xff]  ;;  %v1972_v29 = vunpack.c.l.s8.bf16 %v526_v0 }
 0x250   : > { %13071 = vmatprep.subr.bf16.mxu1 %v1941_v31  ;;  %v12747_v42 = vpop.f32.mrb[32].mxu0  ;;  %v522_v31 = vld [vmem:[%s16178_s23 + $0x850] sm:$0xff]  ;;  %v1948_v32 = vunpack.c.l.s8.bf16 %v514_v28  ;;  %v1949_v41 = vunpack.c.h.s8.bf16 %v514_v28 }
 0x251   : > { %v12769_v25 = vpop.f32.mrb[32].mxu1  ;;  %v12748_v34 = vpop.f32.mrb[33].mxu0  ;;  %v1964_v11 = vunpack.c.l.s8.bf16 %v522_v31  ;;  %v542_v28 = vld [vmem:[%s16178_s23 + $0x8f0] sm:$0xff] }
 0x252   : > { %v12770_v40 = vpop.f32.mrb[33].mxu1  ;;  %v12749_v30 = vadd.f32 %v12748_v34, %v12747_v42  ;;  %v12750_v44 = vpop.f32.mrb[34].mxu0  ;;  %13050 = vmatpush3.bf16.msra.mxu0 %v1917_v33  ;;  %v1957_v33 = vunpack.c.h.s8.bf16 %v518_v21  ;;  %v1965_v42 = vunpack.c.h.s8.bf16 %v522_v31  ;;  %v515_v34 = vld [vmem:[%s16178_s23 + $0x818] sm:$0xff] }
 0x253   : > { %v12771_v18 = vadd.f32 %v12770_v40, %v12769_v25  ;;  %13072 = vmatpush3.bf16.msra.mxu1 %v1933_v22  ;;  %v12772_v48 = vpop.f32.mrb[34].mxu1  ;;  %v12751_v49 = vpop.f32.mrb[35].mxu0  ;;  %13051 = vmatprep.subr.bf16.mxu0 %v1926_v35  ;;  %v1973_v22 = vunpack.c.h.s8.bf16 %v526_v0  ;;  %v519_v35 = vld [vmem:[%s16178_s23 + $0x838] sm:$0xff]  ;;  %v1974_v40 = vunpack.c.l.s8.bf16 %v527_v5 }
 0x254   : > { %13073 = vmatprep.subr.bf16.mxu1 %v1942_v36  ;;  %v12773_v50 = vpop.f32.mrb[35].mxu1  ;;  %v6601_v39 = vadd.f32 %v12749_v30, %v16624_v51  ;;  %v512_v51 = vld [vmem:[%s16178_s23 + $0x800] sm:$0xff]  ;;  %v4213_v36 = vcombine.high %v16640_v26, %v16640_v26  ;;  %v1958_v25 = vunpack.c.l.s8.bf16 %v519_v35  ;;  %v523_v30 = vld [vmem:[%s16178_s23 + $0x858] sm:$0xff]  ;;  %v1959_v15 = vunpack.c.h.s8.bf16 %v519_v35 }
 0x255   : > { %v1944_v6 = vunpack.c.l.s8.bf16 %v512_v51  ;;  %v1945_v8 = vunpack.c.h.s8.bf16 %v512_v51  ;;  %v1966_v50 = vunpack.c.l.s8.bf16 %v523_v30 }
 0x256   : > { %v16655_v54 = vadd.f32 %v12771_v18, %v6601_v39  ;;  %13052 = vmatpush3.bf16.msra.mxu0 %v1918_v38  ;;  %v16675_v38 = vrot.slane %v4213_v36, %v16209_v37 }
 0x257   : > { %13074 = vmatpush3.bf16.msra.mxu1 %v1934_v45  ;;  %13053 = vmatprep.subr.bf16.mxu0 %v1927_v24 }
 0x258   : > { %13075 = vmatprep.subr.bf16.mxu1 %v1943_v43  ;;  %v1950_v43 = vunpack.c.l.s8.bf16 %v515_v34  ;;  %v4229_v51 = vcombine.high %v16675_v38, %v16675_v38 }
 0x25a   : > { %13054 = vmatpush3.bf16.msra.mxu0 %v1919_v56 }
 0x25b   : > { %13076 = vmatpush3.bf16.msra.mxu1 %v1935_v58  ;;  %13083 = vmatprep.subr.bf16.mxu0 %v1952_v1  ;;  %v532_v58 = vld [vmem:[%s16178_s23 + $0x8a0] sm:$0xff] }
 0x25c   : > { %13105 = vmatprep.subr.bf16.mxu1 %v1968_v59  ;;  %v540_v1 = vld [vmem:[%s16178_s23 + $0x8e0] sm:$0xff]  ;;  %v4236_v59 = vrot.slane %v16646_v10, %v16209_v37 }
 0x25d   : > { %7159 = vmatmul.mubr.bf16.vlgmr.msra.gmra.mrb[60].mxu0 %v4194_v53 }
 0x25e   : > { %7199 = vmatmul.mubr.bf16.vlgmr.msra.gmra.mrb[60].mxu1 %v4210_v61  ;;  %13084 = vmatpush3.bf16.msra.mxu0 %v1944_v6  ;;  %v1967_v61 = vunpack.c.h.s8.bf16 %v523_v30  ;;  %v1984_v6 = vunpack.c.l.s8.bf16 %v532_v58  ;;  %v4258_v55 = vcombine.high %v4236_v59, %v4236_v59 }
 0x25f   : > { %13106 = vmatpush3.bf16.msra.mxu1 %v1960_v62  ;;  %13085 = vmatprep.subr.bf16.mxu0 %v1953_v63  ;;  %v2000_v62 = vunpack.c.l.s8.bf16 %v540_v1  ;;  %v536_v63 = vld [vmem:[%s16178_s23 + $0x8c0] sm:$0xff] }
 0x260   : > { %13107 = vmatprep.subr.bf16.mxu1 %v1969_v2  ;;  %7238 = vmatprep.mubr.bf16.mxu0 %v4250_v60  ;;  %v1951_v60 = vunpack.c.h.s8.bf16 %v515_v34  ;;  %v4257_v2 = vrot.slane %v4229_v51, %v16209_v37  ;;  %v1992_v3 = vunpack.c.l.s8.bf16 %v536_v63  ;;  %v1993_v13 = vunpack.c.h.s8.bf16 %v536_v63  ;;  %v16700_v34 = vld [vmem:[%s16192_s25 + $0x48] sm:$0xff] }
 0x261   : > { %7278 = vmatprep.mubr.bf16.mxu1 %v4260_v4  ;;  %v1985_v4 = vunpack.c.h.s8.bf16 %v532_v58 }
 0x262   : > { %13086 = vmatpush3.bf16.msra.mxu0 %v1945_v8  ;;  %v2001_v8 = vunpack.c.h.s8.bf16 %v540_v1  ;;  %v4261_v57 = vcombine.high %v4257_v2, %v4257_v2 }
 0x263   : > { %13108 = vmatpush3.bf16.msra.mxu1 %v1961_v9  ;;  %13087 = vmatprep.subr.bf16.mxu0 %v1954_v7  ;;  %v533_v9 = vld [vmem:[%s16178_s23 + $0x8a8] sm:$0xff] }
 0x264   : > { %13109 = vmatprep.subr.bf16.mxu1 %v1970_v12  ;;  %v541_v7 = vld [vmem:[%s16178_s23 + $0x8e8] sm:$0xff] }
 0x266   : > { %13088 = vmatpush3.bf16.msra.mxu0 %v1946_v16  ;;  %v1986_v16 = vunpack.c.l.s8.bf16 %v533_v9 }
 0x267   : > { %13110 = vmatpush3.bf16.msra.mxu1 %v1962_v17  ;;  %13089 = vmatprep.subr.bf16.mxu0 %v1955_v19  ;;  %v529_v17 = vld [vmem:[%s16178_s23 + $0x888] sm:$0xff]  ;;  %v2002_v19 = vunpack.c.l.s8.bf16 %v541_v7 }
 0x268   : > { %13111 = vmatprep.subr.bf16.mxu1 %v1971_v20  ;;  %v537_v20 = vld [vmem:[%s16178_s23 + $0x8c8] sm:$0xff]  ;;  %v1978_v21 = vunpack.c.l.s8.bf16 %v529_v17 }
 0x269   : > { %v1994_v0 = vunpack.c.l.s8.bf16 %v537_v20  ;;  %v1995_v31 = vunpack.c.h.s8.bf16 %v537_v20 }
 0x26a   : > { %13090 = vmatpush3.bf16.msra.mxu0 %v1947_v23  ;;  %v1987_v23 = vunpack.c.h.s8.bf16 %v533_v9 }
 0x26b   : > { %13112 = vmatpush3.bf16.msra.mxu1 %v1963_v14  ;;  %13091 = vmatprep.subr.bf16.mxu0 %v1956_v27  ;;  %v2003_v14 = vunpack.c.h.s8.bf16 %v541_v7  ;;  %v534_v27 = vld [vmem:[%s16178_s23 + $0x8b0] sm:$0xff] }
 0x26c   : > { %13113 = vmatprep.subr.bf16.mxu1 %v1972_v29  ;;  %v1979_v29 = vunpack.c.h.s8.bf16 %v529_v17  ;;  %v1989_v36 = vunpack.c.h.s8.bf16 %v534_v27 }
 0x26e   : > { %13092 = vmatpush3.bf16.msra.mxu0 %v1948_v32  ;;  %v1988_v32 = vunpack.c.l.s8.bf16 %v534_v27 }
 0x26f   : > { %13114 = vmatpush3.bf16.msra.mxu1 %v1964_v11  ;;  %13093 = vmatprep.subr.bf16.mxu0 %v1957_v33  ;;  %v530_v11 = vld [vmem:[%s16178_s23 + $0x890] sm:$0xff]  ;;  %v2004_v33 = vunpack.c.l.s8.bf16 %v542_v28 }
 0x270   : > { %13115 = vmatprep.subr.bf16.mxu1 %v1973_v22  ;;  %v12791_v44 = vpop.f32.mrb[36].mxu0  ;;  %v538_v22 = vld [vmem:[%s16178_s23 + $0x8d0] sm:$0xff]  ;;  %v1980_v35 = vunpack.c.l.s8.bf16 %v530_v11 }
 0x271   : > { %v12813_v18 = vpop.f32.mrb[36].mxu1  ;;  %v12792_v45 = vpop.f32.mrb[37].mxu0  ;;  %v1996_v5 = vunpack.c.l.s8.bf16 %v538_v22  ;;  %v1997_v30 = vunpack.c.h.s8.bf16 %v538_v22 }
 0x272   : > { %v12814_v48 = vpop.f32.mrb[37].mxu1  ;;  %v12793_v49 = vadd.f32 %v12792_v45, %v12791_v44  ;;  %v12794_v26 = vpop.f32.mrb[38].mxu0  ;;  %13094 = vmatpush3.bf16.msra.mxu0 %v1949_v41  ;;  %v2005_v41 = vunpack.c.h.s8.bf16 %v542_v28 }
 0x273   : > { %v12815_v24 = vadd.f32 %v12814_v48, %v12813_v18  ;;  %13116 = vmatpush3.bf16.msra.mxu1 %v1965_v42  ;;  %v12816_v39 = vpop.f32.mrb[38].mxu1  ;;  %v12795_v52 = vpop.f32.mrb[39].mxu0  ;;  %13095 = vmatprep.subr.bf16.mxu0 %v1958_v25  ;;  %v535_v42 = vld [vmem:[%s16178_s23 + $0x8b8] sm:$0xff] }
 0x274   : > { %13117 = vmatprep.subr.bf16.mxu1 %v1974_v40  ;;  %v12817_v53 = vpop.f32.mrb[39].mxu1  ;;  %v6681_v56 = vadd.f32 %v12793_v49, %v16655_v54  ;;  %v528_v54 = vld [vmem:[%s16178_s23 + $0x880] sm:$0xff]  ;;  %v543_v25 = vld [vmem:[%s16178_s23 + $0x8f8] sm:$0xff]  ;;  %v1981_v40 = vunpack.c.h.s8.bf16 %v530_v11  ;;  %v1990_v44 = vunpack.c.l.s8.bf16 %v535_v42  ;;  %v1991_v1 = vunpack.c.h.s8.bf16 %v535_v42  ;;  %v558_v11 = vld [vmem:[%s16178_s23 + $0x970] sm:$0xff] }
 0x275   : > { %v1976_v10 = vunpack.c.l.s8.bf16 %v528_v54  ;;  %v1977_v12 = vunpack.c.h.s8.bf16 %v528_v54  ;;  %v531_v18 = vld [vmem:[%s16178_s23 + $0x898] sm:$0xff]  ;;  %v2006_v45 = vunpack.c.l.s8.bf16 %v543_v25  ;;  %v2007_v51 = vunpack.c.h.s8.bf16 %v543_v25 }
 0x276   : > { %v16684_v47 = vadd.f32 %v12815_v24, %v6681_v56  ;;  %13096 = vmatpush3.bf16.msra.mxu0 %v1950_v43  ;;  %v539_v48 = vld [vmem:[%s16178_s23 + $0x8d8] sm:$0xff]  ;;  %v16706_v24 = vrot.slane %v16700_v34, %v16209_v37 }
 0x277   : > { %13118 = vmatpush3.bf16.msra.mxu1 %v1966_v50  ;;  %13097 = vmatprep.subr.bf16.mxu0 %v1959_v15  ;;  %v1998_v53 = vunpack.c.l.s8.bf16 %v539_v48 }
 0x278   : > { %13119 = vmatprep.subr.bf16.mxu1 %v1975_v46  ;;  %v1982_v46 = vunpack.c.l.s8.bf16 %v531_v18  ;;  %v4277_v54 = vcombine.high %v16706_v24, %v16706_v24 }
 0x27a   : > { %13098 = vmatpush3.bf16.msra.mxu0 %v1951_v60 }
 0x27b   : > { %13120 = vmatpush3.bf16.msra.mxu1 %v1967_v61  ;;  %13127 = vmatprep.subr.bf16.mxu0 %v1984_v6  ;;  %v548_v61 = vld [vmem:[%s16178_s23 + $0x920] sm:$0xff] }
 0x27c   : > { %13149 = vmatprep.subr.bf16.mxu1 %v2000_v62  ;;  %v556_v6 = vld [vmem:[%s16178_s23 + $0x960] sm:$0xff]  ;;  %v4243_v62 = vrot.slane %v16675_v38, %v16209_v37 }
 0x27d   : > { %7239 = vmatmul.mubr.bf16.vlgmr.msra.gmra.mrb[64].mxu0 %v4236_v59 }
 0x27e   : > { %7279 = vmatmul.mubr.bf16.vlgmr.msra.gmra.mrb[64].mxu1 %v4258_v55  ;;  %13128 = vmatpush3.bf16.msra.mxu0 %v1976_v10  ;;  %v1999_v55 = vunpack.c.h.s8.bf16 %v539_v48  ;;  %v2016_v10 = vunpack.c.l.s8.bf16 %v548_v61  ;;  %v4259_v9 = vcombine.high %v4243_v62, %v4243_v62 }
 0x27f   : > { %13150 = vmatpush3.bf16.msra.mxu1 %v1992_v3  ;;  %13129 = vmatprep.subr.bf16.mxu0 %v1985_v4  ;;  %v2032_v3 = vunpack.c.l.s8.bf16 %v556_v6  ;;  %v552_v4 = vld [vmem:[%s16178_s23 + $0x940] sm:$0xff] }
 0x280   : > { %13151 = vmatprep.subr.bf16.mxu1 %v2001_v8  ;;  %7318 = vmatprep.mubr.bf16.mxu0 %v4257_v2  ;;  %v1983_v2 = vunpack.c.h.s8.bf16 %v531_v18  ;;  %v4299_v8 = vrot.slane %v4277_v54, %v16209_v37  ;;  %v2024_v7 = vunpack.c.l.s8.bf16 %v552_v4  ;;  %v2025_v20 = vunpack.c.h.s8.bf16 %v552_v4  ;;  %v559_v18 = vld [vmem:[%s16178_s23 + $0x978] sm:$0xff] }
 0x281   : > { %7358 = vmatprep.mubr.bf16.mxu1 %v4261_v57  ;;  %v2017_v57 = vunpack.c.h.s8.bf16 %v548_v61  ;;  %v2039_v54 = vunpack.c.h.s8.bf16 %v559_v18 }
 0x282   : > { %13130 = vmatpush3.bf16.msra.mxu0 %v1977_v12  ;;  %v2033_v12 = vunpack.c.h.s8.bf16 %v556_v6  ;;  %v4309_v17 = vcombine.high %v4299_v8, %v4299_v8 }
 0x283   : > { %13152 = vmatpush3.bf16.msra.mxu1 %v1993_v13  ;;  %13131 = vmatprep.subr.bf16.mxu0 %v1986_v16  ;;  %v549_v13 = vld [vmem:[%s16178_s23 + $0x928] sm:$0xff] }
 0x284   : > { %13153 = vmatprep.subr.bf16.mxu1 %v2002_v19  ;;  %v557_v16 = vld [vmem:[%s16178_s23 + $0x968] sm:$0xff] }
 0x286   : > { %13132 = vmatpush3.bf16.msra.mxu0 %v1978_v21  ;;  %v2018_v21 = vunpack.c.l.s8.bf16 %v549_v13 }
 0x287   : > { %13154 = vmatpush3.bf16.msra.mxu1 %v1994_v0  ;;  %13133 = vmatprep.subr.bf16.mxu0 %v1987_v23  ;;  %v545_v0 = vld [vmem:[%s16178_s23 + $0x908] sm:$0xff]  ;;  %v2034_v23 = vunpack.c.l.s8.bf16 %v557_v16 }
 0x288   : > { %13155 = vmatprep.subr.bf16.mxu1 %v2003_v14  ;;  %v553_v14 = vld [vmem:[%s16178_s23 + $0x948] sm:$0xff]  ;;  %v2010_v27 = vunpack.c.l.s8.bf16 %v545_v0 }
 0x289   : > { %v2026_v28 = vunpack.c.l.s8.bf16 %v553_v14  ;;  %v2027_v22 = vunpack.c.h.s8.bf16 %v553_v14 }
 0x28a   : > { %13134 = vmatpush3.bf16.msra.mxu0 %v1979_v29  ;;  %v2019_v29 = vunpack.c.h.s8.bf16 %v549_v13 }
 0x28b   : > { %13156 = vmatpush3.bf16.msra.mxu1 %v1995_v31  ;;  %13135 = vmatprep.subr.bf16.mxu0 %v1988_v32  ;;  %v2035_v31 = vunpack.c.h.s8.bf16 %v557_v16  ;;  %v550_v32 = vld [vmem:[%s16178_s23 + $0x930] sm:$0xff] }
 0x28c   : > { %13157 = vmatprep.subr.bf16.mxu1 %v2004_v33  ;;  %v2011_v33 = vunpack.c.h.s8.bf16 %v545_v0 }
 0x28e   : > { %13136 = vmatpush3.bf16.msra.mxu0 %v1980_v35  ;;  %v2020_v35 = vunpack.c.l.s8.bf16 %v550_v32 }
 0x28f   : > { %13158 = vmatpush3.bf16.msra.mxu1 %v1996_v5  ;;  %13137 = vmatprep.subr.bf16.mxu0 %v1989_v36  ;;  %v546_v5 = vld [vmem:[%s16178_s23 + $0x910] sm:$0xff]  ;;  %v2036_v36 = vunpack.c.l.s8.bf16 %v558_v11 }
 0x290   : > { %13159 = vmatprep.subr.bf16.mxu1 %v2005_v41  ;;  %v12835_v49 = vpop.f32.mrb[40].mxu0  ;;  %v554_v41 = vld [vmem:[%s16178_s23 + $0x950] sm:$0xff]  ;;  %v2012_v42 = vunpack.c.l.s8.bf16 %v546_v5  ;;  %v2013_v48 = vunpack.c.h.s8.bf16 %v546_v5 }
 0x291   : > { %v12857_v26 = vpop.f32.mrb[40].mxu1  ;;  %v12836_v43 = vpop.f32.mrb[41].mxu0  ;;  %v2028_v25 = vunpack.c.l.s8.bf16 %v554_v41  ;;  %v574_v5 = vld [vmem:[%s16178_s23 + $0x9f0] sm:$0xff] }
 0x292   : > { %v12858_v50 = vpop.f32.mrb[41].mxu1  ;;  %v12837_v39 = vadd.f32 %v12836_v43, %v12835_v49  ;;  %v12838_v52 = vpop.f32.mrb[42].mxu0  ;;  %13138 = vmatpush3.bf16.msra.mxu0 %v1981_v40  ;;  %v2021_v40 = vunpack.c.h.s8.bf16 %v550_v32  ;;  %v2029_v49 = vunpack.c.h.s8.bf16 %v554_v41  ;;  %v547_v43 = vld [vmem:[%s16178_s23 + $0x918] sm:$0xff] }
 0x293   : > { %v12859_v15 = vadd.f32 %v12858_v50, %v12857_v26  ;;  %13160 = vmatpush3.bf16.msra.mxu1 %v1997_v30  ;;  %v12860_v56 = vpop.f32.mrb[42].mxu1  ;;  %v12839_v58 = vpop.f32.mrb[43].mxu0  ;;  %13139 = vmatprep.subr.bf16.mxu0 %v1990_v44  ;;  %v2037_v30 = vunpack.c.h.s8.bf16 %v558_v11  ;;  %v551_v44 = vld [vmem:[%s16178_s23 + $0x938] sm:$0xff]  ;;  %v2038_v50 = vunpack.c.l.s8.bf16 %v559_v18 }
 0x294   : > { %13161 = vmatprep.subr.bf16.mxu1 %v2006_v45  ;;  %v12861_v59 = vpop.f32.mrb[43].mxu1  ;;  %v6761_v60 = vadd.f32 %v12837_v39, %v16684_v47  ;;  %v544_v47 = vld [vmem:[%s16178_s23 + $0x900] sm:$0xff]  ;;  %v4262_v45 = vcombine.high %v16700_v34, %v16700_v34  ;;  %v2022_v26 = vunpack.c.l.s8.bf16 %v551_v44  ;;  %v555_v39 = vld [vmem:[%s16178_s23 + $0x958] sm:$0xff]  ;;  %v2023_v6 = vunpack.c.h.s8.bf16 %v551_v44 }
 0x295   : > { %v2008_v38 = vunpack.c.l.s8.bf16 %v544_v47  ;;  %v2009_v19 = vunpack.c.h.s8.bf16 %v544_v47  ;;  %v2030_v59 = vunpack.c.l.s8.bf16 %v555_v39 }
 0x296   : > { %v16715_v63 = vadd.f32 %v12859_v15, %v6761_v60  ;;  %13140 = vmatpush3.bf16.msra.mxu0 %v1982_v46  ;;  %v16735_v46 = vrot.slane %v4262_v45, %v16209_v37 }
 0x297   : > { %13162 = vmatpush3.bf16.msra.mxu1 %v1998_v53  ;;  %13141 = vmatprep.subr.bf16.mxu0 %v1991_v1 }
 0x298   : > { %13163 = vmatprep.subr.bf16.mxu1 %v2007_v51  ;;  %v2014_v51 = vunpack.c.l.s8.bf16 %v547_v43  ;;  %v4278_v47 = vcombine.high %v16735_v46, %v16735_v46 }
 0x29a   : > { %13142 = vmatpush3.bf16.msra.mxu0 %v1983_v2 }
 0x29b   : > { %13164 = vmatpush3.bf16.msra.mxu1 %v1999_v55  ;;  %13171 = vmatprep.subr.bf16.mxu0 %v2016_v10  ;;  %v564_v55 = vld [vmem:[%s16178_s23 + $0x9a0] sm:$0xff] }
 0x29c   : > { %13193 = vmatprep.subr.bf16.mxu1 %v2032_v3  ;;  %v572_v10 = vld [vmem:[%s16178_s23 + $0x9e0] sm:$0xff]  ;;  %v4285_v3 = vrot.slane %v16706_v24, %v16209_v37 }
 0x29d   : > { %7319 = vmatmul.mubr.bf16.vlgmr.msra.gmra.mrb[68].mxu0 %v4243_v62 }
 0x29e   : > { %7359 = vmatmul.mubr.bf16.vlgmr.msra.gmra.mrb[68].mxu1 %v4259_v9  ;;  %13172 = vmatpush3.bf16.msra.mxu0 %v2008_v38  ;;  %v2031_v9 = vunpack.c.h.s8.bf16 %v555_v39  ;;  %v2048_v38 = vunpack.c.l.s8.bf16 %v564_v55  ;;  %v4307_v13 = vcombine.high %v4285_v3, %v4285_v3 }
 0x29f   : > { %13194 = vmatpush3.bf16.msra.mxu1 %v2024_v7  ;;  %13173 = vmatprep.subr.bf16.mxu0 %v2017_v57  ;;  %v2064_v7 = vunpack.c.l.s8.bf16 %v572_v10  ;;  %v568_v57 = vld [vmem:[%s16178_s23 + $0x9c0] sm:$0xff] }
 0x2a0   : > { %13195 = vmatprep.subr.bf16.mxu1 %v2033_v12  ;;  %7398 = vmatprep.mubr.bf16.mxu0 %v4299_v8  ;;  %v2015_v8 = vunpack.c.h.s8.bf16 %v547_v43  ;;  %v4306_v12 = vrot.slane %v4278_v47, %v16209_v37  ;;  %v2056_v16 = vunpack.c.l.s8.bf16 %v568_v57  ;;  %v2057_v14 = vunpack.c.h.s8.bf16 %v568_v57  ;;  %v16760_v43 = vld [vmem:[%s16192_s25 + $0x50] sm:$0xff] }
 0x2a1   : > { %7438 = vmatprep.mubr.bf16.mxu1 %v4309_v17  ;;  %v2049_v17 = vunpack.c.h.s8.bf16 %v564_v55 }
 0x2a2   : > { %13174 = vmatpush3.bf16.msra.mxu0 %v2009_v19  ;;  %v2065_v19 = vunpack.c.h.s8.bf16 %v572_v10  ;;  %v4310_v0 = vcombine.high %v4306_v12, %v4306_v12 }
 0x2a3   : > { %13196 = vmatpush3.bf16.msra.mxu1 %v2025_v20  ;;  %13175 = vmatprep.subr.bf16.mxu0 %v2018_v21  ;;  %v565_v20 = vld [vmem:[%s16178_s23 + $0x9a8] sm:$0xff] }
 0x2a4   : > { %13197 = vmatprep.subr.bf16.mxu1 %v2034_v23  ;;  %v573_v21 = vld [vmem:[%s16178_s23 + $0x9e8] sm:$0xff] }
 0x2a6   : > { %13176 = vmatpush3.bf16.msra.mxu0 %v2010_v27  ;;  %v2050_v27 = vunpack.c.l.s8.bf16 %v565_v20 }
 0x2a7   : > { %13198 = vmatpush3.bf16.msra.mxu1 %v2026_v28  ;;  %13177 = vmatprep.subr.bf16.mxu0 %v2019_v29  ;;  %v561_v28 = vld [vmem:[%s16178_s23 + $0x988] sm:$0xff]  ;;  %v2066_v29 = vunpack.c.l.s8.bf16 %v573_v21 }
 0x2a8   : > { %13199 = vmatprep.subr.bf16.mxu1 %v2035_v31  ;;  %v569_v31 = vld [vmem:[%s16178_s23 + $0x9c8] sm:$0xff]  ;;  %v2042_v32 = vunpack.c.l.s8.bf16 %v561_v28 }
 0x2a9   : > { %v2058_v11 = vunpack.c.l.s8.bf16 %v569_v31  ;;  %v2059_v41 = vunpack.c.h.s8.bf16 %v569_v31 }
 0x2aa   : > { %13178 = vmatpush3.bf16.msra.mxu0 %v2011_v33  ;;  %v2051_v33 = vunpack.c.h.s8.bf16 %v565_v20 }
 0x2ab   : > { %13200 = vmatpush3.bf16.msra.mxu1 %v2027_v22  ;;  %13179 = vmatprep.subr.bf16.mxu0 %v2020_v35  ;;  %v2067_v22 = vunpack.c.h.s8.bf16 %v573_v21  ;;  %v566_v35 = vld [vmem:[%s16178_s23 + $0x9b0] sm:$0xff] }
 0x2ac   : > { %13201 = vmatprep.subr.bf16.mxu1 %v2036_v36  ;;  %v2043_v36 = vunpack.c.h.s8.bf16 %v561_v28  ;;  %v2053_v45 = vunpack.c.h.s8.bf16 %v566_v35 }
 0x2ae   : > { %13180 = vmatpush3.bf16.msra.mxu0 %v2012_v42  ;;  %v2052_v42 = vunpack.c.l.s8.bf16 %v566_v35 }
 0x2af   : > { %13202 = vmatpush3.bf16.msra.mxu1 %v2028_v25  ;;  %13181 = vmatprep.subr.bf16.mxu0 %v2021_v40  ;;  %v562_v25 = vld [vmem:[%s16178_s23 + $0x990] sm:$0xff]  ;;  %v2068_v40 = vunpack.c.l.s8.bf16 %v574_v5 }
 0x2b0   : > { %13203 = vmatprep.subr.bf16.mxu1 %v2037_v30  ;;  %v12879_v52 = vpop.f32.mrb[44].mxu0  ;;  %v570_v30 = vld [vmem:[%s16178_s23 + $0x9d0] sm:$0xff]  ;;  %v2044_v44 = vunpack.c.l.s8.bf16 %v562_v25 }
 0x2b1   : > { %v12901_v15 = vpop.f32.mrb[44].mxu1  ;;  %v12880_v53 = vpop.f32.mrb[45].mxu0  ;;  %v2060_v18 = vunpack.c.l.s8.bf16 %v570_v30  ;;  %v2061_v39 = vunpack.c.h.s8.bf16 %v570_v30 }
 0x2b2   : > { %v12902_v56 = vpop.f32.mrb[45].mxu1  ;;  %v12881_v58 = vadd.f32 %v12880_v53, %v12879_v52  ;;  %v12882_v34 = vpop.f32.mrb[46].mxu0  ;;  %13182 = vmatpush3.bf16.msra.mxu0 %v2013_v48  ;;  %v2069_v48 = vunpack.c.h.s8.bf16 %v574_v5 }
 0x2b3   : > { %v12903_v1 = vadd.f32 %v12902_v56, %v12901_v15  ;;  %13204 = vmatpush3.bf16.msra.mxu1 %v2029_v49  ;;  %v12904_v60 = vpop.f32.mrb[46].mxu1  ;;  %v12883_v61 = vpop.f32.mrb[47].mxu0  ;;  %13183 = vmatprep.subr.bf16.mxu0 %v2022_v26  ;;  %v567_v49 = vld [vmem:[%s16178_s23 + $0x9b8] sm:$0xff] }
 0x2b4   : > { %13205 = vmatprep.subr.bf16.mxu1 %v2038_v50  ;;  %v12905_v62 = vpop.f32.mrb[47].mxu1  ;;  %v6841_v2 = vadd.f32 %v12881_v58, %v16715_v63  ;;  %v560_v63 = vld [vmem:[%s16178_s23 + $0x980] sm:$0xff]  ;;  %v575_v26 = vld [vmem:[%s16178_s23 + $0x9f8] sm:$0xff]  ;;  %v2045_v50 = vunpack.c.h.s8.bf16 %v562_v25  ;;  %v2054_v52 = vunpack.c.l.s8.bf16 %v567_v49  ;;  %v2055_v10 = vunpack.c.h.s8.bf16 %v567_v49  ;;  %v590_v25 = vld [vmem:[%s16178_s23 + $0xa70] sm:$0xff] }
 0x2b5   : > { %v2040_v24 = vunpack.c.l.s8.bf16 %v560_v63  ;;  %v2041_v23 = vunpack.c.h.s8.bf16 %v560_v63  ;;  %v563_v15 = vld [vmem:[%s16178_s23 + $0x998] sm:$0xff]  ;;  %v2070_v53 = vunpack.c.l.s8.bf16 %v575_v26  ;;  %v2071_v47 = vunpack.c.h.s8.bf16 %v575_v26 }
 0x2b6   : > { %v16744_v4 = vadd.f32 %v12903_v1, %v6841_v2  ;;  %13184 = vmatpush3.bf16.msra.mxu0 %v2014_v51  ;;  %v571_v56 = vld [vmem:[%s16178_s23 + $0x9d8] sm:$0xff]  ;;  %v16766_v1 = vrot.slane %v16760_v43, %v16209_v37 }
 0x2b7   : > { %13206 = vmatpush3.bf16.msra.mxu1 %v2030_v59  ;;  %13185 = vmatprep.subr.bf16.mxu0 %v2023_v6  ;;  %v2062_v62 = vunpack.c.l.s8.bf16 %v571_v56 }
 0x2b8   : > { %13207 = vmatprep.subr.bf16.mxu1 %v2039_v54  ;;  %v2046_v54 = vunpack.c.l.s8.bf16 %v563_v15  ;;  %v4326_v63 = vcombine.high %v16766_v1, %v16766_v1 }
 0x2ba   : > { %13186 = vmatpush3.bf16.msra.mxu0 %v2015_v8 }
 0x2bb   : > { %13208 = vmatpush3.bf16.msra.mxu1 %v2031_v9  ;;  %13215 = vmatprep.subr.bf16.mxu0 %v2048_v38  ;;  %v580_v9 = vld [vmem:[%s16178_s23 + $0xa20] sm:$0xff] }
 0x2bc   : > { %13237 = vmatprep.subr.bf16.mxu1 %v2064_v7  ;;  %v588_v38 = vld [vmem:[%s16178_s23 + $0xa60] sm:$0xff]  ;;  %v4292_v7 = vrot.slane %v16735_v46, %v16209_v37 }
 0x2bd   : > { %7399 = vmatmul.mubr.bf16.vlgmr.msra.gmra.mrb[72].mxu0 %v4285_v3 }
 0x2be   : > { %7439 = vmatmul.mubr.bf16.vlgmr.msra.gmra.mrb[72].mxu1 %v4307_v13  ;;  %13216 = vmatpush3.bf16.msra.mxu0 %v2040_v24  ;;  %v2063_v13 = vunpack.c.h.s8.bf16 %v571_v56  ;;  %v2080_v24 = vunpack.c.l.s8.bf16 %v580_v9  ;;  %v4308_v20 = vcombine.high %v4292_v7, %v4292_v7 }
 0x2bf   : > { %13238 = vmatpush3.bf16.msra.mxu1 %v2056_v16  ;;  %13217 = vmatprep.subr.bf16.mxu0 %v2049_v17  ;;  %v2096_v16 = vunpack.c.l.s8.bf16 %v588_v38  ;;  %v584_v17 = vld [vmem:[%s16178_s23 + $0xa40] sm:$0xff] }
 0x2c0   : > { %13239 = vmatprep.subr.bf16.mxu1 %v2065_v19  ;;  %7478 = vmatprep.mubr.bf16.mxu0 %v4306_v12  ;;  %v2047_v12 = vunpack.c.h.s8.bf16 %v563_v15  ;;  %v4348_v19 = vrot.slane %v4326_v63, %v16209_v37  ;;  %v2088_v21 = vunpack.c.l.s8.bf16 %v584_v17  ;;  %v2089_v31 = vunpack.c.h.s8.bf16 %v584_v17  ;;  %v591_v15 = vld [vmem:[%s16178_s23 + $0xa78] sm:$0xff] }
 0x2c1   : > { %7518 = vmatprep.mubr.bf16.mxu1 %v4310_v0  ;;  %v2081_v0 = vunpack.c.h.s8.bf16 %v580_v9  ;;  %v2103_v63 = vunpack.c.h.s8.bf16 %v591_v15 }
 0x2c2   : > { %13218 = vmatpush3.bf16.msra.mxu0 %v2041_v23  ;;  %v2097_v23 = vunpack.c.h.s8.bf16 %v588_v38  ;;  %v4358_v28 = vcombine.high %v4348_v19, %v4348_v19 }
 0x2c3   : > { %13240 = vmatpush3.bf16.msra.mxu1 %v2057_v14  ;;  %13219 = vmatprep.subr.bf16.mxu0 %v2050_v27  ;;  %v581_v14 = vld [vmem:[%s16178_s23 + $0xa28] sm:$0xff] }
 0x2c4   : > { %13241 = vmatprep.subr.bf16.mxu1 %v2066_v29  ;;  %v589_v27 = vld [vmem:[%s16178_s23 + $0xa68] sm:$0xff] }
 0x2c6   : > { %13220 = vmatpush3.bf16.msra.mxu0 %v2042_v32  ;;  %v2082_v32 = vunpack.c.l.s8.bf16 %v581_v14 }
 0x2c7   : > { %13242 = vmatpush3.bf16.msra.mxu1 %v2058_v11  ;;  %13221 = vmatprep.subr.bf16.mxu0 %v2051_v33  ;;  %v577_v11 = vld [vmem:[%s16178_s23 + $0xa08] sm:$0xff]  ;;  %v2098_v33 = vunpack.c.l.s8.bf16 %v589_v27 }
 0x2c8   : > { %13243 = vmatprep.subr.bf16.mxu1 %v2067_v22  ;;  %v585_v22 = vld [vmem:[%s16178_s23 + $0xa48] sm:$0xff]  ;;  %v2074_v35 = vunpack.c.l.s8.bf16 %v577_v11 }
 0x2c9   : > { %v2090_v5 = vunpack.c.l.s8.bf16 %v585_v22  ;;  %v2091_v30 = vunpack.c.h.s8.bf16 %v585_v22 }
 0x2ca   : > { %13222 = vmatpush3.bf16.msra.mxu0 %v2043_v36  ;;  %v2083_v36 = vunpack.c.h.s8.bf16 %v581_v14 }
 0x2cb   : > { %13244 = vmatpush3.bf16.msra.mxu1 %v2059_v41  ;;  %13223 = vmatprep.subr.bf16.mxu0 %v2052_v42  ;;  %v2099_v41 = vunpack.c.h.s8.bf16 %v589_v27  ;;  %v582_v42 = vld [vmem:[%s16178_s23 + $0xa30] sm:$0xff] }
 0x2cc   : > { %13245 = vmatprep.subr.bf16.mxu1 %v2068_v40  ;;  %v2075_v40 = vunpack.c.h.s8.bf16 %v577_v11 }
 0x2ce   : > { %13224 = vmatpush3.bf16.msra.mxu0 %v2044_v44  ;;  %v2084_v44 = vunpack.c.l.s8.bf16 %v582_v42 }
 0x2cf   : > { %13246 = vmatpush3.bf16.msra.mxu1 %v2060_v18  ;;  %13225 = vmatprep.subr.bf16.mxu0 %v2053_v45  ;;  %v578_v18 = vld [vmem:[%s16178_s23 + $0xa10] sm:$0xff]  ;;  %v2100_v45 = vunpack.c.l.s8.bf16 %v590_v25 }
 0x2d0   : > { %13247 = vmatprep.subr.bf16.mxu1 %v2069_v48  ;;  %v12923_v58 = vpop.f32.mrb[48].mxu0  ;;  %v586_v48 = vld [vmem:[%s16178_s23 + $0xa50] sm:$0xff]  ;;  %v2076_v49 = vunpack.c.l.s8.bf16 %v578_v18  ;;  %v2077_v56 = vunpack.c.h.s8.bf16 %v578_v18 }
 0x2d1   : > { %v12945_v34 = vpop.f32.mrb[48].mxu1  ;;  %v12924_v51 = vpop.f32.mrb[49].mxu0  ;;  %v2092_v26 = vunpack.c.l.s8.bf16 %v586_v48  ;;  %v606_v18 = vld [vmem:[%s16178_s23 + $0xaf0] sm:$0xff] }
 0x2d2   : > { %v12946_v59 = vpop.f32.mrb[49].mxu1  ;;  %v12925_v60 = vadd.f32 %v12924_v51, %v12923_v58  ;;  %v12926_v61 = vpop.f32.mrb[50].mxu0  ;;  %13226 = vmatpush3.bf16.msra.mxu0 %v2045_v50  ;;  %v2085_v50 = vunpack.c.h.s8.bf16 %v582_v42  ;;  %v2093_v58 = vunpack.c.h.s8.bf16 %v586_v48  ;;  %v579_v51 = vld [vmem:[%s16178_s23 + $0xa18] sm:$0xff] }
 0x2d3   : > { %v12947_v6 = vadd.f32 %v12946_v59, %v12945_v34  ;;  %13248 = vmatpush3.bf16.msra.mxu1 %v2061_v39  ;;  %v12948_v2 = vpop.f32.mrb[50].mxu1  ;;  %v12927_v55 = vpop.f32.mrb[51].mxu0  ;;  %13227 = vmatprep.subr.bf16.mxu0 %v2054_v52  ;;  %v2101_v39 = vunpack.c.h.s8.bf16 %v590_v25  ;;  %v583_v52 = vld [vmem:[%s16178_s23 + $0xa38] sm:$0xff]  ;;  %v2102_v59 = vunpack.c.l.s8.bf16 %v591_v15 }
 0x2d4   : > { %13249 = vmatprep.subr.bf16.mxu1 %v2070_v53  ;;  %v12949_v3 = vpop.f32.mrb[51].mxu1  ;;  %v6921_v8 = vadd.f32 %v12925_v60, %v16744_v4  ;;  %v576_v4 = vld [vmem:[%s16178_s23 + $0xa00] sm:$0xff]  ;;  %v4311_v53 = vcombine.high %v16760_v43, %v16760_v43  ;;  %v2086_v34 = vunpack.c.l.s8.bf16 %v583_v52  ;;  %v587_v60 = vld [vmem:[%s16178_s23 + $0xa58] sm:$0xff]  ;;  %v2087_v38 = vunpack.c.h.s8.bf16 %v583_v52 }
 0x2d5   : > { %v2072_v46 = vunpack.c.l.s8.bf16 %v576_v4  ;;  %v2073_v29 = vunpack.c.h.s8.bf16 %v576_v4  ;;  %v2094_v3 = vunpack.c.l.s8.bf16 %v587_v60 }
 0x2d6   : > { %v16775_v57 = vadd.f32 %v12947_v6, %v6921_v8  ;;  %13228 = vmatpush3.bf16.msra.mxu0 %v2046_v54  ;;  %v16795_v54 = vrot.slane %v4311_v53, %v16209_v37 }
 0x2d7   : > { %13250 = vmatpush3.bf16.msra.mxu1 %v2062_v62  ;;  %13229 = vmatprep.subr.bf16.mxu0 %v2055_v10 }
 0x2d8   : > { %13251 = vmatprep.subr.bf16.mxu1 %v2071_v47  ;;  %v2078_v47 = vunpack.c.l.s8.bf16 %v579_v51  ;;  %v4327_v4 = vcombine.high %v16795_v54, %v16795_v54 }
 0x2da   : > { %13230 = vmatpush3.bf16.msra.mxu0 %v2047_v12 }
 0x2db   : > { %13252 = vmatpush3.bf16.msra.mxu1 %v2063_v13  ;;  %13259 = vmatprep.subr.bf16.mxu0 %v2080_v24  ;;  %v596_v13 = vld [vmem:[%s16178_s23 + $0xaa0] sm:$0xff] }
 0x2dc   : > { %13281 = vmatprep.subr.bf16.mxu1 %v2096_v16  ;;  %v604_v24 = vld [vmem:[%s16178_s23 + $0xae0] sm:$0xff]  ;;  %v4334_v16 = vrot.slane %v16766_v1, %v16209_v37 }
 0x2dd   : > { %7479 = vmatmul.mubr.bf16.vlgmr.msra.gmra.mrb[76].mxu0 %v4292_v7 }
 0x2de   : > { %7519 = vmatmul.mubr.bf16.vlgmr.msra.gmra.mrb[76].mxu1 %v4308_v20  ;;  %13260 = vmatpush3.bf16.msra.mxu0 %v2072_v46  ;;  %v2095_v20 = vunpack.c.h.s8.bf16 %v587_v60  ;;  %v2112_v46 = vunpack.c.l.s8.bf16 %v596_v13  ;;  %v4356_v14 = vcombine.high %v4334_v16, %v4334_v16 }
 0x2df   : > { %13282 = vmatpush3.bf16.msra.mxu1 %v2088_v21  ;;  %13261 = vmatprep.subr.bf16.mxu0 %v2081_v0  ;;  %v2128_v21 = vunpack.c.l.s8.bf16 %v604_v24  ;;  %v600_v0 = vld [vmem:[%s16178_s23 + $0xac0] sm:$0xff] }
 0x2e0   : > { %13283 = vmatprep.subr.bf16.mxu1 %v2097_v23  ;;  %7558 = vmatprep.mubr.bf16.mxu0 %v4348_v19  ;;  %v2079_v19 = vunpack.c.h.s8.bf16 %v579_v51  ;;  %v4355_v23 = vrot.slane %v4327_v4, %v16209_v37  ;;  %v2120_v27 = vunpack.c.l.s8.bf16 %v600_v0  ;;  %v2121_v22 = vunpack.c.h.s8.bf16 %v600_v0  ;;  %v16820_v51 = vld [vmem:[%s16192_s25 + $0x58] sm:$0xff] }
 0x2e1   : > { %7598 = vmatprep.mubr.bf16.mxu1 %v4358_v28  ;;  %v2113_v28 = vunpack.c.h.s8.bf16 %v596_v13 }
 0x2e2   : > { %13262 = vmatpush3.bf16.msra.mxu0 %v2073_v29  ;;  %v2129_v29 = vunpack.c.h.s8.bf16 %v604_v24  ;;  %v4359_v11 = vcombine.high %v4355_v23, %v4355_v23 }
 0x2e3   : > { %13284 = vmatpush3.bf16.msra.mxu1 %v2089_v31  ;;  %13263 = vmatprep.subr.bf16.mxu0 %v2082_v32  ;;  %v597_v31 = vld [vmem:[%s16178_s23 + $0xaa8] sm:$0xff] }
 0x2e4   : > { %13285 = vmatprep.subr.bf16.mxu1 %v2098_v33  ;;  %v605_v32 = vld [vmem:[%s16178_s23 + $0xae8] sm:$0xff] }
 0x2e6   : > { %13264 = vmatpush3.bf16.msra.mxu0 %v2074_v35  ;;  %v2114_v35 = vunpack.c.l.s8.bf16 %v597_v31 }
 0x2e7   : > { %13286 = vmatpush3.bf16.msra.mxu1 %v2090_v5  ;;  %13265 = vmatprep.subr.bf16.mxu0 %v2083_v36  ;;  %v593_v5 = vld [vmem:[%s16178_s23 + $0xa88] sm:$0xff]  ;;  %v2130_v36 = vunpack.c.l.s8.bf16 %v605_v32 }
 0x2e8   : > { %13287 = vmatprep.subr.bf16.mxu1 %v2099_v41  ;;  %v601_v41 = vld [vmem:[%s16178_s23 + $0xac8] sm:$0xff]  ;;  %v2106_v42 = vunpack.c.l.s8.bf16 %v593_v5 }
 0x2e9   : > { %v2122_v25 = vunpack.c.l.s8.bf16 %v601_v41  ;;  %v2123_v48 = vunpack.c.h.s8.bf16 %v601_v41 }
 0x2ea   : > { %13266 = vmatpush3.bf16.msra.mxu0 %v2075_v40  ;;  %v2115_v40 = vunpack.c.h.s8.bf16 %v597_v31 }
 0x2eb   : > { %13288 = vmatpush3.bf16.msra.mxu1 %v2091_v30  ;;  %13267 = vmatprep.subr.bf16.mxu0 %v2084_v44  ;;  %v2131_v30 = vunpack.c.h.s8.bf16 %v605_v32  ;;  %v598_v44 = vld [vmem:[%s16178_s23 + $0xab0] sm:$0xff] }
 0x2ec   : > { %13289 = vmatprep.subr.bf16.mxu1 %v2100_v45  ;;  %v2107_v45 = vunpack.c.h.s8.bf16 %v593_v5  ;;  %v2117_v53 = vunpack.c.h.s8.bf16 %v598_v44 }
 0x2ee   : > { %13268 = vmatpush3.bf16.msra.mxu0 %v2076_v49  ;;  %v2116_v49 = vunpack.c.l.s8.bf16 %v598_v44 }
 0x2ef   : > { %13290 = vmatpush3.bf16.msra.mxu1 %v2092_v26  ;;  %13269 = vmatprep.subr.bf16.mxu0 %v2085_v50  ;;  %v594_v26 = vld [vmem:[%s16178_s23 + $0xa90] sm:$0xff]  ;;  %v2132_v50 = vunpack.c.l.s8.bf16 %v606_v18 }
 0x2f0   : > { %13291 = vmatprep.subr.bf16.mxu1 %v2101_v39  ;;  %v12967_v61 = vpop.f32.mrb[52].mxu0  ;;  %v602_v39 = vld [vmem:[%s16178_s23 + $0xad0] sm:$0xff]  ;;  %v2108_v52 = vunpack.c.l.s8.bf16 %v594_v26 }
 0x2f1   : > { %v12989_v6 = vpop.f32.mrb[52].mxu1  ;;  %v12968_v62 = vpop.f32.mrb[53].mxu0  ;;  %v2124_v15 = vunpack.c.l.s8.bf16 %v602_v39  ;;  %v2125_v60 = vunpack.c.h.s8.bf16 %v602_v39 }
 0x2f2   : > { %v12990_v2 = vpop.f32.mrb[53].mxu1  ;;  %v12969_v55 = vadd.f32 %v12968_v62, %v12967_v61  ;;  %v12970_v43 = vpop.f32.mrb[54].mxu0  ;;  %13270 = vmatpush3.bf16.msra.mxu0 %v2077_v56  ;;  %v2133_v56 = vunpack.c.h.s8.bf16 %v606_v18 }
 0x2f3   : > { %v12991_v10 = vadd.f32 %v12990_v2, %v12989_v6  ;;  %13292 = vmatpush3.bf16.msra.mxu1 %v2093_v58  ;;  %v12992_v8 = vpop.f32.mrb[54].mxu1  ;;  %v12971_v9 = vpop.f32.mrb[55].mxu0  ;;  %13271 = vmatprep.subr.bf16.mxu0 %v2086_v34  ;;  %v599_v58 = vld [vmem:[%s16178_s23 + $0xab8] sm:$0xff] }
 0x2f4   : > { %13293 = vmatprep.subr.bf16.mxu1 %v2102_v59  ;;  %v12993_v7 = vpop.f32.mrb[55].mxu1  ;;  %v7001_v12 = vadd.f32 %v12969_v55, %v16775_v57  ;;  %v592_v57 = vld [vmem:[%s16178_s23 + $0xa80] sm:$0xff]  ;;  %v607_v34 = vld [vmem:[%s16178_s23 + $0xaf8] sm:$0xff]  ;;  %v2109_v59 = vunpack.c.h.s8.bf16 %v594_v26  ;;  %v2118_v61 = vunpack.c.l.s8.bf16 %v599_v58  ;;  %v2119_v24 = vunpack.c.h.s8.bf16 %v599_v58  ;;  %v622_v26 = vld [vmem:[%s16178_s23 + $0xb70] sm:$0xff] }
 0x2f5   : > { %v2104_v1 = vunpack.c.l.s8.bf16 %v592_v57  ;;  %v2105_v33 = vunpack.c.h.s8.bf16 %v592_v57  ;;  %v595_v6 = vld [vmem:[%s16178_s23 + $0xa98] sm:$0xff]  ;;  %v2134_v62 = vunpack.c.l.s8.bf16 %v607_v34  ;;  %v2135_v4 = vunpack.c.h.s8.bf16 %v607_v34 }
 0x2f6   : > { %v16804_v17 = vadd.f32 %v12991_v10, %v7001_v12  ;;  %13272 = vmatpush3.bf16.msra.mxu0 %v2078_v47  ;;  %v603_v2 = vld [vmem:[%s16178_s23 + $0xad8] sm:$0xff]  ;;  %v16826_v10 = vrot.slane %v16820_v51, %v16209_v37 }
 0x2f7   : > { %13294 = vmatpush3.bf16.msra.mxu1 %v2094_v3  ;;  %13273 = vmatprep.subr.bf16.mxu0 %v2087_v38  ;;  %v2126_v7 = vunpack.c.l.s8.bf16 %v603_v2 }
 0x2f8   : > { %13295 = vmatprep.subr.bf16.mxu1 %v2103_v63  ;;  %v2110_v63 = vunpack.c.l.s8.bf16 %v595_v6  ;;  %v4375_v57 = vcombine.high %v16826_v10, %v16826_v10 }
 0x2fa   : > { %13274 = vmatpush3.bf16.msra.mxu0 %v2079_v19 }
 0x2fb   : > { %13296 = vmatpush3.bf16.msra.mxu1 %v2095_v20  ;;  %13303 = vmatprep.subr.bf16.mxu0 %v2112_v46  ;;  %v612_v20 = vld [vmem:[%s16178_s23 + $0xb20] sm:$0xff] }
 0x2fc   : > { %13325 = vmatprep.subr.bf16.mxu1 %v2128_v21  ;;  %v620_v46 = vld [vmem:[%s16178_s23 + $0xb60] sm:$0xff]  ;;  %v4341_v21 = vrot.slane %v16795_v54, %v16209_v37 }
 0x2fd   : > { %7559 = vmatmul.mubr.bf16.vlgmr.msra.gmra.mrb[80].mxu0 %v4334_v16 }
 0x2fe   : > { %7599 = vmatmul.mubr.bf16.vlgmr.msra.gmra.mrb[80].mxu1 %v4356_v14  ;;  %13304 = vmatpush3.bf16.msra.mxu0 %v2104_v1  ;;  %v2127_v14 = vunpack.c.h.s8.bf16 %v603_v2  ;;  %v2144_v1 = vunpack.c.l.s8.bf16 %v612_v20  ;;  %v4357_v31 = vcombine.high %v4341_v21, %v4341_v21 }
 0x2ff   : > { %13326 = vmatpush3.bf16.msra.mxu1 %v2120_v27  ;;  %13305 = vmatprep.subr.bf16.mxu0 %v2113_v28  ;;  %v2160_v27 = vunpack.c.l.s8.bf16 %v620_v46  ;;  %v616_v28 = vld [vmem:[%s16178_s23 + $0xb40] sm:$0xff] }
 0x300   : > { %13327 = vmatprep.subr.bf16.mxu1 %v2129_v29  ;;  %7638 = vmatprep.mubr.bf16.mxu0 %v4355_v23  ;;  %v2111_v23 = vunpack.c.h.s8.bf16 %v595_v6  ;;  %v4397_v29 = vrot.slane %v4375_v57, %v16209_v37  ;;  %v2152_v32 = vunpack.c.l.s8.bf16 %v616_v28  ;;  %v2153_v41 = vunpack.c.h.s8.bf16 %v616_v28  ;;  %v623_v6 = vld [vmem:[%s16178_s23 + $0xb78] sm:$0xff] }
 0x301   : > { %7678 = vmatprep.mubr.bf16.mxu1 %v4359_v11  ;;  %v2145_v11 = vunpack.c.h.s8.bf16 %v612_v20  ;;  %v2167_v57 = vunpack.c.h.s8.bf16 %v623_v6 }
 0x302   : > { %13306 = vmatpush3.bf16.msra.mxu0 %v2105_v33  ;;  %v2161_v33 = vunpack.c.h.s8.bf16 %v620_v46  ;;  %v4407_v5 = vcombine.high %v4397_v29, %v4397_v29 }
 0x303   : > { %13328 = vmatpush3.bf16.msra.mxu1 %v2121_v22  ;;  %13307 = vmatprep.subr.bf16.mxu0 %v2114_v35  ;;  %v613_v22 = vld [vmem:[%s16178_s23 + $0xb28] sm:$0xff] }
 0x304   : > { %13329 = vmatprep.subr.bf16.mxu1 %v2130_v36  ;;  %v621_v35 = vld [vmem:[%s16178_s23 + $0xb68] sm:$0xff] }
 0x306   : > { %13308 = vmatpush3.bf16.msra.mxu0 %v2106_v42  ;;  %v2146_v42 = vunpack.c.l.s8.bf16 %v613_v22 }
 0x307   : > { %13330 = vmatpush3.bf16.msra.mxu1 %v2122_v25  ;;  %13309 = vmatprep.subr.bf16.mxu0 %v2115_v40  ;;  %v609_v25 = vld [vmem:[%s16178_s23 + $0xb08] sm:$0xff]  ;;  %v2162_v40 = vunpack.c.l.s8.bf16 %v621_v35 }
 0x308   : > { %13331 = vmatprep.subr.bf16.mxu1 %v2131_v30  ;;  %v617_v30 = vld [vmem:[%s16178_s23 + $0xb48] sm:$0xff]  ;;  %v2138_v44 = vunpack.c.l.s8.bf16 %v609_v25 }
 0x309   : > { %v2154_v18 = vunpack.c.l.s8.bf16 %v617_v30  ;;  %v2155_v39 = vunpack.c.h.s8.bf16 %v617_v30 }
 0x30a   : > { %13310 = vmatpush3.bf16.msra.mxu0 %v2107_v45  ;;  %v2147_v45 = vunpack.c.h.s8.bf16 %v613_v22 }
 0x30b   : > { %13332 = vmatpush3.bf16.msra.mxu1 %v2123_v48  ;;  %13311 = vmatprep.subr.bf16.mxu0 %v2116_v49  ;;  %v2163_v48 = vunpack.c.h.s8.bf16 %v621_v35  ;;  %v614_v49 = vld [vmem:[%s16178_s23 + $0xb30] sm:$0xff] }
 0x30c   : > { %13333 = vmatprep.subr.bf16.mxu1 %v2132_v50  ;;  %v2139_v50 = vunpack.c.h.s8.bf16 %v609_v25 }
 0x30e   : > { %13312 = vmatpush3.bf16.msra.mxu0 %v2108_v52  ;;  %v2148_v52 = vunpack.c.l.s8.bf16 %v614_v49 }
 0x30f   : > { %13334 = vmatpush3.bf16.msra.mxu1 %v2124_v15  ;;  %13313 = vmatprep.subr.bf16.mxu0 %v2117_v53  ;;  %v610_v15 = vld [vmem:[%s16178_s23 + $0xb10] sm:$0xff]  ;;  %v2164_v53 = vunpack.c.l.s8.bf16 %v622_v26 }
 0x310   : > { %13335 = vmatprep.subr.bf16.mxu1 %v2133_v56  ;;  %v13011_v55 = vpop.f32.mrb[56].mxu0  ;;  %v618_v56 = vld [vmem:[%s16178_s23 + $0xb50] sm:$0xff]  ;;  %v2140_v58 = vunpack.c.l.s8.bf16 %v610_v15  ;;  %v2141_v2 = vunpack.c.h.s8.bf16 %v610_v15 }
 0x311   : > { %v13033_v43 = vpop.f32.mrb[56].mxu1  ;;  %v13012_v47 = vpop.f32.mrb[57].mxu0  ;;  %v2156_v34 = vunpack.c.l.s8.bf16 %v618_v56  ;;  %v638_v15 = vld [vmem:[%s16178_s23 + $0xbf0] sm:$0xff] }
 0x312   : > { %v13034_v3 = vpop.f32.mrb[57].mxu1  ;;  %v13013_v8 = vadd.f32 %v13012_v47, %v13011_v55  ;;  %v13014_v9 = vpop.f32.mrb[58].mxu0  ;;  %13314 = vmatpush3.bf16.msra.mxu0 %v2109_v59  ;;  %v2149_v59 = vunpack.c.h.s8.bf16 %v614_v49  ;;  %v2157_v55 = vunpack.c.h.s8.bf16 %v618_v56  ;;  %v611_v47 = vld [vmem:[%s16178_s23 + $0xb18] sm:$0xff] }
 0x313   : > { %v13035_v38 = vadd.f32 %v13034_v3, %v13033_v43  ;;  %13336 = vmatpush3.bf16.msra.mxu1 %v2125_v60  ;;  %v13036_v12 = vpop.f32.mrb[58].mxu1  ;;  %v13015_v13 = vpop.f32.mrb[59].mxu0  ;;  %13315 = vmatprep.subr.bf16.mxu0 %v2118_v61  ;;  %v2165_v60 = vunpack.c.h.s8.bf16 %v622_v26  ;;  %v615_v61 = vld [vmem:[%s16178_s23 + $0xb38] sm:$0xff]  ;;  %v2166_v3 = vunpack.c.l.s8.bf16 %v623_v6 }
 0x314   : > { %13337 = vmatprep.subr.bf16.mxu1 %v2134_v62  ;;  %v13037_v16 = vpop.f32.mrb[59].mxu1  ;;  %v7081_v19 = vadd.f32 %v13013_v8, %v16804_v17  ;;  %v608_v17 = vld [vmem:[%s16178_s23 + $0xb00] sm:$0xff]  ;;  %v4360_v62 = vcombine.high %v16820_v51, %v16820_v51  ;;  %v2150_v43 = vunpack.c.l.s8.bf16 %v615_v61  ;;  %v619_v8 = vld [vmem:[%s16178_s23 + $0xb58] sm:$0xff]  ;;  %v2151_v46 = vunpack.c.h.s8.bf16 %v615_v61 }
 0x315   : > { %v2136_v54 = vunpack.c.l.s8.bf16 %v608_v17  ;;  %v2137_v36 = vunpack.c.h.s8.bf16 %v608_v17  ;;  %v2158_v16 = vunpack.c.l.s8.bf16 %v619_v8 }
 0x316   : > { %v16835_v0 = vadd.f32 %v13035_v38, %v7081_v19  ;;  %13316 = vmatpush3.bf16.msra.mxu0 %v2110_v63  ;;  %v16855_v63 = vrot.slane %v4360_v62, %v16209_v37 }
 0x317   : > { %13338 = vmatpush3.bf16.msra.mxu1 %v2126_v7  ;;  %13317 = vmatprep.subr.bf16.mxu0 %v2119_v24 }
 0x318   : > { %13339 = vmatprep.subr.bf16.mxu1 %v2135_v4  ;;  %v2142_v4 = vunpack.c.l.s8.bf16 %v611_v47  ;;  %v4376_v17 = vcombine.high %v16855_v63, %v16855_v63 }
 0x31a   : > { %13318 = vmatpush3.bf16.msra.mxu0 %v2111_v23 }
 0x31b   : > { %13340 = vmatpush3.bf16.msra.mxu1 %v2127_v14  ;;  %13347 = vmatprep.subr.bf16.mxu0 %v2144_v1  ;;  %v628_v14 = vld [vmem:[%s16178_s23 + $0xba0] sm:$0xff] }
 0x31c   : > { %13369 = vmatprep.subr.bf16.mxu1 %v2160_v27  ;;  %v636_v1 = vld [vmem:[%s16178_s23 + $0xbe0] sm:$0xff]  ;;  %v4383_v27 = vrot.slane %v16826_v10, %v16209_v37 }
 0x31d   : > { %7639 = vmatmul.mubr.bf16.vlgmr.msra.gmra.mrb[84].mxu0 %v4341_v21 }
 0x31e   : > { %7679 = vmatmul.mubr.bf16.vlgmr.msra.gmra.mrb[84].mxu1 %v4357_v31  ;;  %13348 = vmatpush3.bf16.msra.mxu0 %v2136_v54  ;;  %v2159_v31 = vunpack.c.h.s8.bf16 %v619_v8  ;;  %v2176_v54 = vunpack.c.l.s8.bf16 %v628_v14  ;;  %v4405_v22 = vcombine.high %v4383_v27, %v4383_v27 }
 0x31f   : > { %13370 = vmatpush3.bf16.msra.mxu1 %v2152_v32  ;;  %13349 = vmatprep.subr.bf16.mxu0 %v2145_v11  ;;  %v2192_v32 = vunpack.c.l.s8.bf16 %v636_v1  ;;  %v632_v11 = vld [vmem:[%s16178_s23 + $0xbc0] sm:$0xff] }
 0x320   : > { %13371 = vmatprep.subr.bf16.mxu1 %v2161_v33  ;;  %7718 = vmatprep.mubr.bf16.mxu0 %v4397_v29  ;;  %v2143_v29 = vunpack.c.h.s8.bf16 %v611_v47  ;;  %v4404_v33 = vrot.slane %v4376_v17, %v16209_v37  ;;  %v2184_v35 = vunpack.c.l.s8.bf16 %v632_v11  ;;  %v2185_v30 = vunpack.c.h.s8.bf16 %v632_v11  ;;  %v16880_v47 = vld [vmem:[%s16192_s25 + $0x60] sm:$0xff] }
 0x321   : > { %7758 = vmatprep.mubr.bf16.mxu1 %v4407_v5  ;;  %v2177_v5 = vunpack.c.h.s8.bf16 %v628_v14 }
 0x322   : > { %13350 = vmatpush3.bf16.msra.mxu0 %v2137_v36  ;;  %v2193_v36 = vunpack.c.h.s8.bf16 %v636_v1  ;;  %v4408_v25 = vcombine.high %v4404_v33, %v4404_v33 }
 0x323   : > { %13372 = vmatpush3.bf16.msra.mxu1 %v2153_v41  ;;  %13351 = vmatprep.subr.bf16.mxu0 %v2146_v42  ;;  %v629_v41 = vld [vmem:[%s16178_s23 + $0xba8] sm:$0xff] }
 0x324   : > { %13373 = vmatprep.subr.bf16.mxu1 %v2162_v40  ;;  %v637_v42 = vld [vmem:[%s16178_s23 + $0xbe8] sm:$0xff] }
 0x326   : > { %13352 = vmatpush3.bf16.msra.mxu0 %v2138_v44  ;;  %v2178_v44 = vunpack.c.l.s8.bf16 %v629_v41 }
 0x327   : > { %13374 = vmatpush3.bf16.msra.mxu1 %v2154_v18  ;;  %13353 = vmatprep.subr.bf16.mxu0 %v2147_v45  ;;  %v625_v18 = vld [vmem:[%s16178_s23 + $0xb88] sm:$0xff]  ;;  %v2194_v45 = vunpack.c.l.s8.bf16 %v637_v42 }
 0x328   : > { %13375 = vmatprep.subr.bf16.mxu1 %v2163_v48  ;;  %v633_v48 = vld [vmem:[%s16178_s23 + $0xbc8] sm:$0xff]  ;;  %v2170_v49 = vunpack.c.l.s8.bf16 %v625_v18 }
 0x329   : > { %v2186_v26 = vunpack.c.l.s8.bf16 %v633_v48  ;;  %v2187_v56 = vunpack.c.h.s8.bf16 %v633_v48 }
 0x32a   : > { %13354 = vmatpush3.bf16.msra.mxu0 %v2139_v50  ;;  %v2179_v50 = vunpack.c.h.s8.bf16 %v629_v41 }
 0x32b   : > { %13376 = vmatpush3.bf16.msra.mxu1 %v2155_v39  ;;  %13355 = vmatprep.subr.bf16.mxu0 %v2148_v52  ;;  %v2195_v39 = vunpack.c.h.s8.bf16 %v637_v42  ;;  %v630_v52 = vld [vmem:[%s16178_s23 + $0xbb0] sm:$0xff] }
 0x32c   : > { %13377 = vmatprep.subr.bf16.mxu1 %v2164_v53  ;;  %v2171_v53 = vunpack.c.h.s8.bf16 %v625_v18  ;;  %v2181_v62 = vunpack.c.h.s8.bf16 %v630_v52 }
 0x32e   : > { %13356 = vmatpush3.bf16.msra.mxu0 %v2140_v58  ;;  %v2180_v58 = vunpack.c.l.s8.bf16 %v630_v52 }
 0x32f   : > { %13378 = vmatpush3.bf16.msra.mxu1 %v2156_v34  ;;  %13357 = vmatprep.subr.bf16.mxu0 %v2149_v59  ;;  %v626_v34 = vld [vmem:[%s16178_s23 + $0xb90] sm:$0xff]  ;;  %v2196_v59 = vunpack.c.l.s8.bf16 %v638_v15 }
 0x330   : > { %13379 = vmatprep.subr.bf16.mxu1 %v2165_v60  ;;  %v13055_v9 = vpop.f32.mrb[60].mxu0  ;;  %v634_v60 = vld [vmem:[%s16178_s23 + $0xbd0] sm:$0xff]  ;;  %v2172_v61 = vunpack.c.l.s8.bf16 %v626_v34 }
 0x331   : > { %v13077_v38 = vpop.f32.mrb[60].mxu1  ;;  %v13056_v7 = vpop.f32.mrb[61].mxu0  ;;  %v2188_v6 = vunpack.c.l.s8.bf16 %v634_v60  ;;  %v2189_v8 = vunpack.c.h.s8.bf16 %v634_v60 }
 0x332   : > { %v13078_v12 = vpop.f32.mrb[61].mxu1  ;;  %v13057_v13 = vadd.f32 %v13056_v7, %v13055_v9  ;;  %v13058_v51 = vpop.f32.mrb[62].mxu0  ;;  %13358 = vmatpush3.bf16.msra.mxu0 %v2141_v2  ;;  %v2197_v2 = vunpack.c.h.s8.bf16 %v638_v15 }
 0x333   : > { %v13079_v24 = vadd.f32 %v13078_v12, %v13077_v38  ;;  %13380 = vmatpush3.bf16.msra.mxu1 %v2157_v55  ;;  %v13080_v19 = vpop.f32.mrb[62].mxu1  ;;  %v13059_v20 = vpop.f32.mrb[63].mxu0  ;;  %13359 = vmatprep.subr.bf16.mxu0 %v2150_v43  ;;  %v631_v55 = vld [vmem:[%s16178_s23 + $0xbb8] sm:$0xff] }
 0x334   : > { %13381 = vmatprep.subr.bf16.mxu1 %v2166_v3  ;;  %v13081_v21 = vpop.f32.mrb[63].mxu1  ;;  %v7161_v23 = vadd.f32 %v13057_v13, %v16835_v0  ;;  %v624_v0 = vld [vmem:[%s16178_s23 + $0xb80] sm:$0xff]  ;;  %v639_v43 = vld [vmem:[%s16178_s23 + $0xbf8] sm:$0xff]  ;;  %v2173_v3 = vunpack.c.h.s8.bf16 %v626_v34  ;;  %v2182_v9 = vunpack.c.l.s8.bf16 %v631_v55  ;;  %v2183_v1 = vunpack.c.h.s8.bf16 %v631_v55  ;;  %v654_v34 = vld [vmem:[%s16178_s23 + $0xc70] sm:$0xff] }
 0x335   : > { %v2168_v10 = vunpack.c.l.s8.bf16 %v624_v0  ;;  %v2169_v40 = vunpack.c.h.s8.bf16 %v624_v0  ;;  %v627_v38 = vld [vmem:[%s16178_s23 + $0xb98] sm:$0xff]  ;;  %v2198_v7 = vunpack.c.l.s8.bf16 %v639_v43  ;;  %v2199_v17 = vunpack.c.h.s8.bf16 %v639_v43 }
 0x336   : > { %v16864_v28 = vadd.f32 %v13079_v24, %v7161_v23  ;;  %13360 = vmatpush3.bf16.msra.mxu0 %v2142_v4  ;;  %v635_v12 = vld [vmem:[%s16178_s23 + $0xbd8] sm:$0xff]  ;;  %v16886_v24 = vrot.slane %v16880_v47, %v16209_v37 }
 0x337   : > { %13382 = vmatpush3.bf16.msra.mxu1 %v2158_v16  ;;  %13361 = vmatprep.subr.bf16.mxu0 %v2151_v46  ;;  %v2190_v21 = vunpack.c.l.s8.bf16 %v635_v12 }
 0x338   : > { %13383 = vmatprep.subr.bf16.mxu1 %v2167_v57  ;;  %v2174_v57 = vunpack.c.l.s8.bf16 %v627_v38  ;;  %v4424_v0 = vcombine.high %v16886_v24, %v16886_v24 }
 0x33a   : > { %13362 = vmatpush3.bf16.msra.mxu0 %v2143_v29 }
 0x33b   : > { %13384 = vmatpush3.bf16.msra.mxu1 %v2159_v31  ;;  %13391 = vmatprep.subr.bf16.mxu0 %v2176_v54  ;;  %v644_v31 = vld [vmem:[%s16178_s23 + $0xc20] sm:$0xff] }
 0x33c   : > { %13413 = vmatprep.subr.bf16.mxu1 %v2192_v32  ;;  %v652_v54 = vld [vmem:[%s16178_s23 + $0xc60] sm:$0xff]  ;;  %v4390_v32 = vrot.slane %v16855_v63, %v16209_v37 }
 0x33d   : > { %7719 = vmatmul.mubr.bf16.vlgmr.msra.gmra.mrb[88].mxu0 %v4383_v27 }
 0x33e   : > { %7759 = vmatmul.mubr.bf16.vlgmr.msra.gmra.mrb[88].mxu1 %v4405_v22  ;;  %13392 = vmatpush3.bf16.msra.mxu0 %v2168_v10  ;;  %v2191_v22 = vunpack.c.h.s8.bf16 %v635_v12  ;;  %v2208_v10 = vunpack.c.l.s8.bf16 %v644_v31  ;;  %v4406_v41 = vcombine.high %v4390_v32, %v4390_v32 }
 0x33f   : > { %13414 = vmatpush3.bf16.msra.mxu1 %v2184_v35  ;;  %13393 = vmatprep.subr.bf16.mxu0 %v2177_v5  ;;  %v2224_v35 = vunpack.c.l.s8.bf16 %v652_v54  ;;  %v648_v5 = vld [vmem:[%s16178_s23 + $0xc40] sm:$0xff] }
 0x340   : > { %13415 = vmatprep.subr.bf16.mxu1 %v2193_v36  ;;  %7798 = vmatprep.mubr.bf16.mxu0 %v4404_v33  ;;  %v2175_v33 = vunpack.c.h.s8.bf16 %v627_v38  ;;  %v4446_v36 = vrot.slane %v4424_v0, %v16209_v37  ;;  %v2216_v42 = vunpack.c.l.s8.bf16 %v648_v5  ;;  %v2217_v48 = vunpack.c.h.s8.bf16 %v648_v5  ;;  %v655_v38 = vld [vmem:[%s16178_s23 + $0xc78] sm:$0xff] }
 0x341   : > { %7838 = vmatprep.mubr.bf16.mxu1 %v4408_v25  ;;  %v2209_v25 = vunpack.c.h.s8.bf16 %v644_v31  ;;  %v2231_v0 = vunpack.c.h.s8.bf16 %v655_v38 }
 0x342   : > { %13394 = vmatpush3.bf16.msra.mxu0 %v2169_v40  ;;  %v2225_v40 = vunpack.c.h.s8.bf16 %v652_v54  ;;  %v4456_v18 = vcombine.high %v4446_v36, %v4446_v36 }
 0x343   : > { %13416 = vmatpush3.bf16.msra.mxu1 %v2185_v30  ;;  %13395 = vmatprep.subr.bf16.mxu0 %v2178_v44  ;;  %v645_v30 = vld [vmem:[%s16178_s23 + $0xc28] sm:$0xff] }
 0x344   : > { %13417 = vmatprep.subr.bf16.mxu1 %v2194_v45  ;;  %v653_v44 = vld [vmem:[%s16178_s23 + $0xc68] sm:$0xff] }
 0x346   : > { %13396 = vmatpush3.bf16.msra.mxu0 %v2170_v49  ;;  %v2210_v49 = vunpack.c.l.s8.bf16 %v645_v30 }
 0x347   : > { %13418 = vmatpush3.bf16.msra.mxu1 %v2186_v26  ;;  %13397 = vmatprep.subr.bf16.mxu0 %v2179_v50  ;;  %v641_v26 = vld [vmem:[%s16178_s23 + $0xc08] sm:$0xff]  ;;  %v2226_v50 = vunpack.c.l.s8.bf16 %v653_v44 }
 0x348   : > { %13419 = vmatprep.subr.bf16.mxu1 %v2195_v39  ;;  %v649_v39 = vld [vmem:[%s16178_s23 + $0xc48] sm:$0xff]  ;;  %v2202_v52 = vunpack.c.l.s8.bf16 %v641_v26 }
 0x349   : > { %v2218_v15 = vunpack.c.l.s8.bf16 %v649_v39  ;;  %v2219_v60 = vunpack.c.h.s8.bf16 %v649_v39 }
 0x34a   : > { %13398 = vmatpush3.bf16.msra.mxu0 %v2171_v53  ;;  %v2211_v53 = vunpack.c.h.s8.bf16 %v645_v30 }
 0x34b   : > { %13420 = vmatpush3.bf16.msra.mxu1 %v2187_v56  ;;  %13399 = vmatprep.subr.bf16.mxu0 %v2180_v58  ;;  %v2227_v56 = vunpack.c.h.s8.bf16 %v653_v44  ;;  %v646_v58 = vld [vmem:[%s16178_s23 + $0xc30] sm:$0xff] }
 0x34c   : > { %13421 = vmatprep.subr.bf16.mxu1 %v2196_v59  ;;  %v2203_v59 = vunpack.c.h.s8.bf16 %v641_v26 }
 0x34e   : > { %13400 = vmatpush3.bf16.msra.mxu0 %v2172_v61  ;;  %v2212_v61 = vunpack.c.l.s8.bf16 %v646_v58 }
 0x34f   : > { %13422 = vmatpush3.bf16.msra.mxu1 %v2188_v6  ;;  %13401 = vmatprep.subr.bf16.mxu0 %v2181_v62  ;;  %v642_v6 = vld [vmem:[%s16178_s23 + $0xc10] sm:$0xff]  ;;  %v2228_v62 = vunpack.c.l.s8.bf16 %v654_v34 }
 0x350   : > { %13423 = vmatprep.subr.bf16.mxu1 %v2197_v2  ;;  %v13099_v13 = vpop.f32.mrb[64].mxu0  ;;  %v650_v2 = vld [vmem:[%s16178_s23 + $0xc50] sm:$0xff]  ;;  %v2204_v55 = vunpack.c.l.s8.bf16 %v642_v6  ;;  %v2205_v12 = vunpack.c.h.s8.bf16 %v642_v6 }
 0x351   : > { %v13121_v51 = vpop.f32.mrb[64].mxu1  ;;  %v13100_v4 = vpop.f32.mrb[65].mxu0  ;;  %v2220_v43 = vunpack.c.l.s8.bf16 %v650_v2  ;;  %v670_v6 = vld [vmem:[%s16178_s23 + $0xcf0] sm:$0xff] }
 0x352   : > { %v13122_v16 = vpop.f32.mrb[65].mxu1  ;;  %v13101_v19 = vadd.f32 %v13100_v4, %v13099_v13  ;;  %v13102_v20 = vpop.f32.mrb[66].mxu0  ;;  %13402 = vmatpush3.bf16.msra.mxu0 %v2173_v3  ;;  %v2213_v3 = vunpack.c.h.s8.bf16 %v646_v58  ;;  %v2221_v13 = vunpack.c.h.s8.bf16 %v650_v2  ;;  %v643_v4 = vld [vmem:[%s16178_s23 + $0xc18] sm:$0xff] }
 0x353   : > { %v13123_v46 = vadd.f32 %v13122_v16, %v13121_v51  ;;  %13424 = vmatpush3.bf16.msra.mxu1 %v2189_v8  ;;  %v13124_v23 = vpop.f32.mrb[66].mxu1  ;;  %v13103_v14 = vpop.f32.mrb[67].mxu0  ;;  %13403 = vmatprep.subr.bf16.mxu0 %v2182_v9  ;;  %v2229_v8 = vunpack.c.h.s8.bf16 %v654_v34  ;;  %v647_v9 = vld [vmem:[%s16178_s23 + $0xc38] sm:$0xff]  ;;  %v2230_v16 = vunpack.c.l.s8.bf16 %v655_v38 }
 0x354   : > { %13425 = vmatprep.subr.bf16.mxu1 %v2198_v7  ;;  %v13125_v27 = vpop.f32.mrb[67].mxu1  ;;  %v7241_v29 = vadd.f32 %v13101_v19, %v16864_v28  ;;  %v640_v28 = vld [vmem:[%s16178_s23 + $0xc00] sm:$0xff]  ;;  %v4409_v7 = vcombine.high %v16880_v47, %v16880_v47  ;;  %v2214_v51 = vunpack.c.l.s8.bf16 %v647_v9  ;;  %v651_v19 = vld [vmem:[%s16178_s23 + $0xc58] sm:$0xff]  ;;  %v2215_v54 = vunpack.c.h.s8.bf16 %v647_v9 }
 0x355   : > { %v2200_v63 = vunpack.c.l.s8.bf16 %v640_v28  ;;  %v2201_v45 = vunpack.c.h.s8.bf16 %v640_v28  ;;  %v2222_v27 = vunpack.c.l.s8.bf16 %v651_v19 }
 0x356   : > { %v16895_v11 = vadd.f32 %v13123_v46, %v7241_v29  ;;  %13404 = vmatpush3.bf16.msra.mxu0 %v2174_v57  ;;  %v16915_v57 = vrot.slane %v4409_v7, %v16209_v37 }
 0x357   : > { %13426 = vmatpush3.bf16.msra.mxu1 %v2190_v21  ;;  %13405 = vmatprep.subr.bf16.mxu0 %v2183_v1 }
 0x358   : > { %13427 = vmatprep.subr.bf16.mxu1 %v2199_v17  ;;  %v2206_v17 = vunpack.c.l.s8.bf16 %v643_v4  ;;  %v4425_v28 = vcombine.high %v16915_v57, %v16915_v57 }
 0x35a   : > { %13406 = vmatpush3.bf16.msra.mxu0 %v2175_v33 }
 0x35b   : > { %13428 = vmatpush3.bf16.msra.mxu1 %v2191_v22  ;;  %13435 = vmatprep.subr.bf16.mxu0 %v2208_v10  ;;  %v660_v22 = vld [vmem:[%s16178_s23 + $0xca0] sm:$0xff] }
 0x35c   : > { %13457 = vmatprep.subr.bf16.mxu1 %v2224_v35  ;;  %v668_v10 = vld [vmem:[%s16178_s23 + $0xce0] sm:$0xff]  ;;  %v4432_v35 = vrot.slane %v16886_v24, %v16209_v37 }
 0x35d   : > { %7799 = vmatmul.mubr.bf16.vlgmr.msra.gmra.mrb[92].mxu0 %v4390_v32 }
 0x35e   : > { %7839 = vmatmul.mubr.bf16.vlgmr.msra.gmra.mrb[92].mxu1 %v4406_v41  ;;  %13436 = vmatpush3.bf16.msra.mxu0 %v2200_v63  ;;  %v2223_v41 = vunpack.c.h.s8.bf16 %v651_v19  ;;  %v2240_v63 = vunpack.c.l.s8.bf16 %v660_v22  ;;  %v4454_v30 = vcombine.high %v4432_v35, %v4432_v35 }
 0x35f   : > { %13458 = vmatpush3.bf16.msra.mxu1 %v2216_v42  ;;  %13437 = vmatprep.subr.bf16.mxu0 %v2209_v25  ;;  %v2256_v42 = vunpack.c.l.s8.bf16 %v668_v10  ;;  %v664_v25 = vld [vmem:[%s16178_s23 + $0xcc0] sm:$0xff] }
 0x360   : > { %13459 = vmatprep.subr.bf16.mxu1 %v2225_v40  ;;  %7878 = vmatprep.mubr.bf16.mxu0 %v4446_v36  ;;  %v2207_v36 = vunpack.c.h.s8.bf16 %v643_v4  ;;  %v4453_v40 = vrot.slane %v4425_v28, %v16209_v37  ;;  %v2248_v44 = vunpack.c.l.s8.bf16 %v664_v25  ;;  %v2249_v39 = vunpack.c.h.s8.bf16 %v664_v25  ;;  %v16940_v4 = vld [vmem:[%s16192_s25 + $0x68] sm:$0xff] }
 0x361   : > { %7918 = vmatprep.mubr.bf16.mxu1 %v4456_v18  ;;  %v2241_v18 = vunpack.c.h.s8.bf16 %v660_v22 }
 0x362   : > { %13438 = vmatpush3.bf16.msra.mxu0 %v2201_v45  ;;  %v2257_v45 = vunpack.c.h.s8.bf16 %v668_v10  ;;  %v4457_v26 = vcombine.high %v4453_v40, %v4453_v40 }
 0x363   : > { %13460 = vmatpush3.bf16.msra.mxu1 %v2217_v48  ;;  %13439 = vmatprep.subr.bf16.mxu0 %v2210_v49  ;;  %v661_v48 = vld [vmem:[%s16178_s23 + $0xca8] sm:$0xff] }
 0x364   : > { %13461 = vmatprep.subr.bf16.mxu1 %v2226_v50  ;;  %v669_v49 = vld [vmem:[%s16178_s23 + $0xce8] sm:$0xff] }
 0x366   : > { %13440 = vmatpush3.bf16.msra.mxu0 %v2202_v52  ;;  %v2242_v52 = vunpack.c.l.s8.bf16 %v661_v48 }
 0x367   : > { %13462 = vmatpush3.bf16.msra.mxu1 %v2218_v15  ;;  %13441 = vmatprep.subr.bf16.mxu0 %v2211_v53  ;;  %v657_v15 = vld [vmem:[%s16178_s23 + $0xc88] sm:$0xff]  ;;  %v2258_v53 = vunpack.c.l.s8.bf16 %v669_v49 }
 0x368   : > { %13463 = vmatprep.subr.bf16.mxu1 %v2227_v56  ;;  %v665_v56 = vld [vmem:[%s16178_s23 + $0xcc8] sm:$0xff]  ;;  %v2234_v58 = vunpack.c.l.s8.bf16 %v657_v15 }
 0x369   : > { %v2250_v34 = vunpack.c.l.s8.bf16 %v665_v56  ;;  %v2251_v2 = vunpack.c.h.s8.bf16 %v665_v56 }
 0x36a   : > { %13442 = vmatpush3.bf16.msra.mxu0 %v2203_v59  ;;  %v2243_v59 = vunpack.c.h.s8.bf16 %v661_v48 }
 0x36b   : > { %13464 = vmatpush3.bf16.msra.mxu1 %v2219_v60  ;;  %13443 = vmatprep.subr.bf16.mxu0 %v2212_v61  ;;  %v2259_v60 = vunpack.c.h.s8.bf16 %v669_v49  ;;  %v662_v61 = vld [vmem:[%s16178_s23 + $0xcb0] sm:$0xff] }
 0x36c   : > { %13465 = vmatprep.subr.bf16.mxu1 %v2228_v62  ;;  %v2235_v62 = vunpack.c.h.s8.bf16 %v657_v15  ;;  %v2245_v7 = vunpack.c.h.s8.bf16 %v662_v61 }
 0x36e   : > { %13444 = vmatpush3.bf16.msra.mxu0 %v2204_v55  ;;  %v2244_v55 = vunpack.c.l.s8.bf16 %v662_v61 }
 0x36f   : > { %13466 = vmatpush3.bf16.msra.mxu1 %v2220_v43  ;;  %13445 = vmatprep.subr.bf16.mxu0 %v2213_v3  ;;  %v658_v43 = vld [vmem:[%s16178_s23 + $0xc90] sm:$0xff]  ;;  %v2260_v3 = vunpack.c.l.s8.bf16 %v670_v6 }
 0x370   : > { %13467 = vmatprep.subr.bf16.mxu1 %v2229_v8  ;;  %v13143_v20 = vpop.f32.mrb[68].mxu0  ;;  %v666_v8 = vld [vmem:[%s16178_s23 + $0xcd0] sm:$0xff]  ;;  %v2236_v9 = vunpack.c.l.s8.bf16 %v658_v43 }
 0x371   : > { %v13165_v46 = vpop.f32.mrb[68].mxu1  ;;  %v13144_v21 = vpop.f32.mrb[69].mxu0  ;;  %v2252_v38 = vunpack.c.l.s8.bf16 %v666_v8  ;;  %v2253_v19 = vunpack.c.h.s8.bf16 %v666_v8 }
 0x372   : > { %v13166_v23 = vpop.f32.mrb[69].mxu1  ;;  %v13145_v14 = vadd.f32 %v13144_v21, %v13143_v20  ;;  %v13146_v47 = vpop.f32.mrb[70].mxu0  ;;  %13446 = vmatpush3.bf16.msra.mxu0 %v2205_v12  ;;  %v2261_v12 = vunpack.c.h.s8.bf16 %v670_v6 }
 0x373   : > { %v13167_v1 = vadd.f32 %v13166_v23, %v13165_v46  ;;  %13468 = vmatpush3.bf16.msra.mxu1 %v2221_v13  ;;  %v13168_v29 = vpop.f32.mrb[70].mxu1  ;;  %v13147_v31 = vpop.f32.mrb[71].mxu0  ;;  %13447 = vmatprep.subr.bf16.mxu0 %v2214_v51  ;;  %v663_v13 = vld [vmem:[%s16178_s23 + $0xcb8] sm:$0xff] }
 0x374   : > { %13469 = vmatprep.subr.bf16.mxu1 %v2230_v16  ;;  %v13169_v32 = vpop.f32.mrb[71].mxu1  ;;  %v7321_v33 = vadd.f32 %v13145_v14, %v16895_v11  ;;  %v656_v11 = vld [vmem:[%s16178_s23 + $0xc80] sm:$0xff]  ;;  %v671_v51 = vld [vmem:[%s16178_s23 + $0xcf8] sm:$0xff]  ;;  %v2237_v16 = vunpack.c.h.s8.bf16 %v658_v43  ;;  %v2246_v20 = vunpack.c.l.s8.bf16 %v663_v13  ;;  %v2247_v10 = vunpack.c.h.s8.bf16 %v663_v13  ;;  %v686_v43 = vld [vmem:[%s16178_s23 + $0xd70] sm:$0xff] }
 0x375   : > { %v2232_v24 = vunpack.c.l.s8.bf16 %v656_v11  ;;  %v2233_v50 = vunpack.c.h.s8.bf16 %v656_v11  ;;  %v659_v46 = vld [vmem:[%s16178_s23 + $0xc98] sm:$0xff]  ;;  %v2262_v21 = vunpack.c.l.s8.bf16 %v671_v51  ;;  %v2263_v28 = vunpack.c.h.s8.bf16 %v671_v51 }
 0x376   : > { %v16924_v5 = vadd.f32 %v13167_v1, %v7321_v33  ;;  %13448 = vmatpush3.bf16.msra.mxu0 %v2206_v17  ;;  %v667_v23 = vld [vmem:[%s16178_s23 + $0xcd8] sm:$0xff]  ;;  %v16946_v1 = vrot.slane %v16940_v4, %v16209_v37 }
 0x377   : > { %13470 = vmatpush3.bf16.msra.mxu1 %v2222_v27  ;;  %13449 = vmatprep.subr.bf16.mxu0 %v2215_v54  ;;  %v2254_v32 = vunpack.c.l.s8.bf16 %v667_v23 }
 0x378   : > { %13471 = vmatprep.subr.bf16.mxu1 %v2231_v0  ;;  %v2238_v0 = vunpack.c.l.s8.bf16 %v659_v46  ;;  %v4473_v11 = vcombine.high %v16946_v1, %v16946_v1 }
 0x37a   : > { %13450 = vmatpush3.bf16.msra.mxu0 %v2207_v36 }
 0x37b   : > { %13472 = vmatpush3.bf16.msra.mxu1 %v2223_v41  ;;  %13479 = vmatprep.subr.bf16.mxu0 %v2240_v63  ;;  %v676_v41 = vld [vmem:[%s16178_s23 + $0xd20] sm:$0xff] }
 0x37c   : > { %13501 = vmatprep.subr.bf16.mxu1 %v2256_v42  ;;  %v684_v63 = vld [vmem:[%s16178_s23 + $0xd60] sm:$0xff]  ;;  %v4439_v42 = vrot.slane %v16915_v57, %v16209_v37 }
 0x37d   : > { %7879 = vmatmul.mubr.bf16.vlgmr.msra.gmra.mrb[96].mxu0 %v4432_v35 }
 0x37e   : > { %7919 = vmatmul.mubr.bf16.vlgmr.msra.gmra.mrb[96].mxu1 %v4454_v30  ;;  %13480 = vmatpush3.bf16.msra.mxu0 %v2232_v24  ;;  %v2255_v30 = vunpack.c.h.s8.bf16 %v667_v23  ;;  %v2272_v24 = vunpack.c.l.s8.bf16 %v676_v41  ;;  %v4455_v48 = vcombine.high %v4439_v42, %v4439_v42 }
 0x37f   : > { %13502 = vmatpush3.bf16.msra.mxu1 %v2248_v44  ;;  %13481 = vmatprep.subr.bf16.mxu0 %v2241_v18  ;;  %v2288_v44 = vunpack.c.l.s8.bf16 %v684_v63  ;;  %v680_v18 = vld [vmem:[%s16178_s23 + $0xd40] sm:$0xff] }
 0x380   : > { %13503 = vmatprep.subr.bf16.mxu1 %v2257_v45  ;;  %7958 = vmatprep.mubr.bf16.mxu0 %v4453_v40  ;;  %v2239_v40 = vunpack.c.h.s8.bf16 %v659_v46  ;;  %v4495_v45 = vrot.slane %v4473_v11, %v16209_v37  ;;  %v2280_v49 = vunpack.c.l.s8.bf16 %v680_v18  ;;  %v2281_v56 = vunpack.c.h.s8.bf16 %v680_v18  ;;  %v687_v46 = vld [vmem:[%s16178_s23 + $0xd78] sm:$0xff] }
 0x381   : > { %7998 = vmatprep.mubr.bf16.mxu1 %v4457_v26  ;;  %v2273_v26 = vunpack.c.h.s8.bf16 %v676_v41  ;;  %v2295_v11 = vunpack.c.h.s8.bf16 %v687_v46 }
 0x382   : > { %13482 = vmatpush3.bf16.msra.mxu0 %v2233_v50  ;;  %v2289_v50 = vunpack.c.h.s8.bf16 %v684_v63  ;;  %v4505_v15 = vcombine.high %v4495_v45, %v4495_v45 }
 0x383   : > { %13504 = vmatpush3.bf16.msra.mxu1 %v2249_v39  ;;  %13483 = vmatprep.subr.bf16.mxu0 %v2242_v52  ;;  %v677_v39 = vld [vmem:[%s16178_s23 + $0xd28] sm:$0xff] }
 0x384   : > { %13505 = vmatprep.subr.bf16.mxu1 %v2258_v53  ;;  %v685_v52 = vld [vmem:[%s16178_s23 + $0xd68] sm:$0xff] }
 0x386   : > { %13484 = vmatpush3.bf16.msra.mxu0 %v2234_v58  ;;  %v2274_v58 = vunpack.c.l.s8.bf16 %v677_v39 }
 0x387   : > { %13506 = vmatpush3.bf16.msra.mxu1 %v2250_v34  ;;  %13485 = vmatprep.subr.bf16.mxu0 %v2243_v59  ;;  %v673_v34 = vld [vmem:[%s16178_s23 + $0xd08] sm:$0xff]  ;;  %v2290_v59 = vunpack.c.l.s8.bf16 %v685_v52 }
 0x388   : > { %13507 = vmatprep.subr.bf16.mxu1 %v2259_v60  ;;  %v681_v60 = vld [vmem:[%s16178_s23 + $0xd48] sm:$0xff]  ;;  %v2266_v61 = vunpack.c.l.s8.bf16 %v673_v34 }
 0x389   : > { %v2282_v6 = vunpack.c.l.s8.bf16 %v681_v60  ;;  %v2283_v8 = vunpack.c.h.s8.bf16 %v681_v60 }
 0x38a   : > { %13486 = vmatpush3.bf16.msra.mxu0 %v2235_v62  ;;  %v2275_v62 = vunpack.c.h.s8.bf16 %v677_v39 }
 0x38b   : > { %13508 = vmatpush3.bf16.msra.mxu1 %v2251_v2  ;;  %13487 = vmatprep.subr.bf16.mxu0 %v2244_v55  ;;  %v2291_v2 = vunpack.c.h.s8.bf16 %v685_v52  ;;  %v678_v55 = vld [vmem:[%s16178_s23 + $0xd30] sm:$0xff] }
 0x38c   : > { %13509 = vmatprep.subr.bf16.mxu1 %v2260_v3  ;;  %v2267_v3 = vunpack.c.h.s8.bf16 %v673_v34 }
 0x38e   : > { %13488 = vmatpush3.bf16.msra.mxu0 %v2236_v9  ;;  %v2276_v9 = vunpack.c.l.s8.bf16 %v678_v55 }
 0x38f   : > { %13510 = vmatpush3.bf16.msra.mxu1 %v2252_v38  ;;  %13489 = vmatprep.subr.bf16.mxu0 %v2245_v7  ;;  %v674_v38 = vld [vmem:[%s16178_s23 + $0xd10] sm:$0xff]  ;;  %v2292_v7 = vunpack.c.l.s8.bf16 %v686_v43 }
 0x390   : > { %13511 = vmatprep.subr.bf16.mxu1 %v2261_v12  ;;  %v13187_v14 = vpop.f32.mrb[72].mxu0  ;;  %v682_v12 = vld [vmem:[%s16178_s23 + $0xd50] sm:$0xff]  ;;  %v2268_v13 = vunpack.c.l.s8.bf16 %v674_v38  ;;  %v2269_v23 = vunpack.c.h.s8.bf16 %v674_v38 }
 0x391   : > { %v13209_v47 = vpop.f32.mrb[72].mxu1  ;;  %v13188_v17 = vpop.f32.mrb[73].mxu0  ;;  %v2284_v51 = vunpack.c.l.s8.bf16 %v682_v12  ;;  %v702_v38 = vld [vmem:[%s16178_s23 + $0xdf0] sm:$0xff] }
 0x392   : > { %v13210_v27 = vpop.f32.mrb[73].mxu1  ;;  %v13189_v29 = vadd.f32 %v13188_v17, %v13187_v14  ;;  %v13190_v31 = vpop.f32.mrb[74].mxu0  ;;  %13490 = vmatpush3.bf16.msra.mxu0 %v2237_v16  ;;  %v2277_v16 = vunpack.c.h.s8.bf16 %v678_v55  ;;  %v2285_v14 = vunpack.c.h.s8.bf16 %v682_v12  ;;  %v675_v17 = vld [vmem:[%s16178_s23 + $0xd18] sm:$0xff] }
 0x393   : > { %v13211_v54 = vadd.f32 %v13210_v27, %v13209_v47  ;;  %13512 = vmatpush3.bf16.msra.mxu1 %v2253_v19  ;;  %v13212_v33 = vpop.f32.mrb[74].mxu1  ;;  %v13191_v22 = vpop.f32.mrb[75].mxu0  ;;  %13491 = vmatprep.subr.bf16.mxu0 %v2246_v20  ;;  %v2293_v19 = vunpack.c.h.s8.bf16 %v686_v43  ;;  %v679_v20 = vld [vmem:[%s16178_s23 + $0xd38] sm:$0xff]  ;;  %v2294_v27 = vunpack.c.l.s8.bf16 %v687_v46 }
 0x394   : > { %13513 = vmatprep.subr.bf16.mxu1 %v2262_v21  ;;  %v13213_v35 = vpop.f32.mrb[75].mxu1  ;;  %v7401_v36 = vadd.f32 %v13189_v29, %v16924_v5  ;;  %v672_v5 = vld [vmem:[%s16178_s23 + $0xd00] sm:$0xff]  ;;  %v4458_v21 = vcombine.high %v16940_v4, %v16940_v4  ;;  %v2278_v47 = vunpack.c.l.s8.bf16 %v679_v20  ;;  %v683_v29 = vld [vmem:[%s16178_s23 + $0xd58] sm:$0xff]  ;;  %v2279_v63 = vunpack.c.h.s8.bf16 %v679_v20 }
 0x395   : > { %v2264_v57 = vunpack.c.l.s8.bf16 %v672_v5  ;;  %v2265_v53 = vunpack.c.h.s8.bf16 %v672_v5  ;;  %v2286_v35 = vunpack.c.l.s8.bf16 %v683_v29 }
 0x396   : > { %v16955_v25 = vadd.f32 %v13211_v54, %v7401_v36  ;;  %13492 = vmatpush3.bf16.msra.mxu0 %v2238_v0  ;;  %v16975_v0 = vrot.slane %v4458_v21, %v16209_v37 }
 0x397   : > { %13514 = vmatpush3.bf16.msra.mxu1 %v2254_v32  ;;  %13493 = vmatprep.subr.bf16.mxu0 %v2247_v10 }
 0x398   : > { %13515 = vmatprep.subr.bf16.mxu1 %v2263_v28  ;;  %v2270_v28 = vunpack.c.l.s8.bf16 %v675_v17  ;;  %v4474_v5 = vcombine.high %v16975_v0, %v16975_v0 }
 0x39a   : > { %13494 = vmatpush3.bf16.msra.mxu0 %v2239_v40 }
 0x39b   : > { %13516 = vmatpush3.bf16.msra.mxu1 %v2255_v30  ;;  %13523 = vmatprep.subr.bf16.mxu0 %v2272_v24  ;;  %v692_v30 = vld [vmem:[%s16178_s23 + $0xda0] sm:$0xff] }
 0x39c   : > { %13545 = vmatprep.subr.bf16.mxu1 %v2288_v44  ;;  %v700_v24 = vld [vmem:[%s16178_s23 + $0xde0] sm:$0xff]  ;;  %v4481_v44 = vrot.slane %v16946_v1, %v16209_v37 }
 0x39d   : > { %7959 = vmatmul.mubr.bf16.vlgmr.msra.gmra.mrb[100].mxu0 %v4439_v42 }
 0x39e   : > { %7999 = vmatmul.mubr.bf16.vlgmr.msra.gmra.mrb[100].mxu1 %v4455_v48  ;;  %13524 = vmatpush3.bf16.msra.mxu0 %v2264_v57  ;;  %v2287_v48 = vunpack.c.h.s8.bf16 %v683_v29  ;;  %v2304_v57 = vunpack.c.l.s8.bf16 %v692_v30  ;;  %v4503_v39 = vcombine.high %v4481_v44, %v4481_v44 }
 0x39f   : > { %13546 = vmatpush3.bf16.msra.mxu1 %v2280_v49  ;;  %13525 = vmatprep.subr.bf16.mxu0 %v2273_v26  ;;  %v2320_v49 = vunpack.c.l.s8.bf16 %v700_v24  ;;  %v696_v26 = vld [vmem:[%s16178_s23 + $0xdc0] sm:$0xff] }
 0x3a0   : > { %13547 = vmatprep.subr.bf16.mxu1 %v2289_v50  ;;  %8038 = vmatprep.mubr.bf16.mxu0 %v4495_v45  ;;  %v2271_v45 = vunpack.c.h.s8.bf16 %v675_v17  ;;  %v4502_v50 = vrot.slane %v4474_v5, %v16209_v37  ;;  %v2312_v52 = vunpack.c.l.s8.bf16 %v696_v26  ;;  %v2313_v60 = vunpack.c.h.s8.bf16 %v696_v26  ;;  %v17000_v17 = vld [vmem:[%s16192_s25 + $0x70] sm:$0xff] }
 0x3a1   : > { %8078 = vmatprep.mubr.bf16.mxu1 %v4505_v15  ;;  %v2305_v15 = vunpack.c.h.s8.bf16 %v692_v30 }
 0x3a2   : > { %13526 = vmatpush3.bf16.msra.mxu0 %v2265_v53  ;;  %v2321_v53 = vunpack.c.h.s8.bf16 %v700_v24  ;;  %v4506_v34 = vcombine.high %v4502_v50, %v4502_v50 }
 0x3a3   : > { %13548 = vmatpush3.bf16.msra.mxu1 %v2281_v56  ;;  %13527 = vmatprep.subr.bf16.mxu0 %v2274_v58  ;;  %v693_v56 = vld [vmem:[%s16178_s23 + $0xda8] sm:$0xff] }
 0x3a4   : > { %13549 = vmatprep.subr.bf16.mxu1 %v2290_v59  ;;  %v701_v58 = vld [vmem:[%s16178_s23 + $0xde8] sm:$0xff] }
 0x3a6   : > { %13528 = vmatpush3.bf16.msra.mxu0 %v2266_v61  ;;  %v2306_v61 = vunpack.c.l.s8.bf16 %v693_v56 }
 0x3a7   : > { %13550 = vmatpush3.bf16.msra.mxu1 %v2282_v6  ;;  %13529 = vmatprep.subr.bf16.mxu0 %v2275_v62  ;;  %v689_v6 = vld [vmem:[%s16178_s23 + $0xd88] sm:$0xff]  ;;  %v2322_v62 = vunpack.c.l.s8.bf16 %v701_v58 }
 0x3a8   : > { %13551 = vmatprep.subr.bf16.mxu1 %v2291_v2  ;;  %v697_v2 = vld [vmem:[%s16178_s23 + $0xdc8] sm:$0xff]  ;;  %v2298_v55 = vunpack.c.l.s8.bf16 %v689_v6 }
 0x3a9   : > { %v2314_v43 = vunpack.c.l.s8.bf16 %v697_v2  ;;  %v2315_v12 = vunpack.c.h.s8.bf16 %v697_v2 }
 0x3aa   : > { %13530 = vmatpush3.bf16.msra.mxu0 %v2267_v3  ;;  %v2307_v3 = vunpack.c.h.s8.bf16 %v693_v56 }
 0x3ab   : > { %13552 = vmatpush3.bf16.msra.mxu1 %v2283_v8  ;;  %13531 = vmatprep.subr.bf16.mxu0 %v2276_v9  ;;  %v2323_v8 = vunpack.c.h.s8.bf16 %v701_v58  ;;  %v694_v9 = vld [vmem:[%s16178_s23 + $0xdb0] sm:$0xff] }
 0x3ac   : > { %13553 = vmatprep.subr.bf16.mxu1 %v2292_v7  ;;  %v2299_v7 = vunpack.c.h.s8.bf16 %v689_v6  ;;  %v2309_v21 = vunpack.c.h.s8.bf16 %v694_v9 }
 0x3ae   : > { %13532 = vmatpush3.bf16.msra.mxu0 %v2268_v13  ;;  %v2308_v13 = vunpack.c.l.s8.bf16 %v694_v9 }
 0x3af   : > { %13554 = vmatpush3.bf16.msra.mxu1 %v2284_v51  ;;  %13533 = vmatprep.subr.bf16.mxu0 %v2277_v16  ;;  %v690_v51 = vld [vmem:[%s16178_s23 + $0xd90] sm:$0xff]  ;;  %v2324_v16 = vunpack.c.l.s8.bf16 %v702_v38 }
 0x3b0   : > { %13555 = vmatprep.subr.bf16.mxu1 %v2293_v19  ;;  %v13231_v31 = vpop.f32.mrb[76].mxu0  ;;  %v698_v19 = vld [vmem:[%s16178_s23 + $0xdd0] sm:$0xff]  ;;  %v2300_v20 = vunpack.c.l.s8.bf16 %v690_v51 }
 0x3b1   : > { %v13253_v54 = vpop.f32.mrb[76].mxu1  ;;  %v13232_v32 = vpop.f32.mrb[77].mxu0  ;;  %v2316_v46 = vunpack.c.l.s8.bf16 %v698_v19  ;;  %v2317_v29 = vunpack.c.h.s8.bf16 %v698_v19 }
 0x3b2   : > { %v13254_v33 = vpop.f32.mrb[77].mxu1  ;;  %v13233_v22 = vadd.f32 %v13232_v32, %v13231_v31  ;;  %v13234_v4 = vpop.f32.mrb[78].mxu0  ;;  %13534 = vmatpush3.bf16.msra.mxu0 %v2269_v23  ;;  %v2325_v23 = vunpack.c.h.s8.bf16 %v702_v38 }
 0x3b3   : > { %v13255_v10 = vadd.f32 %v13254_v33, %v13253_v54  ;;  %13556 = vmatpush3.bf16.msra.mxu1 %v2285_v14  ;;  %v13256_v36 = vpop.f32.mrb[78].mxu1  ;;  %v13235_v41 = vpop.f32.mrb[79].mxu0  ;;  %13535 = vmatprep.subr.bf16.mxu0 %v2278_v47  ;;  %v695_v14 = vld [vmem:[%s16178_s23 + $0xdb8] sm:$0xff] }
 0x3b4   : > { %13557 = vmatprep.subr.bf16.mxu1 %v2294_v27  ;;  %v13257_v42 = vpop.f32.mrb[79].mxu1  ;;  %v7481_v40 = vadd.f32 %v13233_v22, %v16955_v25  ;;  %v688_v25 = vld [vmem:[%s16178_s23 + $0xd80] sm:$0xff]  ;;  %v703_v47 = vld [vmem:[%s16178_s23 + $0xdf8] sm:$0xff]  ;;  %v2301_v27 = vunpack.c.h.s8.bf16 %v690_v51  ;;  %v2310_v31 = vunpack.c.l.s8.bf16 %v695_v14  ;;  %v2311_v24 = vunpack.c.h.s8.bf16 %v695_v14  ;;  %v718_v51 = vld [vmem:[%s16178_s23 + $0xe70] sm:$0xff] }
 0x3b5   : > { %v2296_v1 = vunpack.c.l.s8.bf16 %v688_v25  ;;  %v2297_v59 = vunpack.c.h.s8.bf16 %v688_v25  ;;  %v691_v54 = vld [vmem:[%s16178_s23 + $0xd98] sm:$0xff]  ;;  %v2326_v32 = vunpack.c.l.s8.bf16 %v703_v47  ;;  %v2327_v5 = vunpack.c.h.s8.bf16 %v703_v47 }
 0x3b6   : > { %v16984_v18 = vadd.f32 %v13255_v10, %v7481_v40  ;;  %13536 = vmatpush3.bf16.msra.mxu0 %v2270_v28  ;;  %v699_v33 = vld [vmem:[%s16178_s23 + $0xdd8] sm:$0xff]  ;;  %v17006_v10 = vrot.slane %v17000_v17, %v16209_v37 }
 0x3b7   : > { %13558 = vmatpush3.bf16.msra.mxu1 %v2286_v35  ;;  %13537 = vmatprep.subr.bf16.mxu0 %v2279_v63  ;;  %v2318_v42 = vunpack.c.l.s8.bf16 %v699_v33 }
 0x3b8   : > { %13559 = vmatprep.subr.bf16.mxu1 %v2295_v11  ;;  %v2302_v11 = vunpack.c.l.s8.bf16 %v691_v54  ;;  %v4522_v25 = vcombine.high %v17006_v10, %v17006_v10 }
 0x3ba   : > { %13538 = vmatpush3.bf16.msra.mxu0 %v2271_v45 }
 0x3bb   : > { %13560 = vmatpush3.bf16.msra.mxu1 %v2287_v48  ;;  %13567 = vmatprep.subr.bf16.mxu0 %v2304_v57  ;;  %v708_v48 = vld [vmem:[%s16178_s23 + $0xe20] sm:$0xff] }
 0x3bc   : > { %13589 = vmatprep.subr.bf16.mxu1 %v2320_v49  ;;  %v716_v57 = vld [vmem:[%s16178_s23 + $0xe60] sm:$0xff]  ;;  %v4488_v49 = vrot.slane %v16975_v0, %v16209_v37 }
 0x3bd   : > { %8039 = vmatmul.mubr.bf16.vlgmr.msra.gmra.mrb[104].mxu0 %v4481_v44 }
 0x3be   : > { %8079 = vmatmul.mubr.bf16.vlgmr.msra.gmra.mrb[104].mxu1 %v4503_v39  ;;  %13568 = vmatpush3.bf16.msra.mxu0 %v2296_v1  ;;  %v2319_v39 = vunpack.c.h.s8.bf16 %v699_v33  ;;  %v2336_v1 = vunpack.c.l.s8.bf16 %v708_v48  ;;  %v4504_v56 = vcombine.high %v4488_v49, %v4488_v49 }
 0x3bf   : > { %13590 = vmatpush3.bf16.msra.mxu1 %v2312_v52  ;;  %13569 = vmatprep.subr.bf16.mxu0 %v2305_v15  ;;  %v2352_v52 = vunpack.c.l.s8.bf16 %v716_v57  ;;  %v712_v15 = vld [vmem:[%s16178_s23 + $0xe40] sm:$0xff] }
 0x3c0   : > { %13591 = vmatprep.subr.bf16.mxu1 %v2321_v53  ;;  %8118 = vmatprep.mubr.bf16.mxu0 %v4502_v50  ;;  %v2303_v50 = vunpack.c.h.s8.bf16 %v691_v54  ;;  %v4544_v53 = vrot.slane %v4522_v25, %v16209_v37  ;;  %v2344_v58 = vunpack.c.l.s8.bf16 %v712_v15  ;;  %v2345_v2 = vunpack.c.h.s8.bf16 %v712_v15  ;;  %v719_v54 = vld [vmem:[%s16178_s23 + $0xe78] sm:$0xff] }
 0x3c1   : > { %8158 = vmatprep.mubr.bf16.mxu1 %v4506_v34  ;;  %v2337_v34 = vunpack.c.h.s8.bf16 %v708_v48  ;;  %v2359_v25 = vunpack.c.h.s8.bf16 %v719_v54 }
 0x3c2   : > { %13570 = vmatpush3.bf16.msra.mxu0 %v2297_v59  ;;  %v2353_v59 = vunpack.c.h.s8.bf16 %v716_v57  ;;  %v4554_v6 = vcombine.high %v4544_v53, %v4544_v53 }
 0x3c3   : > { %13592 = vmatpush3.bf16.msra.mxu1 %v2313_v60  ;;  %13571 = vmatprep.subr.bf16.mxu0 %v2306_v61  ;;  %v709_v60 = vld [vmem:[%s16178_s23 + $0xe28] sm:$0xff] }
 0x3c4   : > { %13593 = vmatprep.subr.bf16.mxu1 %v2322_v62  ;;  %v717_v61 = vld [vmem:[%s16178_s23 + $0xe68] sm:$0xff] }
 0x3c6   : > { %13572 = vmatpush3.bf16.msra.mxu0 %v2298_v55  ;;  %v2338_v55 = vunpack.c.l.s8.bf16 %v709_v60 }
 0x3c7   : > { %13594 = vmatpush3.bf16.msra.mxu1 %v2314_v43  ;;  %13573 = vmatprep.subr.bf16.mxu0 %v2307_v3  ;;  %v705_v43 = vld [vmem:[%s16178_s23 + $0xe08] sm:$0xff]  ;;  %v2354_v3 = vunpack.c.l.s8.bf16 %v717_v61 }
 0x3c8   : > { %13595 = vmatprep.subr.bf16.mxu1 %v2323_v8  ;;  %v713_v8 = vld [vmem:[%s16178_s23 + $0xe48] sm:$0xff]  ;;  %v2330_v9 = vunpack.c.l.s8.bf16 %v705_v43 }
 0x3c9   : > { %v2346_v38 = vunpack.c.l.s8.bf16 %v713_v8  ;;  %v2347_v19 = vunpack.c.h.s8.bf16 %v713_v8 }
 0x3ca   : > { %13574 = vmatpush3.bf16.msra.mxu0 %v2299_v7  ;;  %v2339_v7 = vunpack.c.h.s8.bf16 %v709_v60 }
 0x3cb   : > { %13596 = vmatpush3.bf16.msra.mxu1 %v2315_v12  ;;  %13575 = vmatprep.subr.bf16.mxu0 %v2308_v13  ;;  %v2355_v12 = vunpack.c.h.s8.bf16 %v717_v61  ;;  %v710_v13 = vld [vmem:[%s16178_s23 + $0xe30] sm:$0xff] }
 0x3cc   : > { %13597 = vmatprep.subr.bf16.mxu1 %v2324_v16  ;;  %v2331_v16 = vunpack.c.h.s8.bf16 %v705_v43 }
 0x3ce   : > { %13576 = vmatpush3.bf16.msra.mxu0 %v2300_v20  ;;  %v2340_v20 = vunpack.c.l.s8.bf16 %v710_v13 }
 0x3cf   : > { %13598 = vmatpush3.bf16.msra.mxu1 %v2316_v46  ;;  %13577 = vmatprep.subr.bf16.mxu0 %v2309_v21  ;;  %v706_v46 = vld [vmem:[%s16178_s23 + $0xe10] sm:$0xff]  ;;  %v2356_v21 = vunpack.c.l.s8.bf16 %v718_v51 }
 0x3d0   : > { %13599 = vmatprep.subr.bf16.mxu1 %v2325_v23  ;;  %v13275_v22 = vpop.f32.mrb[80].mxu0  ;;  %v714_v23 = vld [vmem:[%s16178_s23 + $0xe50] sm:$0xff]  ;;  %v2332_v14 = vunpack.c.l.s8.bf16 %v706_v46  ;;  %v2333_v33 = vunpack.c.h.s8.bf16 %v706_v46 }
 0x3d1   : > { %v13297_v4 = vpop.f32.mrb[80].mxu1  ;;  %v13276_v28 = vpop.f32.mrb[81].mxu0  ;;  %v2348_v47 = vunpack.c.l.s8.bf16 %v714_v23  ;;  %v734_v46 = vld [vmem:[%s16178_s23 + $0xef0] sm:$0xff] }
 0x3d2   : > { %v13298_v35 = vpop.f32.mrb[81].mxu1  ;;  %v13277_v36 = vadd.f32 %v13276_v28, %v13275_v22  ;;  %v13278_v41 = vpop.f32.mrb[82].mxu0  ;;  %13578 = vmatpush3.bf16.msra.mxu0 %v2301_v27  ;;  %v2341_v27 = vunpack.c.h.s8.bf16 %v710_v13  ;;  %v2349_v22 = vunpack.c.h.s8.bf16 %v714_v23  ;;  %v707_v28 = vld [vmem:[%s16178_s23 + $0xe18] sm:$0xff] }
 0x3d3   : > { %v13299_v63 = vadd.f32 %v13298_v35, %v13297_v4  ;;  %13600 = vmatpush3.bf16.msra.mxu1 %v2317_v29  ;;  %v13300_v40 = vpop.f32.mrb[82].mxu1  ;;  %v13279_v30 = vpop.f32.mrb[83].mxu0  ;;  %13579 = vmatprep.subr.bf16.mxu0 %v2310_v31  ;;  %v2357_v29 = vunpack.c.h.s8.bf16 %v718_v51  ;;  %v711_v31 = vld [vmem:[%s16178_s23 + $0xe38] sm:$0xff]  ;;  %v2358_v35 = vunpack.c.l.s8.bf16 %v719_v54 }
 0x3d4   : > { %13601 = vmatprep.subr.bf16.mxu1 %v2326_v32  ;;  %v13301_v44 = vpop.f32.mrb[83].mxu1  ;;  %v7561_v45 = vadd.f32 %v13277_v36, %v16984_v18  ;;  %v704_v18 = vld [vmem:[%s16178_s23 + $0xe00] sm:$0xff]  ;;  %v4507_v32 = vcombine.high %v17000_v17, %v17000_v17  ;;  %v2342_v4 = vunpack.c.l.s8.bf16 %v711_v31  ;;  %v715_v36 = vld [vmem:[%s16178_s23 + $0xe58] sm:$0xff]  ;;  %v2343_v57 = vunpack.c.h.s8.bf16 %v711_v31 }
 0x3d5   : > { %v2328_v0 = vunpack.c.l.s8.bf16 %v704_v18  ;;  %v2329_v62 = vunpack.c.h.s8.bf16 %v704_v18  ;;  %v2350_v44 = vunpack.c.l.s8.bf16 %v715_v36 }
 0x3d6   : > { %v17015_v26 = vadd.f32 %v13299_v63, %v7561_v45  ;;  %13580 = vmatpush3.bf16.msra.mxu0 %v2302_v11  ;;  %v17035_v11 = vrot.slane %v4507_v32, %v16209_v37 }
 0x3d7   : > { %13602 = vmatpush3.bf16.msra.mxu1 %v2318_v42  ;;  %13581 = vmatprep.subr.bf16.mxu0 %v2311_v24 }
 0x3d8   : > { %13603 = vmatprep.subr.bf16.mxu1 %v2327_v5  ;;  %v2334_v5 = vunpack.c.l.s8.bf16 %v707_v28  ;;  %v4523_v18 = vcombine.high %v17035_v11, %v17035_v11 }
 0x3da   : > { %13582 = vmatpush3.bf16.msra.mxu0 %v2303_v50 }
 0x3db   : > { %13604 = vmatpush3.bf16.msra.mxu1 %v2319_v39  ;;  %13611 = vmatprep.subr.bf16.mxu0 %v2336_v1  ;;  %v724_v39 = vld [vmem:[%s16178_s23 + $0xea0] sm:$0xff] }
 0x3dc   : > { %13633 = vmatprep.subr.bf16.mxu1 %v2352_v52  ;;  %v732_v1 = vld [vmem:[%s16178_s23 + $0xee0] sm:$0xff]  ;;  %v4530_v52 = vrot.slane %v17006_v10, %v16209_v37 }
 0x3dd   : > { %8119 = vmatmul.mubr.bf16.vlgmr.msra.gmra.mrb[108].mxu0 %v4488_v49 }
 0x3de   : > { %8159 = vmatmul.mubr.bf16.vlgmr.msra.gmra.mrb[108].mxu1 %v4504_v56  ;;  %13612 = vmatpush3.bf16.msra.mxu0 %v2328_v0  ;;  %v2351_v56 = vunpack.c.h.s8.bf16 %v715_v36  ;;  %v2368_v0 = vunpack.c.l.s8.bf16 %v724_v39  ;;  %v4552_v60 = vcombine.high %v4530_v52, %v4530_v52 }
 0x3df   : > { %13634 = vmatpush3.bf16.msra.mxu1 %v2344_v58  ;;  %13613 = vmatprep.subr.bf16.mxu0 %v2337_v34  ;;  %v2384_v58 = vunpack.c.l.s8.bf16 %v732_v1  ;;  %v728_v34 = vld [vmem:[%s16178_s23 + $0xec0] sm:$0xff] }
 0x3e0   : > { %13635 = vmatprep.subr.bf16.mxu1 %v2353_v59  ;;  %8198 = vmatprep.mubr.bf16.mxu0 %v4544_v53  ;;  %v2335_v53 = vunpack.c.h.s8.bf16 %v707_v28  ;;  %v4551_v59 = vrot.slane %v4523_v18, %v16209_v37  ;;  %v2376_v61 = vunpack.c.l.s8.bf16 %v728_v34  ;;  %v2377_v8 = vunpack.c.h.s8.bf16 %v728_v34  ;;  %v17060_v28 = vld [vmem:[%s16192_s25 + $0x78] sm:$0xff] }
 0x3e1   : > { %8238 = vmatprep.mubr.bf16.mxu1 %v4554_v6  ;;  %v2369_v6 = vunpack.c.h.s8.bf16 %v724_v39 }
 0x3e2   : > { %13614 = vmatpush3.bf16.msra.mxu0 %v2329_v62  ;;  %v2385_v62 = vunpack.c.h.s8.bf16 %v732_v1  ;;  %v4555_v43 = vcombine.high %v4551_v59, %v4551_v59 }
 0x3e3   : > { %13636 = vmatpush3.bf16.msra.mxu1 %v2345_v2  ;;  %13615 = vmatprep.subr.bf16.mxu0 %v2338_v55  ;;  %v725_v2 = vld [vmem:[%s16178_s23 + $0xea8] sm:$0xff] }
 0x3e4   : > { %13637 = vmatprep.subr.bf16.mxu1 %v2354_v3  ;;  %v733_v55 = vld [vmem:[%s16178_s23 + $0xee8] sm:$0xff] }
 0x3e6   : > { %13616 = vmatpush3.bf16.msra.mxu0 %v2330_v9  ;;  %v2370_v9 = vunpack.c.l.s8.bf16 %v725_v2 }
 0x3e7   : > { %13638 = vmatpush3.bf16.msra.mxu1 %v2346_v38  ;;  %13617 = vmatprep.subr.bf16.mxu0 %v2339_v7  ;;  %v721_v38 = vld [vmem:[%s16178_s23 + $0xe88] sm:$0xff]  ;;  %v2386_v7 = vunpack.c.l.s8.bf16 %v733_v55 }
 0x3e8   : > { %13639 = vmatprep.subr.bf16.mxu1 %v2355_v12  ;;  %v729_v12 = vld [vmem:[%s16178_s23 + $0xec8] sm:$0xff]  ;;  %v2362_v13 = vunpack.c.l.s8.bf16 %v721_v38 }
 0x3e9   : > { %v2378_v51 = vunpack.c.l.s8.bf16 %v729_v12  ;;  %v2379_v23 = vunpack.c.h.s8.bf16 %v729_v12 }
 0x3ea   : > { %13618 = vmatpush3.bf16.msra.mxu0 %v2331_v16  ;;  %v2371_v16 = vunpack.c.h.s8.bf16 %v725_v2 }
 0x3eb   : > { %13640 = vmatpush3.bf16.msra.mxu1 %v2347_v19  ;;  %13619 = vmatprep.subr.bf16.mxu0 %v2340_v20  ;;  %v2387_v19 = vunpack.c.h.s8.bf16 %v733_v55  ;;  %v726_v20 = vld [vmem:[%s16178_s23 + $0xeb0] sm:$0xff] }
 0x3ec   : > { %13641 = vmatprep.subr.bf16.mxu1 %v2356_v21  ;;  %v2363_v21 = vunpack.c.h.s8.bf16 %v721_v38  ;;  %v2373_v32 = vunpack.c.h.s8.bf16 %v726_v20 }
 0x3ee   : > { %13620 = vmatpush3.bf16.msra.mxu0 %v2332_v14  ;;  %v2372_v14 = vunpack.c.l.s8.bf16 %v726_v20 }
 0x3ef   : > { %13642 = vmatpush3.bf16.msra.mxu1 %v2348_v47  ;;  %13621 = vmatprep.subr.bf16.mxu0 %v2341_v27  ;;  %v722_v47 = vld [vmem:[%s16178_s23 + $0xe90] sm:$0xff]  ;;  %v2388_v27 = vunpack.c.l.s8.bf16 %v734_v46 }
 0x3f0   : > { %13643 = vmatprep.subr.bf16.mxu1 %v2357_v29  ;;  %v13319_v41 = vpop.f32.mrb[84].mxu0  ;;  %v730_v29 = vld [vmem:[%s16178_s23 + $0xed0] sm:$0xff]  ;;  %v2364_v31 = vunpack.c.l.s8.bf16 %v722_v47 }
 0x3f1   : > { %v13341_v63 = vpop.f32.mrb[84].mxu1  ;;  %v13320_v42 = vpop.f32.mrb[85].mxu0  ;;  %v2380_v54 = vunpack.c.l.s8.bf16 %v730_v29  ;;  %v2381_v36 = vunpack.c.h.s8.bf16 %v730_v29 }
 0x3f2   : > { %v13342_v40 = vpop.f32.mrb[85].mxu1  ;;  %v13321_v30 = vadd.f32 %v13320_v42, %v13319_v41  ;;  %v13322_v17 = vpop.f32.mrb[86].mxu0  ;;  %13622 = vmatpush3.bf16.msra.mxu0 %v2333_v33  ;;  %v2389_v33 = vunpack.c.h.s8.bf16 %v734_v46 }
 0x3f3   : > { %v13343_v24 = vadd.f32 %v13342_v40, %v13341_v63  ;;  %13644 = vmatpush3.bf16.msra.mxu1 %v2349_v22  ;;  %v13344_v45 = vpop.f32.mrb[86].mxu1  ;;  %v13323_v48 = vpop.f32.mrb[87].mxu0  ;;  %13623 = vmatprep.subr.bf16.mxu0 %v2342_v4  ;;  %v727_v22 = vld [vmem:[%s16178_s23 + $0xeb8] sm:$0xff] }
 0x3f4   : > { %13645 = vmatprep.subr.bf16.mxu1 %v2358_v35  ;;  %v13345_v49 = vpop.f32.mrb[87].mxu1  ;;  %v7641_v50 = vadd.f32 %v13321_v30, %v17015_v26  ;;  %v720_v26 = vld [vmem:[%s16178_s23 + $0xe80] sm:$0xff]  ;;  %v735_v4 = vld [vmem:[%s16178_s23 + $0xef8] sm:$0xff]  ;;  %v2365_v35 = vunpack.c.h.s8.bf16 %v722_v47  ;;  %v2374_v41 = vunpack.c.l.s8.bf16 %v727_v22  ;;  %v2375_v1 = vunpack.c.h.s8.bf16 %v727_v22  ;;  %v750_v47 = vld [vmem:[%s16178_s23 + $0xf70] sm:$0xff] }
 0x3f5   : > { %v2360_v10 = vunpack.c.l.s8.bf16 %v720_v26  ;;  %v2361_v3 = vunpack.c.h.s8.bf16 %v720_v26  ;;  %v723_v63 = vld [vmem:[%s16178_s23 + $0xe98] sm:$0xff]  ;;  %v2390_v42 = vunpack.c.l.s8.bf16 %v735_v4  ;;  %v2391_v18 = vunpack.c.h.s8.bf16 %v735_v4 }
 0x3f6   : > { %v17044_v15 = vadd.f32 %v13343_v24, %v7641_v50  ;;  %13624 = vmatpush3.bf16.msra.mxu0 %v2334_v5  ;;  %v731_v40 = vld [vmem:[%s16178_s23 + $0xed8] sm:$0xff]  ;;  %v17066_v24 = vrot.slane %v17060_v28, %v16209_v37 }
 0x3f7   : > { %13646 = vmatpush3.bf16.msra.mxu1 %v2350_v44  ;;  %13625 = vmatprep.subr.bf16.mxu0 %v2343_v57  ;;  %v2382_v49 = vunpack.c.l.s8.bf16 %v731_v40 }
 0x3f8   : > { %13647 = vmatprep.subr.bf16.mxu1 %v2359_v25  ;;  %v2366_v25 = vunpack.c.l.s8.bf16 %v723_v63  ;;  %v4571_v26 = vcombine.high %v17066_v24, %v17066_v24 }
 0x3fa   : > { %13626 = vmatpush3.bf16.msra.mxu0 %v2335_v53 }
 0x3fb   : > { %13648 = vmatpush3.bf16.msra.mxu1 %v2351_v56  ;;  %13655 = vmatprep.subr.bf16.mxu0 %v2368_v0  ;;  %v740_v56 = vld [vmem:[%s16178_s23 + $0xf20] sm:$0xff] }
 0x3fc   : > { %13677 = vmatprep.subr.bf16.mxu1 %v2384_v58  ;;  %v748_v0 = vld [vmem:[%s16178_s23 + $0xf60] sm:$0xff]  ;;  %v4537_v58 = vrot.slane %v17035_v11, %v16209_v37 }
 0x3fd   : > { %8199 = vmatmul.mubr.bf16.vlgmr.msra.gmra.mrb[112].mxu0 %v4530_v52 }
 0x3fe   : > { %8239 = vmatmul.mubr.bf16.vlgmr.msra.gmra.mrb[112].mxu1 %v4552_v60  ;;  %13656 = vmatpush3.bf16.msra.mxu0 %v2360_v10  ;;  %v2383_v60 = vunpack.c.h.s8.bf16 %v731_v40  ;;  %v2400_v10 = vunpack.c.l.s8.bf16 %v740_v56  ;;  %v4553_v2 = vcombine.high %v4537_v58, %v4537_v58 }
 0x3ff   : > { %13678 = vmatpush3.bf16.msra.mxu1 %v2376_v61  ;;  %13657 = vmatprep.subr.bf16.mxu0 %v2369_v6  ;;  %v2416_v61 = vunpack.c.l.s8.bf16 %v748_v0  ;;  %v744_v6 = vld [vmem:[%s16178_s23 + $0xf40] sm:$0xff] }
 0x400   : > { %13679 = vmatprep.subr.bf16.mxu1 %v2385_v62  ;;  %8278 = vmatprep.mubr.bf16.mxu0 %v4551_v59  ;;  %v2367_v59 = vunpack.c.h.s8.bf16 %v723_v63  ;;  %v4593_v62 = vrot.slane %v4571_v26, %v16209_v37  ;;  %v2408_v55 = vunpack.c.l.s8.bf16 %v744_v6  ;;  %v2409_v12 = vunpack.c.h.s8.bf16 %v744_v6  ;;  %v751_v63 = vld [vmem:[%s16178_s23 + $0xf78] sm:$0xff] }
 0x401   : > { %8318 = vmatprep.mubr.bf16.mxu1 %v4555_v43  ;;  %v2401_v43 = vunpack.c.h.s8.bf16 %v740_v56  ;;  %v2423_v26 = vunpack.c.h.s8.bf16 %v751_v63 }
 0x402   : > { %13658 = vmatpush3.bf16.msra.mxu0 %v2361_v3  ;;  %v2417_v3 = vunpack.c.h.s8.bf16 %v748_v0  ;;  %v4603_v38 = vcombine.high %v4593_v62, %v4593_v62 }
 0x403   : > { %13680 = vmatpush3.bf16.msra.mxu1 %v2377_v8  ;;  %13659 = vmatprep.subr.bf16.mxu0 %v2370_v9  ;;  %v741_v8 = vld [vmem:[%s16178_s23 + $0xf28] sm:$0xff] }
 0x404   : > { %13681 = vmatprep.subr.bf16.mxu1 %v2386_v7  ;;  %v749_v9 = vld [vmem:[%s16178_s23 + $0xf68] sm:$0xff] }
 0x406   : > { %13660 = vmatpush3.bf16.msra.mxu0 %v2362_v13  ;;  %v2402_v13 = vunpack.c.l.s8.bf16 %v741_v8 }
 0x407   : > { %13682 = vmatpush3.bf16.msra.mxu1 %v2378_v51  ;;  %13661 = vmatprep.subr.bf16.mxu0 %v2371_v16  ;;  %v737_v51 = vld [vmem:[%s16178_s23 + $0xf08] sm:$0xff]  ;;  %v2418_v16 = vunpack.c.l.s8.bf16 %v749_v9 }
 0x408   : > { %13683 = vmatprep.subr.bf16.mxu1 %v2387_v19  ;;  %v745_v19 = vld [vmem:[%s16178_s23 + $0xf48] sm:$0xff]  ;;  %v2394_v20 = vunpack.c.l.s8.bf16 %v737_v51 }
 0x409   : > { %v2410_v46 = vunpack.c.l.s8.bf16 %v745_v19  ;;  %v2411_v29 = vunpack.c.h.s8.bf16 %v745_v19 }
 0x40a   : > { %13662 = vmatpush3.bf16.msra.mxu0 %v2363_v21  ;;  %v2403_v21 = vunpack.c.h.s8.bf16 %v741_v8 }
 0x40b   : > { %13684 = vmatpush3.bf16.msra.mxu1 %v2379_v23  ;;  %13663 = vmatprep.subr.bf16.mxu0 %v2372_v14  ;;  %v2419_v23 = vunpack.c.h.s8.bf16 %v749_v9  ;;  %v742_v14 = vld [vmem:[%s16178_s23 + $0xf30] sm:$0xff] }
 0x40c   : > { %13685 = vmatprep.subr.bf16.mxu1 %v2388_v27  ;;  %v2395_v27 = vunpack.c.h.s8.bf16 %v737_v51 }
 0x40e   : > { %13664 = vmatpush3.bf16.msra.mxu0 %v2364_v31  ;;  %v2404_v31 = vunpack.c.l.s8.bf16 %v742_v14 }
 0x40f   : > { %13686 = vmatpush3.bf16.msra.mxu1 %v2380_v54  ;;  %13665 = vmatprep.subr.bf16.mxu0 %v2373_v32  ;;  %v738_v54 = vld [vmem:[%s16178_s23 + $0xf10] sm:$0xff]  ;;  %v2420_v32 = vunpack.c.l.s8.bf16 %v750_v47 }
 0x410   : > { %13687 = vmatprep.subr.bf16.mxu1 %v2389_v33  ;;  %v13363_v30 = vpop.f32.mrb[88].mxu0  ;;  %v746_v33 = vld [vmem:[%s16178_s23 + $0xf50] sm:$0xff]  ;;  %v2396_v22 = vunpack.c.l.s8.bf16 %v738_v54  ;;  %v2397_v40 = vunpack.c.h.s8.bf16 %v738_v54 }
 0x411   : > { %v13385_v17 = vpop.f32.mrb[88].mxu1  ;;  %v13364_v5 = vpop.f32.mrb[89].mxu0  ;;  %v2412_v4 = vunpack.c.l.s8.bf16 %v746_v33  ;;  %v766_v54 = vld [vmem:[%s16178_s23 + $0xff0] sm:$0xff] }
 0x412   : > { %v13386_v44 = vpop.f32.mrb[89].mxu1  ;;  %v13365_v45 = vadd.f32 %v13364_v5, %v13363_v30  ;;  %v13366_v48 = vpop.f32.mrb[90].mxu0  ;;  %13666 = vmatpush3.bf16.msra.mxu0 %v2365_v35  ;;  %v2405_v35 = vunpack.c.h.s8.bf16 %v742_v14  ;;  %v2413_v30 = vunpack.c.h.s8.bf16 %v746_v33  ;;  %v739_v5 = vld [vmem:[%s16178_s23 + $0xf18] sm:$0xff] }
 0x413   : > { %v13387_v57 = vadd.f32 %v13386_v44, %v13385_v17  ;;  %13688 = vmatpush3.bf16.msra.mxu1 %v2381_v36  ;;  %v13388_v50 = vpop.f32.mrb[90].mxu1  ;;  %v13367_v39 = vpop.f32.mrb[91].mxu0  ;;  %13667 = vmatprep.subr.bf16.mxu0 %v2374_v41  ;;  %v2421_v36 = vunpack.c.h.s8.bf16 %v750_v47  ;;  %v743_v41 = vld [vmem:[%s16178_s23 + $0xf38] sm:$0xff]  ;;  %v2422_v44 = vunpack.c.l.s8.bf16 %v751_v63 }
 0x414   : > { %13689 = vmatprep.subr.bf16.mxu1 %v2390_v42  ;;  %v13389_v52 = vpop.f32.mrb[91].mxu1  ;;  %v7721_v53 = vadd.f32 %v13365_v45, %v17044_v15  ;;  %v736_v15 = vld [vmem:[%s16178_s23 + $0xf00] sm:$0xff]  ;;  %v4556_v42 = vcombine.high %v17060_v28, %v17060_v28  ;;  %v2406_v17 = vunpack.c.l.s8.bf16 %v743_v41  ;;  %v747_v45 = vld [vmem:[%s16178_s23 + $0xf58] sm:$0xff]  ;;  %v2407_v0 = vunpack.c.h.s8.bf16 %v743_v41 }
 0x415   : > { %v2392_v11 = vunpack.c.l.s8.bf16 %v736_v15  ;;  %v2393_v7 = vunpack.c.h.s8.bf16 %v736_v15  ;;  %v2414_v52 = vunpack.c.l.s8.bf16 %v747_v45 }
 0x416   : > { %v17075_v34 = vadd.f32 %v13387_v57, %v7721_v53  ;;  %13668 = vmatpush3.bf16.msra.mxu0 %v2366_v25  ;;  %v17095_v25 = vrot.slane %v4556_v42, %v16209_v37 }
 0x417   : > { %13690 = vmatpush3.bf16.msra.mxu1 %v2382_v49  ;;  %13669 = vmatprep.subr.bf16.mxu0 %v2375_v1 }
 0x418   : > { %13691 = vmatprep.subr.bf16.mxu1 %v2391_v18  ;;  %v2398_v18 = vunpack.c.l.s8.bf16 %v739_v5  ;;  %v4572_v15 = vcombine.high %v17095_v25, %v17095_v25 }
 0x41a   : > { %13670 = vmatpush3.bf16.msra.mxu0 %v2367_v59 }
 0x41b   : > { %13692 = vmatpush3.bf16.msra.mxu1 %v2383_v60  ;;  %13699 = vmatprep.subr.bf16.mxu0 %v2400_v10  ;;  %v756_v60 = vld [vmem:[%s16178_s23 + $0xfa0] sm:$0xff] }
 0x41c   : > { %13721 = vmatprep.subr.bf16.mxu1 %v2416_v61  ;;  %v764_v10 = vld [vmem:[%s16178_s23 + $0xfe0] sm:$0xff]  ;;  %v4579_v61 = vrot.slane %v17066_v24, %v16209_v37 }
 0x41d   : > { %8279 = vmatmul.mubr.bf16.vlgmr.msra.gmra.mrb[116].mxu0 %v4537_v58 }
 0x41e   : > { %8319 = vmatmul.mubr.bf16.vlgmr.msra.gmra.mrb[116].mxu1 %v4553_v2  ;;  %13700 = vmatpush3.bf16.msra.mxu0 %v2392_v11  ;;  %v2415_v2 = vunpack.c.h.s8.bf16 %v747_v45  ;;  %v2432_v11 = vunpack.c.l.s8.bf16 %v756_v60  ;;  %v4601_v8 = vcombine.high %v4579_v61, %v4579_v61 }
 0x41f   : > { %13722 = vmatpush3.bf16.msra.mxu1 %v2408_v55  ;;  %13701 = vmatprep.subr.bf16.mxu0 %v2401_v43  ;;  %v2448_v55 = vunpack.c.l.s8.bf16 %v764_v10  ;;  %v760_v43 = vld [vmem:[%s16178_s23 + $0xfc0] sm:$0xff] }
 0x420   : > { %13723 = vmatprep.subr.bf16.mxu1 %v2417_v3  ;;  %8358 = vmatprep.mubr.bf16.mxu0 %v4593_v62  ;;  %v2399_v62 = vunpack.c.h.s8.bf16 %v739_v5  ;;  %v4600_v3 = vrot.slane %v4572_v15, %v16209_v37  ;;  %v2440_v9 = vunpack.c.l.s8.bf16 %v760_v43  ;;  %v2441_v19 = vunpack.c.h.s8.bf16 %v760_v43  ;;  %v17120_v5 = vld [vmem:[%s16192_s25 + $0x80] sm:$0xff] }
 0x421   : > { %8398 = vmatprep.mubr.bf16.mxu1 %v4603_v38  ;;  %v2433_v38 = vunpack.c.h.s8.bf16 %v756_v60 }
 0x422   : > { %13702 = vmatpush3.bf16.msra.mxu0 %v2393_v7  ;;  %v2449_v7 = vunpack.c.h.s8.bf16 %v764_v10  ;;  %v4604_v51 = vcombine.high %v4600_v3, %v4600_v3 }
 0x423   : > { %13724 = vmatpush3.bf16.msra.mxu1 %v2409_v12  ;;  %13703 = vmatprep.subr.bf16.mxu0 %v2402_v13  ;;  %v757_v12 = vld [vmem:[%s16178_s23 + $0xfa8] sm:$0xff] }
 0x424   : > { %13725 = vmatprep.subr.bf16.mxu1 %v2418_v16  ;;  %v765_v13 = vld [vmem:[%s16178_s23 + $0xfe8] sm:$0xff] }
 0x426   : > { %13704 = vmatpush3.bf16.msra.mxu0 %v2394_v20  ;;  %v2434_v20 = vunpack.c.l.s8.bf16 %v757_v12 }
 0x427   : > { %13726 = vmatpush3.bf16.msra.mxu1 %v2410_v46  ;;  %13705 = vmatprep.subr.bf16.mxu0 %v2403_v21  ;;  %v753_v46 = vld [vmem:[%s16178_s23 + $0xf88] sm:$0xff]  ;;  %v2450_v21 = vunpack.c.l.s8.bf16 %v765_v13 }
 0x428   : > { %13727 = vmatprep.subr.bf16.mxu1 %v2419_v23  ;;  %v761_v23 = vld [vmem:[%s16178_s23 + $0xfc8] sm:$0xff]  ;;  %v2426_v14 = vunpack.c.l.s8.bf16 %v753_v46 }
 0x429   : > { %v2442_v47 = vunpack.c.l.s8.bf16 %v761_v23  ;;  %v2443_v33 = vunpack.c.h.s8.bf16 %v761_v23 }
 0x42a   : > { %13706 = vmatpush3.bf16.msra.mxu0 %v2395_v27  ;;  %v2435_v27 = vunpack.c.h.s8.bf16 %v757_v12 }
 0x42b   : > { %13728 = vmatpush3.bf16.msra.mxu1 %v2411_v29  ;;  %13707 = vmatprep.subr.bf16.mxu0 %v2404_v31  ;;  %v2451_v29 = vunpack.c.h.s8.bf16 %v765_v13  ;;  %v758_v31 = vld [vmem:[%s16178_s23 + $0xfb0] sm:$0xff] }
 0x42c   : > { %13729 = vmatprep.subr.bf16.mxu1 %v2420_v32  ;;  %v2427_v32 = vunpack.c.h.s8.bf16 %v753_v46  ;;  %v2437_v42 = vunpack.c.h.s8.bf16 %v758_v31 }
 0x42e   : > { %13708 = vmatpush3.bf16.msra.mxu0 %v2396_v22  ;;  %v2436_v22 = vunpack.c.l.s8.bf16 %v758_v31 }
 0x42f   : > { %13730 = vmatpush3.bf16.msra.mxu1 %v2412_v4  ;;  %13709 = vmatprep.subr.bf16.mxu0 %v2405_v35  ;;  %v754_v4 = vld [vmem:[%s16178_s23 + $0xf90] sm:$0xff]  ;;  %v2452_v35 = vunpack.c.l.s8.bf16 %v766_v54 }
 0x430   : > { %13731 = vmatprep.subr.bf16.mxu1 %v2421_v36  ;;  %v13407_v48 = vpop.f32.mrb[92].mxu0  ;;  %v762_v36 = vld [vmem:[%s16178_s23 + $0xfd0] sm:$0xff]  ;;  %v2428_v41 = vunpack.c.l.s8.bf16 %v754_v4 }
 0x431   : > { %v13429_v57 = vpop.f32.mrb[92].mxu1  ;;  %v13408_v49 = vpop.f32.mrb[93].mxu0  ;;  %v2444_v63 = vunpack.c.l.s8.bf16 %v762_v36  ;;  %v2445_v45 = vunpack.c.h.s8.bf16 %v762_v36 }
 0x432   : > { %v13430_v50 = vpop.f32.mrb[93].mxu1  ;;  %v13409_v39 = vadd.f32 %v13408_v49, %v13407_v48  ;;  %v13410_v28 = vpop.f32.mrb[94].mxu0  ;;  %13710 = vmatpush3.bf16.msra.mxu0 %v2397_v40  ;;  %v2453_v40 = vunpack.c.h.s8.bf16 %v766_v54 }
 0x433   : > { %v13431_v1 = vadd.f32 %v13430_v50, %v13429_v57  ;;  %13732 = vmatpush3.bf16.msra.mxu1 %v2413_v30  ;;  %v13432_v53 = vpop.f32.mrb[94].mxu1  ;;  %v13411_v56 = vpop.f32.mrb[95].mxu0  ;;  %13711 = vmatprep.subr.bf16.mxu0 %v2406_v17  ;;  %v759_v30 = vld [vmem:[%s16178_s23 + $0xfb8] sm:$0xff] }
 0x434   : > { %13733 = vmatprep.subr.bf16.mxu1 %v2422_v44  ;;  %v13433_v58 = vpop.f32.mrb[95].mxu1  ;;  %v7801_v59 = vadd.f32 %v13409_v39, %v17075_v34  ;;  %v752_v34 = vld [vmem:[%s16178_s23 + $0xf80] sm:$0xff]  ;;  %v767_v17 = vld [vmem:[%s16178_s23 + $0xff8] sm:$0xff]  ;;  %v2429_v44 = vunpack.c.h.s8.bf16 %v754_v4  ;;  %v2438_v48 = vunpack.c.l.s8.bf16 %v759_v30  ;;  %v2439_v10 = vunpack.c.h.s8.bf16 %v759_v30  ;;  %v782_v4 = vld [vmem:[%s16178_s23 + $0x1070] sm:$0xff] }
 0x435   : > { %v2424_v24 = vunpack.c.l.s8.bf16 %v752_v34  ;;  %v2425_v16 = vunpack.c.h.s8.bf16 %v752_v34  ;;  %v755_v57 = vld [vmem:[%s16178_s23 + $0xf98] sm:$0xff]  ;;  %v2454_v49 = vunpack.c.l.s8.bf16 %v767_v17  ;;  %v2455_v15 = vunpack.c.h.s8.bf16 %v767_v17 }
 0x436   : > { %v17104_v6 = vadd.f32 %v13431_v1, %v7801_v59  ;;  %13712 = vmatpush3.bf16.msra.mxu0 %v2398_v18  ;;  %v763_v50 = vld [vmem:[%s16178_s23 + $0xfd8] sm:$0xff]  ;;  %v17126_v1 = vrot.slane %v17120_v5, %v16209_v37 }
 0x437   : > { %13734 = vmatpush3.bf16.msra.mxu1 %v2414_v52  ;;  %13713 = vmatprep.subr.bf16.mxu0 %v2407_v0  ;;  %v2446_v58 = vunpack.c.l.s8.bf16 %v763_v50 }
 0x438   : > { %13735 = vmatprep.subr.bf16.mxu1 %v2423_v26  ;;  %v2430_v26 = vunpack.c.l.s8.bf16 %v755_v57  ;;  %v4620_v34 = vcombine.high %v17126_v1, %v17126_v1 }
 0x43a   : > { %13714 = vmatpush3.bf16.msra.mxu0 %v2399_v62 }
 0x43b   : > { %13736 = vmatpush3.bf16.msra.mxu1 %v2415_v2  ;;  %13743 = vmatprep.subr.bf16.mxu0 %v2432_v11  ;;  %v772_v2 = vld [vmem:[%s16178_s23 + $0x1020] sm:$0xff] }
 0x43c   : > { %13765 = vmatprep.subr.bf16.mxu1 %v2448_v55  ;;  %v780_v11 = vld [vmem:[%s16178_s23 + $0x1060] sm:$0xff]  ;;  %v4586_v55 = vrot.slane %v17095_v25, %v16209_v37 }
 0x43d   : > { %8359 = vmatmul.mubr.bf16.vlgmr.msra.gmra.mrb[120].mxu0 %v4579_v61 }
 0x43e   : > { %8399 = vmatmul.mubr.bf16.vlgmr.msra.gmra.mrb[120].mxu1 %v4601_v8  ;;  %13744 = vmatpush3.bf16.msra.mxu0 %v2424_v24  ;;  %v2447_v8 = vunpack.c.h.s8.bf16 %v763_v50  ;;  %v2464_v24 = vunpack.c.l.s8.bf16 %v772_v2  ;;  %v4602_v12 = vcombine.high %v4586_v55, %v4586_v55 }
 0x43f   : > { %13766 = vmatpush3.bf16.msra.mxu1 %v2440_v9  ;;  %13745 = vmatprep.subr.bf16.mxu0 %v2433_v38  ;;  %v2480_v9 = vunpack.c.l.s8.bf16 %v780_v11  ;;  %v776_v38 = vld [vmem:[%s16178_s23 + $0x1040] sm:$0xff] }
 0x440   : > { %13767 = vmatprep.subr.bf16.mxu1 %v2449_v7  ;;  %8438 = vmatprep.mubr.bf16.mxu0 %v4600_v3  ;;  %v2431_v3 = vunpack.c.h.s8.bf16 %v755_v57  ;;  %v4642_v7 = vrot.slane %v4620_v34, %v16209_v37  ;;  %v2472_v13 = vunpack.c.l.s8.bf16 %v776_v38  ;;  %v2473_v23 = vunpack.c.h.s8.bf16 %v776_v38  ;;  %v783_v57 = vld [vmem:[%s16178_s23 + $0x1078] sm:$0xff] }
 0x441   : > { %8478 = vmatprep.mubr.bf16.mxu1 %v4604_v51  ;;  %v2465_v51 = vunpack.c.h.s8.bf16 %v772_v2  ;;  %v2487_v34 = vunpack.c.h.s8.bf16 %v783_v57 }
 0x442   : > { %13746 = vmatpush3.bf16.msra.mxu0 %v2425_v16  ;;  %v2481_v16 = vunpack.c.h.s8.bf16 %v780_v11  ;;  %v4652_v46 = vcombine.high %v4642_v7, %v4642_v7 }
 0x443   : > { %13768 = vmatpush3.bf16.msra.mxu1 %v2441_v19  ;;  %13747 = vmatprep.subr.bf16.mxu0 %v2434_v20  ;;  %v773_v19 = vld [vmem:[%s16178_s23 + $0x1028] sm:$0xff] }
 0x444   : > { %13769 = vmatprep.subr.bf16.mxu1 %v2450_v21  ;;  %v781_v20 = vld [vmem:[%s16178_s23 + $0x1068] sm:$0xff] }
 0x446   : > { %13748 = vmatpush3.bf16.msra.mxu0 %v2426_v14  ;;  %v2466_v14 = vunpack.c.l.s8.bf16 %v773_v19 }
 0x447   : > { %13770 = vmatpush3.bf16.msra.mxu1 %v2442_v47  ;;  %13749 = vmatprep.subr.bf16.mxu0 %v2435_v27  ;;  %v769_v47 = vld [vmem:[%s16178_s23 + $0x1008] sm:$0xff]  ;;  %v2482_v27 = vunpack.c.l.s8.bf16 %v781_v20 }
 0x448   : > { %13771 = vmatprep.subr.bf16.mxu1 %v2451_v29  ;;  %v777_v29 = vld [vmem:[%s16178_s23 + $0x1048] sm:$0xff]  ;;  %v2458_v31 = vunpack.c.l.s8.bf16 %v769_v47 }
 0x449   : > { %v2474_v54 = vunpack.c.l.s8.bf16 %v777_v29  ;;  %v2475_v36 = vunpack.c.h.s8.bf16 %v777_v29 }
 0x44a   : > { %13750 = vmatpush3.bf16.msra.mxu0 %v2427_v32  ;;  %v2467_v32 = vunpack.c.h.s8.bf16 %v773_v19 }
 0x44b   : > { %13772 = vmatpush3.bf16.msra.mxu1 %v2443_v33  ;;  %13751 = vmatprep.subr.bf16.mxu0 %v2436_v22  ;;  %v2483_v33 = vunpack.c.h.s8.bf16 %v781_v20  ;;  %v774_v22 = vld [vmem:[%s16178_s23 + $0x1030] sm:$0xff] }
 0x44c   : > { %13773 = vmatprep.subr.bf16.mxu1 %v2452_v35  ;;  %v2459_v35 = vunpack.c.h.s8.bf16 %v769_v47 }
 0x44e   : > { %13752 = vmatpush3.bf16.msra.mxu0 %v2428_v41  ;;  %v2468_v41 = vunpack.c.l.s8.bf16 %v774_v22 }
 0x44f   : > { %13774 = vmatpush3.bf16.msra.mxu1 %v2444_v63  ;;  %13753 = vmatprep.subr.bf16.mxu0 %v2437_v42  ;;  %v770_v63 = vld [vmem:[%s16178_s23 + $0x1010] sm:$0xff]  ;;  %v2484_v42 = vunpack.c.l.s8.bf16 %v782_v4 }
 0x450   : > { %13775 = vmatprep.subr.bf16.mxu1 %v2453_v40  ;;  %v13451_v39 = vpop.f32.mrb[96].mxu0  ;;  %v778_v40 = vld [vmem:[%s16178_s23 + $0x1050] sm:$0xff]  ;;  %v2460_v30 = vunpack.c.l.s8.bf16 %v770_v63  ;;  %v2461_v50 = vunpack.c.h.s8.bf16 %v770_v63 }
 0x451   : > { %v13473_v28 = vpop.f32.mrb[96].mxu1  ;;  %v13452_v18 = vpop.f32.mrb[97].mxu0  ;;  %v2476_v17 = vunpack.c.l.s8.bf16 %v778_v40  ;;  %v798_v63 = vld [vmem:[%s16178_s23 + $0x10f0] sm:$0xff] }
 0x452   : > { %v13474_v52 = vpop.f32.mrb[97].mxu1  ;;  %v13453_v53 = vadd.f32 %v13452_v18, %v13451_v39  ;;  %v13454_v56 = vpop.f32.mrb[98].mxu0  ;;  %13754 = vmatpush3.bf16.msra.mxu0 %v2429_v44  ;;  %v2469_v44 = vunpack.c.h.s8.bf16 %v774_v22  ;;  %v2477_v39 = vunpack.c.h.s8.bf16 %v778_v40  ;;  %v771_v18 = vld [vmem:[%s16178_s23 + $0x1018] sm:$0xff] }
 0x453   : > { %v13475_v0 = vadd.f32 %v13474_v52, %v13473_v28  ;;  %13776 = vmatpush3.bf16.msra.mxu1 %v2445_v45  ;;  %v13476_v59 = vpop.f32.mrb[98].mxu1  ;;  %v13455_v60 = vpop.f32.mrb[99].mxu0  ;;  %13755 = vmatprep.subr.bf16.mxu0 %v2438_v48  ;;  %v2485_v45 = vunpack.c.h.s8.bf16 %v782_v4  ;;  %v775_v48 = vld [vmem:[%s16178_s23 + $0x1038] sm:$0xff]  ;;  %v2486_v52 = vunpack.c.l.s8.bf16 %v783_v57 }
 0x454   : > { %13777 = vmatprep.subr.bf16.mxu1 %v2454_v49  ;;  %v13477_v61 = vpop.f32.mrb[99].mxu1  ;;  %v7881_v62 = vadd.f32 %v13453_v53, %v17104_v6  ;;  %v768_v6 = vld [vmem:[%s16178_s23 + $0x1000] sm:$0xff]  ;;  %v4605_v49 = vcombine.high %v17120_v5, %v17120_v5  ;;  %v2470_v28 = vunpack.c.l.s8.bf16 %v775_v48  ;;  %v779_v53 = vld [vmem:[%s16178_s23 + $0x1058] sm:$0xff]  ;;  %v2471_v11 = vunpack.c.h.s8.bf16 %v775_v48 }
 0x455   : > { %v2456_v25 = vunpack.c.l.s8.bf16 %v768_v6  ;;  %v2457_v21 = vunpack.c.h.s8.bf16 %v768_v6  ;;  %v2478_v61 = vunpack.c.l.s8.bf16 %v779_v53 }
 0x456   : > { %v17135_v43 = vadd.f32 %v13475_v0, %v7881_v62  ;;  %13756 = vmatpush3.bf16.msra.mxu0 %v2430_v26  ;;  %v17155_v26 = vrot.slane %v4605_v49, %v16209_v37 }
 0x457   : > { %13778 = vmatpush3.bf16.msra.mxu1 %v2446_v58  ;;  %13757 = vmatprep.subr.bf16.mxu0 %v2439_v10 }
 0x458   : > { %13779 = vmatprep.subr.bf16.mxu1 %v2455_v15  ;;  %v2462_v15 = vunpack.c.l.s8.bf16 %v771_v18  ;;  %v4621_v6 = vcombine.high %v17155_v26, %v17155_v26 }
 0x45a   : > { %13758 = vmatpush3.bf16.msra.mxu0 %v2431_v3 }
 0x45b   : > { %13780 = vmatpush3.bf16.msra.mxu1 %v2447_v8  ;;  %13787 = vmatprep.subr.bf16.mxu0 %v2464_v24  ;;  %v788_v8 = vld [vmem:[%s16178_s23 + $0x10a0] sm:$0xff] }
 0x45c   : > { %13809 = vmatprep.subr.bf16.mxu1 %v2480_v9  ;;  %v796_v24 = vld [vmem:[%s16178_s23 + $0x10e0] sm:$0xff]  ;;  %v4628_v9 = vrot.slane %v17126_v1, %v16209_v37 }
 0x45d   : > { %8439 = vmatmul.mubr.bf16.vlgmr.msra.gmra.mrb[124].mxu0 %v4586_v55 }
 0x45e   : > { %8479 = vmatmul.mubr.bf16.vlgmr.msra.gmra.mrb[124].mxu1 %v4602_v12  ;;  %13788 = vmatpush3.bf16.msra.mxu0 %v2456_v25  ;;  %v2479_v12 = vunpack.c.h.s8.bf16 %v779_v53  ;;  %v2496_v25 = vunpack.c.l.s8.bf16 %v788_v8  ;;  %v4650_v19 = vcombine.high %v4628_v9, %v4628_v9 }
 0x45f   : > { %13810 = vmatpush3.bf16.msra.mxu1 %v2472_v13  ;;  %13789 = vmatprep.subr.bf16.mxu0 %v2465_v51  ;;  %v2512_v13 = vunpack.c.l.s8.bf16 %v796_v24  ;;  %v792_v51 = vld [vmem:[%s16178_s23 + $0x10c0] sm:$0xff] }
 0x460   : > { %13811 = vmatprep.subr.bf16.mxu1 %v2481_v16  ;;  %8518 = vmatprep.mubr.bf16.mxu0 %v4642_v7  ;;  %v2463_v7 = vunpack.c.h.s8.bf16 %v771_v18  ;;  %v4649_v16 = vrot.slane %v4621_v6, %v16209_v37  ;;  %v2504_v20 = vunpack.c.l.s8.bf16 %v792_v51  ;;  %v2505_v29 = vunpack.c.h.s8.bf16 %v792_v51  ;;  %v17180_v18 = vld [vmem:[%s16192_s25 + $0x88] sm:$0xff] }
 0x461   : > { %8558 = vmatprep.mubr.bf16.mxu1 %v4652_v46  ;;  %v2497_v46 = vunpack.c.h.s8.bf16 %v788_v8 }
 0x462   : > { %13790 = vmatpush3.bf16.msra.mxu0 %v2457_v21  ;;  %v2513_v21 = vunpack.c.h.s8.bf16 %v796_v24  ;;  %v4653_v47 = vcombine.high %v4649_v16, %v4649_v16 }
 0x463   : > { %13812 = vmatpush3.bf16.msra.mxu1 %v2473_v23  ;;  %13791 = vmatprep.subr.bf16.mxu0 %v2466_v14  ;;  %v789_v23 = vld [vmem:[%s16178_s23 + $0x10a8] sm:$0xff] }
 0x464   : > { %13813 = vmatprep.subr.bf16.mxu1 %v2482_v27  ;;  %v797_v14 = vld [vmem:[%s16178_s23 + $0x10e8] sm:$0xff] }
 0x466   : > { %13792 = vmatpush3.bf16.msra.mxu0 %v2458_v31  ;;  %v2498_v31 = vunpack.c.l.s8.bf16 %v789_v23 }
 0x467   : > { %13814 = vmatpush3.bf16.msra.mxu1 %v2474_v54  ;;  %13793 = vmatprep.subr.bf16.mxu0 %v2467_v32  ;;  %v785_v54 = vld [vmem:[%s16178_s23 + $0x1088] sm:$0xff]  ;;  %v2514_v32 = vunpack.c.l.s8.bf16 %v797_v14 }
 0x468   : > { %13815 = vmatprep.subr.bf16.mxu1 %v2483_v33  ;;  %v793_v33 = vld [vmem:[%s16178_s23 + $0x10c8] sm:$0xff]  ;;  %v2490_v22 = vunpack.c.l.s8.bf16 %v785_v54 }
 0x469   : > { %v2506_v4 = vunpack.c.l.s8.bf16 %v793_v33  ;;  %v2507_v40 = vunpack.c.h.s8.bf16 %v793_v33 }
 0x46a   : > { %13794 = vmatpush3.bf16.msra.mxu0 %v2459_v35  ;;  %v2499_v35 = vunpack.c.h.s8.bf16 %v789_v23 }
 0x46b   : > { %13816 = vmatpush3.bf16.msra.mxu1 %v2475_v36  ;;  %13795 = vmatprep.subr.bf16.mxu0 %v2468_v41  ;;  %v2515_v36 = vunpack.c.h.s8.bf16 %v797_v14  ;;  %v790_v41 = vld [vmem:[%s16178_s23 + $0x10b0] sm:$0xff] }
 0x46c   : > { %13817 = vmatprep.subr.bf16.mxu1 %v2484_v42  ;;  %v2491_v42 = vunpack.c.h.s8.bf16 %v785_v54  ;;  %v2501_v49 = vunpack.c.h.s8.bf16 %v790_v41 }
 0x46e   : > { %13796 = vmatpush3.bf16.msra.mxu0 %v2460_v30  ;;  %v2500_v30 = vunpack.c.l.s8.bf16 %v790_v41 }
 0x46f   : > { %13818 = vmatpush3.bf16.msra.mxu1 %v2476_v17  ;;  %13797 = vmatprep.subr.bf16.mxu0 %v2469_v44  ;;  %v786_v17 = vld [vmem:[%s16178_s23 + $0x1090] sm:$0xff]  ;;  %v2516_v44 = vunpack.c.l.s8.bf16 %v798_v63 }
 0x470   : > { %13819 = vmatprep.subr.bf16.mxu1 %v2485_v45  ;;  %v13495_v56 = vpop.f32.mrb[100].mxu0  ;;  %v794_v45 = vld [vmem:[%s16178_s23 + $0x10d0] sm:$0xff]  ;;  %v2492_v48 = vunpack.c.l.s8.bf16 %v786_v17 }
 0x471   : > { %v13517_v0 = vpop.f32.mrb[100].mxu1  ;;  %v13496_v58 = vpop.f32.mrb[101].mxu0  ;;  %v2508_v57 = vunpack.c.l.s8.bf16 %v794_v45  ;;  %v2509_v53 = vunpack.c.h.s8.bf16 %v794_v45 }
 0x472   : > { %v13518_v59 = vpop.f32.mrb[101].mxu1  ;;  %v13497_v60 = vadd.f32 %v13496_v58, %v13495_v56  ;;  %v13498_v5 = vpop.f32.mrb[102].mxu0  ;;  %13798 = vmatpush3.bf16.msra.mxu0 %v2461_v50  ;;  %v2517_v50 = vunpack.c.h.s8.bf16 %v798_v63 }
 0x473   : > { %v13519_v10 = vadd.f32 %v13518_v59, %v13517_v0  ;;  %13820 = vmatpush3.bf16.msra.mxu1 %v2477_v39  ;;  %v13520_v62 = vpop.f32.mrb[102].mxu1  ;;  %v13499_v2 = vpop.f32.mrb[103].mxu0  ;;  %13799 = vmatprep.subr.bf16.mxu0 %v2470_v28  ;;  %v791_v39 = vld [vmem:[%s16178_s23 + $0x10b8] sm:$0xff] }
 0x474   : > { %13821 = vmatprep.subr.bf16.mxu1 %v2486_v52  ;;  %v13521_v55 = vpop.f32.mrb[103].mxu1  ;;  %v7961_v3 = vadd.f32 %v13497_v60, %v17135_v43  ;;  %v784_v43 = vld [vmem:[%s16178_s23 + $0x1080] sm:$0xff]  ;;  %v799_v28 = vld [vmem:[%s16178_s23 + $0x10f8] sm:$0xff]  ;;  %v2493_v52 = vunpack.c.h.s8.bf16 %v786_v17  ;;  %v2502_v56 = vunpack.c.l.s8.bf16 %v791_v39  ;;  %v2503_v24 = vunpack.c.h.s8.bf16 %v791_v39  ;;  %v814_v17 = vld [vmem:[%s16178_s23 + $0x1170] sm:$0xff] }
 0x475   : > { %v2488_v1 = vunpack.c.l.s8.bf16 %v784_v43  ;;  %v2489_v27 = vunpack.c.h.s8.bf16 %v784_v43  ;;  %v787_v0 = vld [vmem:[%s16178_s23 + $0x1098] sm:$0xff]  ;;  %v2518_v58 = vunpack.c.l.s8.bf16 %v799_v28  ;;  %v2519_v6 = vunpack.c.h.s8.bf16 %v799_v28 }
 0x476   : > { %v17164_v38 = vadd.f32 %v13519_v10, %v7961_v3  ;;  %13800 = vmatpush3.bf16.msra.mxu0 %v2462_v15  ;;  %v795_v59 = vld [vmem:[%s16178_s23 + $0x10d8] sm:$0xff]  ;;  %v17186_v10 = vrot.slane %v17180_v18, %v16209_v37 }
 0x477   : > { %13822 = vmatpush3.bf16.msra.mxu1 %v2478_v61  ;;  %13801 = vmatprep.subr.bf16.mxu0 %v2471_v11  ;;  %v2510_v55 = vunpack.c.l.s8.bf16 %v795_v59 }
 0x478   : > { %13823 = vmatprep.subr.bf16.mxu1 %v2487_v34  ;;  %v2494_v34 = vunpack.c.l.s8.bf16 %v787_v0  ;;  %v4669_v43 = vcombine.high %v17186_v10, %v17186_v10 }
 0x47a   : > { %13802 = vmatpush3.bf16.msra.mxu0 %v2463_v7 }
 0x47b   : > { %13824 = vmatpush3.bf16.msra.mxu1 %v2479_v12  ;;  %13831 = vmatprep.subr.bf16.mxu0 %v2496_v25  ;;  %v804_v12 = vld [vmem:[%s16178_s23 + $0x1120] sm:$0xff] }
 0x47c   : > { %13853 = vmatprep.subr.bf16.mxu1 %v2512_v13  ;;  %v812_v25 = vld [vmem:[%s16178_s23 + $0x1160] sm:$0xff]  ;;  %v4635_v13 = vrot.slane %v17155_v26, %v16209_v37 }
 0x47d   : > { %8519 = vmatmul.mubr.bf16.vlgmr.msra.gmra.mrb[128].mxu0 %v4628_v9 }
 0x47e   : > { %8559 = vmatmul.mubr.bf16.vlgmr.msra.gmra.mrb[128].mxu1 %v4650_v19  ;;  %13832 = vmatpush3.bf16.msra.mxu0 %v2488_v1  ;;  %v2511_v19 = vunpack.c.h.s8.bf16 %v795_v59  ;;  %v2528_v1 = vunpack.c.l.s8.bf16 %v804_v12  ;;  %v4651_v23 = vcombine.high %v4635_v13, %v4635_v13 }
 0x47f   : > { %13854 = vmatpush3.bf16.msra.mxu1 %v2504_v20  ;;  %13833 = vmatprep.subr.bf16.mxu0 %v2497_v46  ;;  %v2544_v20 = vunpack.c.l.s8.bf16 %v812_v25  ;;  %v808_v46 = vld [vmem:[%s16178_s23 + $0x1140] sm:$0xff] }
 0x480   : > { %13855 = vmatprep.subr.bf16.mxu1 %v2513_v21  ;;  %8598 = vmatprep.mubr.bf16.mxu0 %v4649_v16  ;;  %v2495_v16 = vunpack.c.h.s8.bf16 %v787_v0  ;;  %v4691_v21 = vrot.slane %v4669_v43, %v16209_v37  ;;  %v2536_v14 = vunpack.c.l.s8.bf16 %v808_v46  ;;  %v2537_v33 = vunpack.c.h.s8.bf16 %v808_v46  ;;  %v815_v0 = vld [vmem:[%s16178_s23 + $0x1178] sm:$0xff] }
 0x481   : > { %8638 = vmatprep.mubr.bf16.mxu1 %v4653_v47  ;;  %v2529_v47 = vunpack.c.h.s8.bf16 %v804_v12  ;;  %v2551_v43 = vunpack.c.h.s8.bf16 %v815_v0 }
 0x482   : > { %13834 = vmatpush3.bf16.msra.mxu0 %v2489_v27  ;;  %v2545_v27 = vunpack.c.h.s8.bf16 %v812_v25  ;;  %v4701_v54 = vcombine.high %v4691_v21, %v4691_v21 }
 0x483   : > { %13856 = vmatpush3.bf16.msra.mxu1 %v2505_v29  ;;  %13835 = vmatprep.subr.bf16.mxu0 %v2498_v31  ;;  %v805_v29 = vld [vmem:[%s16178_s23 + $0x1128] sm:$0xff] }
 0x484   : > { %13857 = vmatprep.subr.bf16.mxu1 %v2514_v32  ;;  %v813_v31 = vld [vmem:[%s16178_s23 + $0x1168] sm:$0xff] }
 0x486   : > { %13836 = vmatpush3.bf16.msra.mxu0 %v2490_v22  ;;  %v2530_v22 = vunpack.c.l.s8.bf16 %v805_v29 }
 0x487   : > { %13858 = vmatpush3.bf16.msra.mxu1 %v2506_v4  ;;  %13837 = vmatprep.subr.bf16.mxu0 %v2499_v35  ;;  %v801_v4 = vld [vmem:[%s16178_s23 + $0x1108] sm:$0xff]  ;;  %v2546_v35 = vunpack.c.l.s8.bf16 %v813_v31 }
 0x488   : > { %13859 = vmatprep.subr.bf16.mxu1 %v2515_v36  ;;  %v809_v36 = vld [vmem:[%s16178_s23 + $0x1148] sm:$0xff]  ;;  %v2522_v41 = vunpack.c.l.s8.bf16 %v801_v4 }
 0x489   : > { %v2538_v63 = vunpack.c.l.s8.bf16 %v809_v36  ;;  %v2539_v45 = vunpack.c.h.s8.bf16 %v809_v36 }
 0x48a   : > { %13838 = vmatpush3.bf16.msra.mxu0 %v2491_v42  ;;  %v2531_v42 = vunpack.c.h.s8.bf16 %v805_v29 }
 0x48b   : > { %13860 = vmatpush3.bf16.msra.mxu1 %v2507_v40  ;;  %13839 = vmatprep.subr.bf16.mxu0 %v2500_v30  ;;  %v2547_v40 = vunpack.c.h.s8.bf16 %v813_v31  ;;  %v806_v30 = vld [vmem:[%s16178_s23 + $0x1130] sm:$0xff] }
 0x48c   : > { %13861 = vmatprep.subr.bf16.mxu1 %v2516_v44  ;;  %v2523_v44 = vunpack.c.h.s8.bf16 %v801_v4 }
 0x48e   : > { %13840 = vmatpush3.bf16.msra.mxu0 %v2492_v48  ;;  %v2532_v48 = vunpack.c.l.s8.bf16 %v806_v30 }
 0x48f   : > { %13862 = vmatpush3.bf16.msra.mxu1 %v2508_v57  ;;  %13841 = vmatprep.subr.bf16.mxu0 %v2501_v49  ;;  %v802_v57 = vld [vmem:[%s16178_s23 + $0x1110] sm:$0xff]  ;;  %v2548_v49 = vunpack.c.l.s8.bf16 %v814_v17 }
 0x490   : > { %13863 = vmatprep.subr.bf16.mxu1 %v2517_v50  ;;  %v13539_v60 = vpop.f32.mrb[104].mxu0  ;;  %v810_v50 = vld [vmem:[%s16178_s23 + $0x1150] sm:$0xff]  ;;  %v2524_v39 = vunpack.c.l.s8.bf16 %v802_v57  ;;  %v2525_v59 = vunpack.c.h.s8.bf16 %v802_v57 }
 0x491   : > { %v13561_v5 = vpop.f32.mrb[104].mxu1  ;;  %v13540_v15 = vpop.f32.mrb[105].mxu0  ;;  %v2540_v28 = vunpack.c.l.s8.bf16 %v810_v50  ;;  %v830_v57 = vld [vmem:[%s16178_s23 + $0x11f0] sm:$0xff] }
 0x492   : > { %v13562_v61 = vpop.f32.mrb[105].mxu1  ;;  %v13541_v62 = vadd.f32 %v13540_v15, %v13539_v60  ;;  %v13542_v2 = vpop.f32.mrb[106].mxu0  ;;  %13842 = vmatpush3.bf16.msra.mxu0 %v2493_v52  ;;  %v2533_v52 = vunpack.c.h.s8.bf16 %v806_v30  ;;  %v2541_v60 = vunpack.c.h.s8.bf16 %v810_v50  ;;  %v803_v15 = vld [vmem:[%s16178_s23 + $0x1118] sm:$0xff] }
 0x493   : > { %v13563_v11 = vadd.f32 %v13562_v61, %v13561_v5  ;;  %13864 = vmatpush3.bf16.msra.mxu1 %v2509_v53  ;;  %v13564_v3 = vpop.f32.mrb[106].mxu1  ;;  %v13543_v8 = vpop.f32.mrb[107].mxu0  ;;  %13843 = vmatprep.subr.bf16.mxu0 %v2502_v56  ;;  %v2549_v53 = vunpack.c.h.s8.bf16 %v814_v17  ;;  %v807_v56 = vld [vmem:[%s16178_s23 + $0x1138] sm:$0xff]  ;;  %v2550_v61 = vunpack.c.l.s8.bf16 %v815_v0 }
 0x494   : > { %13865 = vmatprep.subr.bf16.mxu1 %v2518_v58  ;;  %v13565_v9 = vpop.f32.mrb[107].mxu1  ;;  %v8041_v7 = vadd.f32 %v13541_v62, %v17164_v38  ;;  %v800_v38 = vld [vmem:[%s16178_s23 + $0x1100] sm:$0xff]  ;;  %v4654_v58 = vcombine.high %v17180_v18, %v17180_v18  ;;  %v2534_v5 = vunpack.c.l.s8.bf16 %v807_v56  ;;  %v811_v62 = vld [vmem:[%s16178_s23 + $0x1158] sm:$0xff]  ;;  %v2535_v25 = vunpack.c.h.s8.bf16 %v807_v56 }
 0x495   : > { %v2520_v26 = vunpack.c.l.s8.bf16 %v800_v38  ;;  %v2521_v32 = vunpack.c.h.s8.bf16 %v800_v38  ;;  %v2542_v9 = vunpack.c.l.s8.bf16 %v811_v62 }
 0x496   : > { %v17195_v51 = vadd.f32 %v13563_v11, %v8041_v7  ;;  %13844 = vmatpush3.bf16.msra.mxu0 %v2494_v34  ;;  %v17215_v34 = vrot.slane %v4654_v58, %v16209_v37 }
 0x497   : > { %13866 = vmatpush3.bf16.msra.mxu1 %v2510_v55  ;;  %13845 = vmatprep.subr.bf16.mxu0 %v2503_v24 }
 0x498   : > { %13867 = vmatprep.subr.bf16.mxu1 %v2519_v6  ;;  %v2526_v6 = vunpack.c.l.s8.bf16 %v803_v15  ;;  %v4670_v38 = vcombine.high %v17215_v34, %v17215_v34 }
 0x49a   : > { %13846 = vmatpush3.bf16.msra.mxu0 %v2495_v16 }
 0x49b   : > { %13868 = vmatpush3.bf16.msra.mxu1 %v2511_v19  ;;  %13875 = vmatprep.subr.bf16.mxu0 %v2528_v1  ;;  %v820_v19 = vld [vmem:[%s16178_s23 + $0x11a0] sm:$0xff] }
 0x49c   : > { %13897 = vmatprep.subr.bf16.mxu1 %v2544_v20  ;;  %v828_v1 = vld [vmem:[%s16178_s23 + $0x11e0] sm:$0xff]  ;;  %v4677_v20 = vrot.slane %v17186_v10, %v16209_v37 }
 0x49d   : > { %8599 = vmatmul.mubr.bf16.vlgmr.msra.gmra.mrb[132].mxu0 %v4635_v13 }
 0x49e   : > { %8639 = vmatmul.mubr.bf16.vlgmr.msra.gmra.mrb[132].mxu1 %v4651_v23  ;;  %13876 = vmatpush3.bf16.msra.mxu0 %v2520_v26  ;;  %v2543_v23 = vunpack.c.h.s8.bf16 %v811_v62  ;;  %v2560_v26 = vunpack.c.l.s8.bf16 %v820_v19  ;;  %v4699_v29 = vcombine.high %v4677_v20, %v4677_v20 }
 0x49f   : > { %13898 = vmatpush3.bf16.msra.mxu1 %v2536_v14  ;;  %13877 = vmatprep.subr.bf16.mxu0 %v2529_v47  ;;  %v2576_v14 = vunpack.c.l.s8.bf16 %v828_v1  ;;  %v824_v47 = vld [vmem:[%s16178_s23 + $0x11c0] sm:$0xff] }
 0x4a0   : > { %13899 = vmatprep.subr.bf16.mxu1 %v2545_v27  ;;  %8678 = vmatprep.mubr.bf16.mxu0 %v4691_v21  ;;  %v2527_v21 = vunpack.c.h.s8.bf16 %v803_v15  ;;  %v4698_v27 = vrot.slane %v4670_v38, %v16209_v37  ;;  %v2568_v31 = vunpack.c.l.s8.bf16 %v824_v47  ;;  %v2569_v36 = vunpack.c.h.s8.bf16 %v824_v47  ;;  %v17240_v15 = vld [vmem:[%s16192_s25 + $0x90] sm:$0xff] }
 0x4a1   : > { %8718 = vmatprep.mubr.bf16.mxu1 %v4701_v54  ;;  %v2561_v54 = vunpack.c.h.s8.bf16 %v820_v19 }
 0x4a2   : > { %13878 = vmatpush3.bf16.msra.mxu0 %v2521_v32  ;;  %v2577_v32 = vunpack.c.h.s8.bf16 %v828_v1  ;;  %v4702_v4 = vcombine.high %v4698_v27, %v4698_v27 }
 0x4a3   : > { %13900 = vmatpush3.bf16.msra.mxu1 %v2537_v33  ;;  %13879 = vmatprep.subr.bf16.mxu0 %v2530_v22  ;;  %v821_v33 = vld [vmem:[%s16178_s23 + $0x11a8] sm:$0xff] }
 0x4a4   : > { %13901 = vmatprep.subr.bf16.mxu1 %v2546_v35  ;;  %v829_v22 = vld [vmem:[%s16178_s23 + $0x11e8] sm:$0xff] }
 0x4a6   : > { %13880 = vmatpush3.bf16.msra.mxu0 %v2522_v41  ;;  %v2562_v41 = vunpack.c.l.s8.bf16 %v821_v33 }
 0x4a7   : > { %13902 = vmatpush3.bf16.msra.mxu1 %v2538_v63  ;;  %13881 = vmatprep.subr.bf16.mxu0 %v2531_v42  ;;  %v817_v63 = vld [vmem:[%s16178_s23 + $0x1188] sm:$0xff]  ;;  %v2578_v42 = vunpack.c.l.s8.bf16 %v829_v22 }
 0x4a8   : > { %13903 = vmatprep.subr.bf16.mxu1 %v2547_v40  ;;  %v825_v40 = vld [vmem:[%s16178_s23 + $0x11c8] sm:$0xff]  ;;  %v2554_v30 = vunpack.c.l.s8.bf16 %v817_v63 }
 0x4a9   : > { %v2570_v17 = vunpack.c.l.s8.bf16 %v825_v40  ;;  %v2571_v50 = vunpack.c.h.s8.bf16 %v825_v40 }
 0x4aa   : > { %13882 = vmatpush3.bf16.msra.mxu0 %v2523_v44  ;;  %v2563_v44 = vunpack.c.h.s8.bf16 %v821_v33 }
 0x4ab   : > { %13904 = vmatpush3.bf16.msra.mxu1 %v2539_v45  ;;  %13883 = vmatprep.subr.bf16.mxu0 %v2532_v48  ;;  %v2579_v45 = vunpack.c.h.s8.bf16 %v829_v22  ;;  %v822_v48 = vld [vmem:[%s16178_s23 + $0x11b0] sm:$0xff] }
 0x4ac   : > { %13905 = vmatprep.subr.bf16.mxu1 %v2548_v49  ;;  %v2555_v49 = vunpack.c.h.s8.bf16 %v817_v63  ;;  %v2565_v58 = vunpack.c.h.s8.bf16 %v822_v48 }
 0x4ae   : > { %13884 = vmatpush3.bf16.msra.mxu0 %v2524_v39  ;;  %v2564_v39 = vunpack.c.l.s8.bf16 %v822_v48 }
 0x4af   : > { %13906 = vmatpush3.bf16.msra.mxu1 %v2540_v28  ;;  %13885 = vmatprep.subr.bf16.mxu0 %v2533_v52  ;;  %v818_v28 = vld [vmem:[%s16178_s23 + $0x1190] sm:$0xff]  ;;  %v2580_v52 = vunpack.c.l.s8.bf16 %v830_v57 }
 0x4b0   : > { %13907 = vmatprep.subr.bf16.mxu1 %v2549_v53  ;;  %v13583_v2 = vpop.f32.mrb[108].mxu0  ;;  %v826_v53 = vld [vmem:[%s16178_s23 + $0x11d0] sm:$0xff]  ;;  %v2556_v56 = vunpack.c.l.s8.bf16 %v818_v28 }
 0x4b1   : > { %v13605_v11 = vpop.f32.mrb[108].mxu1  ;;  %v13584_v55 = vpop.f32.mrb[109].mxu0  ;;  %v2572_v0 = vunpack.c.l.s8.bf16 %v826_v53  ;;  %v2573_v62 = vunpack.c.h.s8.bf16 %v826_v53 }
 0x4b2   : > { %v13606_v3 = vpop.f32.mrb[109].mxu1  ;;  %v13585_v8 = vadd.f32 %v13584_v55, %v13583_v2  ;;  %v13586_v18 = vpop.f32.mrb[110].mxu0  ;;  %13886 = vmatpush3.bf16.msra.mxu0 %v2525_v59  ;;  %v2581_v59 = vunpack.c.h.s8.bf16 %v830_v57 }
 0x4b3   : > { %v13607_v24 = vadd.f32 %v13606_v3, %v13605_v11  ;;  %13908 = vmatpush3.bf16.msra.mxu1 %v2541_v60  ;;  %v13608_v7 = vpop.f32.mrb[110].mxu1  ;;  %v13587_v12 = vpop.f32.mrb[111].mxu0  ;;  %13887 = vmatprep.subr.bf16.mxu0 %v2534_v5  ;;  %v823_v60 = vld [vmem:[%s16178_s23 + $0x11b8] sm:$0xff] }
 0x4b4   : > { %13909 = vmatprep.subr.bf16.mxu1 %v2550_v61  ;;  %v13609_v13 = vpop.f32.mrb[111].mxu1  ;;  %v8121_v16 = vadd.f32 %v13585_v8, %v17195_v51  ;;  %v816_v51 = vld [vmem:[%s16178_s23 + $0x1180] sm:$0xff]  ;;  %v831_v5 = vld [vmem:[%s16178_s23 + $0x11f8] sm:$0xff]  ;;  %v2557_v61 = vunpack.c.h.s8.bf16 %v818_v28  ;;  %v2566_v2 = vunpack.c.l.s8.bf16 %v823_v60  ;;  %v2567_v1 = vunpack.c.h.s8.bf16 %v823_v60  ;;  %v846_v28 = vld [vmem:[%s16178_s23 + $0x1270] sm:$0xff] }
 0x4b5   : > { %v2552_v10 = vunpack.c.l.s8.bf16 %v816_v51  ;;  %v2553_v35 = vunpack.c.h.s8.bf16 %v816_v51  ;;  %v819_v11 = vld [vmem:[%s16178_s23 + $0x1198] sm:$0xff]  ;;  %v2582_v55 = vunpack.c.l.s8.bf16 %v831_v5  ;;  %v2583_v38 = vunpack.c.h.s8.bf16 %v831_v5 }
 0x4b6   : > { %v17224_v46 = vadd.f32 %v13607_v24, %v8121_v16  ;;  %13888 = vmatpush3.bf16.msra.mxu0 %v2526_v6  ;;  %v827_v3 = vld [vmem:[%s16178_s23 + $0x11d8] sm:$0xff]  ;;  %v17246_v24 = vrot.slane %v17240_v15, %v16209_v37 }
 0x4b7   : > { %13910 = vmatpush3.bf16.msra.mxu1 %v2542_v9  ;;  %13889 = vmatprep.subr.bf16.mxu0 %v2535_v25  ;;  %v2574_v13 = vunpack.c.l.s8.bf16 %v827_v3 }
 0x4b8   : > { %13911 = vmatprep.subr.bf16.mxu1 %v2551_v43  ;;  %v2558_v43 = vunpack.c.l.s8.bf16 %v819_v11  ;;  %v4718_v51 = vcombine.high %v17246_v24, %v17246_v24 }
 0x4ba   : > { %13890 = vmatpush3.bf16.msra.mxu0 %v2527_v21 }
 0x4bb   : > { %13912 = vmatpush3.bf16.msra.mxu1 %v2543_v23  ;;  %13919 = vmatprep.subr.bf16.mxu0 %v2560_v26  ;;  %v836_v23 = vld [vmem:[%s16178_s23 + $0x1220] sm:$0xff] }
 0x4bc   : > { %13941 = vmatprep.subr.bf16.mxu1 %v2576_v14  ;;  %v844_v26 = vld [vmem:[%s16178_s23 + $0x1260] sm:$0xff]  ;;  %v4684_v14 = vrot.slane %v17215_v34, %v16209_v37 }
 0x4bd   : > { %8679 = vmatmul.mubr.bf16.vlgmr.msra.gmra.mrb[136].mxu0 %v4677_v20 }
 0x4be   : > { %8719 = vmatmul.mubr.bf16.vlgmr.msra.gmra.mrb[136].mxu1 %v4699_v29  ;;  %13920 = vmatpush3.bf16.msra.mxu0 %v2552_v10  ;;  %v2575_v29 = vunpack.c.h.s8.bf16 %v827_v3  ;;  %v2592_v10 = vunpack.c.l.s8.bf16 %v836_v23  ;;  %v4700_v33 = vcombine.high %v4684_v14, %v4684_v14 }
 0x4bf   : > { %13942 = vmatpush3.bf16.msra.mxu1 %v2568_v31  ;;  %13921 = vmatprep.subr.bf16.mxu0 %v2561_v54  ;;  %v2608_v31 = vunpack.c.l.s8.bf16 %v844_v26  ;;  %v840_v54 = vld [vmem:[%s16178_s23 + $0x1240] sm:$0xff] }
 0x4c0   : > { %13943 = vmatprep.subr.bf16.mxu1 %v2577_v32  ;;  %8758 = vmatprep.mubr.bf16.mxu0 %v4698_v27  ;;  %v2559_v27 = vunpack.c.h.s8.bf16 %v819_v11  ;;  %v4740_v32 = vrot.slane %v4718_v51, %v16209_v37  ;;  %v2600_v22 = vunpack.c.l.s8.bf16 %v840_v54  ;;  %v2601_v40 = vunpack.c.h.s8.bf16 %v840_v54  ;;  %v847_v11 = vld [vmem:[%s16178_s23 + $0x1278] sm:$0xff] }
 0x4c1   : > { %8798 = vmatprep.mubr.bf16.mxu1 %v4702_v4  ;;  %v2593_v4 = vunpack.c.h.s8.bf16 %v836_v23  ;;  %v2615_v51 = vunpack.c.h.s8.bf16 %v847_v11 }
 0x4c2   : > { %13922 = vmatpush3.bf16.msra.mxu0 %v2553_v35  ;;  %v2609_v35 = vunpack.c.h.s8.bf16 %v844_v26  ;;  %v4750_v63 = vcombine.high %v4740_v32, %v4740_v32 }
 0x4c3   : > { %13944 = vmatpush3.bf16.msra.mxu1 %v2569_v36  ;;  %13923 = vmatprep.subr.bf16.mxu0 %v2562_v41  ;;  %v837_v36 = vld [vmem:[%s16178_s23 + $0x1228] sm:$0xff] }
 0x4c4   : > { %13945 = vmatprep.subr.bf16.mxu1 %v2578_v42  ;;  %v845_v41 = vld [vmem:[%s16178_s23 + $0x1268] sm:$0xff] }
 0x4c6   : > { %13924 = vmatpush3.bf16.msra.mxu0 %v2554_v30  ;;  %v2594_v30 = vunpack.c.l.s8.bf16 %v837_v36 }
 0x4c7   : > { %13946 = vmatpush3.bf16.msra.mxu1 %v2570_v17  ;;  %13925 = vmatprep.subr.bf16.mxu0 %v2563_v44  ;;  %v833_v17 = vld [vmem:[%s16178_s23 + $0x1208] sm:$0xff]  ;;  %v2610_v44 = vunpack.c.l.s8.bf16 %v845_v41 }
 0x4c8   : > { %13947 = vmatprep.subr.bf16.mxu1 %v2579_v45  ;;  %v841_v45 = vld [vmem:[%s16178_s23 + $0x1248] sm:$0xff]  ;;  %v2586_v48 = vunpack.c.l.s8.bf16 %v833_v17 }
 0x4c9   : > { %v2602_v57 = vunpack.c.l.s8.bf16 %v841_v45  ;;  %v2603_v53 = vunpack.c.h.s8.bf16 %v841_v45 }
 0x4ca   : > { %13926 = vmatpush3.bf16.msra.mxu0 %v2555_v49  ;;  %v2595_v49 = vunpack.c.h.s8.bf16 %v837_v36 }
 0x4cb   : > { %13948 = vmatpush3.bf16.msra.mxu1 %v2571_v50  ;;  %13927 = vmatprep.subr.bf16.mxu0 %v2564_v39  ;;  %v2611_v50 = vunpack.c.h.s8.bf16 %v845_v41  ;;  %v838_v39 = vld [vmem:[%s16178_s23 + $0x1230] sm:$0xff] }
 0x4cc   : > { %13949 = vmatprep.subr.bf16.mxu1 %v2580_v52  ;;  %v2587_v52 = vunpack.c.h.s8.bf16 %v833_v17 }
 0x4ce   : > { %13928 = vmatpush3.bf16.msra.mxu0 %v2556_v56  ;;  %v2596_v56 = vunpack.c.l.s8.bf16 %v838_v39 }
 0x4cf   : > { %13950 = vmatpush3.bf16.msra.mxu1 %v2572_v0  ;;  %13929 = vmatprep.subr.bf16.mxu0 %v2565_v58  ;;  %v834_v0 = vld [vmem:[%s16178_s23 + $0x1210] sm:$0xff]  ;;  %v2612_v58 = vunpack.c.l.s8.bf16 %v846_v28 }
 0x4d0   : > { %13951 = vmatprep.subr.bf16.mxu1 %v2581_v59  ;;  %v13627_v8 = vpop.f32.mrb[112].mxu0  ;;  %v842_v59 = vld [vmem:[%s16178_s23 + $0x1250] sm:$0xff]  ;;  %v2588_v60 = vunpack.c.l.s8.bf16 %v834_v0  ;;  %v2589_v3 = vunpack.c.h.s8.bf16 %v834_v0 }
 0x4d1   : > { %v13649_v18 = vpop.f32.mrb[112].mxu1  ;;  %v13628_v6 = vpop.f32.mrb[113].mxu0  ;;  %v2604_v5 = vunpack.c.l.s8.bf16 %v842_v59  ;;  %v862_v0 = vld [vmem:[%s16178_s23 + $0x12f0] sm:$0xff] }
 0x4d2   : > { %v13650_v9 = vpop.f32.mrb[113].mxu1  ;;  %v13629_v7 = vadd.f32 %v13628_v6, %v13627_v8  ;;  %v13630_v12 = vpop.f32.mrb[114].mxu0  ;;  %13930 = vmatpush3.bf16.msra.mxu0 %v2557_v61  ;;  %v2597_v61 = vunpack.c.h.s8.bf16 %v838_v39  ;;  %v2605_v8 = vunpack.c.h.s8.bf16 %v842_v59  ;;  %v835_v6 = vld [vmem:[%s16178_s23 + $0x1218] sm:$0xff] }
 0x4d3   : > { %v13651_v25 = vadd.f32 %v13650_v9, %v13649_v18  ;;  %13952 = vmatpush3.bf16.msra.mxu1 %v2573_v62  ;;  %v13652_v16 = vpop.f32.mrb[114].mxu1  ;;  %v13631_v19 = vpop.f32.mrb[115].mxu0  ;;  %13931 = vmatprep.subr.bf16.mxu0 %v2566_v2  ;;  %v2613_v62 = vunpack.c.h.s8.bf16 %v846_v28  ;;  %v839_v2 = vld [vmem:[%s16178_s23 + $0x1238] sm:$0xff]  ;;  %v2614_v9 = vunpack.c.l.s8.bf16 %v847_v11 }
 0x4d4   : > { %13953 = vmatprep.subr.bf16.mxu1 %v2582_v55  ;;  %v13653_v20 = vpop.f32.mrb[115].mxu1  ;;  %v8201_v21 = vadd.f32 %v13629_v7, %v17224_v46  ;;  %v832_v46 = vld [vmem:[%s16178_s23 + $0x1200] sm:$0xff]  ;;  %v4703_v55 = vcombine.high %v17240_v15, %v17240_v15  ;;  %v2598_v18 = vunpack.c.l.s8.bf16 %v839_v2  ;;  %v843_v7 = vld [vmem:[%s16178_s23 + $0x1258] sm:$0xff]  ;;  %v2599_v26 = vunpack.c.h.s8.bf16 %v839_v2 }
 0x4d5   : > { %v2584_v34 = vunpack.c.l.s8.bf16 %v832_v46  ;;  %v2585_v42 = vunpack.c.h.s8.bf16 %v832_v46  ;;  %v2606_v20 = vunpack.c.l.s8.bf16 %v843_v7 }
 0x4d6   : > { %v17255_v47 = vadd.f32 %v13651_v25, %v8201_v21  ;;  %13932 = vmatpush3.bf16.msra.mxu0 %v2558_v43  ;;  %v17275_v43 = vrot.slane %v4703_v55, %v16209_v37 }
 0x4d7   : > { %13954 = vmatpush3.bf16.msra.mxu1 %v2574_v13  ;;  %13933 = vmatprep.subr.bf16.mxu0 %v2567_v1 }
 0x4d8   : > { %13955 = vmatprep.subr.bf16.mxu1 %v2583_v38  ;;  %v2590_v38 = vunpack.c.l.s8.bf16 %v835_v6  ;;  %v4719_v46 = vcombine.high %v17275_v43, %v17275_v43 }
 0x4da   : > { %13934 = vmatpush3.bf16.msra.mxu0 %v2559_v27 }
 0x4db   : > { %13956 = vmatpush3.bf16.msra.mxu1 %v2575_v29  ;;  %13963 = vmatprep.subr.bf16.mxu0 %v2592_v10  ;;  %v852_v29 = vld [vmem:[%s16178_s23 + $0x12a0] sm:$0xff] }
 0x4dc   : > { %13985 = vmatprep.subr.bf16.mxu1 %v2608_v31  ;;  %v860_v10 = vld [vmem:[%s16178_s23 + $0x12e0] sm:$0xff]  ;;  %v4726_v31 = vrot.slane %v17246_v24, %v16209_v37 }
 0x4dd   : > { %8759 = vmatmul.mubr.bf16.vlgmr.msra.gmra.mrb[140].mxu0 %v4684_v14 }
 0x4de   : > { %8799 = vmatmul.mubr.bf16.vlgmr.msra.gmra.mrb[140].mxu1 %v4700_v33  ;;  %13964 = vmatpush3.bf16.msra.mxu0 %v2584_v34  ;;  %v2607_v33 = vunpack.c.h.s8.bf16 %v843_v7  ;;  %v2624_v34 = vunpack.c.l.s8.bf16 %v852_v29  ;;  %v4748_v36 = vcombine.high %v4726_v31, %v4726_v31 }
 0x4df   : > { %13986 = vmatpush3.bf16.msra.mxu1 %v2600_v22  ;;  %13965 = vmatprep.subr.bf16.mxu0 %v2593_v4  ;;  %v2640_v22 = vunpack.c.l.s8.bf16 %v860_v10  ;;  %v856_v4 = vld [vmem:[%s16178_s23 + $0x12c0] sm:$0xff] }
 0x4e0   : > { %13987 = vmatprep.subr.bf16.mxu1 %v2609_v35  ;;  %8838 = vmatprep.mubr.bf16.mxu0 %v4740_v32  ;;  %v2591_v32 = vunpack.c.h.s8.bf16 %v835_v6  ;;  %v4747_v35 = vrot.slane %v4719_v46, %v16209_v37  ;;  %v2632_v41 = vunpack.c.l.s8.bf16 %v856_v4  ;;  %v2633_v45 = vunpack.c.h.s8.bf16 %v856_v4  ;;  %v17300_v6 = vld [vmem:[%s16192_s25 + $0x98] sm:$0xff] }
 0x4e1   : > { %8878 = vmatprep.mubr.bf16.mxu1 %v4750_v63  ;;  %v2625_v63 = vunpack.c.h.s8.bf16 %v852_v29 }
 0x4e2   : > { %13966 = vmatpush3.bf16.msra.mxu0 %v2585_v42  ;;  %v2641_v42 = vunpack.c.h.s8.bf16 %v860_v10  ;;  %v4751_v17 = vcombine.high %v4747_v35, %v4747_v35 }
 0x4e3   : > { %13988 = vmatpush3.bf16.msra.mxu1 %v2601_v40  ;;  %13967 = vmatprep.subr.bf16.mxu0 %v2594_v30  ;;  %v853_v40 = vld [vmem:[%s16178_s23 + $0x12a8] sm:$0xff] }
 0x4e4   : > { %13989 = vmatprep.subr.bf16.mxu1 %v2610_v44  ;;  %v861_v30 = vld [vmem:[%s16178_s23 + $0x12e8] sm:$0xff] }
 0x4e6   : > { %13968 = vmatpush3.bf16.msra.mxu0 %v2586_v48  ;;  %v2626_v48 = vunpack.c.l.s8.bf16 %v853_v40 }
 0x4e7   : > { %13990 = vmatpush3.bf16.msra.mxu1 %v2602_v57  ;;  %13969 = vmatprep.subr.bf16.mxu0 %v2595_v49  ;;  %v849_v57 = vld [vmem:[%s16178_s23 + $0x1288] sm:$0xff]  ;;  %v2642_v49 = vunpack.c.l.s8.bf16 %v861_v30 }
 0x4e8   : > { %13991 = vmatprep.subr.bf16.mxu1 %v2611_v50  ;;  %v857_v50 = vld [vmem:[%s16178_s23 + $0x12c8] sm:$0xff]  ;;  %v2618_v39 = vunpack.c.l.s8.bf16 %v849_v57 }
 0x4e9   : > { %v2634_v28 = vunpack.c.l.s8.bf16 %v857_v50  ;;  %v2635_v59 = vunpack.c.h.s8.bf16 %v857_v50 }
 0x4ea   : > { %13970 = vmatpush3.bf16.msra.mxu0 %v2587_v52  ;;  %v2627_v52 = vunpack.c.h.s8.bf16 %v853_v40 }
 0x4eb   : > { %13992 = vmatpush3.bf16.msra.mxu1 %v2603_v53  ;;  %13971 = vmatprep.subr.bf16.mxu0 %v2596_v56  ;;  %v2643_v53 = vunpack.c.h.s8.bf16 %v861_v30  ;;  %v854_v56 = vld [vmem:[%s16178_s23 + $0x12b0] sm:$0xff] }
 0x4ec   : > { %13993 = vmatprep.subr.bf16.mxu1 %v2612_v58  ;;  %v2619_v58 = vunpack.c.h.s8.bf16 %v849_v57  ;;  %v2629_v55 = vunpack.c.h.s8.bf16 %v854_v56 }
 0x4ee   : > { %13972 = vmatpush3.bf16.msra.mxu0 %v2588_v60  ;;  %v2628_v60 = vunpack.c.l.s8.bf16 %v854_v56 }
 0x4ef   : > { %13994 = vmatpush3.bf16.msra.mxu1 %v2604_v5  ;;  %13973 = vmatprep.subr.bf16.mxu0 %v2597_v61  ;;  %v850_v5 = vld [vmem:[%s16178_s23 + $0x1290] sm:$0xff]  ;;  %v2644_v61 = vunpack.c.l.s8.bf16 %v862_v0 }
 0x4f0   : > { %13995 = vmatprep.subr.bf16.mxu1 %v2613_v62  ;;  %v13671_v12 = vpop.f32.mrb[116].mxu0  ;;  %v858_v62 = vld [vmem:[%s16178_s23 + $0x12d0] sm:$0xff]  ;;  %v2620_v2 = vunpack.c.l.s8.bf16 %v850_v5 }
 0x4f1   : > { %v13693_v25 = vpop.f32.mrb[116].mxu1  ;;  %v13672_v13 = vpop.f32.mrb[117].mxu0  ;;  %v2636_v11 = vunpack.c.l.s8.bf16 %v858_v62  ;;  %v2637_v7 = vunpack.c.h.s8.bf16 %v858_v62 }
 0x4f2   : > { %v13694_v16 = vpop.f32.mrb[117].mxu1  ;;  %v13673_v19 = vadd.f32 %v13672_v13, %v13671_v12  ;;  %v13674_v15 = vpop.f32.mrb[118].mxu0  ;;  %13974 = vmatpush3.bf16.msra.mxu0 %v2589_v3  ;;  %v2645_v3 = vunpack.c.h.s8.bf16 %v862_v0 }
 0x4f3   : > { %v13695_v1 = vadd.f32 %v13694_v16, %v13693_v25  ;;  %13996 = vmatpush3.bf16.msra.mxu1 %v2605_v8  ;;  %v13696_v21 = vpop.f32.mrb[118].mxu1  ;;  %v13675_v23 = vpop.f32.mrb[119].mxu0  ;;  %13975 = vmatprep.subr.bf16.mxu0 %v2598_v18  ;;  %v855_v8 = vld [vmem:[%s16178_s23 + $0x12b8] sm:$0xff] }
 0x4f4   : > { %13997 = vmatprep.subr.bf16.mxu1 %v2614_v9  ;;  %v13697_v14 = vpop.f32.mrb[119].mxu1  ;;  %v8281_v27 = vadd.f32 %v13673_v19, %v17255_v47  ;;  %v848_v47 = vld [vmem:[%s16178_s23 + $0x1280] sm:$0xff]  ;;  %v863_v18 = vld [vmem:[%s16178_s23 + $0x12f8] sm:$0xff]  ;;  %v2621_v9 = vunpack.c.h.s8.bf16 %v850_v5  ;;  %v2630_v12 = vunpack.c.l.s8.bf16 %v855_v8  ;;  %v2631_v10 = vunpack.c.h.s8.bf16 %v855_v8  ;;  %v878_v5 = vld [vmem:[%s16178_s23 + $0x1370] sm:$0xff] }
 0x4f5   : > { %v2616_v24 = vunpack.c.l.s8.bf16 %v848_v47  ;;  %v2617_v44 = vunpack.c.h.s8.bf16 %v848_v47  ;;  %v851_v25 = vld [vmem:[%s16178_s23 + $0x1298] sm:$0xff]  ;;  %v2646_v13 = vunpack.c.l.s8.bf16 %v863_v18  ;;  %v2647_v46 = vunpack.c.h.s8.bf16 %v863_v18 }
 0x4f6   : > { %v17284_v54 = vadd.f32 %v13695_v1, %v8281_v27  ;;  %13976 = vmatpush3.bf16.msra.mxu0 %v2590_v38  ;;  %v859_v16 = vld [vmem:[%s16178_s23 + $0x12d8] sm:$0xff]  ;;  %v17306_v1 = vrot.slane %v17300_v6, %v16209_v37 }
 0x4f7   : > { %13998 = vmatpush3.bf16.msra.mxu1 %v2606_v20  ;;  %13977 = vmatprep.subr.bf16.mxu0 %v2599_v26  ;;  %v2638_v14 = vunpack.c.l.s8.bf16 %v859_v16 }
 0x4f8   : > { %13999 = vmatprep.subr.bf16.mxu1 %v2615_v51  ;;  %v2622_v51 = vunpack.c.l.s8.bf16 %v851_v25  ;;  %v4767_v47 = vcombine.high %v17306_v1, %v17306_v1 }
 0x4fa   : > { %13978 = vmatpush3.bf16.msra.mxu0 %v2591_v32 }
 0x4fb   : > { %14000 = vmatpush3.bf16.msra.mxu1 %v2607_v33  ;;  %14007 = vmatprep.subr.bf16.mxu0 %v2624_v34  ;;  %v868_v33 = vld [vmem:[%s16178_s23 + $0x1320] sm:$0xff] }
 0x4fc   : > { %14029 = vmatprep.subr.bf16.mxu1 %v2640_v22  ;;  %v876_v34 = vld [vmem:[%s16178_s23 + $0x1360] sm:$0xff]  ;;  %v4733_v22 = vrot.slane %v17275_v43, %v16209_v37 }
 0x4fd   : > { %8839 = vmatmul.mubr.bf16.vlgmr.msra.gmra.mrb[144].mxu0 %v4726_v31 }
 0x4fe   : > { %8879 = vmatmul.mubr.bf16.vlgmr.msra.gmra.mrb[144].mxu1 %v4748_v36  ;;  %14008 = vmatpush3.bf16.msra.mxu0 %v2616_v24  ;;  %v2639_v36 = vunpack.c.h.s8.bf16 %v859_v16  ;;  %v2656_v24 = vunpack.c.l.s8.bf16 %v868_v33  ;;  %v4749_v40 = vcombine.high %v4733_v22, %v4733_v22 }
 0x4ff   : > { %14030 = vmatpush3.bf16.msra.mxu1 %v2632_v41  ;;  %14009 = vmatprep.subr.bf16.mxu0 %v2625_v63  ;;  %v2672_v41 = vunpack.c.l.s8.bf16 %v876_v34  ;;  %v872_v63 = vld [vmem:[%s16178_s23 + $0x1340] sm:$0xff] }
 0x500   : > { %14031 = vmatprep.subr.bf16.mxu1 %v2641_v42  ;;  %8918 = vmatprep.mubr.bf16.mxu0 %v4747_v35  ;;  %v2623_v35 = vunpack.c.h.s8.bf16 %v851_v25  ;;  %v4789_v42 = vrot.slane %v4767_v47, %v16209_v37  ;;  %v2664_v30 = vunpack.c.l.s8.bf16 %v872_v63  ;;  %v2665_v50 = vunpack.c.h.s8.bf16 %v872_v63  ;;  %v879_v25 = vld [vmem:[%s16178_s23 + $0x1378] sm:$0xff] }
 0x501   : > { %8958 = vmatprep.mubr.bf16.mxu1 %v4751_v17  ;;  %v2657_v17 = vunpack.c.h.s8.bf16 %v868_v33  ;;  %v2679_v47 = vunpack.c.h.s8.bf16 %v879_v25 }
 0x502   : > { %14010 = vmatpush3.bf16.msra.mxu0 %v2617_v44  ;;  %v2673_v44 = vunpack.c.h.s8.bf16 %v876_v34  ;;  %v4799_v57 = vcombine.high %v4789_v42, %v4789_v42 }
 0x503   : > { %14032 = vmatpush3.bf16.msra.mxu1 %v2633_v45  ;;  %14011 = vmatprep.subr.bf16.mxu0 %v2626_v48  ;;  %v869_v45 = vld [vmem:[%s16178_s23 + $0x1328] sm:$0xff] }
 0x504   : > { %14033 = vmatprep.subr.bf16.mxu1 %v2642_v49  ;;  %v877_v48 = vld [vmem:[%s16178_s23 + $0x1368] sm:$0xff] }
 0x506   : > { %14012 = vmatpush3.bf16.msra.mxu0 %v2618_v39  ;;  %v2658_v39 = vunpack.c.l.s8.bf16 %v869_v45 }
 0x507   : > { %14034 = vmatpush3.bf16.msra.mxu1 %v2634_v28  ;;  %14013 = vmatprep.subr.bf16.mxu0 %v2627_v52  ;;  %v865_v28 = vld [vmem:[%s16178_s23 + $0x1308] sm:$0xff]  ;;  %v2674_v52 = vunpack.c.l.s8.bf16 %v877_v48 }
 0x508   : > { %14035 = vmatprep.subr.bf16.mxu1 %v2643_v53  ;;  %v873_v53 = vld [vmem:[%s16178_s23 + $0x1348] sm:$0xff]  ;;  %v2650_v56 = vunpack.c.l.s8.bf16 %v865_v28 }
 0x509   : > { %v2666_v0 = vunpack.c.l.s8.bf16 %v873_v53  ;;  %v2667_v62 = vunpack.c.h.s8.bf16 %v873_v53 }
 0x50a   : > { %14014 = vmatpush3.bf16.msra.mxu0 %v2619_v58  ;;  %v2659_v58 = vunpack.c.h.s8.bf16 %v869_v45 }
 0x50b   : > { %14036 = vmatpush3.bf16.msra.mxu1 %v2635_v59  ;;  %14015 = vmatprep.subr.bf16.mxu0 %v2628_v60  ;;  %v2675_v59 = vunpack.c.h.s8.bf16 %v877_v48  ;;  %v870_v60 = vld [vmem:[%s16178_s23 + $0x1330] sm:$0xff] }
 0x50c   : > { %14037 = vmatprep.subr.bf16.mxu1 %v2644_v61  ;;  %v2651_v61 = vunpack.c.h.s8.bf16 %v865_v28 }
 0x50e   : > { %14016 = vmatpush3.bf16.msra.mxu0 %v2620_v2  ;;  %v2660_v2 = vunpack.c.l.s8.bf16 %v870_v60 }
 0x50f   : > { %14038 = vmatpush3.bf16.msra.mxu1 %v2636_v11  ;;  %14017 = vmatprep.subr.bf16.mxu0 %v2629_v55  ;;  %v866_v11 = vld [vmem:[%s16178_s23 + $0x1310] sm:$0xff]  ;;  %v2676_v55 = vunpack.c.l.s8.bf16 %v878_v5 }
 0x510   : > { %14039 = vmatprep.subr.bf16.mxu1 %v2645_v3  ;;  %v13715_v19 = vpop.f32.mrb[120].mxu0  ;;  %v874_v3 = vld [vmem:[%s16178_s23 + $0x1350] sm:$0xff]  ;;  %v2652_v8 = vunpack.c.l.s8.bf16 %v866_v11  ;;  %v2653_v16 = vunpack.c.h.s8.bf16 %v866_v11 }
 0x511   : > { %v13737_v15 = vpop.f32.mrb[120].mxu1  ;;  %v13716_v38 = vpop.f32.mrb[121].mxu0  ;;  %v2668_v18 = vunpack.c.l.s8.bf16 %v874_v3  ;;  %v894_v11 = vld [vmem:[%s16178_s23 + $0x13f0] sm:$0xff] }
 0x512   : > { %v13738_v20 = vpop.f32.mrb[121].mxu1  ;;  %v13717_v21 = vadd.f32 %v13716_v38, %v13715_v19  ;;  %v13718_v23 = vpop.f32.mrb[122].mxu0  ;;  %14018 = vmatpush3.bf16.msra.mxu0 %v2621_v9  ;;  %v2661_v9 = vunpack.c.h.s8.bf16 %v870_v60  ;;  %v2669_v19 = vunpack.c.h.s8.bf16 %v874_v3  ;;  %v867_v38 = vld [vmem:[%s16178_s23 + $0x1318] sm:$0xff] }
 0x513   : > { %v13739_v26 = vadd.f32 %v13738_v20, %v13737_v15  ;;  %14040 = vmatpush3.bf16.msra.mxu1 %v2637_v7  ;;  %v13740_v27 = vpop.f32.mrb[122].mxu1  ;;  %v13719_v29 = vpop.f32.mrb[123].mxu0  ;;  %14019 = vmatprep.subr.bf16.mxu0 %v2630_v12  ;;  %v2677_v7 = vunpack.c.h.s8.bf16 %v878_v5  ;;  %v871_v12 = vld [vmem:[%s16178_s23 + $0x1338] sm:$0xff]  ;;  %v2678_v20 = vunpack.c.l.s8.bf16 %v879_v25 }
 0x514   : > { %14041 = vmatprep.subr.bf16.mxu1 %v2646_v13  ;;  %v13741_v31 = vpop.f32.mrb[123].mxu1  ;;  %v8361_v32 = vadd.f32 %v13717_v21, %v17284_v54  ;;  %v864_v54 = vld [vmem:[%s16178_s23 + $0x1300] sm:$0xff]  ;;  %v4752_v13 = vcombine.high %v17300_v6, %v17300_v6  ;;  %v2662_v15 = vunpack.c.l.s8.bf16 %v871_v12  ;;  %v875_v21 = vld [vmem:[%s16178_s23 + $0x1358] sm:$0xff]  ;;  %v2663_v34 = vunpack.c.h.s8.bf16 %v871_v12 }
 0x515   : > { %v2648_v43 = vunpack.c.l.s8.bf16 %v864_v54  ;;  %v2649_v49 = vunpack.c.h.s8.bf16 %v864_v54  ;;  %v2670_v31 = vunpack.c.l.s8.bf16 %v875_v21 }
 0x516   : > { %v17315_v4 = vadd.f32 %v13739_v26, %v8361_v32  ;;  %14020 = vmatpush3.bf16.msra.mxu0 %v2622_v51  ;;  %v17335_v51 = vrot.slane %v4752_v13, %v16209_v37 }
 0x517   : > { %14042 = vmatpush3.bf16.msra.mxu1 %v2638_v14  ;;  %14021 = vmatprep.subr.bf16.mxu0 %v2631_v10 }
 0x518   : > { %14043 = vmatprep.subr.bf16.mxu1 %v2647_v46  ;;  %v2654_v46 = vunpack.c.l.s8.bf16 %v867_v38  ;;  %v4768_v54 = vcombine.high %v17335_v51, %v17335_v51 }
 0x51a   : > { %14022 = vmatpush3.bf16.msra.mxu0 %v2623_v35 }
 0x51b   : > { %14044 = vmatpush3.bf16.msra.mxu1 %v2639_v36  ;;  %14051 = vmatprep.subr.bf16.mxu0 %v2656_v24  ;;  %v884_v36 = vld [vmem:[%s16178_s23 + $0x13a0] sm:$0xff] }
 0x51c   : > { %14073 = vmatprep.subr.bf16.mxu1 %v2672_v41  ;;  %v892_v24 = vld [vmem:[%s16178_s23 + $0x13e0] sm:$0xff]  ;;  %v4775_v41 = vrot.slane %v17306_v1, %v16209_v37 }
 0x51d   : > { %8919 = vmatmul.mubr.bf16.vlgmr.msra.gmra.mrb[148].mxu0 %v4733_v22 }
 0x51e   : > { %8959 = vmatmul.mubr.bf16.vlgmr.msra.gmra.mrb[148].mxu1 %v4749_v40  ;;  %14052 = vmatpush3.bf16.msra.mxu0 %v2648_v43  ;;  %v2671_v40 = vunpack.c.h.s8.bf16 %v875_v21  ;;  %v2688_v43 = vunpack.c.l.s8.bf16 %v884_v36  ;;  %v4797_v45 = vcombine.high %v4775_v41, %v4775_v41 }
 0x51f   : > { %14074 = vmatpush3.bf16.msra.mxu1 %v2664_v30  ;;  %14053 = vmatprep.subr.bf16.mxu0 %v2657_v17  ;;  %v2704_v30 = vunpack.c.l.s8.bf16 %v892_v24  ;;  %v888_v17 = vld [vmem:[%s16178_s23 + $0x13c0] sm:$0xff] }
 0x520   : > { %14075 = vmatprep.subr.bf16.mxu1 %v2673_v44  ;;  %8998 = vmatprep.mubr.bf16.mxu0 %v4789_v42  ;;  %v2655_v42 = vunpack.c.h.s8.bf16 %v867_v38  ;;  %v4796_v44 = vrot.slane %v4768_v54, %v16209_v37  ;;  %v2696_v48 = vunpack.c.l.s8.bf16 %v888_v17  ;;  %v2697_v53 = vunpack.c.h.s8.bf16 %v888_v17  ;;  %v17360_v38 = vld [vmem:[%s16192_s25 + $0xa0] sm:$0xff] }
 0x521   : > { %9038 = vmatprep.mubr.bf16.mxu1 %v4799_v57  ;;  %v2689_v57 = vunpack.c.h.s8.bf16 %v884_v36 }
 0x522   : > { %14054 = vmatpush3.bf16.msra.mxu0 %v2649_v49  ;;  %v2705_v49 = vunpack.c.h.s8.bf16 %v892_v24  ;;  %v4800_v28 = vcombine.high %v4796_v44, %v4796_v44 }
 0x523   : > { %14076 = vmatpush3.bf16.msra.mxu1 %v2665_v50  ;;  %14055 = vmatprep.subr.bf16.mxu0 %v2658_v39  ;;  %v885_v50 = vld [vmem:[%s16178_s23 + $0x13a8] sm:$0xff] }
 0x524   : > { %14077 = vmatprep.subr.bf16.mxu1 %v2674_v52  ;;  %v893_v39 = vld [vmem:[%s16178_s23 + $0x13e8] sm:$0xff] }
 0x526   : > { %14056 = vmatpush3.bf16.msra.mxu0 %v2650_v56  ;;  %v2690_v56 = vunpack.c.l.s8.bf16 %v885_v50 }
 0x527   : > { %14078 = vmatpush3.bf16.msra.mxu1 %v2666_v0  ;;  %14057 = vmatprep.subr.bf16.mxu0 %v2659_v58  ;;  %v881_v0 = vld [vmem:[%s16178_s23 + $0x1388] sm:$0xff]  ;;  %v2706_v58 = vunpack.c.l.s8.bf16 %v893_v39 }
 0x528   : > { %14079 = vmatprep.subr.bf16.mxu1 %v2675_v59  ;;  %v889_v59 = vld [vmem:[%s16178_s23 + $0x13c8] sm:$0xff]  ;;  %v2682_v60 = vunpack.c.l.s8.bf16 %v881_v0 }
 0x529   : > { %v2698_v5 = vunpack.c.l.s8.bf16 %v889_v59  ;;  %v2699_v3 = vunpack.c.h.s8.bf16 %v889_v59 }
 0x52a   : > { %14058 = vmatpush3.bf16.msra.mxu0 %v2651_v61  ;;  %v2691_v61 = vunpack.c.h.s8.bf16 %v885_v50 }
 0x52b   : > { %14080 = vmatpush3.bf16.msra.mxu1 %v2667_v62  ;;  %14059 = vmatprep.subr.bf16.mxu0 %v2660_v2  ;;  %v2707_v62 = vunpack.c.h.s8.bf16 %v893_v39  ;;  %v886_v2 = vld [vmem:[%s16178_s23 + $0x13b0] sm:$0xff] }
 0x52c   : > { %14081 = vmatprep.subr.bf16.mxu1 %v2676_v55  ;;  %v2683_v55 = vunpack.c.h.s8.bf16 %v881_v0  ;;  %v2693_v13 = vunpack.c.h.s8.bf16 %v886_v2 }
 0x52e   : > { %14060 = vmatpush3.bf16.msra.mxu0 %v2652_v8  ;;  %v2692_v8 = vunpack.c.l.s8.bf16 %v886_v2 }
 0x52f   : > { %14082 = vmatpush3.bf16.msra.mxu1 %v2668_v18  ;;  %14061 = vmatprep.subr.bf16.mxu0 %v2661_v9  ;;  %v882_v18 = vld [vmem:[%s16178_s23 + $0x1390] sm:$0xff]  ;;  %v2708_v9 = vunpack.c.l.s8.bf16 %v894_v11 }
 0x530   : > { %14083 = vmatprep.subr.bf16.mxu1 %v2677_v7  ;;  %v13759_v23 = vpop.f32.mrb[124].mxu0  ;;  %v890_v7 = vld [vmem:[%s16178_s23 + $0x13d0] sm:$0xff]  ;;  %v2684_v12 = vunpack.c.l.s8.bf16 %v882_v18 }
 0x531   : > { %v13781_v26 = vpop.f32.mrb[124].mxu1  ;;  %v13760_v14 = vpop.f32.mrb[125].mxu0  ;;  %v2700_v25 = vunpack.c.l.s8.bf16 %v890_v7  ;;  %v2701_v21 = vunpack.c.h.s8.bf16 %v890_v7 }
 0x532   : > { %v13782_v27 = vpop.f32.mrb[125].mxu1  ;;  %v13761_v29 = vadd.f32 %v13760_v14, %v13759_v23  ;;  %v13762_v6 = vpop.f32.mrb[126].mxu0  ;;  %14062 = vmatpush3.bf16.msra.mxu0 %v2653_v16  ;;  %v2709_v16 = vunpack.c.h.s8.bf16 %v894_v11 }
 0x533   : > { %v13783_v10 = vadd.f32 %v13782_v27, %v13781_v26  ;;  %14084 = vmatpush3.bf16.msra.mxu1 %v2669_v19  ;;  %v13784_v32 = vpop.f32.mrb[126].mxu1  ;;  %v13763_v33 = vpop.f32.mrb[127].mxu0  ;;  %14063 = vmatprep.subr.bf16.mxu0 %v2662_v15  ;;  %v887_v19 = vld [vmem:[%s16178_s23 + $0x13b8] sm:$0xff] }
 0x534   : > { %14085 = vmatprep.subr.bf16.mxu1 %v2678_v20  ;;  %v13785_v22 = vpop.f32.mrb[127].mxu1  ;;  %v8441_v35 = vadd.f32 %v13761_v29, %v17315_v4  ;;  %v880_v4 = vld [vmem:[%s16178_s23 + $0x1380] sm:$0xff]  ;;  %v895_v15 = vld [vmem:[%s16178_s23 + $0x13f8] sm:$0xff]  ;;  %v2685_v20 = vunpack.c.h.s8.bf16 %v882_v18  ;;  %v2694_v23 = vunpack.c.l.s8.bf16 %v887_v19  ;;  %v2695_v24 = vunpack.c.h.s8.bf16 %v887_v19  ;;  %v910_v18 = vld [vmem:[%s16178_s23 + $0x1470] sm:$0xff] }
 0x535   : > { %v2680_v1 = vunpack.c.l.s8.bf16 %v880_v4  ;;  %v2681_v52 = vunpack.c.h.s8.bf16 %v880_v4  ;;  %v883_v26 = vld [vmem:[%s16178_s23 + $0x1398] sm:$0xff]  ;;  %v2710_v14 = vunpack.c.l.s8.bf16 %v895_v15  ;;  %v2711_v54 = vunpack.c.h.s8.bf16 %v895_v15 }
 0x536   : > { %v17344_v63 = vadd.f32 %v13783_v10, %v8441_v35  ;;  %14064 = vmatpush3.bf16.msra.mxu0 %v2654_v46  ;;  %v891_v27 = vld [vmem:[%s16178_s23 + $0x13d8] sm:$0xff]  ;;  %v17366_v10 = vrot.slane %v17360_v38, %v16209_v37 }
 0x537   : > { %14086 = vmatpush3.bf16.msra.mxu1 %v2670_v31  ;;  %14065 = vmatprep.subr.bf16.mxu0 %v2663_v34  ;;  %v2702_v22 = vunpack.c.l.s8.bf16 %v891_v27 }
 0x538   : > { %14087 = vmatprep.subr.bf16.mxu1 %v2679_v47  ;;  %v2686_v47 = vunpack.c.l.s8.bf16 %v883_v26  ;;  %v4816_v4 = vcombine.high %v17366_v10, %v17366_v10 }
 0x53a   : > { %14066 = vmatpush3.bf16.msra.mxu0 %v2655_v42 }
 0x53b   : > { %14088 = vmatpush3.bf16.msra.mxu1 %v2671_v40  ;;  %14095 = vmatprep.subr.bf16.mxu0 %v2688_v43  ;;  %v900_v40 = vld [vmem:[%s16178_s23 + $0x1420] sm:$0xff] }
 0x53c   : > { %14117 = vmatprep.subr.bf16.mxu1 %v2704_v30  ;;  %v908_v43 = vld [vmem:[%s16178_s23 + $0x1460] sm:$0xff]  ;;  %v4782_v30 = vrot.slane %v17335_v51, %v16209_v37 }
 0x53d   : > { %8999 = vmatmul.mubr.bf16.vlgmr.msra.gmra.mrb[152].mxu0 %v4775_v41 }
 0x53e   : > { %9039 = vmatmul.mubr.bf16.vlgmr.msra.gmra.mrb[152].mxu1 %v4797_v45  ;;  %14096 = vmatpush3.bf16.msra.mxu0 %v2680_v1  ;;  %v2703_v45 = vunpack.c.h.s8.bf16 %v891_v27  ;;  %v2720_v1 = vunpack.c.l.s8.bf16 %v900_v40  ;;  %v4798_v50 = vcombine.high %v4782_v30, %v4782_v30 }
 0x53f   : > { %14118 = vmatpush3.bf16.msra.mxu1 %v2696_v48  ;;  %14097 = vmatprep.subr.bf16.mxu0 %v2689_v57  ;;  %v2736_v48 = vunpack.c.l.s8.bf16 %v908_v43  ;;  %v904_v57 = vld [vmem:[%s16178_s23 + $0x1440] sm:$0xff] }
 0x540   : > { %14119 = vmatprep.subr.bf16.mxu1 %v2705_v49  ;;  %9078 = vmatprep.mubr.bf16.mxu0 %v4796_v44  ;;  %v2687_v44 = vunpack.c.h.s8.bf16 %v883_v26  ;;  %v4838_v49 = vrot.slane %v4816_v4, %v16209_v37  ;;  %v2728_v39 = vunpack.c.l.s8.bf16 %v904_v57  ;;  %v2729_v59 = vunpack.c.h.s8.bf16 %v904_v57  ;;  %v911_v26 = vld [vmem:[%s16178_s23 + $0x1478] sm:$0xff] }
 0x541   : > { %9118 = vmatprep.mubr.bf16.mxu1 %v4800_v28  ;;  %v2721_v28 = vunpack.c.h.s8.bf16 %v900_v40  ;;  %v2743_v4 = vunpack.c.h.s8.bf16 %v911_v26 }
 0x542   : > { %14098 = vmatpush3.bf16.msra.mxu0 %v2681_v52  ;;  %v2737_v52 = vunpack.c.h.s8.bf16 %v908_v43  ;;  %v4848_v0 = vcombine.high %v4838_v49, %v4838_v49 }
 0x543   : > { %14120 = vmatpush3.bf16.msra.mxu1 %v2697_v53  ;;  %14099 = vmatprep.subr.bf16.mxu0 %v2690_v56  ;;  %v901_v53 = vld [vmem:[%s16178_s23 + $0x1428] sm:$0xff] }
 0x544   : > { %14121 = vmatprep.subr.bf16.mxu1 %v2706_v58  ;;  %v909_v56 = vld [vmem:[%s16178_s23 + $0x1468] sm:$0xff] }
 0x546   : > { %14100 = vmatpush3.bf16.msra.mxu0 %v2682_v60  ;;  %v2722_v60 = vunpack.c.l.s8.bf16 %v901_v53 }
 0x547   : > { %14122 = vmatpush3.bf16.msra.mxu1 %v2698_v5  ;;  %14101 = vmatprep.subr.bf16.mxu0 %v2691_v61  ;;  %v897_v5 = vld [vmem:[%s16178_s23 + $0x1408] sm:$0xff]  ;;  %v2738_v61 = vunpack.c.l.s8.bf16 %v909_v56 }
 0x548   : > { %14123 = vmatprep.subr.bf16.mxu1 %v2707_v62  ;;  %v905_v62 = vld [vmem:[%s16178_s23 + $0x1448] sm:$0xff]  ;;  %v2714_v2 = vunpack.c.l.s8.bf16 %v897_v5 }
 0x549   : > { %v2730_v11 = vunpack.c.l.s8.bf16 %v905_v62  ;;  %v2731_v7 = vunpack.c.h.s8.bf16 %v905_v62 }
 0x54a   : > { %14102 = vmatpush3.bf16.msra.mxu0 %v2683_v55  ;;  %v2723_v55 = vunpack.c.h.s8.bf16 %v901_v53 }
 0x54b   : > { %14124 = vmatpush3.bf16.msra.mxu1 %v2699_v3  ;;  %14103 = vmatprep.subr.bf16.mxu0 %v2692_v8  ;;  %v2739_v3 = vunpack.c.h.s8.bf16 %v909_v56  ;;  %v902_v8 = vld [vmem:[%s16178_s23 + $0x1430] sm:$0xff] }
 0x54c   : > { %14125 = vmatprep.subr.bf16.mxu1 %v2708_v9  ;;  %v2715_v9 = vunpack.c.h.s8.bf16 %v897_v5 }
 0x54e   : > { %14104 = vmatpush3.bf16.msra.mxu0 %v2684_v12  ;;  %v2724_v12 = vunpack.c.l.s8.bf16 %v902_v8 }
 0x54f   : > { %14126 = vmatpush3.bf16.msra.mxu1 %v2700_v25  ;;  %14105 = vmatprep.subr.bf16.mxu0 %v2693_v13  ;;  %v898_v25 = vld [vmem:[%s16178_s23 + $0x1410] sm:$0xff]  ;;  %v2740_v13 = vunpack.c.l.s8.bf16 %v910_v18 }
 0x550   : > { %14127 = vmatprep.subr.bf16.mxu1 %v2709_v16  ;;  %v13803_v29 = vpop.f32.mrb[128].mxu0  ;;  %v906_v16 = vld [vmem:[%s16178_s23 + $0x1450] sm:$0xff]  ;;  %v2716_v19 = vunpack.c.l.s8.bf16 %v898_v25  ;;  %v2717_v27 = vunpack.c.h.s8.bf16 %v898_v25 }
 0x551   : > { %v13825_v6 = vpop.f32.mrb[128].mxu1  ;;  %v13804_v46 = vpop.f32.mrb[129].mxu0  ;;  %v2732_v15 = vunpack.c.l.s8.bf16 %v906_v16  ;;  %v926_v25 = vld [vmem:[%s16178_s23 + $0x14f0] sm:$0xff] }
 0x552   : > { %v13826_v31 = vpop.f32.mrb[129].mxu1  ;;  %v13805_v32 = vadd.f32 %v13804_v46, %v13803_v29  ;;  %v13806_v33 = vpop.f32.mrb[130].mxu0  ;;  %14106 = vmatpush3.bf16.msra.mxu0 %v2685_v20  ;;  %v2725_v20 = vunpack.c.h.s8.bf16 %v902_v8  ;;  %v2733_v29 = vunpack.c.h.s8.bf16 %v906_v16  ;;  %v899_v46 = vld [vmem:[%s16178_s23 + $0x1418] sm:$0xff] }
 0x553   : > { %v13827_v34 = vadd.f32 %v13826_v31, %v13825_v6  ;;  %14128 = vmatpush3.bf16.msra.mxu1 %v2701_v21  ;;  %v13828_v35 = vpop.f32.mrb[130].mxu1  ;;  %v13807_v36 = vpop.f32.mrb[131].mxu0  ;;  %14107 = vmatprep.subr.bf16.mxu0 %v2694_v23  ;;  %v2741_v21 = vunpack.c.h.s8.bf16 %v910_v18  ;;  %v903_v23 = vld [vmem:[%s16178_s23 + $0x1438] sm:$0xff]  ;;  %v2742_v31 = vunpack.c.l.s8.bf16 %v911_v26 }
 0x554   : > { %14129 = vmatprep.subr.bf16.mxu1 %v2710_v14  ;;  %v13829_v41 = vpop.f32.mrb[131].mxu1  ;;  %v8521_v42 = vadd.f32 %v13805_v32, %v17344_v63  ;;  %v896_v63 = vld [vmem:[%s16178_s23 + $0x1400] sm:$0xff]  ;;  %v4801_v14 = vcombine.high %v17360_v38, %v17360_v38  ;;  %v2726_v6 = vunpack.c.l.s8.bf16 %v903_v23  ;;  %v907_v32 = vld [vmem:[%s16178_s23 + $0x1458] sm:$0xff]  ;;  %v2727_v43 = vunpack.c.h.s8.bf16 %v903_v23 }
 0x555   : > { %v2712_v51 = vunpack.c.l.s8.bf16 %v896_v63  ;;  %v2713_v58 = vunpack.c.h.s8.bf16 %v896_v63  ;;  %v2734_v41 = vunpack.c.l.s8.bf16 %v907_v32 }
 0x556   : > { %v17375_v17 = vadd.f32 %v13827_v34, %v8521_v42  ;;  %14108 = vmatpush3.bf16.msra.mxu0 %v2686_v47  ;;  %v17395_v47 = vrot.slane %v4801_v14, %v16209_v37 }
 0x557   : > { %14130 = vmatpush3.bf16.msra.mxu1 %v2702_v22  ;;  %14109 = vmatprep.subr.bf16.mxu0 %v2695_v24 }
 0x558   : > { %14131 = vmatprep.subr.bf16.mxu1 %v2711_v54  ;;  %v2718_v54 = vunpack.c.l.s8.bf16 %v899_v46  ;;  %v4817_v63 = vcombine.high %v17395_v47, %v17395_v47 }
 0x55a   : > { %14110 = vmatpush3.bf16.msra.mxu0 %v2687_v44 }
 0x55b   : > { %14132 = vmatpush3.bf16.msra.mxu1 %v2703_v45  ;;  %14139 = vmatprep.subr.bf16.mxu0 %v2720_v1  ;;  %v916_v45 = vld [vmem:[%s16178_s23 + $0x14a0] sm:$0xff] }
 0x55c   : > { %14161 = vmatprep.subr.bf16.mxu1 %v2736_v48  ;;  %v924_v1 = vld [vmem:[%s16178_s23 + $0x14e0] sm:$0xff]  ;;  %v4824_v48 = vrot.slane %v17366_v10, %v16209_v37 }
 0x55d   : > { %9079 = vmatmul.mubr.bf16.vlgmr.msra.gmra.mrb[156].mxu0 %v4782_v30 }
 0x55e   : > { %9119 = vmatmul.mubr.bf16.vlgmr.msra.gmra.mrb[156].mxu1 %v4798_v50  ;;  %14140 = vmatpush3.bf16.msra.mxu0 %v2712_v51  ;;  %v2735_v50 = vunpack.c.h.s8.bf16 %v907_v32  ;;  %v2752_v51 = vunpack.c.l.s8.bf16 %v916_v45  ;;  %v4846_v53 = vcombine.high %v4824_v48, %v4824_v48 }
 0x55f   : > { %14162 = vmatpush3.bf16.msra.mxu1 %v2728_v39  ;;  %14141 = vmatprep.subr.bf16.mxu0 %v2721_v28  ;;  %v2768_v39 = vunpack.c.l.s8.bf16 %v924_v1  ;;  %v920_v28 = vld [vmem:[%s16178_s23 + $0x14c0] sm:$0xff] }
 0x560   : > { %14163 = vmatprep.subr.bf16.mxu1 %v2737_v52  ;;  %9158 = vmatprep.mubr.bf16.mxu0 %v4838_v49  ;;  %v2719_v49 = vunpack.c.h.s8.bf16 %v899_v46  ;;  %v4845_v52 = vrot.slane %v4817_v63, %v16209_v37  ;;  %v2760_v56 = vunpack.c.l.s8.bf16 %v920_v28  ;;  %v2761_v62 = vunpack.c.h.s8.bf16 %v920_v28  ;;  %v17420_v46 = vld [vmem:[%s16192_s25 + $0xa8] sm:$0xff] }
 0x561   : > { %9198 = vmatprep.mubr.bf16.mxu1 %v4848_v0  ;;  %v2753_v0 = vunpack.c.h.s8.bf16 %v916_v45 }
 0x562   : > { %14142 = vmatpush3.bf16.msra.mxu0 %v2713_v58  ;;  %v2769_v58 = vunpack.c.h.s8.bf16 %v924_v1  ;;  %v4849_v5 = vcombine.high %v4845_v52, %v4845_v52 }
 0x563   : > { %14164 = vmatpush3.bf16.msra.mxu1 %v2729_v59  ;;  %14143 = vmatprep.subr.bf16.mxu0 %v2722_v60  ;;  %v917_v59 = vld [vmem:[%s16178_s23 + $0x14a8] sm:$0xff] }
 0x564   : > { %14165 = vmatprep.subr.bf16.mxu1 %v2738_v61  ;;  %v925_v60 = vld [vmem:[%s16178_s23 + $0x14e8] sm:$0xff] }
 0x566   : > { %14144 = vmatpush3.bf16.msra.mxu0 %v2714_v2  ;;  %v2754_v2 = vunpack.c.l.s8.bf16 %v917_v59 }
 0x567   : > { %14166 = vmatpush3.bf16.msra.mxu1 %v2730_v11  ;;  %14145 = vmatprep.subr.bf16.mxu0 %v2723_v55  ;;  %v913_v11 = vld [vmem:[%s16178_s23 + $0x1488] sm:$0xff]  ;;  %v2770_v55 = vunpack.c.l.s8.bf16 %v925_v60 }
 0x568   : > { %14167 = vmatprep.subr.bf16.mxu1 %v2739_v3  ;;  %v921_v3 = vld [vmem:[%s16178_s23 + $0x14c8] sm:$0xff]  ;;  %v2746_v8 = vunpack.c.l.s8.bf16 %v913_v11 }
 0x569   : > { %v2762_v18 = vunpack.c.l.s8.bf16 %v921_v3  ;;  %v2763_v16 = vunpack.c.h.s8.bf16 %v921_v3 }
 0x56a   : > { %14146 = vmatpush3.bf16.msra.mxu0 %v2715_v9  ;;  %v2755_v9 = vunpack.c.h.s8.bf16 %v917_v59 }
 0x56b   : > { %14168 = vmatpush3.bf16.msra.mxu1 %v2731_v7  ;;  %14147 = vmatprep.subr.bf16.mxu0 %v2724_v12  ;;  %v2771_v7 = vunpack.c.h.s8.bf16 %v925_v60  ;;  %v918_v12 = vld [vmem:[%s16178_s23 + $0x14b0] sm:$0xff] }
 0x56c   : > { %14169 = vmatprep.subr.bf16.mxu1 %v2740_v13  ;;  %v2747_v13 = vunpack.c.h.s8.bf16 %v913_v11  ;;  %v2757_v14 = vunpack.c.h.s8.bf16 %v918_v12 }
 0x56e   : > { %14148 = vmatpush3.bf16.msra.mxu0 %v2716_v19  ;;  %v2756_v19 = vunpack.c.l.s8.bf16 %v918_v12 }
 0x56f   : > { %14170 = vmatpush3.bf16.msra.mxu1 %v2732_v15  ;;  %14149 = vmatprep.subr.bf16.mxu0 %v2725_v20  ;;  %v914_v15 = vld [vmem:[%s16178_s23 + $0x1490] sm:$0xff]  ;;  %v2772_v20 = vunpack.c.l.s8.bf16 %v926_v25 }
 0x570   : > { %14171 = vmatprep.subr.bf16.mxu1 %v2741_v21  ;;  %v13847_v33 = vpop.f32.mrb[132].mxu0  ;;  %v922_v21 = vld [vmem:[%s16178_s23 + $0x14d0] sm:$0xff]  ;;  %v2748_v23 = vunpack.c.l.s8.bf16 %v914_v15 }
 0x571   : > { %v13869_v34 = vpop.f32.mrb[132].mxu1  ;;  %v13848_v22 = vpop.f32.mrb[133].mxu0  ;;  %v2764_v26 = vunpack.c.l.s8.bf16 %v922_v21  ;;  %v2765_v32 = vunpack.c.h.s8.bf16 %v922_v21 }
 0x572   : > { %v13870_v35 = vpop.f32.mrb[133].mxu1  ;;  %v13849_v36 = vadd.f32 %v13848_v22, %v13847_v33  ;;  %v13850_v38 = vpop.f32.mrb[134].mxu0  ;;  %14150 = vmatpush3.bf16.msra.mxu0 %v2717_v27  ;;  %v2773_v27 = vunpack.c.h.s8.bf16 %v926_v25 }
 0x573   : > { %v13871_v24 = vadd.f32 %v13870_v35, %v13869_v34  ;;  %14172 = vmatpush3.bf16.msra.mxu1 %v2733_v29  ;;  %v13872_v42 = vpop.f32.mrb[134].mxu1  ;;  %v13851_v40 = vpop.f32.mrb[135].mxu0  ;;  %14151 = vmatprep.subr.bf16.mxu0 %v2726_v6  ;;  %v919_v29 = vld [vmem:[%s16178_s23 + $0x14b8] sm:$0xff] }
 0x574   : > { %14173 = vmatprep.subr.bf16.mxu1 %v2742_v31  ;;  %v13873_v30 = vpop.f32.mrb[135].mxu1  ;;  %v8601_v44 = vadd.f32 %v13849_v36, %v17375_v17  ;;  %v912_v17 = vld [vmem:[%s16178_s23 + $0x1480] sm:$0xff]  ;;  %v927_v6 = vld [vmem:[%s16178_s23 + $0x14f8] sm:$0xff]  ;;  %v2749_v31 = vunpack.c.h.s8.bf16 %v914_v15  ;;  %v2758_v33 = vunpack.c.l.s8.bf16 %v919_v29  ;;  %v2759_v1 = vunpack.c.h.s8.bf16 %v919_v29  ;;  %v942_v15 = vld [vmem:[%s16178_s23 + $0x1570] sm:$0xff] }
 0x575   : > { %v2744_v10 = vunpack.c.l.s8.bf16 %v912_v17  ;;  %v2745_v61 = vunpack.c.h.s8.bf16 %v912_v17  ;;  %v915_v34 = vld [vmem:[%s16178_s23 + $0x1498] sm:$0xff]  ;;  %v2774_v22 = vunpack.c.l.s8.bf16 %v927_v6  ;;  %v2775_v63 = vunpack.c.h.s8.bf16 %v927_v6 }
 0x576   : > { %v17404_v57 = vadd.f32 %v13871_v24, %v8601_v44  ;;  %14152 = vmatpush3.bf16.msra.mxu0 %v2718_v54  ;;  %v923_v35 = vld [vmem:[%s16178_s23 + $0x14d8] sm:$0xff]  ;;  %v17426_v24 = vrot.slane %v17420_v46, %v16209_v37 }
 0x577   : > { %14174 = vmatpush3.bf16.msra.mxu1 %v2734_v41  ;;  %14153 = vmatprep.subr.bf16.mxu0 %v2727_v43  ;;  %v2766_v30 = vunpack.c.l.s8.bf16 %v923_v35 }
 0x578   : > { %14175 = vmatprep.subr.bf16.mxu1 %v2743_v4  ;;  %v2750_v4 = vunpack.c.l.s8.bf16 %v915_v34  ;;  %v4865_v17 = vcombine.high %v17426_v24, %v17426_v24 }
 0x57a   : > { %14154 = vmatpush3.bf16.msra.mxu0 %v2719_v49 }
 0x57b   : > { %14176 = vmatpush3.bf16.msra.mxu1 %v2735_v50  ;;  %14183 = vmatprep.subr.bf16.mxu0 %v2752_v51  ;;  %v932_v50 = vld [vmem:[%s16178_s23 + $0x1520] sm:$0xff] }
 0x57c   : > { %14205 = vmatprep.subr.bf16.mxu1 %v2768_v39  ;;  %v940_v51 = vld [vmem:[%s16178_s23 + $0x1560] sm:$0xff]  ;;  %v4831_v39 = vrot.slane %v17395_v47, %v16209_v37 }
 0x57d   : > { %9159 = vmatmul.mubr.bf16.vlgmr.msra.gmra.mrb[160].mxu0 %v4824_v48 }
 0x57e   : > { %9199 = vmatmul.mubr.bf16.vlgmr.msra.gmra.mrb[160].mxu1 %v4846_v53  ;;  %14184 = vmatpush3.bf16.msra.mxu0 %v2744_v10  ;;  %v2767_v53 = vunpack.c.h.s8.bf16 %v923_v35  ;;  %v2784_v10 = vunpack.c.l.s8.bf16 %v932_v50  ;;  %v4847_v59 = vcombine.high %v4831_v39, %v4831_v39 }
 0x57f   : > { %14206 = vmatpush3.bf16.msra.mxu1 %v2760_v56  ;;  %14185 = vmatprep.subr.bf16.mxu0 %v2753_v0  ;;  %v2800_v56 = vunpack.c.l.s8.bf16 %v940_v51  ;;  %v936_v0 = vld [vmem:[%s16178_s23 + $0x1540] sm:$0xff] }
 0x580   : > { %14207 = vmatprep.subr.bf16.mxu1 %v2769_v58  ;;  %9238 = vmatprep.mubr.bf16.mxu0 %v4845_v52  ;;  %v2751_v52 = vunpack.c.h.s8.bf16 %v915_v34  ;;  %v4887_v58 = vrot.slane %v4865_v17, %v16209_v37  ;;  %v2792_v60 = vunpack.c.l.s8.bf16 %v936_v0  ;;  %v2793_v3 = vunpack.c.h.s8.bf16 %v936_v0  ;;  %v943_v34 = vld [vmem:[%s16178_s23 + $0x1578] sm:$0xff] }
 0x581   : > { %9278 = vmatprep.mubr.bf16.mxu1 %v4849_v5  ;;  %v2785_v5 = vunpack.c.h.s8.bf16 %v932_v50  ;;  %v2807_v17 = vunpack.c.h.s8.bf16 %v943_v34 }
 0x582   : > { %14186 = vmatpush3.bf16.msra.mxu0 %v2745_v61  ;;  %v2801_v61 = vunpack.c.h.s8.bf16 %v940_v51  ;;  %v4897_v11 = vcombine.high %v4887_v58, %v4887_v58 }
 0x583   : > { %14208 = vmatpush3.bf16.msra.mxu1 %v2761_v62  ;;  %14187 = vmatprep.subr.bf16.mxu0 %v2754_v2  ;;  %v933_v62 = vld [vmem:[%s16178_s23 + $0x1528] sm:$0xff] }
 0x584   : > { %14209 = vmatprep.subr.bf16.mxu1 %v2770_v55  ;;  %v941_v2 = vld [vmem:[%s16178_s23 + $0x1568] sm:$0xff] }
 0x586   : > { %14188 = vmatpush3.bf16.msra.mxu0 %v2746_v8  ;;  %v2786_v8 = vunpack.c.l.s8.bf16 %v933_v62 }
 0x587   : > { %14210 = vmatpush3.bf16.msra.mxu1 %v2762_v18  ;;  %14189 = vmatprep.subr.bf16.mxu0 %v2755_v9  ;;  %v929_v18 = vld [vmem:[%s16178_s23 + $0x1508] sm:$0xff]  ;;  %v2802_v9 = vunpack.c.l.s8.bf16 %v941_v2 }
 0x588   : > { %14211 = vmatprep.subr.bf16.mxu1 %v2771_v7  ;;  %v937_v7 = vld [vmem:[%s16178_s23 + $0x1548] sm:$0xff]  ;;  %v2778_v12 = vunpack.c.l.s8.bf16 %v929_v18 }
 0x589   : > { %v2794_v25 = vunpack.c.l.s8.bf16 %v937_v7  ;;  %v2795_v21 = vunpack.c.h.s8.bf16 %v937_v7 }
 0x58a   : > { %14190 = vmatpush3.bf16.msra.mxu0 %v2747_v13  ;;  %v2787_v13 = vunpack.c.h.s8.bf16 %v933_v62 }
 0x58b   : > { %14212 = vmatpush3.bf16.msra.mxu1 %v2763_v16  ;;  %14191 = vmatprep.subr.bf16.mxu0 %v2756_v19  ;;  %v2803_v16 = vunpack.c.h.s8.bf16 %v941_v2  ;;  %v934_v19 = vld [vmem:[%s16178_s23 + $0x1530] sm:$0xff] }
 0x58c   : > { %14213 = vmatprep.subr.bf16.mxu1 %v2772_v20  ;;  %v2779_v20 = vunpack.c.h.s8.bf16 %v929_v18 }
 0x58e   : > { %14192 = vmatpush3.bf16.msra.mxu0 %v2748_v23  ;;  %v2788_v23 = vunpack.c.l.s8.bf16 %v934_v19 }
 0x58f   : > { %14214 = vmatpush3.bf16.msra.mxu1 %v2764_v26  ;;  %14193 = vmatprep.subr.bf16.mxu0 %v2757_v14  ;;  %v930_v26 = vld [vmem:[%s16178_s23 + $0x1510] sm:$0xff]  ;;  %v2804_v14 = vunpack.c.l.s8.bf16 %v942_v15 }
 0x590   : > { %14215 = vmatprep.subr.bf16.mxu1 %v2773_v27  ;;  %v13891_v36 = vpop.f32.mrb[136].mxu0  ;;  %v938_v27 = vld [vmem:[%s16178_s23 + $0x1550] sm:$0xff]  ;;  %v2780_v29 = vunpack.c.l.s8.bf16 %v930_v26  ;;  %v2781_v35 = vunpack.c.h.s8.bf16 %v930_v26 }
 0x591   : > { %v13913_v38 = vpop.f32.mrb[136].mxu1  ;;  %v13892_v54 = vpop.f32.mrb[137].mxu0  ;;  %v2796_v6 = vunpack.c.l.s8.bf16 %v938_v27  ;;  %v958_v26 = vld [vmem:[%s16178_s23 + $0x15f0] sm:$0xff] }
 0x592   : > { %v13914_v41 = vpop.f32.mrb[137].mxu1  ;;  %v13893_v42 = vadd.f32 %v13892_v54, %v13891_v36  ;;  %v13894_v40 = vpop.f32.mrb[138].mxu0  ;;  %14194 = vmatpush3.bf16.msra.mxu0 %v2749_v31  ;;  %v2789_v31 = vunpack.c.h.s8.bf16 %v934_v19  ;;  %v2797_v36 = vunpack.c.h.s8.bf16 %v938_v27  ;;  %v931_v54 = vld [vmem:[%s16178_s23 + $0x1518] sm:$0xff] }
 0x593   : > { %v13915_v43 = vadd.f32 %v13914_v41, %v13913_v38  ;;  %14216 = vmatpush3.bf16.msra.mxu1 %v2765_v32  ;;  %v13916_v44 = vpop.f32.mrb[138].mxu1  ;;  %v13895_v45 = vpop.f32.mrb[139].mxu0  ;;  %14195 = vmatprep.subr.bf16.mxu0 %v2758_v33  ;;  %v2805_v32 = vunpack.c.h.s8.bf16 %v942_v15  ;;  %v935_v33 = vld [vmem:[%s16178_s23 + $0x1538] sm:$0xff]  ;;  %v2806_v41 = vunpack.c.l.s8.bf16 %v943_v34 }
 0x594   : > { %14217 = vmatprep.subr.bf16.mxu1 %v2774_v22  ;;  %v13917_v48 = vpop.f32.mrb[139].mxu1  ;;  %v8681_v49 = vadd.f32 %v13893_v42, %v17404_v57  ;;  %v928_v57 = vld [vmem:[%s16178_s23 + $0x1500] sm:$0xff]  ;;  %v4850_v22 = vcombine.high %v17420_v46, %v17420_v46  ;;  %v2790_v38 = vunpack.c.l.s8.bf16 %v935_v33  ;;  %v939_v42 = vld [vmem:[%s16178_s23 + $0x1558] sm:$0xff]  ;;  %v2791_v51 = vunpack.c.h.s8.bf16 %v935_v33 }
 0x595   : > { %v2776_v47 = vunpack.c.l.s8.bf16 %v928_v57  ;;  %v2777_v55 = vunpack.c.h.s8.bf16 %v928_v57  ;;  %v2798_v48 = vunpack.c.l.s8.bf16 %v939_v42 }
 0x596   : > { %v17435_v28 = vadd.f32 %v13915_v43, %v8681_v49  ;;  %14196 = vmatpush3.bf16.msra.mxu0 %v2750_v4  ;;  %v17455_v4 = vrot.slane %v4850_v22, %v16209_v37 }
 0x597   : > { %14218 = vmatpush3.bf16.msra.mxu1 %v2766_v30  ;;  %14197 = vmatprep.subr.bf16.mxu0 %v2759_v1 }
 0x598   : > { %14219 = vmatprep.subr.bf16.mxu1 %v2775_v63  ;;  %v2782_v63 = vunpack.c.l.s8.bf16 %v931_v54  ;;  %v4866_v57 = vcombine.high %v17455_v4, %v17455_v4 }
 0x59a   : > { %14198 = vmatpush3.bf16.msra.mxu0 %v2751_v52 }
 0x59b   : > { %14220 = vmatpush3.bf16.msra.mxu1 %v2767_v53  ;;  %14227 = vmatprep.subr.bf16.mxu0 %v2784_v10  ;;  %v948_v53 = vld [vmem:[%s16178_s23 + $0x15a0] sm:$0xff] }
 0x59c   : > { %14249 = vmatprep.subr.bf16.mxu1 %v2800_v56  ;;  %v956_v10 = vld [vmem:[%s16178_s23 + $0x15e0] sm:$0xff]  ;;  %v4873_v56 = vrot.slane %v17426_v24, %v16209_v37 }
 0x59d   : > { %9239 = vmatmul.mubr.bf16.vlgmr.msra.gmra.mrb[164].mxu0 %v4831_v39 }
 0x59e   : > { %9279 = vmatmul.mubr.bf16.vlgmr.msra.gmra.mrb[164].mxu1 %v4847_v59  ;;  %14228 = vmatpush3.bf16.msra.mxu0 %v2776_v47  ;;  %v2799_v59 = vunpack.c.h.s8.bf16 %v939_v42  ;;  %v2816_v47 = vunpack.c.l.s8.bf16 %v948_v53  ;;  %v4895_v62 = vcombine.high %v4873_v56, %v4873_v56 }
 0x59f   : > { %14250 = vmatpush3.bf16.msra.mxu1 %v2792_v60  ;;  %14229 = vmatprep.subr.bf16.mxu0 %v2785_v5  ;;  %v2832_v60 = vunpack.c.l.s8.bf16 %v956_v10  ;;  %v952_v5 = vld [vmem:[%s16178_s23 + $0x15c0] sm:$0xff] }
 0x5a0   : > { %14251 = vmatprep.subr.bf16.mxu1 %v2801_v61  ;;  %9318 = vmatprep.mubr.bf16.mxu0 %v4887_v58  ;;  %v2783_v58 = vunpack.c.h.s8.bf16 %v931_v54  ;;  %v4894_v61 = vrot.slane %v4866_v57, %v16209_v37  ;;  %v2824_v2 = vunpack.c.l.s8.bf16 %v952_v5  ;;  %v2825_v7 = vunpack.c.h.s8.bf16 %v952_v5  ;;  %v17480_v54 = vld [vmem:[%s16192_s25 + $0xb0] sm:$0xff] }
 0x5a1   : > { %9358 = vmatprep.mubr.bf16.mxu1 %v4897_v11  ;;  %v2817_v11 = vunpack.c.h.s8.bf16 %v948_v53 }
 0x5a2   : > { %14230 = vmatpush3.bf16.msra.mxu0 %v2777_v55  ;;  %v2833_v55 = vunpack.c.h.s8.bf16 %v956_v10  ;;  %v4898_v18 = vcombine.high %v4894_v61, %v4894_v61 }
 0x5a3   : > { %14252 = vmatpush3.bf16.msra.mxu1 %v2793_v3  ;;  %14231 = vmatprep.subr.bf16.mxu0 %v2786_v8  ;;  %v949_v3 = vld [vmem:[%s16178_s23 + $0x15a8] sm:$0xff] }
 0x5a4   : > { %14253 = vmatprep.subr.bf16.mxu1 %v2802_v9  ;;  %v957_v8 = vld [vmem:[%s16178_s23 + $0x15e8] sm:$0xff] }
 0x5a6   : > { %14232 = vmatpush3.bf16.msra.mxu0 %v2778_v12  ;;  %v2818_v12 = vunpack.c.l.s8.bf16 %v949_v3 }
 0x5a7   : > { %14254 = vmatpush3.bf16.msra.mxu1 %v2794_v25  ;;  %14233 = vmatprep.subr.bf16.mxu0 %v2787_v13  ;;  %v945_v25 = vld [vmem:[%s16178_s23 + $0x1588] sm:$0xff]  ;;  %v2834_v13 = vunpack.c.l.s8.bf16 %v957_v8 }
 0x5a8   : > { %14255 = vmatprep.subr.bf16.mxu1 %v2803_v16  ;;  %v953_v16 = vld [vmem:[%s16178_s23 + $0x15c8] sm:$0xff]  ;;  %v2810_v19 = vunpack.c.l.s8.bf16 %v945_v25 }
 0x5a9   : > { %v2826_v15 = vunpack.c.l.s8.bf16 %v953_v16  ;;  %v2827_v27 = vunpack.c.h.s8.bf16 %v953_v16 }
 0x5aa   : > { %14234 = vmatpush3.bf16.msra.mxu0 %v2779_v20  ;;  %v2819_v20 = vunpack.c.h.s8.bf16 %v949_v3 }
 0x5ab   : > { %14256 = vmatpush3.bf16.msra.mxu1 %v2795_v21  ;;  %14235 = vmatprep.subr.bf16.mxu0 %v2788_v23  ;;  %v2835_v21 = vunpack.c.h.s8.bf16 %v957_v8  ;;  %v950_v23 = vld [vmem:[%s16178_s23 + $0x15b0] sm:$0xff] }
 0x5ac   : > { %14257 = vmatprep.subr.bf16.mxu1 %v2804_v14  ;;  %v2811_v14 = vunpack.c.h.s8.bf16 %v945_v25  ;;  %v2821_v22 = vunpack.c.h.s8.bf16 %v950_v23 }
 0x5ae   : > { %14236 = vmatpush3.bf16.msra.mxu0 %v2780_v29  ;;  %v2820_v29 = vunpack.c.l.s8.bf16 %v950_v23 }
 0x5af   : > { %14258 = vmatpush3.bf16.msra.mxu1 %v2796_v6  ;;  %14237 = vmatprep.subr.bf16.mxu0 %v2789_v31  ;;  %v946_v6 = vld [vmem:[%s16178_s23 + $0x1590] sm:$0xff]  ;;  %v2836_v31 = vunpack.c.l.s8.bf16 %v958_v26 }
 0x5b0   : > { %14259 = vmatprep.subr.bf16.mxu1 %v2805_v32  ;;  %v13935_v40 = vpop.f32.mrb[140].mxu0  ;;  %v954_v32 = vld [vmem:[%s16178_s23 + $0x15d0] sm:$0xff]  ;;  %v2812_v33 = vunpack.c.l.s8.bf16 %v946_v6 }
 0x5b1   : > { %v13957_v43 = vpop.f32.mrb[140].mxu1  ;;  %v13936_v30 = vpop.f32.mrb[141].mxu0  ;;  %v2828_v34 = vunpack.c.l.s8.bf16 %v954_v32  ;;  %v2829_v42 = vunpack.c.h.s8.bf16 %v954_v32 }
 0x5b2   : > { %v13958_v44 = vpop.f32.mrb[141].mxu1  ;;  %v13937_v45 = vadd.f32 %v13936_v30, %v13935_v40  ;;  %v13938_v46 = vpop.f32.mrb[142].mxu0  ;;  %14238 = vmatpush3.bf16.msra.mxu0 %v2781_v35  ;;  %v2837_v35 = vunpack.c.h.s8.bf16 %v958_v26 }
 0x5b3   : > { %v13959_v1 = vadd.f32 %v13958_v44, %v13957_v43  ;;  %14260 = vmatpush3.bf16.msra.mxu1 %v2797_v36  ;;  %v13960_v49 = vpop.f32.mrb[142].mxu1  ;;  %v13939_v50 = vpop.f32.mrb[143].mxu0  ;;  %14239 = vmatprep.subr.bf16.mxu0 %v2790_v38  ;;  %v951_v36 = vld [vmem:[%s16178_s23 + $0x15b8] sm:$0xff] }
 0x5b4   : > { %14261 = vmatprep.subr.bf16.mxu1 %v2806_v41  ;;  %v13961_v39 = vpop.f32.mrb[143].mxu1  ;;  %v8761_v52 = vadd.f32 %v13937_v45, %v17435_v28  ;;  %v944_v28 = vld [vmem:[%s16178_s23 + $0x1580] sm:$0xff]  ;;  %v959_v38 = vld [vmem:[%s16178_s23 + $0x15f8] sm:$0xff]  ;;  %v2813_v41 = vunpack.c.h.s8.bf16 %v946_v6  ;;  %v2822_v40 = vunpack.c.l.s8.bf16 %v951_v36  ;;  %v2823_v10 = vunpack.c.h.s8.bf16 %v951_v36  ;;  %v974_v6 = vld [vmem:[%s16178_s23 + $0x1670] sm:$0xff] }
 0x5b5   : > { %v2808_v24 = vunpack.c.l.s8.bf16 %v944_v28  ;;  %v2809_v9 = vunpack.c.h.s8.bf16 %v944_v28  ;;  %v947_v43 = vld [vmem:[%s16178_s23 + $0x1598] sm:$0xff]  ;;  %v2838_v30 = vunpack.c.l.s8.bf16 %v959_v38  ;;  %v2839_v57 = vunpack.c.h.s8.bf16 %v959_v38 }
 0x5b6   : > { %v17464_v0 = vadd.f32 %v13959_v1, %v8761_v52  ;;  %14240 = vmatpush3.bf16.msra.mxu0 %v2782_v63  ;;  %v955_v44 = vld [vmem:[%s16178_s23 + $0x15d8] sm:$0xff]  ;;  %v17486_v1 = vrot.slane %v17480_v54, %v16209_v37 }
 0x5b7   : > { %14262 = vmatpush3.bf16.msra.mxu1 %v2798_v48  ;;  %14241 = vmatprep.subr.bf16.mxu0 %v2791_v51  ;;  %v2830_v39 = vunpack.c.l.s8.bf16 %v955_v44 }
 0x5b8   : > { %14263 = vmatprep.subr.bf16.mxu1 %v2807_v17  ;;  %v2814_v17 = vunpack.c.l.s8.bf16 %v947_v43  ;;  %v4914_v28 = vcombine.high %v17486_v1, %v17486_v1 }
 0x5ba   : > { %14242 = vmatpush3.bf16.msra.mxu0 %v2783_v58 }
 0x5bb   : > { %14264 = vmatpush3.bf16.msra.mxu1 %v2799_v59  ;;  %14271 = vmatprep.subr.bf16.mxu0 %v2816_v47  ;;  %v964_v59 = vld [vmem:[%s16178_s23 + $0x1620] sm:$0xff] }
 0x5bc   : > { %14293 = vmatprep.subr.bf16.mxu1 %v2832_v60  ;;  %v972_v47 = vld [vmem:[%s16178_s23 + $0x1660] sm:$0xff]  ;;  %v4880_v60 = vrot.slane %v17455_v4, %v16209_v37 }
 0x5bd   : > { %9319 = vmatmul.mubr.bf16.vlgmr.msra.gmra.mrb[168].mxu0 %v4873_v56 }
 0x5be   : > { %9359 = vmatmul.mubr.bf16.vlgmr.msra.gmra.mrb[168].mxu1 %v4895_v62  ;;  %14272 = vmatpush3.bf16.msra.mxu0 %v2808_v24  ;;  %v2831_v62 = vunpack.c.h.s8.bf16 %v955_v44  ;;  %v2848_v24 = vunpack.c.l.s8.bf16 %v964_v59  ;;  %v4896_v3 = vcombine.high %v4880_v60, %v4880_v60 }
 0x5bf   : > { %14294 = vmatpush3.bf16.msra.mxu1 %v2824_v2  ;;  %14273 = vmatprep.subr.bf16.mxu0 %v2817_v11  ;;  %v2864_v2 = vunpack.c.l.s8.bf16 %v972_v47  ;;  %v968_v11 = vld [vmem:[%s16178_s23 + $0x1640] sm:$0xff] }
 0x5c0   : > { %14295 = vmatprep.subr.bf16.mxu1 %v2833_v55  ;;  %9398 = vmatprep.mubr.bf16.mxu0 %v4894_v61  ;;  %v2815_v61 = vunpack.c.h.s8.bf16 %v947_v43  ;;  %v4936_v55 = vrot.slane %v4914_v28, %v16209_v37  ;;  %v2856_v8 = vunpack.c.l.s8.bf16 %v968_v11  ;;  %v2857_v16 = vunpack.c.h.s8.bf16 %v968_v11  ;;  %v975_v43 = vld [vmem:[%s16178_s23 + $0x1678] sm:$0xff] }
 0x5c1   : > { %9438 = vmatprep.mubr.bf16.mxu1 %v4898_v18  ;;  %v2849_v18 = vunpack.c.h.s8.bf16 %v964_v59  ;;  %v2871_v28 = vunpack.c.h.s8.bf16 %v975_v43 }
 0x5c2   : > { %14274 = vmatpush3.bf16.msra.mxu0 %v2809_v9  ;;  %v2865_v9 = vunpack.c.h.s8.bf16 %v972_v47  ;;  %v4946_v25 = vcombine.high %v4936_v55, %v4936_v55 }
 0x5c3   : > { %14296 = vmatpush3.bf16.msra.mxu1 %v2825_v7  ;;  %14275 = vmatprep.subr.bf16.mxu0 %v2818_v12  ;;  %v965_v7 = vld [vmem:[%s16178_s23 + $0x1628] sm:$0xff] }
 0x5c4   : > { %14297 = vmatprep.subr.bf16.mxu1 %v2834_v13  ;;  %v973_v12 = vld [vmem:[%s16178_s23 + $0x1668] sm:$0xff] }
 0x5c6   : > { %14276 = vmatpush3.bf16.msra.mxu0 %v2810_v19  ;;  %v2850_v19 = vunpack.c.l.s8.bf16 %v965_v7 }
 0x5c7   : > { %14298 = vmatpush3.bf16.msra.mxu1 %v2826_v15  ;;  %14277 = vmatprep.subr.bf16.mxu0 %v2819_v20  ;;  %v961_v15 = vld [vmem:[%s16178_s23 + $0x1608] sm:$0xff]  ;;  %v2866_v20 = vunpack.c.l.s8.bf16 %v973_v12 }
 0x5c8   : > { %14299 = vmatprep.subr.bf16.mxu1 %v2835_v21  ;;  %v969_v21 = vld [vmem:[%s16178_s23 + $0x1648] sm:$0xff]  ;;  %v2842_v23 = vunpack.c.l.s8.bf16 %v961_v15 }
 0x5c9   : > { %v2858_v26 = vunpack.c.l.s8.bf16 %v969_v21  ;;  %v2859_v32 = vunpack.c.h.s8.bf16 %v969_v21 }
 0x5ca   : > { %14278 = vmatpush3.bf16.msra.mxu0 %v2811_v14  ;;  %v2851_v14 = vunpack.c.h.s8.bf16 %v965_v7 }
 0x5cb   : > { %14300 = vmatpush3.bf16.msra.mxu1 %v2827_v27  ;;  %14279 = vmatprep.subr.bf16.mxu0 %v2820_v29  ;;  %v2867_v27 = vunpack.c.h.s8.bf16 %v973_v12  ;;  %v966_v29 = vld [vmem:[%s16178_s23 + $0x1630] sm:$0xff] }
 0x5cc   : > { %14301 = vmatprep.subr.bf16.mxu1 %v2836_v31  ;;  %v2843_v31 = vunpack.c.h.s8.bf16 %v961_v15 }
 0x5ce   : > { %14280 = vmatpush3.bf16.msra.mxu0 %v2812_v33  ;;  %v2852_v33 = vunpack.c.l.s8.bf16 %v966_v29 }
 0x5cf   : > { %14302 = vmatpush3.bf16.msra.mxu1 %v2828_v34  ;;  %14281 = vmatprep.subr.bf16.mxu0 %v2821_v22  ;;  %v962_v34 = vld [vmem:[%s16178_s23 + $0x1610] sm:$0xff]  ;;  %v2868_v22 = vunpack.c.l.s8.bf16 %v974_v6 }
 0x5d0   : > { %14303 = vmatprep.subr.bf16.mxu1 %v2837_v35  ;;  %v13979_v45 = vpop.f32.mrb[144].mxu0  ;;  %v970_v35 = vld [vmem:[%s16178_s23 + $0x1650] sm:$0xff]  ;;  %v2844_v36 = vunpack.c.l.s8.bf16 %v962_v34  ;;  %v2845_v44 = vunpack.c.h.s8.bf16 %v962_v34 }
 0x5d1   : > { %v14001_v46 = vpop.f32.mrb[144].mxu1  ;;  %v13980_v63 = vpop.f32.mrb[145].mxu0  ;;  %v2860_v38 = vunpack.c.l.s8.bf16 %v970_v35  ;;  %v990_v34 = vld [vmem:[%s16178_s23 + $0x16f0] sm:$0xff] }
 0x5d2   : > { %v14002_v48 = vpop.f32.mrb[145].mxu1  ;;  %v13981_v49 = vadd.f32 %v13980_v63, %v13979_v45  ;;  %v13982_v50 = vpop.f32.mrb[146].mxu0  ;;  %14282 = vmatpush3.bf16.msra.mxu0 %v2813_v41  ;;  %v2853_v41 = vunpack.c.h.s8.bf16 %v966_v29  ;;  %v2861_v45 = vunpack.c.h.s8.bf16 %v970_v35  ;;  %v963_v63 = vld [vmem:[%s16178_s23 + $0x1618] sm:$0xff] }
 0x5d3   : > { %v14003_v51 = vadd.f32 %v14002_v48, %v14001_v46  ;;  %14304 = vmatpush3.bf16.msra.mxu1 %v2829_v42  ;;  %v14004_v52 = vpop.f32.mrb[146].mxu1  ;;  %v13983_v53 = vpop.f32.mrb[147].mxu0  ;;  %14283 = vmatprep.subr.bf16.mxu0 %v2822_v40  ;;  %v2869_v42 = vunpack.c.h.s8.bf16 %v974_v6  ;;  %v967_v40 = vld [vmem:[%s16178_s23 + $0x1638] sm:$0xff]  ;;  %v2870_v48 = vunpack.c.l.s8.bf16 %v975_v43 }
 0x5d4   : > { %14305 = vmatprep.subr.bf16.mxu1 %v2838_v30  ;;  %v14005_v56 = vpop.f32.mrb[147].mxu1  ;;  %v8841_v58 = vadd.f32 %v13981_v49, %v17464_v0  ;;  %v960_v0 = vld [vmem:[%s16178_s23 + $0x1600] sm:$0xff]  ;;  %v4899_v30 = vcombine.high %v17480_v54, %v17480_v54  ;;  %v2854_v46 = vunpack.c.l.s8.bf16 %v967_v40  ;;  %v971_v49 = vld [vmem:[%s16178_s23 + $0x1658] sm:$0xff]  ;;  %v2855_v47 = vunpack.c.h.s8.bf16 %v967_v40 }
 0x5d5   : > { %v2840_v4 = vunpack.c.l.s8.bf16 %v960_v0  ;;  %v2841_v13 = vunpack.c.h.s8.bf16 %v960_v0  ;;  %v2862_v56 = vunpack.c.l.s8.bf16 %v971_v49 }
 0x5d6   : > { %v17495_v5 = vadd.f32 %v14003_v51, %v8841_v58  ;;  %14284 = vmatpush3.bf16.msra.mxu0 %v2814_v17  ;;  %v17515_v17 = vrot.slane %v4899_v30, %v16209_v37 }
 0x5d7   : > { %14306 = vmatpush3.bf16.msra.mxu1 %v2830_v39  ;;  %14285 = vmatprep.subr.bf16.mxu0 %v2823_v10 }
 0x5d8   : > { %14307 = vmatprep.subr.bf16.mxu1 %v2839_v57  ;;  %v2846_v57 = vunpack.c.l.s8.bf16 %v963_v63  ;;  %v4915_v0 = vcombine.high %v17515_v17, %v17515_v17 }
 0x5da   : > { %14286 = vmatpush3.bf16.msra.mxu0 %v2815_v61 }
 0x5db   : > { %14308 = vmatpush3.bf16.msra.mxu1 %v2831_v62  ;;  %14315 = vmatprep.subr.bf16.mxu0 %v2848_v24  ;;  %v980_v62 = vld [vmem:[%s16178_s23 + $0x16a0] sm:$0xff] }
 0x5dc   : > { %14337 = vmatprep.subr.bf16.mxu1 %v2864_v2  ;;  %v988_v24 = vld [vmem:[%s16178_s23 + $0x16e0] sm:$0xff]  ;;  %v4922_v2 = vrot.slane %v17486_v1, %v16209_v37 }
 0x5dd   : > { %9399 = vmatmul.mubr.bf16.vlgmr.msra.gmra.mrb[172].mxu0 %v4880_v60 }
 0x5de   : > { %9439 = vmatmul.mubr.bf16.vlgmr.msra.gmra.mrb[172].mxu1 %v4896_v3  ;;  %14316 = vmatpush3.bf16.msra.mxu0 %v2840_v4  ;;  %v2863_v3 = vunpack.c.h.s8.bf16 %v971_v49  ;;  %v2880_v4 = vunpack.c.l.s8.bf16 %v980_v62  ;;  %v4944_v7 = vcombine.high %v4922_v2, %v4922_v2 }
 0x5df   : > { %14338 = vmatpush3.bf16.msra.mxu1 %v2856_v8  ;;  %14317 = vmatprep.subr.bf16.mxu0 %v2849_v18  ;;  %v2896_v8 = vunpack.c.l.s8.bf16 %v988_v24  ;;  %v984_v18 = vld [vmem:[%s16178_s23 + $0x16c0] sm:$0xff] }
 0x5e0   : > { %14339 = vmatprep.subr.bf16.mxu1 %v2865_v9  ;;  %9478 = vmatprep.mubr.bf16.mxu0 %v4936_v55  ;;  %v2847_v55 = vunpack.c.h.s8.bf16 %v963_v63  ;;  %v4943_v9 = vrot.slane %v4915_v0, %v16209_v37  ;;  %v2888_v12 = vunpack.c.l.s8.bf16 %v984_v18  ;;  %v2889_v21 = vunpack.c.h.s8.bf16 %v984_v18  ;;  %v17540_v63 = vld [vmem:[%s16192_s25 + $0xb8] sm:$0xff] }
 0x5e1   : > { %9518 = vmatprep.mubr.bf16.mxu1 %v4946_v25  ;;  %v2881_v25 = vunpack.c.h.s8.bf16 %v980_v62 }
 0x5e2   : > { %14318 = vmatpush3.bf16.msra.mxu0 %v2841_v13  ;;  %v2897_v13 = vunpack.c.h.s8.bf16 %v988_v24  ;;  %v4947_v15 = vcombine.high %v4943_v9, %v4943_v9 }
 0x5e3   : > { %14340 = vmatpush3.bf16.msra.mxu1 %v2857_v16  ;;  %14319 = vmatprep.subr.bf16.mxu0 %v2850_v19  ;;  %v981_v16 = vld [vmem:[%s16178_s23 + $0x16a8] sm:$0xff] }
 0x5e4   : > { %14341 = vmatprep.subr.bf16.mxu1 %v2866_v20  ;;  %v989_v19 = vld [vmem:[%s16178_s23 + $0x16e8] sm:$0xff] }
 0x5e6   : > { %14320 = vmatpush3.bf16.msra.mxu0 %v2842_v23  ;;  %v2882_v23 = vunpack.c.l.s8.bf16 %v981_v16 }
 0x5e7   : > { %14342 = vmatpush3.bf16.msra.mxu1 %v2858_v26  ;;  %14321 = vmatprep.subr.bf16.mxu0 %v2851_v14  ;;  %v977_v26 = vld [vmem:[%s16178_s23 + $0x1688] sm:$0xff]  ;;  %v2898_v14 = vunpack.c.l.s8.bf16 %v989_v19 }
 0x5e8   : > { %14343 = vmatprep.subr.bf16.mxu1 %v2867_v27  ;;  %v985_v27 = vld [vmem:[%s16178_s23 + $0x16c8] sm:$0xff]  ;;  %v2874_v29 = vunpack.c.l.s8.bf16 %v977_v26 }
 0x5e9   : > { %v2890_v6 = vunpack.c.l.s8.bf16 %v985_v27  ;;  %v2891_v35 = vunpack.c.h.s8.bf16 %v985_v27 }
 0x5ea   : > { %14322 = vmatpush3.bf16.msra.mxu0 %v2843_v31  ;;  %v2883_v31 = vunpack.c.h.s8.bf16 %v981_v16 }
 0x5eb   : > { %14344 = vmatpush3.bf16.msra.mxu1 %v2859_v32  ;;  %14323 = vmatprep.subr.bf16.mxu0 %v2852_v33  ;;  %v2899_v32 = vunpack.c.h.s8.bf16 %v989_v19  ;;  %v982_v33 = vld [vmem:[%s16178_s23 + $0x16b0] sm:$0xff] }
 0x5ec   : > { %14345 = vmatprep.subr.bf16.mxu1 %v2868_v22  ;;  %v2875_v22 = vunpack.c.h.s8.bf16 %v977_v26  ;;  %v2885_v30 = vunpack.c.h.s8.bf16 %v982_v33 }
 0x5ee   : > { %14324 = vmatpush3.bf16.msra.mxu0 %v2844_v36  ;;  %v2884_v36 = vunpack.c.l.s8.bf16 %v982_v33 }
 0x5ef   : > { %14346 = vmatpush3.bf16.msra.mxu1 %v2860_v38  ;;  %14325 = vmatprep.subr.bf16.mxu0 %v2853_v41  ;;  %v978_v38 = vld [vmem:[%s16178_s23 + $0x1690] sm:$0xff]  ;;  %v2900_v41 = vunpack.c.l.s8.bf16 %v990_v34 }
 0x5f0   : > { %14347 = vmatprep.subr.bf16.mxu1 %v2869_v42  ;;  %v14023_v50 = vpop.f32.mrb[148].mxu0  ;;  %v986_v42 = vld [vmem:[%s16178_s23 + $0x16d0] sm:$0xff]  ;;  %v2876_v40 = vunpack.c.l.s8.bf16 %v978_v38 }
 0x5f1   : > { %v14045_v51 = vpop.f32.mrb[148].mxu1  ;;  %v14024_v39 = vpop.f32.mrb[149].mxu0  ;;  %v2892_v43 = vunpack.c.l.s8.bf16 %v986_v42  ;;  %v2893_v49 = vunpack.c.h.s8.bf16 %v986_v42 }
 0x5f2   : > { %v14046_v52 = vpop.f32.mrb[149].mxu1  ;;  %v14025_v53 = vadd.f32 %v14024_v39, %v14023_v50  ;;  %v14026_v54 = vpop.f32.mrb[150].mxu0  ;;  %14326 = vmatpush3.bf16.msra.mxu0 %v2845_v44  ;;  %v2901_v44 = vunpack.c.h.s8.bf16 %v990_v34 }
 0x5f3   : > { %v14047_v10 = vadd.f32 %v14046_v52, %v14045_v51  ;;  %14348 = vmatpush3.bf16.msra.mxu1 %v2861_v45  ;;  %v14048_v58 = vpop.f32.mrb[150].mxu1  ;;  %v14027_v59 = vpop.f32.mrb[151].mxu0  ;;  %14327 = vmatprep.subr.bf16.mxu0 %v2854_v46  ;;  %v983_v45 = vld [vmem:[%s16178_s23 + $0x16b8] sm:$0xff] }
 0x5f4   : > { %14349 = vmatprep.subr.bf16.mxu1 %v2870_v48  ;;  %v14049_v60 = vpop.f32.mrb[151].mxu1  ;;  %v8921_v61 = vadd.f32 %v14025_v53, %v17495_v5  ;;  %v976_v5 = vld [vmem:[%s16178_s23 + $0x1680] sm:$0xff]  ;;  %v991_v46 = vld [vmem:[%s16178_s23 + $0x16f8] sm:$0xff]  ;;  %v2877_v48 = vunpack.c.h.s8.bf16 %v978_v38  ;;  %v2886_v50 = vunpack.c.l.s8.bf16 %v983_v45  ;;  %v2887_v24 = vunpack.c.h.s8.bf16 %v983_v45  ;;  %v1006_v38 = vld [vmem:[%s16178_s23 + $0x1770] sm:$0xff] }
 0x5f5   : > { %v2872_v1 = vunpack.c.l.s8.bf16 %v976_v5  ;;  %v2873_v20 = vunpack.c.h.s8.bf16 %v976_v5  ;;  %v979_v51 = vld [vmem:[%s16178_s23 + $0x1698] sm:$0xff]  ;;  %v2902_v39 = vunpack.c.l.s8.bf16 %v991_v46  ;;  %v2903_v0 = vunpack.c.h.s8.bf16 %v991_v46 }
 0x5f6   : > { %v17524_v11 = vadd.f32 %v14047_v10, %v8921_v61  ;;  %14328 = vmatpush3.bf16.msra.mxu0 %v2846_v57  ;;  %v987_v52 = vld [vmem:[%s16178_s23 + $0x16d8] sm:$0xff]  ;;  %v17546_v10 = vrot.slane %v17540_v63, %v16209_v37 }
 0x5f7   : > { %14350 = vmatpush3.bf16.msra.mxu1 %v2862_v56  ;;  %14329 = vmatprep.subr.bf16.mxu0 %v2855_v47  ;;  %v2894_v60 = vunpack.c.l.s8.bf16 %v987_v52 }
 0x5f8   : > { %14351 = vmatprep.subr.bf16.mxu1 %v2871_v28  ;;  %v2878_v28 = vunpack.c.l.s8.bf16 %v979_v51  ;;  %v4963_v5 = vcombine.high %v17546_v10, %v17546_v10 }
 0x5fa   : > { %14330 = vmatpush3.bf16.msra.mxu0 %v2847_v55 }
 0x5fb   : > { %14352 = vmatpush3.bf16.msra.mxu1 %v2863_v3  ;;  %14359 = vmatprep.subr.bf16.mxu0 %v2880_v4  ;;  %v996_v3 = vld [vmem:[%s16178_s23 + $0x1720] sm:$0xff] }
 0x5fc   : > { %14381 = vmatprep.subr.bf16.mxu1 %v2896_v8  ;;  %v1004_v4 = vld [vmem:[%s16178_s23 + $0x1760] sm:$0xff]  ;;  %v4929_v8 = vrot.slane %v17515_v17, %v16209_v37 }
 0x5fd   : > { %9479 = vmatmul.mubr.bf16.vlgmr.msra.gmra.mrb[176].mxu0 %v4922_v2 }
 0x5fe   : > { %9519 = vmatmul.mubr.bf16.vlgmr.msra.gmra.mrb[176].mxu1 %v4944_v7  ;;  %14360 = vmatpush3.bf16.msra.mxu0 %v2872_v1  ;;  %v2895_v7 = vunpack.c.h.s8.bf16 %v987_v52  ;;  %v2912_v1 = vunpack.c.l.s8.bf16 %v996_v3  ;;  %v4945_v16 = vcombine.high %v4929_v8, %v4929_v8 }
 0x5ff   : > { %14382 = vmatpush3.bf16.msra.mxu1 %v2888_v12  ;;  %14361 = vmatprep.subr.bf16.mxu0 %v2881_v25  ;;  %v2928_v12 = vunpack.c.l.s8.bf16 %v1004_v4  ;;  %v1000_v25 = vld [vmem:[%s16178_s23 + $0x1740] sm:$0xff] }
 0x600   : > { %14383 = vmatprep.subr.bf16.mxu1 %v2897_v13  ;;  %9558 = vmatprep.mubr.bf16.mxu0 %v4943_v9  ;;  %v2879_v9 = vunpack.c.h.s8.bf16 %v979_v51  ;;  %v4985_v13 = vrot.slane %v4963_v5, %v16209_v37  ;;  %v2920_v19 = vunpack.c.l.s8.bf16 %v1000_v25  ;;  %v2921_v27 = vunpack.c.h.s8.bf16 %v1000_v25  ;;  %v1007_v51 = vld [vmem:[%s16178_s23 + $0x1778] sm:$0xff] }
 0x601   : > { %9598 = vmatprep.mubr.bf16.mxu1 %v4947_v15  ;;  %v2913_v15 = vunpack.c.h.s8.bf16 %v996_v3  ;;  %v2935_v5 = vunpack.c.h.s8.bf16 %v1007_v51 }
 0x602   : > { %14362 = vmatpush3.bf16.msra.mxu0 %v2873_v20  ;;  %v2929_v20 = vunpack.c.h.s8.bf16 %v1004_v4  ;;  %v4995_v26 = vcombine.high %v4985_v13, %v4985_v13 }
 0x603   : > { %14384 = vmatpush3.bf16.msra.mxu1 %v2889_v21  ;;  %14363 = vmatprep.subr.bf16.mxu0 %v2882_v23  ;;  %v997_v21 = vld [vmem:[%s16178_s23 + $0x1728] sm:$0xff] }
 0x604   : > { %14385 = vmatprep.subr.bf16.mxu1 %v2898_v14  ;;  %v1005_v23 = vld [vmem:[%s16178_s23 + $0x1768] sm:$0xff] }
 0x606   : > { %14364 = vmatpush3.bf16.msra.mxu0 %v2874_v29  ;;  %v2914_v29 = vunpack.c.l.s8.bf16 %v997_v21 }
 0x607   : > { %14386 = vmatpush3.bf16.msra.mxu1 %v2890_v6  ;;  %14365 = vmatprep.subr.bf16.mxu0 %v2883_v31  ;;  %v993_v6 = vld [vmem:[%s16178_s23 + $0x1708] sm:$0xff]  ;;  %v2930_v31 = vunpack.c.l.s8.bf16 %v1005_v23 }
 0x608   : > { %14387 = vmatprep.subr.bf16.mxu1 %v2899_v32  ;;  %v1001_v32 = vld [vmem:[%s16178_s23 + $0x1748] sm:$0xff]  ;;  %v2906_v33 = vunpack.c.l.s8.bf16 %v993_v6 }
 0x609   : > { %v2922_v34 = vunpack.c.l.s8.bf16 %v1001_v32  ;;  %v2923_v42 = vunpack.c.h.s8.bf16 %v1001_v32 }
 0x60a   : > { %14366 = vmatpush3.bf16.msra.mxu0 %v2875_v22  ;;  %v2915_v22 = vunpack.c.h.s8.bf16 %v997_v21 }
 0x60b   : > { %14388 = vmatpush3.bf16.msra.mxu1 %v2891_v35  ;;  %14367 = vmatprep.subr.bf16.mxu0 %v2884_v36  ;;  %v2931_v35 = vunpack.c.h.s8.bf16 %v1005_v23  ;;  %v998_v36 = vld [vmem:[%s16178_s23 + $0x1730] sm:$0xff] }
 0x60c   : > { %14389 = vmatprep.subr.bf16.mxu1 %v2900_v41  ;;  %v2907_v41 = vunpack.c.h.s8.bf16 %v993_v6 }
 0x60e   : > { %14368 = vmatpush3.bf16.msra.mxu0 %v2876_v40  ;;  %v2916_v40 = vunpack.c.l.s8.bf16 %v998_v36 }
 0x60f   : > { %14390 = vmatpush3.bf16.msra.mxu1 %v2892_v43  ;;  %14369 = vmatprep.subr.bf16.mxu0 %v2885_v30  ;;  %v994_v43 = vld [vmem:[%s16178_s23 + $0x1710] sm:$0xff]  ;;  %v2932_v30 = vunpack.c.l.s8.bf16 %v1006_v38 }
 0x610   : > { %14391 = vmatprep.subr.bf16.mxu1 %v2901_v44  ;;  %v14067_v53 = vpop.f32.mrb[152].mxu0  ;;  %v1002_v44 = vld [vmem:[%s16178_s23 + $0x1750] sm:$0xff]  ;;  %v2908_v45 = vunpack.c.l.s8.bf16 %v994_v43  ;;  %v2909_v52 = vunpack.c.h.s8.bf16 %v994_v43 }
 0x611   : > { %v14089_v54 = vpop.f32.mrb[152].mxu1  ;;  %v14068_v57 = vpop.f32.mrb[153].mxu0  ;;  %v2924_v46 = vunpack.c.l.s8.bf16 %v1002_v44  ;;  %v1022_v43 = vld [vmem:[%s16178_s23 + $0x17f0] sm:$0xff] }
 0x612   : > { %v14090_v56 = vpop.f32.mrb[153].mxu1  ;;  %v14069_v58 = vadd.f32 %v14068_v57, %v14067_v53  ;;  %v14070_v59 = vpop.f32.mrb[154].mxu0  ;;  %14370 = vmatpush3.bf16.msra.mxu0 %v2877_v48  ;;  %v2917_v48 = vunpack.c.h.s8.bf16 %v998_v36  ;;  %v2925_v53 = vunpack.c.h.s8.bf16 %v1002_v44  ;;  %v995_v57 = vld [vmem:[%s16178_s23 + $0x1718] sm:$0xff] }
 0x613   : > { %v14091_v47 = vadd.f32 %v14090_v56, %v14089_v54  ;;  %14392 = vmatpush3.bf16.msra.mxu1 %v2893_v49  ;;  %v14092_v61 = vpop.f32.mrb[154].mxu1  ;;  %v14071_v62 = vpop.f32.mrb[155].mxu0  ;;  %14371 = vmatprep.subr.bf16.mxu0 %v2886_v50  ;;  %v2933_v49 = vunpack.c.h.s8.bf16 %v1006_v38  ;;  %v999_v50 = vld [vmem:[%s16178_s23 + $0x1738] sm:$0xff]  ;;  %v2934_v56 = vunpack.c.l.s8.bf16 %v1007_v51 }
 0x614   : > { %14393 = vmatprep.subr.bf16.mxu1 %v2902_v39  ;;  %v14093_v2 = vpop.f32.mrb[155].mxu1  ;;  %v9001_v55 = vadd.f32 %v14069_v58, %v17524_v11  ;;  %v992_v11 = vld [vmem:[%s16178_s23 + $0x1700] sm:$0xff]  ;;  %v4948_v39 = vcombine.high %v17540_v63, %v17540_v63  ;;  %v2918_v54 = vunpack.c.l.s8.bf16 %v999_v50  ;;  %v1003_v58 = vld [vmem:[%s16178_s23 + $0x1758] sm:$0xff]  ;;  %v2919_v4 = vunpack.c.h.s8.bf16 %v999_v50 }
 0x615   : > { %v2904_v17 = vunpack.c.l.s8.bf16 %v992_v11  ;;  %v2905_v14 = vunpack.c.h.s8.bf16 %v992_v11  ;;  %v2926_v2 = vunpack.c.l.s8.bf16 %v1003_v58 }
 0x616   : > { %v17555_v18 = vadd.f32 %v14091_v47, %v9001_v55  ;;  %14372 = vmatpush3.bf16.msra.mxu0 %v2878_v28  ;;  %v17575_v28 = vrot.slane %v4948_v39, %v16209_v37 }
 0x617   : > { %14394 = vmatpush3.bf16.msra.mxu1 %v2894_v60  ;;  %14373 = vmatprep.subr.bf16.mxu0 %v2887_v24 }
 0x618   : > { %14395 = vmatprep.subr.bf16.mxu1 %v2903_v0  ;;  %v2910_v0 = vunpack.c.l.s8.bf16 %v995_v57  ;;  %v4964_v11 = vcombine.high %v17575_v28, %v17575_v28 }
 0x61a   : > { %14374 = vmatpush3.bf16.msra.mxu0 %v2879_v9 }
 0x61b   : > { %14396 = vmatpush3.bf16.msra.mxu1 %v2895_v7  ;;  %14403 = vmatprep.subr.bf16.mxu0 %v2912_v1  ;;  %v1012_v7 = vld [vmem:[%s16178_s23 + $0x17a0] sm:$0xff] }
 0x61c   : > { %14425 = vmatprep.subr.bf16.mxu1 %v2928_v12  ;;  %v1020_v1 = vld [vmem:[%s16178_s23 + $0x17e0] sm:$0xff]  ;;  %v4971_v12 = vrot.slane %v17546_v10, %v16209_v37 }
 0x61d   : > { %9559 = vmatmul.mubr.bf16.vlgmr.msra.gmra.mrb[180].mxu0 %v4929_v8 }
 0x61e   : > { %9599 = vmatmul.mubr.bf16.vlgmr.msra.gmra.mrb[180].mxu1 %v4945_v16  ;;  %14404 = vmatpush3.bf16.msra.mxu0 %v2904_v17  ;;  %v2927_v16 = vunpack.c.h.s8.bf16 %v1003_v58  ;;  %v2944_v17 = vunpack.c.l.s8.bf16 %v1012_v7  ;;  %v4993_v21 = vcombine.high %v4971_v12, %v4971_v12 }
 0x61f   : > { %14426 = vmatpush3.bf16.msra.mxu1 %v2920_v19  ;;  %14405 = vmatprep.subr.bf16.mxu0 %v2913_v15  ;;  %v2960_v19 = vunpack.c.l.s8.bf16 %v1020_v1  ;;  %v1016_v15 = vld [vmem:[%s16178_s23 + $0x17c0] sm:$0xff] }
 0x620   : > { %14427 = vmatprep.subr.bf16.mxu1 %v2929_v20  ;;  %9638 = vmatprep.mubr.bf16.mxu0 %v4985_v13  ;;  %v2911_v13 = vunpack.c.h.s8.bf16 %v995_v57  ;;  %v4992_v20 = vrot.slane %v4964_v11, %v16209_v37  ;;  %v2952_v23 = vunpack.c.l.s8.bf16 %v1016_v15  ;;  %v2953_v32 = vunpack.c.h.s8.bf16 %v1016_v15  ;;  %v17600_v57 = vld [vmem:[%s16192_s25 + $0xc0] sm:$0xff] }
 0x621   : > { %9678 = vmatprep.mubr.bf16.mxu1 %v4995_v26  ;;  %v2945_v26 = vunpack.c.h.s8.bf16 %v1012_v7 }
 0x622   : > { %14406 = vmatpush3.bf16.msra.mxu0 %v2905_v14  ;;  %v2961_v14 = vunpack.c.h.s8.bf16 %v1020_v1  ;;  %v4996_v6 = vcombine.high %v4992_v20, %v4992_v20 }
 0x623   : > { %14428 = vmatpush3.bf16.msra.mxu1 %v2921_v27  ;;  %14407 = vmatprep.subr.bf16.mxu0 %v2914_v29  ;;  %v1013_v27 = vld [vmem:[%s16178_s23 + $0x17a8] sm:$0xff] }
 0x624   : > { %14429 = vmatprep.subr.bf16.mxu1 %v2930_v31  ;;  %v1021_v29 = vld [vmem:[%s16178_s23 + $0x17e8] sm:$0xff] }
 0x626   : > { %14408 = vmatpush3.bf16.msra.mxu0 %v2906_v33  ;;  %v2946_v33 = vunpack.c.l.s8.bf16 %v1013_v27 }
 0x627   : > { %14430 = vmatpush3.bf16.msra.mxu1 %v2922_v34  ;;  %14409 = vmatprep.subr.bf16.mxu0 %v2915_v22  ;;  %v1009_v34 = vld [vmem:[%s16178_s23 + $0x1788] sm:$0xff]  ;;  %v2962_v22 = vunpack.c.l.s8.bf16 %v1021_v29 }
 0x628   : > { %14431 = vmatprep.subr.bf16.mxu1 %v2931_v35  ;;  %v1017_v35 = vld [vmem:[%s16178_s23 + $0x17c8] sm:$0xff]  ;;  %v2938_v36 = vunpack.c.l.s8.bf16 %v1009_v34 }
 0x629   : > { %v2954_v38 = vunpack.c.l.s8.bf16 %v1017_v35  ;;  %v2955_v44 = vunpack.c.h.s8.bf16 %v1017_v35 }
 0x62a   : > { %14410 = vmatpush3.bf16.msra.mxu0 %v2907_v41  ;;  %v2947_v41 = vunpack.c.h.s8.bf16 %v1013_v27 }
 0x62b   : > { %14432 = vmatpush3.bf16.msra.mxu1 %v2923_v42  ;;  %14411 = vmatprep.subr.bf16.mxu0 %v2916_v40  ;;  %v2963_v42 = vunpack.c.h.s8.bf16 %v1021_v29  ;;  %v1014_v40 = vld [vmem:[%s16178_s23 + $0x17b0] sm:$0xff] }
 0x62c   : > { %14433 = vmatprep.subr.bf16.mxu1 %v2932_v30  ;;  %v2939_v30 = vunpack.c.h.s8.bf16 %v1009_v34  ;;  %v2949_v39 = vunpack.c.h.s8.bf16 %v1014_v40 }
 0x62e   : > { %14412 = vmatpush3.bf16.msra.mxu0 %v2908_v45  ;;  %v2948_v45 = vunpack.c.l.s8.bf16 %v1014_v40 }
 0x62f   : > { %14434 = vmatpush3.bf16.msra.mxu1 %v2924_v46  ;;  %14413 = vmatprep.subr.bf16.mxu0 %v2917_v48  ;;  %v1010_v46 = vld [vmem:[%s16178_s23 + $0x1790] sm:$0xff]  ;;  %v2964_v48 = vunpack.c.l.s8.bf16 %v1022_v43 }
 0x630   : > { %14435 = vmatprep.subr.bf16.mxu1 %v2933_v49  ;;  %v14111_v59 = vpop.f32.mrb[156].mxu0  ;;  %v1018_v49 = vld [vmem:[%s16178_s23 + $0x17d0] sm:$0xff]  ;;  %v2940_v50 = vunpack.c.l.s8.bf16 %v1010_v46 }
 0x631   : > { %v14133_v47 = vpop.f32.mrb[156].mxu1  ;;  %v14112_v60 = vpop.f32.mrb[157].mxu0  ;;  %v2956_v51 = vunpack.c.l.s8.bf16 %v1018_v49  ;;  %v2957_v58 = vunpack.c.h.s8.bf16 %v1018_v49 }
 0x632   : > { %v14134_v61 = vpop.f32.mrb[157].mxu1  ;;  %v14113_v62 = vadd.f32 %v14112_v60, %v14111_v59  ;;  %v14114_v63 = vpop.f32.mrb[158].mxu0  ;;  %14414 = vmatpush3.bf16.msra.mxu0 %v2909_v52  ;;  %v2965_v52 = vunpack.c.h.s8.bf16 %v1022_v43 }
 0x633   : > { %v14135_v24 = vadd.f32 %v14134_v61, %v14133_v47  ;;  %14436 = vmatpush3.bf16.msra.mxu1 %v2925_v53  ;;  %v14136_v55 = vpop.f32.mrb[158].mxu1  ;;  %v14115_v3 = vpop.f32.mrb[159].mxu0  ;;  %14415 = vmatprep.subr.bf16.mxu0 %v2918_v54  ;;  %v1015_v53 = vld [vmem:[%s16178_s23 + $0x17b8] sm:$0xff] }
 0x634   : > { %14437 = vmatprep.subr.bf16.mxu1 %v2934_v56  ;;  %v14137_v8 = vpop.f32.mrb[159].mxu1  ;;  %v9081_v9 = vadd.f32 %v14113_v62, %v17555_v18  ;;  %v1008_v18 = vld [vmem:[%s16178_s23 + $0x1780] sm:$0xff]  ;;  %v1023_v54 = vld [vmem:[%s16178_s23 + $0x17f8] sm:$0xff]  ;;  %v2941_v56 = vunpack.c.h.s8.bf16 %v1010_v46  ;;  %v2950_v59 = vunpack.c.l.s8.bf16 %v1015_v53  ;;  %v2951_v1 = vunpack.c.h.s8.bf16 %v1015_v53  ;;  %v1038_v46 = vld [vmem:[%s16178_s23 + $0x1870] sm:$0xff] }
 0x635   : > { %v2936_v10 = vunpack.c.l.s8.bf16 %v1008_v18  ;;  %v2937_v31 = vunpack.c.h.s8.bf16 %v1008_v18  ;;  %v1011_v47 = vld [vmem:[%s16178_s23 + $0x1798] sm:$0xff]  ;;  %v2966_v60 = vunpack.c.l.s8.bf16 %v1023_v54  ;;  %v2967_v11 = vunpack.c.h.s8.bf16 %v1023_v54 }
 0x636   : > { %v17584_v25 = vadd.f32 %v14135_v24, %v9081_v9  ;;  %14416 = vmatpush3.bf16.msra.mxu0 %v2910_v0  ;;  %v1019_v61 = vld [vmem:[%s16178_s23 + $0x17d8] sm:$0xff]  ;;  %v17606_v24 = vrot.slane %v17600_v57, %v16209_v37 }
 0x637   : > { %14438 = vmatpush3.bf16.msra.mxu1 %v2926_v2  ;;  %14417 = vmatprep.subr.bf16.mxu0 %v2919_v4  ;;  %v2958_v8 = vunpack.c.l.s8.bf16 %v1019_v61 }
 0x638   : > { %14439 = vmatprep.subr.bf16.mxu1 %v2935_v5  ;;  %v2942_v5 = vunpack.c.l.s8.bf16 %v1011_v47  ;;  %v5012_v18 = vcombine.high %v17606_v24, %v17606_v24 }
 0x63a   : > { %14418 = vmatpush3.bf16.msra.mxu0 %v2911_v13 }
 0x63b   : > { %14440 = vmatpush3.bf16.msra.mxu1 %v2927_v16  ;;  %14447 = vmatprep.subr.bf16.mxu0 %v2944_v17  ;;  %v1028_v16 = vld [vmem:[%s16178_s23 + $0x1820] sm:$0xff] }
 0x63c   : > { %14469 = vmatprep.subr.bf16.mxu1 %v2960_v19  ;;  %v1036_v17 = vld [vmem:[%s16178_s23 + $0x1860] sm:$0xff]  ;;  %v4978_v19 = vrot.slane %v17575_v28, %v16209_v37 }
 0x63d   : > { %9639 = vmatmul.mubr.bf16.vlgmr.msra.gmra.mrb[184].mxu0 %v4971_v12 }
 0x63e   : > { %9679 = vmatmul.mubr.bf16.vlgmr.msra.gmra.mrb[184].mxu1 %v4993_v21  ;;  %14448 = vmatpush3.bf16.msra.mxu0 %v2936_v10  ;;  %v2959_v21 = vunpack.c.h.s8.bf16 %v1019_v61  ;;  %v2976_v10 = vunpack.c.l.s8.bf16 %v1028_v16  ;;  %v4994_v27 = vcombine.high %v4978_v19, %v4978_v19 }
 0x63f   : > { %14470 = vmatpush3.bf16.msra.mxu1 %v2952_v23  ;;  %14449 = vmatprep.subr.bf16.mxu0 %v2945_v26  ;;  %v2992_v23 = vunpack.c.l.s8.bf16 %v1036_v17  ;;  %v1032_v26 = vld [vmem:[%s16178_s23 + $0x1840] sm:$0xff] }
 0x640   : > { %14471 = vmatprep.subr.bf16.mxu1 %v2961_v14  ;;  %9718 = vmatprep.mubr.bf16.mxu0 %v4992_v20  ;;  %v2943_v20 = vunpack.c.h.s8.bf16 %v1011_v47  ;;  %v5034_v14 = vrot.slane %v5012_v18, %v16209_v37  ;;  %v2984_v29 = vunpack.c.l.s8.bf16 %v1032_v26  ;;  %v2985_v35 = vunpack.c.h.s8.bf16 %v1032_v26  ;;  %v1039_v47 = vld [vmem:[%s16178_s23 + $0x1878] sm:$0xff] }
 0x641   : > { %9758 = vmatprep.mubr.bf16.mxu1 %v4996_v6  ;;  %v2977_v6 = vunpack.c.h.s8.bf16 %v1028_v16  ;;  %v2999_v18 = vunpack.c.h.s8.bf16 %v1039_v47 }
 0x642   : > { %14450 = vmatpush3.bf16.msra.mxu0 %v2937_v31  ;;  %v2993_v31 = vunpack.c.h.s8.bf16 %v1036_v17  ;;  %v5044_v34 = vcombine.high %v5034_v14, %v5034_v14 }
 0x643   : > { %14472 = vmatpush3.bf16.msra.mxu1 %v2953_v32  ;;  %14451 = vmatprep.subr.bf16.mxu0 %v2946_v33  ;;  %v1029_v32 = vld [vmem:[%s16178_s23 + $0x1828] sm:$0xff] }
 0x644   : > { %14473 = vmatprep.subr.bf16.mxu1 %v2962_v22  ;;  %v1037_v33 = vld [vmem:[%s16178_s23 + $0x1868] sm:$0xff] }
 0x646   : > { %14452 = vmatpush3.bf16.msra.mxu0 %v2938_v36  ;;  %v2978_v36 = vunpack.c.l.s8.bf16 %v1029_v32 }
 0x647   : > { %14474 = vmatpush3.bf16.msra.mxu1 %v2954_v38  ;;  %14453 = vmatprep.subr.bf16.mxu0 %v2947_v41  ;;  %v1025_v38 = vld [vmem:[%s16178_s23 + $0x1808] sm:$0xff]  ;;  %v2994_v41 = vunpack.c.l.s8.bf16 %v1037_v33 }
 0x648   : > { %14475 = vmatprep.subr.bf16.mxu1 %v2963_v42  ;;  %v1033_v42 = vld [vmem:[%s16178_s23 + $0x1848] sm:$0xff]  ;;  %v2970_v40 = vunpack.c.l.s8.bf16 %v1025_v38 }
 0x649   : > { %v2986_v43 = vunpack.c.l.s8.bf16 %v1033_v42  ;;  %v2987_v49 = vunpack.c.h.s8.bf16 %v1033_v42 }
 0x64a   : > { %14454 = vmatpush3.bf16.msra.mxu0 %v2939_v30  ;;  %v2979_v30 = vunpack.c.h.s8.bf16 %v1029_v32 }
 0x64b   : > { %14476 = vmatpush3.bf16.msra.mxu1 %v2955_v44  ;;  %14455 = vmatprep.subr.bf16.mxu0 %v2948_v45  ;;  %v2995_v44 = vunpack.c.h.s8.bf16 %v1037_v33  ;;  %v1030_v45 = vld [vmem:[%s16178_s23 + $0x1830] sm:$0xff] }
 0x64c   : > { %14477 = vmatprep.subr.bf16.mxu1 %v2964_v48  ;;  %v2971_v48 = vunpack.c.h.s8.bf16 %v1025_v38 }
 0x64e   : > { %14456 = vmatpush3.bf16.msra.mxu0 %v2940_v50  ;;  %v2980_v50 = vunpack.c.l.s8.bf16 %v1030_v45 }
 0x64f   : > { %14478 = vmatpush3.bf16.msra.mxu1 %v2956_v51  ;;  %14457 = vmatprep.subr.bf16.mxu0 %v2949_v39  ;;  %v1026_v51 = vld [vmem:[%s16178_s23 + $0x1810] sm:$0xff]  ;;  %v2996_v39 = vunpack.c.l.s8.bf16 %v1038_v46 }
 0x650   : > { %14479 = vmatprep.subr.bf16.mxu1 %v2965_v52  ;;  %v14155_v62 = vpop.f32.mrb[160].mxu0  ;;  %v1034_v52 = vld [vmem:[%s16178_s23 + $0x1850] sm:$0xff]  ;;  %v2972_v53 = vunpack.c.l.s8.bf16 %v1026_v51  ;;  %v2973_v61 = vunpack.c.h.s8.bf16 %v1026_v51 }
 0x651   : > { %v14177_v63 = vpop.f32.mrb[160].mxu1  ;;  %v14156_v0 = vpop.f32.mrb[161].mxu0  ;;  %v2988_v54 = vunpack.c.l.s8.bf16 %v1034_v52  ;;  %v1054_v51 = vld [vmem:[%s16178_s23 + $0x18f0] sm:$0xff] }
 0x652   : > { %v14178_v2 = vpop.f32.mrb[161].mxu1  ;;  %v14157_v55 = vadd.f32 %v14156_v0, %v14155_v62  ;;  %v14158_v3 = vpop.f32.mrb[162].mxu0  ;;  %14458 = vmatpush3.bf16.msra.mxu0 %v2941_v56  ;;  %v2981_v56 = vunpack.c.h.s8.bf16 %v1030_v45  ;;  %v2989_v62 = vunpack.c.h.s8.bf16 %v1034_v52  ;;  %v1027_v0 = vld [vmem:[%s16178_s23 + $0x1818] sm:$0xff] }
 0x653   : > { %v14179_v4 = vadd.f32 %v14178_v2, %v14177_v63  ;;  %14480 = vmatpush3.bf16.msra.mxu1 %v2957_v58  ;;  %v14180_v9 = vpop.f32.mrb[162].mxu1  ;;  %v14159_v7 = vpop.f32.mrb[163].mxu0  ;;  %14459 = vmatprep.subr.bf16.mxu0 %v2950_v59  ;;  %v2997_v58 = vunpack.c.h.s8.bf16 %v1038_v46  ;;  %v1031_v59 = vld [vmem:[%s16178_s23 + $0x1838] sm:$0xff]  ;;  %v2998_v2 = vunpack.c.l.s8.bf16 %v1039_v47 }
 0x654   : > { %14481 = vmatprep.subr.bf16.mxu1 %v2966_v60  ;;  %v14181_v12 = vpop.f32.mrb[163].mxu1  ;;  %v9161_v13 = vadd.f32 %v14157_v55, %v17584_v25  ;;  %v1024_v25 = vld [vmem:[%s16178_s23 + $0x1800] sm:$0xff]  ;;  %v4997_v60 = vcombine.high %v17600_v57, %v17600_v57  ;;  %v2982_v63 = vunpack.c.l.s8.bf16 %v1031_v59  ;;  %v1035_v55 = vld [vmem:[%s16178_s23 + $0x1858] sm:$0xff]  ;;  %v2983_v17 = vunpack.c.h.s8.bf16 %v1031_v59 }
 0x655   : > { %v2968_v28 = vunpack.c.l.s8.bf16 %v1024_v25  ;;  %v2969_v22 = vunpack.c.h.s8.bf16 %v1024_v25  ;;  %v2990_v12 = vunpack.c.l.s8.bf16 %v1035_v55 }
 0x656   : > { %v17615_v15 = vadd.f32 %v14179_v4, %v9161_v13  ;;  %14460 = vmatpush3.bf16.msra.mxu0 %v2942_v5  ;;  %v17635_v5 = vrot.slane %v4997_v60, %v16209_v37 }
 0x657   : > { %14482 = vmatpush3.bf16.msra.mxu1 %v2958_v8  ;;  %14461 = vmatprep.subr.bf16.mxu0 %v2951_v1 }
 0x658   : > { %14483 = vmatprep.subr.bf16.mxu1 %v2967_v11  ;;  %v2974_v11 = vunpack.c.l.s8.bf16 %v1027_v0  ;;  %v5013_v25 = vcombine.high %v17635_v5, %v17635_v5 }
 0x65a   : > { %14462 = vmatpush3.bf16.msra.mxu0 %v2943_v20 }
 0x65b   : > { %14484 = vmatpush3.bf16.msra.mxu1 %v2959_v21  ;;  %14491 = vmatprep.subr.bf16.mxu0 %v2976_v10  ;;  %v1044_v21 = vld [vmem:[%s16178_s23 + $0x18a0] sm:$0xff] }
 0x65c   : > { %14513 = vmatprep.subr.bf16.mxu1 %v2992_v23  ;;  %v1052_v10 = vld [vmem:[%s16178_s23 + $0x18e0] sm:$0xff]  ;;  %v5020_v23 = vrot.slane %v17606_v24, %v16209_v37 }
 0x65d   : > { %9719 = vmatmul.mubr.bf16.vlgmr.msra.gmra.mrb[188].mxu0 %v4978_v19 }
 0x65e   : > { %9759 = vmatmul.mubr.bf16.vlgmr.msra.gmra.mrb[188].mxu1 %v4994_v27  ;;  %14492 = vmatpush3.bf16.msra.mxu0 %v2968_v28  ;;  %v2991_v27 = vunpack.c.h.s8.bf16 %v1035_v55  ;;  %v3008_v28 = vunpack.c.l.s8.bf16 %v1044_v21  ;;  %v5042_v32 = vcombine.high %v5020_v23, %v5020_v23 }
 0x65f   : > { %14514 = vmatpush3.bf16.msra.mxu1 %v2984_v29  ;;  %14493 = vmatprep.subr.bf16.mxu0 %v2977_v6  ;;  %v3024_v29 = vunpack.c.l.s8.bf16 %v1052_v10  ;;  %v1048_v6 = vld [vmem:[%s16178_s23 + $0x18c0] sm:$0xff] }
 0x660   : > { %14515 = vmatprep.subr.bf16.mxu1 %v2993_v31  ;;  %9798 = vmatprep.mubr.bf16.mxu0 %v5034_v14  ;;  %v2975_v14 = vunpack.c.h.s8.bf16 %v1027_v0  ;;  %v5041_v31 = vrot.slane %v5013_v25, %v16209_v37  ;;  %v3016_v33 = vunpack.c.l.s8.bf16 %v1048_v6  ;;  %v3017_v42 = vunpack.c.h.s8.bf16 %v1048_v6  ;;  %v17660_v0 = vld [vmem:[%s16192_s25 + $0xc8] sm:$0xff] }
 0x661   : > { %9838 = vmatprep.mubr.bf16.mxu1 %v5044_v34  ;;  %v3009_v34 = vunpack.c.h.s8.bf16 %v1044_v21 }
 0x662   : > { %14494 = vmatpush3.bf16.msra.mxu0 %v2969_v22  ;;  %v3025_v22 = vunpack.c.h.s8.bf16 %v1052_v10  ;;  %v5045_v38 = vcombine.high %v5041_v31, %v5041_v31 }
 0x663   : > { %14516 = vmatpush3.bf16.msra.mxu1 %v2985_v35  ;;  %14495 = vmatprep.subr.bf16.mxu0 %v2978_v36  ;;  %v1045_v35 = vld [vmem:[%s16178_s23 + $0x18a8] sm:$0xff] }
 0x664   : > { %14517 = vmatprep.subr.bf16.mxu1 %v2994_v41  ;;  %v1053_v36 = vld [vmem:[%s16178_s23 + $0x18e8] sm:$0xff] }
 0x666   : > { %14496 = vmatpush3.bf16.msra.mxu0 %v2970_v40  ;;  %v3010_v40 = vunpack.c.l.s8.bf16 %v1045_v35 }
 0x667   : > { %14518 = vmatpush3.bf16.msra.mxu1 %v2986_v43  ;;  %14497 = vmatprep.subr.bf16.mxu0 %v2979_v30  ;;  %v1041_v43 = vld [vmem:[%s16178_s23 + $0x1888] sm:$0xff]  ;;  %v3026_v30 = vunpack.c.l.s8.bf16 %v1053_v36 }
 0x668   : > { %14519 = vmatprep.subr.bf16.mxu1 %v2995_v44  ;;  %v1049_v44 = vld [vmem:[%s16178_s23 + $0x18c8] sm:$0xff]  ;;  %v3002_v45 = vunpack.c.l.s8.bf16 %v1041_v43 }
 0x669   : > { %v3018_v46 = vunpack.c.l.s8.bf16 %v1049_v44  ;;  %v3019_v52 = vunpack.c.h.s8.bf16 %v1049_v44 }
 0x66a   : > { %14498 = vmatpush3.bf16.msra.mxu0 %v2971_v48  ;;  %v3011_v48 = vunpack.c.h.s8.bf16 %v1045_v35 }
 0x66b   : > { %14520 = vmatpush3.bf16.msra.mxu1 %v2987_v49  ;;  %14499 = vmatprep.subr.bf16.mxu0 %v2980_v50  ;;  %v3027_v49 = vunpack.c.h.s8.bf16 %v1053_v36  ;;  %v1046_v50 = vld [vmem:[%s16178_s23 + $0x18b0] sm:$0xff] }
 0x66c   : > { %14521 = vmatprep.subr.bf16.mxu1 %v2996_v39  ;;  %v3003_v39 = vunpack.c.h.s8.bf16 %v1041_v43  ;;  %v3013_v60 = vunpack.c.h.s8.bf16 %v1046_v50 }
 0x66e   : > { %14500 = vmatpush3.bf16.msra.mxu0 %v2972_v53  ;;  %v3012_v53 = vunpack.c.l.s8.bf16 %v1046_v50 }
 0x66f   : > { %14522 = vmatpush3.bf16.msra.mxu1 %v2988_v54  ;;  %14501 = vmatprep.subr.bf16.mxu0 %v2981_v56  ;;  %v1042_v54 = vld [vmem:[%s16178_s23 + $0x1890] sm:$0xff]  ;;  %v3028_v56 = vunpack.c.l.s8.bf16 %v1054_v51 }
 0x670   : > { %14523 = vmatprep.subr.bf16.mxu1 %v2997_v58  ;;  %v14199_v3 = vpop.f32.mrb[164].mxu0  ;;  %v1050_v58 = vld [vmem:[%s16178_s23 + $0x18d0] sm:$0xff]  ;;  %v3004_v59 = vunpack.c.l.s8.bf16 %v1042_v54 }
 0x671   : > { %v14221_v4 = vpop.f32.mrb[164].mxu1  ;;  %v14200_v8 = vpop.f32.mrb[165].mxu0  ;;  %v3020_v47 = vunpack.c.l.s8.bf16 %v1050_v58  ;;  %v3021_v55 = vunpack.c.h.s8.bf16 %v1050_v58 }
 0x672   : > { %v14222_v9 = vpop.f32.mrb[165].mxu1  ;;  %v14201_v7 = vadd.f32 %v14200_v8, %v14199_v3  ;;  %v14202_v57 = vpop.f32.mrb[166].mxu0  ;;  %14502 = vmatpush3.bf16.msra.mxu0 %v2973_v61  ;;  %v3029_v61 = vunpack.c.h.s8.bf16 %v1054_v51 }
 0x673   : > { %v14223_v1 = vadd.f32 %v14222_v9, %v14221_v4  ;;  %14524 = vmatpush3.bf16.msra.mxu1 %v2989_v62  ;;  %v14224_v13 = vpop.f32.mrb[166].mxu1  ;;  %v14203_v16 = vpop.f32.mrb[167].mxu0  ;;  %14503 = vmatprep.subr.bf16.mxu0 %v2982_v63  ;;  %v1047_v62 = vld [vmem:[%s16178_s23 + $0x18b8] sm:$0xff] }
 0x674   : > { %14525 = vmatprep.subr.bf16.mxu1 %v2998_v2  ;;  %v14225_v19 = vpop.f32.mrb[167].mxu1  ;;  %v9241_v20 = vadd.f32 %v14201_v7, %v17615_v15  ;;  %v1040_v15 = vld [vmem:[%s16178_s23 + $0x1880] sm:$0xff]  ;;  %v1055_v63 = vld [vmem:[%s16178_s23 + $0x18f8] sm:$0xff]  ;;  %v3005_v2 = vunpack.c.h.s8.bf16 %v1042_v54  ;;  %v3014_v3 = vunpack.c.l.s8.bf16 %v1047_v62  ;;  %v3015_v10 = vunpack.c.h.s8.bf16 %v1047_v62  ;;  %v1070_v54 = vld [vmem:[%s16178_s23 + $0x1970] sm:$0xff] }
 0x675   : > { %v3000_v24 = vunpack.c.l.s8.bf16 %v1040_v15  ;;  %v3001_v41 = vunpack.c.h.s8.bf16 %v1040_v15  ;;  %v1043_v4 = vld [vmem:[%s16178_s23 + $0x1898] sm:$0xff]  ;;  %v3030_v8 = vunpack.c.l.s8.bf16 %v1055_v63  ;;  %v3031_v25 = vunpack.c.h.s8.bf16 %v1055_v63 }
 0x676   : > { %v17644_v26 = vadd.f32 %v14223_v1, %v9241_v20  ;;  %14504 = vmatpush3.bf16.msra.mxu0 %v2974_v11  ;;  %v1051_v9 = vld [vmem:[%s16178_s23 + $0x18d8] sm:$0xff]  ;;  %v17666_v1 = vrot.slane %v17660_v0, %v16209_v37 }
 0x677   : > { %14526 = vmatpush3.bf16.msra.mxu1 %v2990_v12  ;;  %14505 = vmatprep.subr.bf16.mxu0 %v2983_v17  ;;  %v3022_v19 = vunpack.c.l.s8.bf16 %v1051_v9 }
 0x678   : > { %14527 = vmatprep.subr.bf16.mxu1 %v2999_v18  ;;  %v3006_v18 = vunpack.c.l.s8.bf16 %v1043_v4  ;;  %v5061_v15 = vcombine.high %v17666_v1, %v17666_v1 }
 0x67a   : > { %14506 = vmatpush3.bf16.msra.mxu0 %v2975_v14 }
 0x67b   : > { %14528 = vmatpush3.bf16.msra.mxu1 %v2991_v27  ;;  %14535 = vmatprep.subr.bf16.mxu0 %v3008_v28  ;;  %v1060_v27 = vld [vmem:[%s16178_s23 + $0x1920] sm:$0xff] }
 0x67c   : > { %14557 = vmatprep.subr.bf16.mxu1 %v3024_v29  ;;  %v1068_v28 = vld [vmem:[%s16178_s23 + $0x1960] sm:$0xff]  ;;  %v5027_v29 = vrot.slane %v17635_v5, %v16209_v37 }
 0x67d   : > { %9799 = vmatmul.mubr.bf16.vlgmr.msra.gmra.mrb[192].mxu0 %v5020_v23 }
 0x67e   : > { %9839 = vmatmul.mubr.bf16.vlgmr.msra.gmra.mrb[192].mxu1 %v5042_v32  ;;  %14536 = vmatpush3.bf16.msra.mxu0 %v3000_v24  ;;  %v3023_v32 = vunpack.c.h.s8.bf16 %v1051_v9  ;;  %v3040_v24 = vunpack.c.l.s8.bf16 %v1060_v27  ;;  %v5043_v35 = vcombine.high %v5027_v29, %v5027_v29 }
 0x67f   : > { %14558 = vmatpush3.bf16.msra.mxu1 %v3016_v33  ;;  %14537 = vmatprep.subr.bf16.mxu0 %v3009_v34  ;;  %v3056_v33 = vunpack.c.l.s8.bf16 %v1068_v28  ;;  %v1064_v34 = vld [vmem:[%s16178_s23 + $0x1940] sm:$0xff] }
 0x680   : > { %14559 = vmatprep.subr.bf16.mxu1 %v3025_v22  ;;  %9878 = vmatprep.mubr.bf16.mxu0 %v5041_v31  ;;  %v3007_v31 = vunpack.c.h.s8.bf16 %v1043_v4  ;;  %v5083_v22 = vrot.slane %v5061_v15, %v16209_v37  ;;  %v3048_v36 = vunpack.c.l.s8.bf16 %v1064_v34  ;;  %v3049_v44 = vunpack.c.h.s8.bf16 %v1064_v34  ;;  %v1071_v4 = vld [vmem:[%s16178_s23 + $0x1978] sm:$0xff] }
 0x681   : > { %9918 = vmatprep.mubr.bf16.mxu1 %v5045_v38  ;;  %v3041_v38 = vunpack.c.h.s8.bf16 %v1060_v27  ;;  %v3063_v15 = vunpack.c.h.s8.bf16 %v1071_v4 }
 0x682   : > { %14538 = vmatpush3.bf16.msra.mxu0 %v3001_v41  ;;  %v3057_v41 = vunpack.c.h.s8.bf16 %v1068_v28  ;;  %v5093_v43 = vcombine.high %v5083_v22, %v5083_v22 }
 0x683   : > { %14560 = vmatpush3.bf16.msra.mxu1 %v3017_v42  ;;  %14539 = vmatprep.subr.bf16.mxu0 %v3010_v40  ;;  %v1061_v42 = vld [vmem:[%s16178_s23 + $0x1928] sm:$0xff] }
 0x684   : > { %14561 = vmatprep.subr.bf16.mxu1 %v3026_v30  ;;  %v1069_v40 = vld [vmem:[%s16178_s23 + $0x1968] sm:$0xff] }
 0x686   : > { %14540 = vmatpush3.bf16.msra.mxu0 %v3002_v45  ;;  %v3042_v45 = vunpack.c.l.s8.bf16 %v1061_v42 }
 0x687   : > { %14562 = vmatpush3.bf16.msra.mxu1 %v3018_v46  ;;  %14541 = vmatprep.subr.bf16.mxu0 %v3011_v48  ;;  %v1057_v46 = vld [vmem:[%s16178_s23 + $0x1908] sm:$0xff]  ;;  %v3058_v48 = vunpack.c.l.s8.bf16 %v1069_v40 }
 0x688   : > { %14563 = vmatprep.subr.bf16.mxu1 %v3027_v49  ;;  %v1065_v49 = vld [vmem:[%s16178_s23 + $0x1948] sm:$0xff]  ;;  %v3034_v50 = vunpack.c.l.s8.bf16 %v1057_v46 }
 0x689   : > { %v3050_v51 = vunpack.c.l.s8.bf16 %v1065_v49  ;;  %v3051_v58 = vunpack.c.h.s8.bf16 %v1065_v49 }
 0x68a   : > { %14542 = vmatpush3.bf16.msra.mxu0 %v3003_v39  ;;  %v3043_v39 = vunpack.c.h.s8.bf16 %v1061_v42 }
 0x68b   : > { %14564 = vmatpush3.bf16.msra.mxu1 %v3019_v52  ;;  %14543 = vmatprep.subr.bf16.mxu0 %v3012_v53  ;;  %v3059_v52 = vunpack.c.h.s8.bf16 %v1069_v40  ;;  %v1062_v53 = vld [vmem:[%s16178_s23 + $0x1930] sm:$0xff] }
 0x68c   : > { %14565 = vmatprep.subr.bf16.mxu1 %v3028_v56  ;;  %v3035_v56 = vunpack.c.h.s8.bf16 %v1057_v46 }
 0x68e   : > { %14544 = vmatpush3.bf16.msra.mxu0 %v3004_v59  ;;  %v3044_v59 = vunpack.c.l.s8.bf16 %v1062_v53 }
 0x68f   : > { %14566 = vmatpush3.bf16.msra.mxu1 %v3020_v47  ;;  %14545 = vmatprep.subr.bf16.mxu0 %v3013_v60  ;;  %v1058_v47 = vld [vmem:[%s16178_s23 + $0x1910] sm:$0xff]  ;;  %v3060_v60 = vunpack.c.l.s8.bf16 %v1070_v54 }
 0x690   : > { %14567 = vmatprep.subr.bf16.mxu1 %v3029_v61  ;;  %v14243_v7 = vpop.f32.mrb[168].mxu0  ;;  %v1066_v61 = vld [vmem:[%s16178_s23 + $0x1950] sm:$0xff]  ;;  %v3036_v62 = vunpack.c.l.s8.bf16 %v1058_v47  ;;  %v3037_v9 = vunpack.c.h.s8.bf16 %v1058_v47 }
 0x691   : > { %v14265_v57 = vpop.f32.mrb[168].mxu1  ;;  %v14244_v11 = vpop.f32.mrb[169].mxu0  ;;  %v3052_v63 = vunpack.c.l.s8.bf16 %v1066_v61  ;;  %v1086_v47 = vld [vmem:[%s16178_s23 + $0x19f0] sm:$0xff] }
 0x692   : > { %v14266_v12 = vpop.f32.mrb[169].mxu1  ;;  %v14245_v13 = vadd.f32 %v14244_v11, %v14243_v7  ;;  %v14246_v16 = vpop.f32.mrb[170].mxu0  ;;  %14546 = vmatpush3.bf16.msra.mxu0 %v3005_v2  ;;  %v3045_v2 = vunpack.c.h.s8.bf16 %v1062_v53  ;;  %v3053_v7 = vunpack.c.h.s8.bf16 %v1066_v61  ;;  %v1059_v11 = vld [vmem:[%s16178_s23 + $0x1918] sm:$0xff] }
 0x693   : > { %v14267_v17 = vadd.f32 %v14266_v12, %v14265_v57  ;;  %14568 = vmatpush3.bf16.msra.mxu1 %v3021_v55  ;;  %v14268_v20 = vpop.f32.mrb[170].mxu1  ;;  %v14247_v21 = vpop.f32.mrb[171].mxu0  ;;  %14547 = vmatprep.subr.bf16.mxu0 %v3014_v3  ;;  %v3061_v55 = vunpack.c.h.s8.bf16 %v1070_v54  ;;  %v1063_v3 = vld [vmem:[%s16178_s23 + $0x1938] sm:$0xff]  ;;  %v3062_v12 = vunpack.c.l.s8.bf16 %v1071_v4 }
 0x694   : > { %14569 = vmatprep.subr.bf16.mxu1 %v3030_v8  ;;  %v14269_v23 = vpop.f32.mrb[171].mxu1  ;;  %v9321_v14 = vadd.f32 %v14245_v13, %v17644_v26  ;;  %v1056_v26 = vld [vmem:[%s16178_s23 + $0x1900] sm:$0xff]  ;;  %v5046_v8 = vcombine.high %v17660_v0, %v17660_v0  ;;  %v3046_v57 = vunpack.c.l.s8.bf16 %v1063_v3  ;;  %v1067_v13 = vld [vmem:[%s16178_s23 + $0x1958] sm:$0xff]  ;;  %v3047_v28 = vunpack.c.h.s8.bf16 %v1063_v3 }
 0x695   : > { %v3032_v5 = vunpack.c.l.s8.bf16 %v1056_v26  ;;  %v3033_v30 = vunpack.c.h.s8.bf16 %v1056_v26  ;;  %v3054_v23 = vunpack.c.l.s8.bf16 %v1067_v13 }
 0x696   : > { %v17675_v6 = vadd.f32 %v14267_v17, %v9321_v14  ;;  %14548 = vmatpush3.bf16.msra.mxu0 %v3006_v18  ;;  %v17695_v18 = vrot.slane %v5046_v8, %v16209_v37 }
 0x697   : > { %14570 = vmatpush3.bf16.msra.mxu1 %v3022_v19  ;;  %14549 = vmatprep.subr.bf16.mxu0 %v3015_v10 }
 0x698   : > { %14571 = vmatprep.subr.bf16.mxu1 %v3031_v25  ;;  %v3038_v25 = vunpack.c.l.s8.bf16 %v1059_v11  ;;  %v5062_v26 = vcombine.high %v17695_v18, %v17695_v18 }
 0x69a   : > { %14550 = vmatpush3.bf16.msra.mxu0 %v3007_v31 }
 0x69b   : > { %14572 = vmatpush3.bf16.msra.mxu1 %v3023_v32  ;;  %14579 = vmatprep.subr.bf16.mxu0 %v3040_v24  ;;  %v1076_v32 = vld [vmem:[%s16178_s23 + $0x19a0] sm:$0xff] }
 0x69c   : > { %14601 = vmatprep.subr.bf16.mxu1 %v3056_v33  ;;  %v1084_v24 = vld [vmem:[%s16178_s23 + $0x19e0] sm:$0xff]  ;;  %v5069_v33 = vrot.slane %v17666_v1, %v16209_v37 }
 0x69d   : > { %9879 = vmatmul.mubr.bf16.vlgmr.msra.gmra.mrb[196].mxu0 %v5027_v29 }
 0x69e   : > { %9919 = vmatmul.mubr.bf16.vlgmr.msra.gmra.mrb[196].mxu1 %v5043_v35  ;;  %14580 = vmatpush3.bf16.msra.mxu0 %v3032_v5  ;;  %v3055_v35 = vunpack.c.h.s8.bf16 %v1067_v13  ;;  %v3072_v5 = vunpack.c.l.s8.bf16 %v1076_v32  ;;  %v5091_v42 = vcombine.high %v5069_v33, %v5069_v33 }
 0x69f   : > { %14602 = vmatpush3.bf16.msra.mxu1 %v3048_v36  ;;  %14581 = vmatprep.subr.bf16.mxu0 %v3041_v38  ;;  %v3088_v36 = vunpack.c.l.s8.bf16 %v1084_v24  ;;  %v1080_v38 = vld [vmem:[%s16178_s23 + $0x19c0] sm:$0xff] }
 0x6a0   : > { %14603 = vmatprep.subr.bf16.mxu1 %v3057_v41  ;;  %9958 = vmatprep.mubr.bf16.mxu0 %v5083_v22  ;;  %v3039_v22 = vunpack.c.h.s8.bf16 %v1059_v11  ;;  %v5090_v41 = vrot.slane %v5062_v26, %v16209_v37  ;;  %v3080_v40 = vunpack.c.l.s8.bf16 %v1080_v38  ;;  %v3081_v49 = vunpack.c.h.s8.bf16 %v1080_v38  ;;  %v17720_v11 = vld [vmem:[%s16192_s25 + $0xd0] sm:$0xff] }
 0x6a1   : > { %9998 = vmatprep.mubr.bf16.mxu1 %v5093_v43  ;;  %v3073_v43 = vunpack.c.h.s8.bf16 %v1076_v32 }
 0x6a2   : > { %14582 = vmatpush3.bf16.msra.mxu0 %v3033_v30  ;;  %v3089_v30 = vunpack.c.h.s8.bf16 %v1084_v24  ;;  %v5094_v46 = vcombine.high %v5090_v41, %v5090_v41 }
 0x6a3   : > { %14604 = vmatpush3.bf16.msra.mxu1 %v3049_v44  ;;  %14583 = vmatprep.subr.bf16.mxu0 %v3042_v45  ;;  %v1077_v44 = vld [vmem:[%s16178_s23 + $0x19a8] sm:$0xff] }
 0x6a4   : > { %14605 = vmatprep.subr.bf16.mxu1 %v3058_v48  ;;  %v1085_v45 = vld [vmem:[%s16178_s23 + $0x19e8] sm:$0xff] }
 0x6a6   : > { %14584 = vmatpush3.bf16.msra.mxu0 %v3034_v50  ;;  %v3074_v50 = vunpack.c.l.s8.bf16 %v1077_v44 }
 0x6a7   : > { %14606 = vmatpush3.bf16.msra.mxu1 %v3050_v51  ;;  %14585 = vmatprep.subr.bf16.mxu0 %v3043_v39  ;;  %v1073_v51 = vld [vmem:[%s16178_s23 + $0x1988] sm:$0xff]  ;;  %v3090_v39 = vunpack.c.l.s8.bf16 %v1085_v45 }
 0x6a8   : > { %14607 = vmatprep.subr.bf16.mxu1 %v3059_v52  ;;  %v1081_v52 = vld [vmem:[%s16178_s23 + $0x19c8] sm:$0xff]  ;;  %v3066_v53 = vunpack.c.l.s8.bf16 %v1073_v51 }
 0x6a9   : > { %v3082_v54 = vunpack.c.l.s8.bf16 %v1081_v52  ;;  %v3083_v61 = vunpack.c.h.s8.bf16 %v1081_v52 }
 0x6aa   : > { %14586 = vmatpush3.bf16.msra.mxu0 %v3035_v56  ;;  %v3075_v56 = vunpack.c.h.s8.bf16 %v1077_v44 }
 0x6ab   : > { %14608 = vmatpush3.bf16.msra.mxu1 %v3051_v58  ;;  %14587 = vmatprep.subr.bf16.mxu0 %v3044_v59  ;;  %v3091_v58 = vunpack.c.h.s8.bf16 %v1085_v45  ;;  %v1078_v59 = vld [vmem:[%s16178_s23 + $0x19b0] sm:$0xff] }
 0x6ac   : > { %14609 = vmatprep.subr.bf16.mxu1 %v3060_v60  ;;  %v3067_v60 = vunpack.c.h.s8.bf16 %v1073_v51  ;;  %v3077_v8 = vunpack.c.h.s8.bf16 %v1078_v59 }
 0x6ae   : > { %14588 = vmatpush3.bf16.msra.mxu0 %v3036_v62  ;;  %v3076_v62 = vunpack.c.l.s8.bf16 %v1078_v59 }
 0x6af   : > { %14610 = vmatpush3.bf16.msra.mxu1 %v3052_v63  ;;  %14589 = vmatprep.subr.bf16.mxu0 %v3045_v2  ;;  %v1074_v63 = vld [vmem:[%s16178_s23 + $0x1990] sm:$0xff]  ;;  %v3092_v2 = vunpack.c.l.s8.bf16 %v1086_v47 }
 0x6b0   : > { %14611 = vmatprep.subr.bf16.mxu1 %v3061_v55  ;;  %v14287_v16 = vpop.f32.mrb[172].mxu0  ;;  %v1082_v55 = vld [vmem:[%s16178_s23 + $0x19d0] sm:$0xff]  ;;  %v3068_v3 = vunpack.c.l.s8.bf16 %v1074_v63 }
 0x6b1   : > { %v14309_v17 = vpop.f32.mrb[172].mxu1  ;;  %v14288_v19 = vpop.f32.mrb[173].mxu0  ;;  %v3084_v4 = vunpack.c.l.s8.bf16 %v1082_v55  ;;  %v3085_v13 = vunpack.c.h.s8.bf16 %v1082_v55 }
 0x6b2   : > { %v14310_v20 = vpop.f32.mrb[173].mxu1  ;;  %v14289_v21 = vadd.f32 %v14288_v19, %v14287_v16  ;;  %v14290_v0 = vpop.f32.mrb[174].mxu0  ;;  %14590 = vmatpush3.bf16.msra.mxu0 %v3037_v9  ;;  %v3093_v9 = vunpack.c.h.s8.bf16 %v1086_v47 }
 0x6b3   : > { %v14311_v10 = vadd.f32 %v14310_v20, %v14309_v17  ;;  %14612 = vmatpush3.bf16.msra.mxu1 %v3053_v7  ;;  %v14312_v14 = vpop.f32.mrb[174].mxu1  ;;  %v14291_v27 = vpop.f32.mrb[175].mxu0  ;;  %14591 = vmatprep.subr.bf16.mxu0 %v3046_v57  ;;  %v1079_v7 = vld [vmem:[%s16178_s23 + $0x19b8] sm:$0xff] }
 0x6b4   : > { %14613 = vmatprep.subr.bf16.mxu1 %v3062_v12  ;;  %v14313_v29 = vpop.f32.mrb[175].mxu1  ;;  %v9401_v31 = vadd.f32 %v14289_v21, %v17675_v6  ;;  %v1072_v6 = vld [vmem:[%s16178_s23 + $0x1980] sm:$0xff]  ;;  %v1087_v57 = vld [vmem:[%s16178_s23 + $0x19f8] sm:$0xff]  ;;  %v3069_v12 = vunpack.c.h.s8.bf16 %v1074_v63  ;;  %v3078_v16 = vunpack.c.l.s8.bf16 %v1079_v7  ;;  %v3079_v24 = vunpack.c.h.s8.bf16 %v1079_v7  ;;  %v1102_v63 = vld [vmem:[%s16178_s23 + $0x1a70] sm:$0xff] }
 0x6b5   : > { %v3064_v1 = vunpack.c.l.s8.bf16 %v1072_v6  ;;  %v3065_v48 = vunpack.c.h.s8.bf16 %v1072_v6  ;;  %v1075_v17 = vld [vmem:[%s16178_s23 + $0x1998] sm:$0xff]  ;;  %v3094_v19 = vunpack.c.l.s8.bf16 %v1087_v57  ;;  %v3095_v26 = vunpack.c.h.s8.bf16 %v1087_v57 }
 0x6b6   : > { %v17704_v34 = vadd.f32 %v14311_v10, %v9401_v31  ;;  %14592 = vmatpush3.bf16.msra.mxu0 %v3038_v25  ;;  %v1083_v20 = vld [vmem:[%s16178_s23 + $0x19d8] sm:$0xff]  ;;  %v17726_v10 = vrot.slane %v17720_v11, %v16209_v37 }
 0x6b7   : > { %14614 = vmatpush3.bf16.msra.mxu1 %v3054_v23  ;;  %14593 = vmatprep.subr.bf16.mxu0 %v3047_v28  ;;  %v3086_v29 = vunpack.c.l.s8.bf16 %v1083_v20 }
 0x6b8   : > { %14615 = vmatprep.subr.bf16.mxu1 %v3063_v15  ;;  %v3070_v15 = vunpack.c.l.s8.bf16 %v1075_v17  ;;  %v5110_v6 = vcombine.high %v17726_v10, %v17726_v10 }
 0x6ba   : > { %14594 = vmatpush3.bf16.msra.mxu0 %v3039_v22 }
 0x6bb   : > { %14616 = vmatpush3.bf16.msra.mxu1 %v3055_v35  ;;  %14623 = vmatprep.subr.bf16.mxu0 %v3072_v5  ;;  %v1092_v35 = vld [vmem:[%s16178_s23 + $0x1a20] sm:$0xff] }
 0x6bc   : > { %14645 = vmatprep.subr.bf16.mxu1 %v3088_v36  ;;  %v1100_v5 = vld [vmem:[%s16178_s23 + $0x1a60] sm:$0xff]  ;;  %v5076_v36 = vrot.slane %v17695_v18, %v16209_v37 }
 0x6bd   : > { %9959 = vmatmul.mubr.bf16.vlgmr.msra.gmra.mrb[200].mxu0 %v5069_v33 }
 0x6be   : > { %9999 = vmatmul.mubr.bf16.vlgmr.msra.gmra.mrb[200].mxu1 %v5091_v42  ;;  %14624 = vmatpush3.bf16.msra.mxu0 %v3064_v1  ;;  %v3087_v42 = vunpack.c.h.s8.bf16 %v1083_v20  ;;  %v3104_v1 = vunpack.c.l.s8.bf16 %v1092_v35  ;;  %v5092_v44 = vcombine.high %v5076_v36, %v5076_v36 }
 0x6bf   : > { %14646 = vmatpush3.bf16.msra.mxu1 %v3080_v40  ;;  %14625 = vmatprep.subr.bf16.mxu0 %v3073_v43  ;;  %v3120_v40 = vunpack.c.l.s8.bf16 %v1100_v5  ;;  %v1096_v43 = vld [vmem:[%s16178_s23 + $0x1a40] sm:$0xff] }
 0x6c0   : > { %14647 = vmatprep.subr.bf16.mxu1 %v3089_v30  ;;  %10038 = vmatprep.mubr.bf16.mxu0 %v5090_v41  ;;  %v3071_v41 = vunpack.c.h.s8.bf16 %v1075_v17  ;;  %v5132_v30 = vrot.slane %v5110_v6, %v16209_v37  ;;  %v3112_v45 = vunpack.c.l.s8.bf16 %v1096_v43  ;;  %v3113_v52 = vunpack.c.h.s8.bf16 %v1096_v43  ;;  %v1103_v17 = vld [vmem:[%s16178_s23 + $0x1a78] sm:$0xff] }
 0x6c1   : > { %10078 = vmatprep.mubr.bf16.mxu1 %v5094_v46  ;;  %v3105_v46 = vunpack.c.h.s8.bf16 %v1092_v35  ;;  %v3127_v6 = vunpack.c.h.s8.bf16 %v1103_v17 }
 0x6c2   : > { %14626 = vmatpush3.bf16.msra.mxu0 %v3065_v48  ;;  %v3121_v48 = vunpack.c.h.s8.bf16 %v1100_v5  ;;  %v5142_v51 = vcombine.high %v5132_v30, %v5132_v30 }
 0x6c3   : > { %14648 = vmatpush3.bf16.msra.mxu1 %v3081_v49  ;;  %14627 = vmatprep.subr.bf16.mxu0 %v3074_v50  ;;  %v1093_v49 = vld [vmem:[%s16178_s23 + $0x1a28] sm:$0xff] }
 0x6c4   : > { %14649 = vmatprep.subr.bf16.mxu1 %v3090_v39  ;;  %v1101_v50 = vld [vmem:[%s16178_s23 + $0x1a68] sm:$0xff] }
 0x6c6   : > { %14628 = vmatpush3.bf16.msra.mxu0 %v3066_v53  ;;  %v3106_v53 = vunpack.c.l.s8.bf16 %v1093_v49 }
 0x6c7   : > { %14650 = vmatpush3.bf16.msra.mxu1 %v3082_v54  ;;  %14629 = vmatprep.subr.bf16.mxu0 %v3075_v56  ;;  %v1089_v54 = vld [vmem:[%s16178_s23 + $0x1a08] sm:$0xff]  ;;  %v3122_v56 = vunpack.c.l.s8.bf16 %v1101_v50 }
 0x6c8   : > { %14651 = vmatprep.subr.bf16.mxu1 %v3091_v58  ;;  %v1097_v58 = vld [vmem:[%s16178_s23 + $0x1a48] sm:$0xff]  ;;  %v3098_v59 = vunpack.c.l.s8.bf16 %v1089_v54 }
 0x6c9   : > { %v3114_v47 = vunpack.c.l.s8.bf16 %v1097_v58  ;;  %v3115_v55 = vunpack.c.h.s8.bf16 %v1097_v58 }
 0x6ca   : > { %14630 = vmatpush3.bf16.msra.mxu0 %v3067_v60  ;;  %v3107_v60 = vunpack.c.h.s8.bf16 %v1093_v49 }
 0x6cb   : > { %14652 = vmatpush3.bf16.msra.mxu1 %v3083_v61  ;;  %14631 = vmatprep.subr.bf16.mxu0 %v3076_v62  ;;  %v3123_v61 = vunpack.c.h.s8.bf16 %v1101_v50  ;;  %v1094_v62 = vld [vmem:[%s16178_s23 + $0x1a30] sm:$0xff] }
 0x6cc   : > { %14653 = vmatprep.subr.bf16.mxu1 %v3092_v2  ;;  %v3099_v2 = vunpack.c.h.s8.bf16 %v1089_v54 }
 0x6ce   : > { %14632 = vmatpush3.bf16.msra.mxu0 %v3068_v3  ;;  %v3108_v3 = vunpack.c.l.s8.bf16 %v1094_v62 }
 0x6cf   : > { %14654 = vmatpush3.bf16.msra.mxu1 %v3084_v4  ;;  %14633 = vmatprep.subr.bf16.mxu0 %v3077_v8  ;;  %v1090_v4 = vld [vmem:[%s16178_s23 + $0x1a10] sm:$0xff]  ;;  %v3124_v8 = vunpack.c.l.s8.bf16 %v1102_v63 }
 0x6d0   : > { %14655 = vmatprep.subr.bf16.mxu1 %v3093_v9  ;;  %v14331_v21 = vpop.f32.mrb[176].mxu0  ;;  %v1098_v9 = vld [vmem:[%s16178_s23 + $0x1a50] sm:$0xff]  ;;  %v3100_v7 = vunpack.c.l.s8.bf16 %v1090_v4  ;;  %v3101_v20 = vunpack.c.h.s8.bf16 %v1090_v4 }
 0x6d1   : > { %v14353_v0 = vpop.f32.mrb[176].mxu1  ;;  %v14332_v25 = vpop.f32.mrb[177].mxu0  ;;  %v3116_v57 = vunpack.c.l.s8.bf16 %v1098_v9  ;;  %v1118_v4 = vld [vmem:[%s16178_s23 + $0x1af0] sm:$0xff] }
 0x6d2   : > { %v14354_v23 = vpop.f32.mrb[177].mxu1  ;;  %v14333_v14 = vadd.f32 %v14332_v25, %v14331_v21  ;;  %v14334_v27 = vpop.f32.mrb[178].mxu0  ;;  %14634 = vmatpush3.bf16.msra.mxu0 %v3069_v12  ;;  %v3109_v12 = vunpack.c.h.s8.bf16 %v1094_v62  ;;  %v3117_v21 = vunpack.c.h.s8.bf16 %v1098_v9  ;;  %v1091_v25 = vld [vmem:[%s16178_s23 + $0x1a18] sm:$0xff] }
 0x6d3   : > { %v14355_v28 = vadd.f32 %v14354_v23, %v14353_v0  ;;  %14656 = vmatpush3.bf16.msra.mxu1 %v3085_v13  ;;  %v14356_v31 = vpop.f32.mrb[178].mxu1  ;;  %v14335_v32 = vpop.f32.mrb[179].mxu0  ;;  %14635 = vmatprep.subr.bf16.mxu0 %v3078_v16  ;;  %v3125_v13 = vunpack.c.h.s8.bf16 %v1102_v63  ;;  %v1095_v16 = vld [vmem:[%s16178_s23 + $0x1a38] sm:$0xff]  ;;  %v3126_v23 = vunpack.c.l.s8.bf16 %v1103_v17 }
 0x6d4   : > { %14657 = vmatprep.subr.bf16.mxu1 %v3094_v19  ;;  %v14357_v33 = vpop.f32.mrb[179].mxu1  ;;  %v9481_v22 = vadd.f32 %v14333_v14, %v17704_v34  ;;  %v1088_v34 = vld [vmem:[%s16178_s23 + $0x1a00] sm:$0xff]  ;;  %v5095_v19 = vcombine.high %v17720_v11, %v17720_v11  ;;  %v3110_v0 = vunpack.c.l.s8.bf16 %v1095_v16  ;;  %v1099_v14 = vld [vmem:[%s16178_s23 + $0x1a58] sm:$0xff]  ;;  %v3111_v5 = vunpack.c.h.s8.bf16 %v1095_v16 }
 0x6d5   : > { %v3096_v18 = vunpack.c.l.s8.bf16 %v1088_v34  ;;  %v3097_v39 = vunpack.c.h.s8.bf16 %v1088_v34  ;;  %v3118_v33 = vunpack.c.l.s8.bf16 %v1099_v14 }
 0x6d6   : > { %v17735_v38 = vadd.f32 %v14355_v28, %v9481_v22  ;;  %14636 = vmatpush3.bf16.msra.mxu0 %v3070_v15  ;;  %v17755_v15 = vrot.slane %v5095_v19, %v16209_v37 }
 0x6d7   : > { %14658 = vmatpush3.bf16.msra.mxu1 %v3086_v29  ;;  %14637 = vmatprep.subr.bf16.mxu0 %v3079_v24 }
 0x6d8   : > { %14659 = vmatprep.subr.bf16.mxu1 %v3095_v26  ;;  %v3102_v26 = vunpack.c.l.s8.bf16 %v1091_v25  ;;  %v5111_v34 = vcombine.high %v17755_v15, %v17755_v15 }
 0x6da   : > { %14638 = vmatpush3.bf16.msra.mxu0 %v3071_v41 }
 0x6db   : > { %14660 = vmatpush3.bf16.msra.mxu1 %v3087_v42  ;;  %14667 = vmatprep.subr.bf16.mxu0 %v3104_v1  ;;  %v1108_v42 = vld [vmem:[%s16178_s23 + $0x1aa0] sm:$0xff] }
 0x6dc   : > { %14689 = vmatprep.subr.bf16.mxu1 %v3120_v40  ;;  %v1116_v1 = vld [vmem:[%s16178_s23 + $0x1ae0] sm:$0xff]  ;;  %v5118_v40 = vrot.slane %v17726_v10, %v16209_v37 }
 0x6dd   : > { %10039 = vmatmul.mubr.bf16.vlgmr.msra.gmra.mrb[204].mxu0 %v5076_v36 }
 0x6de   : > { %10079 = vmatmul.mubr.bf16.vlgmr.msra.gmra.mrb[204].mxu1 %v5092_v44  ;;  %14668 = vmatpush3.bf16.msra.mxu0 %v3096_v18  ;;  %v3119_v44 = vunpack.c.h.s8.bf16 %v1099_v14  ;;  %v3136_v18 = vunpack.c.l.s8.bf16 %v1108_v42  ;;  %v5140_v49 = vcombine.high %v5118_v40, %v5118_v40 }
 0x6df   : > { %14690 = vmatpush3.bf16.msra.mxu1 %v3112_v45  ;;  %14669 = vmatprep.subr.bf16.mxu0 %v3105_v46  ;;  %v3152_v45 = vunpack.c.l.s8.bf16 %v1116_v1  ;;  %v1112_v46 = vld [vmem:[%s16178_s23 + $0x1ac0] sm:$0xff] }
 0x6e0   : > { %14691 = vmatprep.subr.bf16.mxu1 %v3121_v48  ;;  %10118 = vmatprep.mubr.bf16.mxu0 %v5132_v30  ;;  %v3103_v30 = vunpack.c.h.s8.bf16 %v1091_v25  ;;  %v5139_v48 = vrot.slane %v5111_v34, %v16209_v37  ;;  %v3144_v50 = vunpack.c.l.s8.bf16 %v1112_v46  ;;  %v3145_v58 = vunpack.c.h.s8.bf16 %v1112_v46  ;;  %v17780_v25 = vld [vmem:[%s16192_s25 + $0xd8] sm:$0xff] }
 0x6e1   : > { %10158 = vmatprep.mubr.bf16.mxu1 %v5142_v51  ;;  %v3137_v51 = vunpack.c.h.s8.bf16 %v1108_v42 }
 0x6e2   : > { %14670 = vmatpush3.bf16.msra.mxu0 %v3097_v39  ;;  %v3153_v39 = vunpack.c.h.s8.bf16 %v1116_v1  ;;  %v5143_v54 = vcombine.high %v5139_v48, %v5139_v48 }
 0x6e3   : > { %14692 = vmatpush3.bf16.msra.mxu1 %v3113_v52  ;;  %14671 = vmatprep.subr.bf16.mxu0 %v3106_v53  ;;  %v1109_v52 = vld [vmem:[%s16178_s23 + $0x1aa8] sm:$0xff] }
 0x6e4   : > { %14693 = vmatprep.subr.bf16.mxu1 %v3122_v56  ;;  %v1117_v53 = vld [vmem:[%s16178_s23 + $0x1ae8] sm:$0xff] }
 0x6e6   : > { %14672 = vmatpush3.bf16.msra.mxu0 %v3098_v59  ;;  %v3138_v59 = vunpack.c.l.s8.bf16 %v1109_v52 }
 0x6e7   : > { %14694 = vmatpush3.bf16.msra.mxu1 %v3114_v47  ;;  %14673 = vmatprep.subr.bf16.mxu0 %v3107_v60  ;;  %v1105_v47 = vld [vmem:[%s16178_s23 + $0x1a88] sm:$0xff]  ;;  %v3154_v60 = vunpack.c.l.s8.bf16 %v1117_v53 }
 0x6e8   : > { %14695 = vmatprep.subr.bf16.mxu1 %v3123_v61  ;;  %v1113_v61 = vld [vmem:[%s16178_s23 + $0x1ac8] sm:$0xff]  ;;  %v3130_v62 = vunpack.c.l.s8.bf16 %v1105_v47 }
 0x6e9   : > { %v3146_v63 = vunpack.c.l.s8.bf16 %v1113_v61  ;;  %v3147_v9 = vunpack.c.h.s8.bf16 %v1113_v61 }
 0x6ea   : > { %14674 = vmatpush3.bf16.msra.mxu0 %v3099_v2  ;;  %v3139_v2 = vunpack.c.h.s8.bf16 %v1109_v52 }
 0x6eb   : > { %14696 = vmatpush3.bf16.msra.mxu1 %v3115_v55  ;;  %14675 = vmatprep.subr.bf16.mxu0 %v3108_v3  ;;  %v3155_v55 = vunpack.c.h.s8.bf16 %v1117_v53  ;;  %v1110_v3 = vld [vmem:[%s16178_s23 + $0x1ab0] sm:$0xff] }
 0x6ec   : > { %14697 = vmatprep.subr.bf16.mxu1 %v3124_v8  ;;  %v3131_v8 = vunpack.c.h.s8.bf16 %v1105_v47  ;;  %v3141_v19 = vunpack.c.h.s8.bf16 %v1110_v3 }
 0x6ee   : > { %14676 = vmatpush3.bf16.msra.mxu0 %v3100_v7  ;;  %v3140_v7 = vunpack.c.l.s8.bf16 %v1110_v3 }
 0x6ef   : > { %14698 = vmatpush3.bf16.msra.mxu1 %v3116_v57  ;;  %14677 = vmatprep.subr.bf16.mxu0 %v3109_v12  ;;  %v1106_v57 = vld [vmem:[%s16178_s23 + $0x1a90] sm:$0xff]  ;;  %v3156_v12 = vunpack.c.l.s8.bf16 %v1118_v4 }
 0x6f0   : > { %14699 = vmatprep.subr.bf16.mxu1 %v3125_v13  ;;  %v14375_v27 = vpop.f32.mrb[180].mxu0  ;;  %v1114_v13 = vld [vmem:[%s16178_s23 + $0x1ad0] sm:$0xff]  ;;  %v3132_v16 = vunpack.c.l.s8.bf16 %v1106_v57 }
 0x6f1   : > { %v14397_v28 = vpop.f32.mrb[180].mxu1  ;;  %v14376_v29 = vpop.f32.mrb[181].mxu0  ;;  %v3148_v17 = vunpack.c.l.s8.bf16 %v1114_v13  ;;  %v3149_v14 = vunpack.c.h.s8.bf16 %v1114_v13 }
 0x6f2   : > { %v14398_v31 = vpop.f32.mrb[181].mxu1  ;;  %v14377_v32 = vadd.f32 %v14376_v29, %v14375_v27  ;;  %v14378_v11 = vpop.f32.mrb[182].mxu0  ;;  %14678 = vmatpush3.bf16.msra.mxu0 %v3101_v20  ;;  %v3157_v20 = vunpack.c.h.s8.bf16 %v1118_v4 }
 0x6f3   : > { %v14399_v24 = vadd.f32 %v14398_v31, %v14397_v28  ;;  %14700 = vmatpush3.bf16.msra.mxu1 %v3117_v21  ;;  %v14400_v22 = vpop.f32.mrb[182].mxu1  ;;  %v14379_v35 = vpop.f32.mrb[183].mxu0  ;;  %14679 = vmatprep.subr.bf16.mxu0 %v3110_v0  ;;  %v1111_v21 = vld [vmem:[%s16178_s23 + $0x1ab8] sm:$0xff] }
 0x6f4   : > { %14701 = vmatprep.subr.bf16.mxu1 %v3126_v23  ;;  %v14401_v36 = vpop.f32.mrb[183].mxu1  ;;  %v9561_v41 = vadd.f32 %v14377_v32, %v17735_v38  ;;  %v1104_v38 = vld [vmem:[%s16178_s23 + $0x1a80] sm:$0xff]  ;;  %v1119_v0 = vld [vmem:[%s16178_s23 + $0x1af8] sm:$0xff]  ;;  %v3133_v23 = vunpack.c.h.s8.bf16 %v1106_v57  ;;  %v3142_v27 = vunpack.c.l.s8.bf16 %v1111_v21  ;;  %v3143_v1 = vunpack.c.h.s8.bf16 %v1111_v21  ;;  %v1134_v57 = vld [vmem:[%s16178_s23 + $0x1b70] sm:$0xff] }
 0x6f5   : > { %v3128_v10 = vunpack.c.l.s8.bf16 %v1104_v38  ;;  %v3129_v56 = vunpack.c.h.s8.bf16 %v1104_v38  ;;  %v1107_v28 = vld [vmem:[%s16178_s23 + $0x1a98] sm:$0xff]  ;;  %v3158_v29 = vunpack.c.l.s8.bf16 %v1119_v0  ;;  %v3159_v34 = vunpack.c.h.s8.bf16 %v1119_v0 }
 0x6f6   : > { %v17764_v43 = vadd.f32 %v14399_v24, %v9561_v41  ;;  %14680 = vmatpush3.bf16.msra.mxu0 %v3102_v26  ;;  %v1115_v31 = vld [vmem:[%s16178_s23 + $0x1ad8] sm:$0xff]  ;;  %v17786_v24 = vrot.slane %v17780_v25, %v16209_v37 }
 0x6f7   : > { %14702 = vmatpush3.bf16.msra.mxu1 %v3118_v33  ;;  %14681 = vmatprep.subr.bf16.mxu0 %v3111_v5  ;;  %v3150_v36 = vunpack.c.l.s8.bf16 %v1115_v31 }
 0x6f8   : > { %14703 = vmatprep.subr.bf16.mxu1 %v3127_v6  ;;  %v3134_v6 = vunpack.c.l.s8.bf16 %v1107_v28  ;;  %v5159_v38 = vcombine.high %v17786_v24, %v17786_v24 }
 0x6fa   : > { %14682 = vmatpush3.bf16.msra.mxu0 %v3103_v30 }
 0x6fb   : > { %14704 = vmatpush3.bf16.msra.mxu1 %v3119_v44  ;;  %14711 = vmatprep.subr.bf16.mxu0 %v3136_v18  ;;  %v1124_v44 = vld [vmem:[%s16178_s23 + $0x1b20] sm:$0xff] }
 0x6fc   : > { %14733 = vmatprep.subr.bf16.mxu1 %v3152_v45  ;;  %v1132_v18 = vld [vmem:[%s16178_s23 + $0x1b60] sm:$0xff]  ;;  %v5125_v45 = vrot.slane %v17755_v15, %v16209_v37 }
 0x6fd   : > { %10119 = vmatmul.mubr.bf16.vlgmr.msra.gmra.mrb[208].mxu0 %v5118_v40 }
 0x6fe   : > { %10159 = vmatmul.mubr.bf16.vlgmr.msra.gmra.mrb[208].mxu1 %v5140_v49  ;;  %14712 = vmatpush3.bf16.msra.mxu0 %v3128_v10  ;;  %v3151_v49 = vunpack.c.h.s8.bf16 %v1115_v31  ;;  %v3168_v10 = vunpack.c.l.s8.bf16 %v1124_v44  ;;  %v5141_v52 = vcombine.high %v5125_v45, %v5125_v45 }
 0x6ff   : > { %14734 = vmatpush3.bf16.msra.mxu1 %v3144_v50  ;;  %14713 = vmatprep.subr.bf16.mxu0 %v3137_v51  ;;  %v3184_v50 = vunpack.c.l.s8.bf16 %v1132_v18  ;;  %v1128_v51 = vld [vmem:[%s16178_s23 + $0x1b40] sm:$0xff] }
 0x700   : > { %14735 = vmatprep.subr.bf16.mxu1 %v3153_v39  ;;  %10198 = vmatprep.mubr.bf16.mxu0 %v5139_v48  ;;  %v3135_v48 = vunpack.c.h.s8.bf16 %v1107_v28  ;;  %v5181_v39 = vrot.slane %v5159_v38, %v16209_v37  ;;  %v3176_v53 = vunpack.c.l.s8.bf16 %v1128_v51  ;;  %v3177_v61 = vunpack.c.h.s8.bf16 %v1128_v51  ;;  %v1135_v28 = vld [vmem:[%s16178_s23 + $0x1b78] sm:$0xff] }
 0x701   : > { %10238 = vmatprep.mubr.bf16.mxu1 %v5143_v54  ;;  %v3169_v54 = vunpack.c.h.s8.bf16 %v1124_v44  ;;  %v3191_v38 = vunpack.c.h.s8.bf16 %v1135_v28 }
 0x702   : > { %14714 = vmatpush3.bf16.msra.mxu0 %v3129_v56  ;;  %v3185_v56 = vunpack.c.h.s8.bf16 %v1132_v18  ;;  %v5191_v47 = vcombine.high %v5181_v39, %v5181_v39 }
 0x703   : > { %14736 = vmatpush3.bf16.msra.mxu1 %v3145_v58  ;;  %14715 = vmatprep.subr.bf16.mxu0 %v3138_v59  ;;  %v1125_v58 = vld [vmem:[%s16178_s23 + $0x1b28] sm:$0xff] }
 0x704   : > { %14737 = vmatprep.subr.bf16.mxu1 %v3154_v60  ;;  %v1133_v59 = vld [vmem:[%s16178_s23 + $0x1b68] sm:$0xff] }
 0x706   : > { %14716 = vmatpush3.bf16.msra.mxu0 %v3130_v62  ;;  %v3170_v62 = vunpack.c.l.s8.bf16 %v1125_v58 }
 0x707   : > { %14738 = vmatpush3.bf16.msra.mxu1 %v3146_v63  ;;  %14717 = vmatprep.subr.bf16.mxu0 %v3139_v2  ;;  %v1121_v63 = vld [vmem:[%s16178_s23 + $0x1b08] sm:$0xff]  ;;  %v3186_v2 = vunpack.c.l.s8.bf16 %v1133_v59 }
 0x708   : > { %14739 = vmatprep.subr.bf16.mxu1 %v3155_v55  ;;  %v1129_v55 = vld [vmem:[%s16178_s23 + $0x1b48] sm:$0xff]  ;;  %v3162_v3 = vunpack.c.l.s8.bf16 %v1121_v63 }
 0x709   : > { %v3178_v4 = vunpack.c.l.s8.bf16 %v1129_v55  ;;  %v3179_v13 = vunpack.c.h.s8.bf16 %v1129_v55 }
 0x70a   : > { %14718 = vmatpush3.bf16.msra.mxu0 %v3131_v8  ;;  %v3171_v8 = vunpack.c.h.s8.bf16 %v1125_v58 }
 0x70b   : > { %14740 = vmatpush3.bf16.msra.mxu1 %v3147_v9  ;;  %14719 = vmatprep.subr.bf16.mxu0 %v3140_v7  ;;  %v3187_v9 = vunpack.c.h.s8.bf16 %v1133_v59  ;;  %v1126_v7 = vld [vmem:[%s16178_s23 + $0x1b30] sm:$0xff] }
 0x70c   : > { %14741 = vmatprep.subr.bf16.mxu1 %v3156_v12  ;;  %v3163_v12 = vunpack.c.h.s8.bf16 %v1121_v63 }
 0x70e   : > { %14720 = vmatpush3.bf16.msra.mxu0 %v3132_v16  ;;  %v3172_v16 = vunpack.c.l.s8.bf16 %v1126_v7 }
 0x70f   : > { %14742 = vmatpush3.bf16.msra.mxu1 %v3148_v17  ;;  %14721 = vmatprep.subr.bf16.mxu0 %v3141_v19  ;;  %v1122_v17 = vld [vmem:[%s16178_s23 + $0x1b10] sm:$0xff]  ;;  %v3188_v19 = vunpack.c.l.s8.bf16 %v1134_v57 }
 0x710   : > { %14743 = vmatprep.subr.bf16.mxu1 %v3157_v20  ;;  %v14419_v32 = vpop.f32.mrb[184].mxu0  ;;  %v1130_v20 = vld [vmem:[%s16178_s23 + $0x1b50] sm:$0xff]  ;;  %v3164_v21 = vunpack.c.l.s8.bf16 %v1122_v17  ;;  %v3165_v31 = vunpack.c.h.s8.bf16 %v1122_v17 }
 0x711   : > { %v14441_v11 = vpop.f32.mrb[184].mxu1  ;;  %v14420_v26 = vpop.f32.mrb[185].mxu0  ;;  %v3180_v0 = vunpack.c.l.s8.bf16 %v1130_v20  ;;  %v1150_v17 = vld [vmem:[%s16178_s23 + $0x1bf0] sm:$0xff] }
 0x712   : > { %v14442_v33 = vpop.f32.mrb[185].mxu1  ;;  %v14421_v22 = vadd.f32 %v14420_v26, %v14419_v32  ;;  %v14422_v35 = vpop.f32.mrb[186].mxu0  ;;  %14722 = vmatpush3.bf16.msra.mxu0 %v3133_v23  ;;  %v3173_v23 = vunpack.c.h.s8.bf16 %v1126_v7  ;;  %v3181_v32 = vunpack.c.h.s8.bf16 %v1130_v20  ;;  %v1123_v26 = vld [vmem:[%s16178_s23 + $0x1b18] sm:$0xff] }
 0x713   : > { %v14443_v5 = vadd.f32 %v14442_v33, %v14441_v11  ;;  %14744 = vmatpush3.bf16.msra.mxu1 %v3149_v14  ;;  %v14444_v41 = vpop.f32.mrb[186].mxu1  ;;  %v14423_v42 = vpop.f32.mrb[187].mxu0  ;;  %14723 = vmatprep.subr.bf16.mxu0 %v3142_v27  ;;  %v3189_v14 = vunpack.c.h.s8.bf16 %v1134_v57  ;;  %v1127_v27 = vld [vmem:[%s16178_s23 + $0x1b38] sm:$0xff]  ;;  %v3190_v33 = vunpack.c.l.s8.bf16 %v1135_v28 }
 0x714   : > { %14745 = vmatprep.subr.bf16.mxu1 %v3158_v29  ;;  %v14445_v40 = vpop.f32.mrb[187].mxu1  ;;  %v9641_v30 = vadd.f32 %v14421_v22, %v17764_v43  ;;  %v1120_v43 = vld [vmem:[%s16178_s23 + $0x1b00] sm:$0xff]  ;;  %v5144_v29 = vcombine.high %v17780_v25, %v17780_v25  ;;  %v3174_v11 = vunpack.c.l.s8.bf16 %v1127_v27  ;;  %v1131_v22 = vld [vmem:[%s16178_s23 + $0x1b58] sm:$0xff]  ;;  %v3175_v18 = vunpack.c.h.s8.bf16 %v1127_v27 }
 0x715   : > { %v3160_v15 = vunpack.c.l.s8.bf16 %v1120_v43  ;;  %v3161_v60 = vunpack.c.h.s8.bf16 %v1120_v43  ;;  %v3182_v40 = vunpack.c.l.s8.bf16 %v1131_v22 }
 0x716   : > { %v17795_v46 = vadd.f32 %v14443_v5, %v9641_v30  ;;  %14724 = vmatpush3.bf16.msra.mxu0 %v3134_v6  ;;  %v17815_v6 = vrot.slane %v5144_v29, %v16209_v37 }
 0x717   : > { %14746 = vmatpush3.bf16.msra.mxu1 %v3150_v36  ;;  %14725 = vmatprep.subr.bf16.mxu0 %v3143_v1 }
 0x718   : > { %14747 = vmatprep.subr.bf16.mxu1 %v3159_v34  ;;  %v3166_v34 = vunpack.c.l.s8.bf16 %v1123_v26  ;;  %v5160_v43 = vcombine.high %v17815_v6, %v17815_v6 }
 0x71a   : > { %14726 = vmatpush3.bf16.msra.mxu0 %v3135_v48 }
 0x71b   : > { %14748 = vmatpush3.bf16.msra.mxu1 %v3151_v49  ;;  %14755 = vmatprep.subr.bf16.mxu0 %v3168_v10  ;;  %v1140_v49 = vld [vmem:[%s16178_s23 + $0x1ba0] sm:$0xff] }
 0x71c   : > { %14777 = vmatprep.subr.bf16.mxu1 %v3184_v50  ;;  %v1148_v10 = vld [vmem:[%s16178_s23 + $0x1be0] sm:$0xff]  ;;  %v5167_v50 = vrot.slane %v17786_v24, %v16209_v37 }
 0x71d   : > { %10199 = vmatmul.mubr.bf16.vlgmr.msra.gmra.mrb[212].mxu0 %v5125_v45 }
 0x71e   : > { %10239 = vmatmul.mubr.bf16.vlgmr.msra.gmra.mrb[212].mxu1 %v5141_v52  ;;  %14756 = vmatpush3.bf16.msra.mxu0 %v3160_v15  ;;  %v3183_v52 = vunpack.c.h.s8.bf16 %v1131_v22  ;;  %v3200_v15 = vunpack.c.l.s8.bf16 %v1140_v49  ;;  %v5189_v58 = vcombine.high %v5167_v50, %v5167_v50 }
 0x71f   : > { %14778 = vmatpush3.bf16.msra.mxu1 %v3176_v53  ;;  %14757 = vmatprep.subr.bf16.mxu0 %v3169_v54  ;;  %v3216_v53 = vunpack.c.l.s8.bf16 %v1148_v10  ;;  %v1144_v54 = vld [vmem:[%s16178_s23 + $0x1bc0] sm:$0xff] }
 0x720   : > { %14779 = vmatprep.subr.bf16.mxu1 %v3185_v56  ;;  %10278 = vmatprep.mubr.bf16.mxu0 %v5181_v39  ;;  %v3167_v39 = vunpack.c.h.s8.bf16 %v1123_v26  ;;  %v5188_v56 = vrot.slane %v5160_v43, %v16209_v37  ;;  %v3208_v59 = vunpack.c.l.s8.bf16 %v1144_v54  ;;  %v3209_v55 = vunpack.c.h.s8.bf16 %v1144_v54  ;;  %v17840_v26 = vld [vmem:[%s16192_s25 + $0xe0] sm:$0xff] }
 0x721   : > { %10318 = vmatprep.mubr.bf16.mxu1 %v5191_v47  ;;  %v3201_v47 = vunpack.c.h.s8.bf16 %v1140_v49 }
 0x722   : > { %14758 = vmatpush3.bf16.msra.mxu0 %v3161_v60  ;;  %v3217_v60 = vunpack.c.h.s8.bf16 %v1148_v10  ;;  %v5192_v63 = vcombine.high %v5188_v56, %v5188_v56 }
 0x723   : > { %14780 = vmatpush3.bf16.msra.mxu1 %v3177_v61  ;;  %14759 = vmatprep.subr.bf16.mxu0 %v3170_v62  ;;  %v1141_v61 = vld [vmem:[%s16178_s23 + $0x1ba8] sm:$0xff] }
 0x724   : > { %14781 = vmatprep.subr.bf16.mxu1 %v3186_v2  ;;  %v1149_v62 = vld [vmem:[%s16178_s23 + $0x1be8] sm:$0xff] }
 0x726   : > { %14760 = vmatpush3.bf16.msra.mxu0 %v3162_v3  ;;  %v3202_v3 = vunpack.c.l.s8.bf16 %v1141_v61 }
 0x727   : > { %14782 = vmatpush3.bf16.msra.mxu1 %v3178_v4  ;;  %14761 = vmatprep.subr.bf16.mxu0 %v3171_v8  ;;  %v1137_v4 = vld [vmem:[%s16178_s23 + $0x1b88] sm:$0xff]  ;;  %v3218_v8 = vunpack.c.l.s8.bf16 %v1149_v62 }
 0x728   : > { %14783 = vmatprep.subr.bf16.mxu1 %v3187_v9  ;;  %v1145_v9 = vld [vmem:[%s16178_s23 + $0x1bc8] sm:$0xff]  ;;  %v3194_v7 = vunpack.c.l.s8.bf16 %v1137_v4 }
 0x729   : > { %v3210_v57 = vunpack.c.l.s8.bf16 %v1145_v9  ;;  %v3211_v20 = vunpack.c.h.s8.bf16 %v1145_v9 }
 0x72a   : > { %14762 = vmatpush3.bf16.msra.mxu0 %v3163_v12  ;;  %v3203_v12 = vunpack.c.h.s8.bf16 %v1141_v61 }
 0x72b   : > { %14784 = vmatpush3.bf16.msra.mxu1 %v3179_v13  ;;  %14763 = vmatprep.subr.bf16.mxu0 %v3172_v16  ;;  %v3219_v13 = vunpack.c.h.s8.bf16 %v1149_v62  ;;  %v1142_v16 = vld [vmem:[%s16178_s23 + $0x1bb0] sm:$0xff] }
 0x72c   : > { %14785 = vmatprep.subr.bf16.mxu1 %v3188_v19  ;;  %v3195_v19 = vunpack.c.h.s8.bf16 %v1137_v4  ;;  %v3205_v29 = vunpack.c.h.s8.bf16 %v1142_v16 }
 0x72e   : > { %14764 = vmatpush3.bf16.msra.mxu0 %v3164_v21  ;;  %v3204_v21 = vunpack.c.l.s8.bf16 %v1142_v16 }
 0x72f   : > { %14786 = vmatpush3.bf16.msra.mxu1 %v3180_v0  ;;  %14765 = vmatprep.subr.bf16.mxu0 %v3173_v23  ;;  %v1138_v0 = vld [vmem:[%s16178_s23 + $0x1b90] sm:$0xff]  ;;  %v3220_v23 = vunpack.c.l.s8.bf16 %v1150_v17 }
 0x730   : > { %14787 = vmatprep.subr.bf16.mxu1 %v3189_v14  ;;  %v14463_v35 = vpop.f32.mrb[188].mxu0  ;;  %v1146_v14 = vld [vmem:[%s16178_s23 + $0x1bd0] sm:$0xff]  ;;  %v3196_v27 = vunpack.c.l.s8.bf16 %v1138_v0 }
 0x731   : > { %v14485_v5 = vpop.f32.mrb[188].mxu1  ;;  %v14464_v36 = vpop.f32.mrb[189].mxu0  ;;  %v3212_v28 = vunpack.c.l.s8.bf16 %v1146_v14  ;;  %v3213_v22 = vunpack.c.h.s8.bf16 %v1146_v14 }
 0x732   : > { %v14486_v41 = vpop.f32.mrb[189].mxu1  ;;  %v14465_v42 = vadd.f32 %v14464_v36, %v14463_v35  ;;  %v14466_v25 = vpop.f32.mrb[190].mxu0  ;;  %14766 = vmatpush3.bf16.msra.mxu0 %v3165_v31  ;;  %v3221_v31 = vunpack.c.h.s8.bf16 %v1150_v17 }
 0x733   : > { %v14487_v1 = vadd.f32 %v14486_v41, %v14485_v5  ;;  %14788 = vmatpush3.bf16.msra.mxu1 %v3181_v32  ;;  %v14488_v30 = vpop.f32.mrb[190].mxu1  ;;  %v14467_v44 = vpop.f32.mrb[191].mxu0  ;;  %14767 = vmatprep.subr.bf16.mxu0 %v3174_v11  ;;  %v1143_v32 = vld [vmem:[%s16178_s23 + $0x1bb8] sm:$0xff] }
 0x734   : > { %14789 = vmatprep.subr.bf16.mxu1 %v3190_v33  ;;  %v14489_v45 = vpop.f32.mrb[191].mxu1  ;;  %v9721_v48 = vadd.f32 %v14465_v42, %v17795_v46  ;;  %v1136_v46 = vld [vmem:[%s16178_s23 + $0x1b80] sm:$0xff]  ;;  %v1151_v11 = vld [vmem:[%s16178_s23 + $0x1bf8] sm:$0xff]  ;;  %v3197_v33 = vunpack.c.h.s8.bf16 %v1138_v0  ;;  %v3206_v35 = vunpack.c.l.s8.bf16 %v1143_v32  ;;  %v3207_v10 = vunpack.c.h.s8.bf16 %v1143_v32  ;;  %v1166_v0 = vld [vmem:[%s16178_s23 + $0x1c70] sm:$0xff] }
 0x735   : > { %v3192_v24 = vunpack.c.l.s8.bf16 %v1136_v46  ;;  %v3193_v2 = vunpack.c.h.s8.bf16 %v1136_v46  ;;  %v1139_v5 = vld [vmem:[%s16178_s23 + $0x1b98] sm:$0xff]  ;;  %v3222_v36 = vunpack.c.l.s8.bf16 %v1151_v11  ;;  %v3223_v43 = vunpack.c.h.s8.bf16 %v1151_v11 }
 0x736   : > { %v17824_v51 = vadd.f32 %v14487_v1, %v9721_v48  ;;  %14768 = vmatpush3.bf16.msra.mxu0 %v3166_v34  ;;  %v1147_v41 = vld [vmem:[%s16178_s23 + $0x1bd8] sm:$0xff]  ;;  %v17846_v1 = vrot.slane %v17840_v26, %v16209_v37 }
 0x737   : > { %14790 = vmatpush3.bf16.msra.mxu1 %v3182_v40  ;;  %14769 = vmatprep.subr.bf16.mxu0 %v3175_v18  ;;  %v3214_v45 = vunpack.c.l.s8.bf16 %v1147_v41 }
 0x738   : > { %14791 = vmatprep.subr.bf16.mxu1 %v3191_v38  ;;  %v3198_v38 = vunpack.c.l.s8.bf16 %v1139_v5  ;;  %v5208_v46 = vcombine.high %v17846_v1, %v17846_v1 }
 0x73a   : > { %14770 = vmatpush3.bf16.msra.mxu0 %v3167_v39 }
 0x73b   : > { %14792 = vmatpush3.bf16.msra.mxu1 %v3183_v52  ;;  %14799 = vmatprep.subr.bf16.mxu0 %v3200_v15  ;;  %v1156_v52 = vld [vmem:[%s16178_s23 + $0x1c20] sm:$0xff] }
 0x73c   : > { %14821 = vmatprep.subr.bf16.mxu1 %v3216_v53  ;;  %v1164_v15 = vld [vmem:[%s16178_s23 + $0x1c60] sm:$0xff]  ;;  %v5174_v53 = vrot.slane %v17815_v6, %v16209_v37 }
 0x73d   : > { %10279 = vmatmul.mubr.bf16.vlgmr.msra.gmra.mrb[216].mxu0 %v5167_v50 }
 0x73e   : > { %10319 = vmatmul.mubr.bf16.vlgmr.msra.gmra.mrb[216].mxu1 %v5189_v58  ;;  %14800 = vmatpush3.bf16.msra.mxu0 %v3192_v24  ;;  %v3215_v58 = vunpack.c.h.s8.bf16 %v1147_v41  ;;  %v3232_v24 = vunpack.c.l.s8.bf16 %v1156_v52  ;;  %v5190_v61 = vcombine.high %v5174_v53, %v5174_v53 }
 0x73f   : > { %14822 = vmatpush3.bf16.msra.mxu1 %v3208_v59  ;;  %14801 = vmatprep.subr.bf16.mxu0 %v3201_v47  ;;  %v3248_v59 = vunpack.c.l.s8.bf16 %v1164_v15  ;;  %v1160_v47 = vld [vmem:[%s16178_s23 + $0x1c40] sm:$0xff] }
 0x740   : > { %14823 = vmatprep.subr.bf16.mxu1 %v3217_v60  ;;  %10358 = vmatprep.mubr.bf16.mxu0 %v5188_v56  ;;  %v3199_v56 = vunpack.c.h.s8.bf16 %v1139_v5  ;;  %v5230_v60 = vrot.slane %v5208_v46, %v16209_v37  ;;  %v3240_v62 = vunpack.c.l.s8.bf16 %v1160_v47  ;;  %v3241_v9 = vunpack.c.h.s8.bf16 %v1160_v47  ;;  %v1167_v5 = vld [vmem:[%s16178_s23 + $0x1c78] sm:$0xff] }
 0x741   : > { %10398 = vmatprep.mubr.bf16.mxu1 %v5192_v63  ;;  %v3233_v63 = vunpack.c.h.s8.bf16 %v1156_v52  ;;  %v3255_v46 = vunpack.c.h.s8.bf16 %v1167_v5 }
 0x742   : > { %14802 = vmatpush3.bf16.msra.mxu0 %v3193_v2  ;;  %v3249_v2 = vunpack.c.h.s8.bf16 %v1164_v15  ;;  %v5240_v4 = vcombine.high %v5230_v60, %v5230_v60 }
 0x743   : > { %14824 = vmatpush3.bf16.msra.mxu1 %v3209_v55  ;;  %14803 = vmatprep.subr.bf16.mxu0 %v3202_v3  ;;  %v1157_v55 = vld [vmem:[%s16178_s23 + $0x1c28] sm:$0xff] }
 0x744   : > { %14825 = vmatprep.subr.bf16.mxu1 %v3218_v8  ;;  %v1165_v3 = vld [vmem:[%s16178_s23 + $0x1c68] sm:$0xff] }
 0x746   : > { %14804 = vmatpush3.bf16.msra.mxu0 %v3194_v7  ;;  %v3234_v7 = vunpack.c.l.s8.bf16 %v1157_v55 }
 0x747   : > { %14826 = vmatpush3.bf16.msra.mxu1 %v3210_v57  ;;  %14805 = vmatprep.subr.bf16.mxu0 %v3203_v12  ;;  %v1153_v57 = vld [vmem:[%s16178_s23 + $0x1c08] sm:$0xff]  ;;  %v3250_v12 = vunpack.c.l.s8.bf16 %v1165_v3 }
 0x748   : > { %14827 = vmatprep.subr.bf16.mxu1 %v3219_v13  ;;  %v1161_v13 = vld [vmem:[%s16178_s23 + $0x1c48] sm:$0xff]  ;;  %v3226_v16 = vunpack.c.l.s8.bf16 %v1153_v57 }
 0x749   : > { %v3242_v17 = vunpack.c.l.s8.bf16 %v1161_v13  ;;  %v3243_v14 = vunpack.c.h.s8.bf16 %v1161_v13 }
 0x74a   : > { %14806 = vmatpush3.bf16.msra.mxu0 %v3195_v19  ;;  %v3235_v19 = vunpack.c.h.s8.bf16 %v1157_v55 }
 0x74b   : > { %14828 = vmatpush3.bf16.msra.mxu1 %v3211_v20  ;;  %14807 = vmatprep.subr.bf16.mxu0 %v3204_v21  ;;  %v3251_v20 = vunpack.c.h.s8.bf16 %v1165_v3  ;;  %v1158_v21 = vld [vmem:[%s16178_s23 + $0x1c30] sm:$0xff] }
 0x74c   : > { %14829 = vmatprep.subr.bf16.mxu1 %v3220_v23  ;;  %v3227_v23 = vunpack.c.h.s8.bf16 %v1153_v57 }
 0x74e   : > { %14808 = vmatpush3.bf16.msra.mxu0 %v3196_v27  ;;  %v3236_v27 = vunpack.c.l.s8.bf16 %v1158_v21 }
 0x74f   : > { %14830 = vmatpush3.bf16.msra.mxu1 %v3212_v28  ;;  %14809 = vmatprep.subr.bf16.mxu0 %v3205_v29  ;;  %v1154_v28 = vld [vmem:[%s16178_s23 + $0x1c10] sm:$0xff]  ;;  %v3252_v29 = vunpack.c.l.s8.bf16 %v1166_v0 }
 0x750   : > { %14831 = vmatprep.subr.bf16.mxu1 %v3221_v31  ;;  %v14507_v42 = vpop.f32.mrb[192].mxu0  ;;  %v1162_v31 = vld [vmem:[%s16178_s23 + $0x1c50] sm:$0xff]  ;;  %v3228_v32 = vunpack.c.l.s8.bf16 %v1154_v28  ;;  %v3229_v41 = vunpack.c.h.s8.bf16 %v1154_v28 }
 0x751   : > { %v14529_v25 = vpop.f32.mrb[192].mxu1  ;;  %v14508_v34 = vpop.f32.mrb[193].mxu0  ;;  %v3244_v11 = vunpack.c.l.s8.bf16 %v1162_v31  ;;  %v1182_v28 = vld [vmem:[%s16178_s23 + $0x1cf0] sm:$0xff] }
 0x752   : > { %v14530_v40 = vpop.f32.mrb[193].mxu1  ;;  %v14509_v30 = vadd.f32 %v14508_v34, %v14507_v42  ;;  %v14510_v44 = vpop.f32.mrb[194].mxu0  ;;  %14810 = vmatpush3.bf16.msra.mxu0 %v3197_v33  ;;  %v3237_v33 = vunpack.c.h.s8.bf16 %v1158_v21  ;;  %v3245_v42 = vunpack.c.h.s8.bf16 %v1162_v31  ;;  %v1155_v34 = vld [vmem:[%s16178_s23 + $0x1c18] sm:$0xff] }
 0x753   : > { %v14531_v18 = vadd.f32 %v14530_v40, %v14529_v25  ;;  %14832 = vmatpush3.bf16.msra.mxu1 %v3213_v22  ;;  %v14532_v48 = vpop.f32.mrb[194].mxu1  ;;  %v14511_v49 = vpop.f32.mrb[195].mxu0  ;;  %14811 = vmatprep.subr.bf16.mxu0 %v3206_v35  ;;  %v3253_v22 = vunpack.c.h.s8.bf16 %v1166_v0  ;;  %v1159_v35 = vld [vmem:[%s16178_s23 + $0x1c38] sm:$0xff]  ;;  %v3254_v40 = vunpack.c.l.s8.bf16 %v1167_v5 }
 0x754   : > { %14833 = vmatprep.subr.bf16.mxu1 %v3222_v36  ;;  %v14533_v50 = vpop.f32.mrb[195].mxu1  ;;  %v9801_v39 = vadd.f32 %v14509_v30, %v17824_v51  ;;  %v1152_v51 = vld [vmem:[%s16178_s23 + $0x1c00] sm:$0xff]  ;;  %v5193_v36 = vcombine.high %v17840_v26, %v17840_v26  ;;  %v3238_v25 = vunpack.c.l.s8.bf16 %v1159_v35  ;;  %v1163_v30 = vld [vmem:[%s16178_s23 + $0x1c58] sm:$0xff]  ;;  %v3239_v15 = vunpack.c.h.s8.bf16 %v1159_v35 }
 0x755   : > { %v3224_v6 = vunpack.c.l.s8.bf16 %v1152_v51  ;;  %v3225_v8 = vunpack.c.h.s8.bf16 %v1152_v51  ;;  %v3246_v50 = vunpack.c.l.s8.bf16 %v1163_v30 }
 0x756   : > { %v17855_v54 = vadd.f32 %v14531_v18, %v9801_v39  ;;  %14812 = vmatpush3.bf16.msra.mxu0 %v3198_v38  ;;  %v17875_v38 = vrot.slane %v5193_v36, %v16209_v37 }
 0x757   : > { %14834 = vmatpush3.bf16.msra.mxu1 %v3214_v45  ;;  %14813 = vmatprep.subr.bf16.mxu0 %v3207_v10 }
 0x758   : > { %14835 = vmatprep.subr.bf16.mxu1 %v3223_v43  ;;  %v3230_v43 = vunpack.c.l.s8.bf16 %v1155_v34  ;;  %v5209_v51 = vcombine.high %v17875_v38, %v17875_v38 }
 0x75a   : > { %14814 = vmatpush3.bf16.msra.mxu0 %v3199_v56 }
 0x75b   : > { %14836 = vmatpush3.bf16.msra.mxu1 %v3215_v58  ;;  %14843 = vmatprep.subr.bf16.mxu0 %v3232_v24  ;;  %v1172_v58 = vld [vmem:[%s16178_s23 + $0x1ca0] sm:$0xff] }
 0x75c   : > { %14865 = vmatprep.subr.bf16.mxu1 %v3248_v59  ;;  %v1180_v24 = vld [vmem:[%s16178_s23 + $0x1ce0] sm:$0xff]  ;;  %v5216_v59 = vrot.slane %v17846_v1, %v16209_v37 }
 0x75d   : > { %10359 = vmatmul.mubr.bf16.vlgmr.msra.gmra.mrb[220].mxu0 %v5174_v53 }
 0x75e   : > { %10399 = vmatmul.mubr.bf16.vlgmr.msra.gmra.mrb[220].mxu1 %v5190_v61  ;;  %14844 = vmatpush3.bf16.msra.mxu0 %v3224_v6  ;;  %v3247_v61 = vunpack.c.h.s8.bf16 %v1163_v30  ;;  %v3264_v6 = vunpack.c.l.s8.bf16 %v1172_v58  ;;  %v5238_v55 = vcombine.high %v5216_v59, %v5216_v59 }
 0x75f   : > { %14866 = vmatpush3.bf16.msra.mxu1 %v3240_v62  ;;  %14845 = vmatprep.subr.bf16.mxu0 %v3233_v63  ;;  %v3280_v62 = vunpack.c.l.s8.bf16 %v1180_v24  ;;  %v1176_v63 = vld [vmem:[%s16178_s23 + $0x1cc0] sm:$0xff] }
 0x760   : > { %14867 = vmatprep.subr.bf16.mxu1 %v3249_v2  ;;  %10438 = vmatprep.mubr.bf16.mxu0 %v5230_v60  ;;  %v3231_v60 = vunpack.c.h.s8.bf16 %v1155_v34  ;;  %v5237_v2 = vrot.slane %v5209_v51, %v16209_v37  ;;  %v3272_v3 = vunpack.c.l.s8.bf16 %v1176_v63  ;;  %v3273_v13 = vunpack.c.h.s8.bf16 %v1176_v63  ;;  %v17900_v34 = vld [vmem:[%s16192_s25 + $0xe8] sm:$0xff] }
 0x761   : > { %10478 = vmatprep.mubr.bf16.mxu1 %v5240_v4  ;;  %v3265_v4 = vunpack.c.h.s8.bf16 %v1172_v58 }
 0x762   : > { %14846 = vmatpush3.bf16.msra.mxu0 %v3225_v8  ;;  %v3281_v8 = vunpack.c.h.s8.bf16 %v1180_v24  ;;  %v5241_v57 = vcombine.high %v5237_v2, %v5237_v2 }
 0x763   : > { %14868 = vmatpush3.bf16.msra.mxu1 %v3241_v9  ;;  %14847 = vmatprep.subr.bf16.mxu0 %v3234_v7  ;;  %v1173_v9 = vld [vmem:[%s16178_s23 + $0x1ca8] sm:$0xff] }
 0x764   : > { %14869 = vmatprep.subr.bf16.mxu1 %v3250_v12  ;;  %v1181_v7 = vld [vmem:[%s16178_s23 + $0x1ce8] sm:$0xff] }
 0x766   : > { %14848 = vmatpush3.bf16.msra.mxu0 %v3226_v16  ;;  %v3266_v16 = vunpack.c.l.s8.bf16 %v1173_v9 }
 0x767   : > { %14870 = vmatpush3.bf16.msra.mxu1 %v3242_v17  ;;  %14849 = vmatprep.subr.bf16.mxu0 %v3235_v19  ;;  %v1169_v17 = vld [vmem:[%s16178_s23 + $0x1c88] sm:$0xff]  ;;  %v3282_v19 = vunpack.c.l.s8.bf16 %v1181_v7 }
 0x768   : > { %14871 = vmatprep.subr.bf16.mxu1 %v3251_v20  ;;  %v1177_v20 = vld [vmem:[%s16178_s23 + $0x1cc8] sm:$0xff]  ;;  %v3258_v21 = vunpack.c.l.s8.bf16 %v1169_v17 }
 0x769   : > { %v3274_v0 = vunpack.c.l.s8.bf16 %v1177_v20  ;;  %v3275_v31 = vunpack.c.h.s8.bf16 %v1177_v20 }
 0x76a   : > { %14850 = vmatpush3.bf16.msra.mxu0 %v3227_v23  ;;  %v3267_v23 = vunpack.c.h.s8.bf16 %v1173_v9 }
 0x76b   : > { %14872 = vmatpush3.bf16.msra.mxu1 %v3243_v14  ;;  %14851 = vmatprep.subr.bf16.mxu0 %v3236_v27  ;;  %v3283_v14 = vunpack.c.h.s8.bf16 %v1181_v7  ;;  %v1174_v27 = vld [vmem:[%s16178_s23 + $0x1cb0] sm:$0xff] }
 0x76c   : > { %14873 = vmatprep.subr.bf16.mxu1 %v3252_v29  ;;  %v3259_v29 = vunpack.c.h.s8.bf16 %v1169_v17  ;;  %v3269_v36 = vunpack.c.h.s8.bf16 %v1174_v27 }
 0x76e   : > { %14852 = vmatpush3.bf16.msra.mxu0 %v3228_v32  ;;  %v3268_v32 = vunpack.c.l.s8.bf16 %v1174_v27 }
 0x76f   : > { %14874 = vmatpush3.bf16.msra.mxu1 %v3244_v11  ;;  %14853 = vmatprep.subr.bf16.mxu0 %v3237_v33  ;;  %v1170_v11 = vld [vmem:[%s16178_s23 + $0x1c90] sm:$0xff]  ;;  %v3284_v33 = vunpack.c.l.s8.bf16 %v1182_v28 }
 0x770   : > { %14875 = vmatprep.subr.bf16.mxu1 %v3253_v22  ;;  %v14551_v44 = vpop.f32.mrb[196].mxu0  ;;  %v1178_v22 = vld [vmem:[%s16178_s23 + $0x1cd0] sm:$0xff]  ;;  %v3260_v35 = vunpack.c.l.s8.bf16 %v1170_v11 }
 0x771   : > { %v14573_v18 = vpop.f32.mrb[196].mxu1  ;;  %v14552_v45 = vpop.f32.mrb[197].mxu0  ;;  %v3276_v5 = vunpack.c.l.s8.bf16 %v1178_v22  ;;  %v3277_v30 = vunpack.c.h.s8.bf16 %v1178_v22 }
 0x772   : > { %v14574_v48 = vpop.f32.mrb[197].mxu1  ;;  %v14553_v49 = vadd.f32 %v14552_v45, %v14551_v44  ;;  %v14554_v26 = vpop.f32.mrb[198].mxu0  ;;  %14854 = vmatpush3.bf16.msra.mxu0 %v3229_v41  ;;  %v3285_v41 = vunpack.c.h.s8.bf16 %v1182_v28 }
 0x773   : > { %v14575_v10 = vadd.f32 %v14574_v48, %v14573_v18  ;;  %14876 = vmatpush3.bf16.msra.mxu1 %v3245_v42  ;;  %v14576_v39 = vpop.f32.mrb[198].mxu1  ;;  %v14555_v52 = vpop.f32.mrb[199].mxu0  ;;  %14855 = vmatprep.subr.bf16.mxu0 %v3238_v25  ;;  %v1175_v42 = vld [vmem:[%s16178_s23 + $0x1cb8] sm:$0xff] }
 0x774   : > { %14877 = vmatprep.subr.bf16.mxu1 %v3254_v40  ;;  %v14577_v53 = vpop.f32.mrb[199].mxu1  ;;  %v9881_v56 = vadd.f32 %v14553_v49, %v17855_v54  ;;  %v1168_v54 = vld [vmem:[%s16178_s23 + $0x1c80] sm:$0xff]  ;;  %v1183_v25 = vld [vmem:[%s16178_s23 + $0x1cf8] sm:$0xff]  ;;  %v3261_v40 = vunpack.c.h.s8.bf16 %v1170_v11  ;;  %v3270_v44 = vunpack.c.l.s8.bf16 %v1175_v42  ;;  %v3271_v24 = vunpack.c.h.s8.bf16 %v1175_v42  ;;  %v1198_v11 = vld [vmem:[%s16178_s23 + $0x1d70] sm:$0xff] }
 0x775   : > { %v3256_v1 = vunpack.c.l.s8.bf16 %v1168_v54  ;;  %v3257_v12 = vunpack.c.h.s8.bf16 %v1168_v54  ;;  %v1171_v18 = vld [vmem:[%s16178_s23 + $0x1c98] sm:$0xff]  ;;  %v3286_v45 = vunpack.c.l.s8.bf16 %v1183_v25  ;;  %v3287_v51 = vunpack.c.h.s8.bf16 %v1183_v25 }
 0x776   : > { %v17884_v47 = vadd.f32 %v14575_v10, %v9881_v56  ;;  %14856 = vmatpush3.bf16.msra.mxu0 %v3230_v43  ;;  %v1179_v48 = vld [vmem:[%s16178_s23 + $0x1cd8] sm:$0xff]  ;;  %v17906_v10 = vrot.slane %v17900_v34, %v16209_v37 }
 0x777   : > { %14878 = vmatpush3.bf16.msra.mxu1 %v3246_v50  ;;  %14857 = vmatprep.subr.bf16.mxu0 %v3239_v15  ;;  %v3278_v53 = vunpack.c.l.s8.bf16 %v1179_v48 }
 0x778   : > { %14879 = vmatprep.subr.bf16.mxu1 %v3255_v46  ;;  %v3262_v46 = vunpack.c.l.s8.bf16 %v1171_v18  ;;  %v5257_v54 = vcombine.high %v17906_v10, %v17906_v10 }
 0x77a   : > { %14858 = vmatpush3.bf16.msra.mxu0 %v3231_v60 }
 0x77b   : > { %14880 = vmatpush3.bf16.msra.mxu1 %v3247_v61  ;;  %14887 = vmatprep.subr.bf16.mxu0 %v3264_v6  ;;  %v1188_v61 = vld [vmem:[%s16178_s23 + $0x1d20] sm:$0xff] }
 0x77c   : > { %14909 = vmatprep.subr.bf16.mxu1 %v3280_v62  ;;  %v1196_v6 = vld [vmem:[%s16178_s23 + $0x1d60] sm:$0xff]  ;;  %v5223_v62 = vrot.slane %v17875_v38, %v16209_v37 }
 0x77d   : > { %10439 = vmatmul.mubr.bf16.vlgmr.msra.gmra.mrb[224].mxu0 %v5216_v59 }
 0x77e   : > { %10479 = vmatmul.mubr.bf16.vlgmr.msra.gmra.mrb[224].mxu1 %v5238_v55  ;;  %14888 = vmatpush3.bf16.msra.mxu0 %v3256_v1  ;;  %v3279_v55 = vunpack.c.h.s8.bf16 %v1179_v48  ;;  %v3296_v1 = vunpack.c.l.s8.bf16 %v1188_v61  ;;  %v5239_v9 = vcombine.high %v5223_v62, %v5223_v62 }
 0x77f   : > { %14910 = vmatpush3.bf16.msra.mxu1 %v3272_v3  ;;  %14889 = vmatprep.subr.bf16.mxu0 %v3265_v4  ;;  %v3312_v3 = vunpack.c.l.s8.bf16 %v1196_v6  ;;  %v1192_v4 = vld [vmem:[%s16178_s23 + $0x1d40] sm:$0xff] }
 0x780   : > { %14911 = vmatprep.subr.bf16.mxu1 %v3281_v8  ;;  %10518 = vmatprep.mubr.bf16.mxu0 %v5237_v2  ;;  %v3263_v2 = vunpack.c.h.s8.bf16 %v1171_v18  ;;  %v5279_v8 = vrot.slane %v5257_v54, %v16209_v37  ;;  %v3304_v7 = vunpack.c.l.s8.bf16 %v1192_v4  ;;  %v3305_v20 = vunpack.c.h.s8.bf16 %v1192_v4  ;;  %v1199_v18 = vld [vmem:[%s16178_s23 + $0x1d78] sm:$0xff] }
 0x781   : > { %10558 = vmatprep.mubr.bf16.mxu1 %v5241_v57  ;;  %v3297_v57 = vunpack.c.h.s8.bf16 %v1188_v61  ;;  %v3319_v54 = vunpack.c.h.s8.bf16 %v1199_v18 }
 0x782   : > { %14890 = vmatpush3.bf16.msra.mxu0 %v3257_v12  ;;  %v3313_v12 = vunpack.c.h.s8.bf16 %v1196_v6  ;;  %v5289_v17 = vcombine.high %v5279_v8, %v5279_v8 }
 0x783   : > { %14912 = vmatpush3.bf16.msra.mxu1 %v3273_v13  ;;  %14891 = vmatprep.subr.bf16.mxu0 %v3266_v16  ;;  %v1189_v13 = vld [vmem:[%s16178_s23 + $0x1d28] sm:$0xff] }
 0x784   : > { %14913 = vmatprep.subr.bf16.mxu1 %v3282_v19  ;;  %v1197_v16 = vld [vmem:[%s16178_s23 + $0x1d68] sm:$0xff] }
 0x786   : > { %14892 = vmatpush3.bf16.msra.mxu0 %v3258_v21  ;;  %v3298_v21 = vunpack.c.l.s8.bf16 %v1189_v13 }
 0x787   : > { %14914 = vmatpush3.bf16.msra.mxu1 %v3274_v0  ;;  %14893 = vmatprep.subr.bf16.mxu0 %v3267_v23  ;;  %v1185_v0 = vld [vmem:[%s16178_s23 + $0x1d08] sm:$0xff]  ;;  %v3314_v23 = vunpack.c.l.s8.bf16 %v1197_v16 }
 0x788   : > { %14915 = vmatprep.subr.bf16.mxu1 %v3283_v14  ;;  %v1193_v14 = vld [vmem:[%s16178_s23 + $0x1d48] sm:$0xff]  ;;  %v3290_v27 = vunpack.c.l.s8.bf16 %v1185_v0 }
 0x789   : > { %v3306_v28 = vunpack.c.l.s8.bf16 %v1193_v14  ;;  %v3307_v22 = vunpack.c.h.s8.bf16 %v1193_v14 }
 0x78a   : > { %14894 = vmatpush3.bf16.msra.mxu0 %v3259_v29  ;;  %v3299_v29 = vunpack.c.h.s8.bf16 %v1189_v13 }
 0x78b   : > { %14916 = vmatpush3.bf16.msra.mxu1 %v3275_v31  ;;  %14895 = vmatprep.subr.bf16.mxu0 %v3268_v32  ;;  %v3315_v31 = vunpack.c.h.s8.bf16 %v1197_v16  ;;  %v1190_v32 = vld [vmem:[%s16178_s23 + $0x1d30] sm:$0xff] }
 0x78c   : > { %14917 = vmatprep.subr.bf16.mxu1 %v3284_v33  ;;  %v3291_v33 = vunpack.c.h.s8.bf16 %v1185_v0 }
 0x78e   : > { %14896 = vmatpush3.bf16.msra.mxu0 %v3260_v35  ;;  %v3300_v35 = vunpack.c.l.s8.bf16 %v1190_v32 }
 0x78f   : > { %14918 = vmatpush3.bf16.msra.mxu1 %v3276_v5  ;;  %14897 = vmatprep.subr.bf16.mxu0 %v3269_v36  ;;  %v1186_v5 = vld [vmem:[%s16178_s23 + $0x1d10] sm:$0xff]  ;;  %v3316_v36 = vunpack.c.l.s8.bf16 %v1198_v11 }
 0x790   : > { %14919 = vmatprep.subr.bf16.mxu1 %v3285_v41  ;;  %v14595_v49 = vpop.f32.mrb[200].mxu0  ;;  %v1194_v41 = vld [vmem:[%s16178_s23 + $0x1d50] sm:$0xff]  ;;  %v3292_v42 = vunpack.c.l.s8.bf16 %v1186_v5  ;;  %v3293_v48 = vunpack.c.h.s8.bf16 %v1186_v5 }
 0x791   : > { %v14617_v26 = vpop.f32.mrb[200].mxu1  ;;  %v14596_v43 = vpop.f32.mrb[201].mxu0  ;;  %v3308_v25 = vunpack.c.l.s8.bf16 %v1194_v41  ;;  %v1214_v5 = vld [vmem:[%s16178_s23 + $0x1df0] sm:$0xff] }
 0x792   : > { %v14618_v50 = vpop.f32.mrb[201].mxu1  ;;  %v14597_v39 = vadd.f32 %v14596_v43, %v14595_v49  ;;  %v14598_v52 = vpop.f32.mrb[202].mxu0  ;;  %14898 = vmatpush3.bf16.msra.mxu0 %v3261_v40  ;;  %v3301_v40 = vunpack.c.h.s8.bf16 %v1190_v32  ;;  %v3309_v49 = vunpack.c.h.s8.bf16 %v1194_v41  ;;  %v1187_v43 = vld [vmem:[%s16178_s23 + $0x1d18] sm:$0xff] }
 0x793   : > { %v14619_v15 = vadd.f32 %v14618_v50, %v14617_v26  ;;  %14920 = vmatpush3.bf16.msra.mxu1 %v3277_v30  ;;  %v14620_v56 = vpop.f32.mrb[202].mxu1  ;;  %v14599_v58 = vpop.f32.mrb[203].mxu0  ;;  %14899 = vmatprep.subr.bf16.mxu0 %v3270_v44  ;;  %v3317_v30 = vunpack.c.h.s8.bf16 %v1198_v11  ;;  %v1191_v44 = vld [vmem:[%s16178_s23 + $0x1d38] sm:$0xff]  ;;  %v3318_v50 = vunpack.c.l.s8.bf16 %v1199_v18 }
 0x794   : > { %14921 = vmatprep.subr.bf16.mxu1 %v3286_v45  ;;  %v14621_v59 = vpop.f32.mrb[203].mxu1  ;;  %v9961_v60 = vadd.f32 %v14597_v39, %v17884_v47  ;;  %v1184_v47 = vld [vmem:[%s16178_s23 + $0x1d00] sm:$0xff]  ;;  %v5242_v45 = vcombine.high %v17900_v34, %v17900_v34  ;;  %v3302_v26 = vunpack.c.l.s8.bf16 %v1191_v44  ;;  %v1195_v39 = vld [vmem:[%s16178_s23 + $0x1d58] sm:$0xff]  ;;  %v3303_v6 = vunpack.c.h.s8.bf16 %v1191_v44 }
 0x795   : > { %v3288_v38 = vunpack.c.l.s8.bf16 %v1184_v47  ;;  %v3289_v19 = vunpack.c.h.s8.bf16 %v1184_v47  ;;  %v3310_v59 = vunpack.c.l.s8.bf16 %v1195_v39 }
 0x796   : > { %v17915_v63 = vadd.f32 %v14619_v15, %v9961_v60  ;;  %14900 = vmatpush3.bf16.msra.mxu0 %v3262_v46  ;;  %v17935_v46 = vrot.slane %v5242_v45, %v16209_v37 }
 0x797   : > { %14922 = vmatpush3.bf16.msra.mxu1 %v3278_v53  ;;  %14901 = vmatprep.subr.bf16.mxu0 %v3271_v24 }
 0x798   : > { %14923 = vmatprep.subr.bf16.mxu1 %v3287_v51  ;;  %v3294_v51 = vunpack.c.l.s8.bf16 %v1187_v43  ;;  %v5258_v47 = vcombine.high %v17935_v46, %v17935_v46 }
 0x79a   : > { %14902 = vmatpush3.bf16.msra.mxu0 %v3263_v2 }
 0x79b   : > { %14924 = vmatpush3.bf16.msra.mxu1 %v3279_v55  ;;  %14931 = vmatprep.subr.bf16.mxu0 %v3296_v1  ;;  %v1204_v55 = vld [vmem:[%s16178_s23 + $0x1da0] sm:$0xff] }
 0x79c   : > { %14953 = vmatprep.subr.bf16.mxu1 %v3312_v3  ;;  %v1212_v1 = vld [vmem:[%s16178_s23 + $0x1de0] sm:$0xff]  ;;  %v5265_v3 = vrot.slane %v17906_v10, %v16209_v37 }
 0x79d   : > { %10519 = vmatmul.mubr.bf16.vlgmr.msra.gmra.mrb[228].mxu0 %v5223_v62 }
 0x79e   : > { %10559 = vmatmul.mubr.bf16.vlgmr.msra.gmra.mrb[228].mxu1 %v5239_v9  ;;  %14932 = vmatpush3.bf16.msra.mxu0 %v3288_v38  ;;  %v3311_v9 = vunpack.c.h.s8.bf16 %v1195_v39  ;;  %v3328_v38 = vunpack.c.l.s8.bf16 %v1204_v55  ;;  %v5287_v13 = vcombine.high %v5265_v3, %v5265_v3 }
 0x79f   : > { %14954 = vmatpush3.bf16.msra.mxu1 %v3304_v7  ;;  %14933 = vmatprep.subr.bf16.mxu0 %v3297_v57  ;;  %v3344_v7 = vunpack.c.l.s8.bf16 %v1212_v1  ;;  %v1208_v57 = vld [vmem:[%s16178_s23 + $0x1dc0] sm:$0xff] }
 0x7a0   : > { %14955 = vmatprep.subr.bf16.mxu1 %v3313_v12  ;;  %10598 = vmatprep.mubr.bf16.mxu0 %v5279_v8  ;;  %v3295_v8 = vunpack.c.h.s8.bf16 %v1187_v43  ;;  %v5286_v12 = vrot.slane %v5258_v47, %v16209_v37  ;;  %v3336_v16 = vunpack.c.l.s8.bf16 %v1208_v57  ;;  %v3337_v14 = vunpack.c.h.s8.bf16 %v1208_v57  ;;  %v17960_v43 = vld [vmem:[%s16192_s25 + $0xf0] sm:$0xff] }
 0x7a1   : > { %10638 = vmatprep.mubr.bf16.mxu1 %v5289_v17  ;;  %v3329_v17 = vunpack.c.h.s8.bf16 %v1204_v55 }
 0x7a2   : > { %14934 = vmatpush3.bf16.msra.mxu0 %v3289_v19  ;;  %v3345_v19 = vunpack.c.h.s8.bf16 %v1212_v1  ;;  %v5290_v0 = vcombine.high %v5286_v12, %v5286_v12 }
 0x7a3   : > { %14956 = vmatpush3.bf16.msra.mxu1 %v3305_v20  ;;  %14935 = vmatprep.subr.bf16.mxu0 %v3298_v21  ;;  %v1205_v20 = vld [vmem:[%s16178_s23 + $0x1da8] sm:$0xff] }
 0x7a4   : > { %14957 = vmatprep.subr.bf16.mxu1 %v3314_v23  ;;  %v1213_v21 = vld [vmem:[%s16178_s23 + $0x1de8] sm:$0xff] }
 0x7a6   : > { %14936 = vmatpush3.bf16.msra.mxu0 %v3290_v27  ;;  %v3330_v27 = vunpack.c.l.s8.bf16 %v1205_v20 }
 0x7a7   : > { %14958 = vmatpush3.bf16.msra.mxu1 %v3306_v28  ;;  %14937 = vmatprep.subr.bf16.mxu0 %v3299_v29  ;;  %v1201_v28 = vld [vmem:[%s16178_s23 + $0x1d88] sm:$0xff]  ;;  %v3346_v29 = vunpack.c.l.s8.bf16 %v1213_v21 }
 0x7a8   : > { %14959 = vmatprep.subr.bf16.mxu1 %v3315_v31  ;;  %v1209_v31 = vld [vmem:[%s16178_s23 + $0x1dc8] sm:$0xff]  ;;  %v3322_v32 = vunpack.c.l.s8.bf16 %v1201_v28 }
 0x7a9   : > { %v3338_v11 = vunpack.c.l.s8.bf16 %v1209_v31  ;;  %v3339_v41 = vunpack.c.h.s8.bf16 %v1209_v31 }
 0x7aa   : > { %14938 = vmatpush3.bf16.msra.mxu0 %v3291_v33  ;;  %v3331_v33 = vunpack.c.h.s8.bf16 %v1205_v20 }
 0x7ab   : > { %14960 = vmatpush3.bf16.msra.mxu1 %v3307_v22  ;;  %14939 = vmatprep.subr.bf16.mxu0 %v3300_v35  ;;  %v3347_v22 = vunpack.c.h.s8.bf16 %v1213_v21  ;;  %v1206_v35 = vld [vmem:[%s16178_s23 + $0x1db0] sm:$0xff] }
 0x7ac   : > { %14961 = vmatprep.subr.bf16.mxu1 %v3316_v36  ;;  %v3323_v36 = vunpack.c.h.s8.bf16 %v1201_v28  ;;  %v3333_v45 = vunpack.c.h.s8.bf16 %v1206_v35 }
 0x7ae   : > { %14940 = vmatpush3.bf16.msra.mxu0 %v3292_v42  ;;  %v3332_v42 = vunpack.c.l.s8.bf16 %v1206_v35 }
 0x7af   : > { %14962 = vmatpush3.bf16.msra.mxu1 %v3308_v25  ;;  %14941 = vmatprep.subr.bf16.mxu0 %v3301_v40  ;;  %v1202_v25 = vld [vmem:[%s16178_s23 + $0x1d90] sm:$0xff]  ;;  %v3348_v40 = vunpack.c.l.s8.bf16 %v1214_v5 }
 0x7b0   : > { %14963 = vmatprep.subr.bf16.mxu1 %v3317_v30  ;;  %v14639_v52 = vpop.f32.mrb[204].mxu0  ;;  %v1210_v30 = vld [vmem:[%s16178_s23 + $0x1dd0] sm:$0xff]  ;;  %v3324_v44 = vunpack.c.l.s8.bf16 %v1202_v25 }
 0x7b1   : > { %v14661_v15 = vpop.f32.mrb[204].mxu1  ;;  %v14640_v53 = vpop.f32.mrb[205].mxu0  ;;  %v3340_v18 = vunpack.c.l.s8.bf16 %v1210_v30  ;;  %v3341_v39 = vunpack.c.h.s8.bf16 %v1210_v30 }
 0x7b2   : > { %v14662_v56 = vpop.f32.mrb[205].mxu1  ;;  %v14641_v58 = vadd.f32 %v14640_v53, %v14639_v52  ;;  %v14642_v34 = vpop.f32.mrb[206].mxu0  ;;  %14942 = vmatpush3.bf16.msra.mxu0 %v3293_v48  ;;  %v3349_v48 = vunpack.c.h.s8.bf16 %v1214_v5 }
 0x7b3   : > { %v14663_v24 = vadd.f32 %v14662_v56, %v14661_v15  ;;  %14964 = vmatpush3.bf16.msra.mxu1 %v3309_v49  ;;  %v14664_v60 = vpop.f32.mrb[206].mxu1  ;;  %v14643_v61 = vpop.f32.mrb[207].mxu0  ;;  %14943 = vmatprep.subr.bf16.mxu0 %v3302_v26  ;;  %v1207_v49 = vld [vmem:[%s16178_s23 + $0x1db8] sm:$0xff] }
 0x7b4   : > { %14965 = vmatprep.subr.bf16.mxu1 %v3318_v50  ;;  %v14665_v62 = vpop.f32.mrb[207].mxu1  ;;  %v10041_v2 = vadd.f32 %v14641_v58, %v17915_v63  ;;  %v1200_v63 = vld [vmem:[%s16178_s23 + $0x1d80] sm:$0xff]  ;;  %v1215_v26 = vld [vmem:[%s16178_s23 + $0x1df8] sm:$0xff]  ;;  %v3325_v50 = vunpack.c.h.s8.bf16 %v1202_v25  ;;  %v3334_v52 = vunpack.c.l.s8.bf16 %v1207_v49  ;;  %v3335_v1 = vunpack.c.h.s8.bf16 %v1207_v49  ;;  %v1230_v25 = vld [vmem:[%s16178_s23 + $0x1e70] sm:$0xff] }
 0x7b5   : > { %v3320_v10 = vunpack.c.l.s8.bf16 %v1200_v63  ;;  %v3321_v23 = vunpack.c.h.s8.bf16 %v1200_v63  ;;  %v1203_v15 = vld [vmem:[%s16178_s23 + $0x1d98] sm:$0xff]  ;;  %v3350_v53 = vunpack.c.l.s8.bf16 %v1215_v26  ;;  %v3351_v47 = vunpack.c.h.s8.bf16 %v1215_v26 }
 0x7b6   : > { %v17944_v4 = vadd.f32 %v14663_v24, %v10041_v2  ;;  %14944 = vmatpush3.bf16.msra.mxu0 %v3294_v51  ;;  %v1211_v56 = vld [vmem:[%s16178_s23 + $0x1dd8] sm:$0xff]  ;;  %v17966_v24 = vrot.slane %v17960_v43, %v16209_v37 }
 0x7b7   : > { %14966 = vmatpush3.bf16.msra.mxu1 %v3310_v59  ;;  %14945 = vmatprep.subr.bf16.mxu0 %v3303_v6  ;;  %v3342_v62 = vunpack.c.l.s8.bf16 %v1211_v56 }
 0x7b8   : > { %14967 = vmatprep.subr.bf16.mxu1 %v3319_v54  ;;  %v3326_v54 = vunpack.c.l.s8.bf16 %v1203_v15  ;;  %v5306_v63 = vcombine.high %v17966_v24, %v17966_v24 }
 0x7ba   : > { %14946 = vmatpush3.bf16.msra.mxu0 %v3295_v8 }
 0x7bb   : > { %14968 = vmatpush3.bf16.msra.mxu1 %v3311_v9  ;;  %14975 = vmatprep.subr.bf16.mxu0 %v3328_v38  ;;  %v1220_v9 = vld [vmem:[%s16178_s23 + $0x1e20] sm:$0xff] }
 0x7bc   : > { %14997 = vmatprep.subr.bf16.mxu1 %v3344_v7  ;;  %v1228_v38 = vld [vmem:[%s16178_s23 + $0x1e60] sm:$0xff]  ;;  %v5272_v7 = vrot.slane %v17935_v46, %v16209_v37 }
 0x7bd   : > { %10599 = vmatmul.mubr.bf16.vlgmr.msra.gmra.mrb[232].mxu0 %v5265_v3 }
 0x7be   : > { %10639 = vmatmul.mubr.bf16.vlgmr.msra.gmra.mrb[232].mxu1 %v5287_v13  ;;  %14976 = vmatpush3.bf16.msra.mxu0 %v3320_v10  ;;  %v3343_v13 = vunpack.c.h.s8.bf16 %v1211_v56  ;;  %v3360_v10 = vunpack.c.l.s8.bf16 %v1220_v9  ;;  %v5288_v20 = vcombine.high %v5272_v7, %v5272_v7 }
 0x7bf   : > { %14998 = vmatpush3.bf16.msra.mxu1 %v3336_v16  ;;  %14977 = vmatprep.subr.bf16.mxu0 %v3329_v17  ;;  %v3376_v16 = vunpack.c.l.s8.bf16 %v1228_v38  ;;  %v1224_v17 = vld [vmem:[%s16178_s23 + $0x1e40] sm:$0xff] }
 0x7c0   : > { %14999 = vmatprep.subr.bf16.mxu1 %v3345_v19  ;;  %10678 = vmatprep.mubr.bf16.mxu0 %v5286_v12  ;;  %v3327_v12 = vunpack.c.h.s8.bf16 %v1203_v15  ;;  %v5328_v19 = vrot.slane %v5306_v63, %v16209_v37  ;;  %v3368_v21 = vunpack.c.l.s8.bf16 %v1224_v17  ;;  %v3369_v31 = vunpack.c.h.s8.bf16 %v1224_v17  ;;  %v1231_v15 = vld [vmem:[%s16178_s23 + $0x1e78] sm:$0xff] }
 0x7c1   : > { %10718 = vmatprep.mubr.bf16.mxu1 %v5290_v0  ;;  %v3361_v0 = vunpack.c.h.s8.bf16 %v1220_v9  ;;  %v3383_v63 = vunpack.c.h.s8.bf16 %v1231_v15 }
 0x7c2   : > { %14978 = vmatpush3.bf16.msra.mxu0 %v3321_v23  ;;  %v3377_v23 = vunpack.c.h.s8.bf16 %v1228_v38  ;;  %v5338_v28 = vcombine.high %v5328_v19, %v5328_v19 }
 0x7c3   : > { %15000 = vmatpush3.bf16.msra.mxu1 %v3337_v14  ;;  %14979 = vmatprep.subr.bf16.mxu0 %v3330_v27  ;;  %v1221_v14 = vld [vmem:[%s16178_s23 + $0x1e28] sm:$0xff] }
 0x7c4   : > { %15001 = vmatprep.subr.bf16.mxu1 %v3346_v29  ;;  %v1229_v27 = vld [vmem:[%s16178_s23 + $0x1e68] sm:$0xff] }
 0x7c6   : > { %14980 = vmatpush3.bf16.msra.mxu0 %v3322_v32  ;;  %v3362_v32 = vunpack.c.l.s8.bf16 %v1221_v14 }
 0x7c7   : > { %15002 = vmatpush3.bf16.msra.mxu1 %v3338_v11  ;;  %14981 = vmatprep.subr.bf16.mxu0 %v3331_v33  ;;  %v1217_v11 = vld [vmem:[%s16178_s23 + $0x1e08] sm:$0xff]  ;;  %v3378_v33 = vunpack.c.l.s8.bf16 %v1229_v27 }
 0x7c8   : > { %15003 = vmatprep.subr.bf16.mxu1 %v3347_v22  ;;  %v1225_v22 = vld [vmem:[%s16178_s23 + $0x1e48] sm:$0xff]  ;;  %v3354_v35 = vunpack.c.l.s8.bf16 %v1217_v11 }
 0x7c9   : > { %v3370_v5 = vunpack.c.l.s8.bf16 %v1225_v22  ;;  %v3371_v30 = vunpack.c.h.s8.bf16 %v1225_v22 }
 0x7ca   : > { %14982 = vmatpush3.bf16.msra.mxu0 %v3323_v36  ;;  %v3363_v36 = vunpack.c.h.s8.bf16 %v1221_v14 }
 0x7cb   : > { %15004 = vmatpush3.bf16.msra.mxu1 %v3339_v41  ;;  %14983 = vmatprep.subr.bf16.mxu0 %v3332_v42  ;;  %v3379_v41 = vunpack.c.h.s8.bf16 %v1229_v27  ;;  %v1222_v42 = vld [vmem:[%s16178_s23 + $0x1e30] sm:$0xff] }
 0x7cc   : > { %15005 = vmatprep.subr.bf16.mxu1 %v3348_v40  ;;  %v3355_v40 = vunpack.c.h.s8.bf16 %v1217_v11 }
 0x7ce   : > { %14984 = vmatpush3.bf16.msra.mxu0 %v3324_v44  ;;  %v3364_v44 = vunpack.c.l.s8.bf16 %v1222_v42 }
 0x7cf   : > { %15006 = vmatpush3.bf16.msra.mxu1 %v3340_v18  ;;  %14985 = vmatprep.subr.bf16.mxu0 %v3333_v45  ;;  %v1218_v18 = vld [vmem:[%s16178_s23 + $0x1e10] sm:$0xff]  ;;  %v3380_v45 = vunpack.c.l.s8.bf16 %v1230_v25 }
 0x7d0   : > { %15007 = vmatprep.subr.bf16.mxu1 %v3349_v48  ;;  %v14683_v58 = vpop.f32.mrb[208].mxu0  ;;  %v1226_v48 = vld [vmem:[%s16178_s23 + $0x1e50] sm:$0xff]  ;;  %v3356_v49 = vunpack.c.l.s8.bf16 %v1218_v18  ;;  %v3357_v56 = vunpack.c.h.s8.bf16 %v1218_v18 }
 0x7d1   : > { %v14705_v34 = vpop.f32.mrb[208].mxu1  ;;  %v14684_v51 = vpop.f32.mrb[209].mxu0  ;;  %v3372_v26 = vunpack.c.l.s8.bf16 %v1226_v48  ;;  %v1246_v18 = vld [vmem:[%s16178_s23 + $0x1ef0] sm:$0xff] }
 0x7d2   : > { %v14706_v59 = vpop.f32.mrb[209].mxu1  ;;  %v14685_v60 = vadd.f32 %v14684_v51, %v14683_v58  ;;  %v14686_v61 = vpop.f32.mrb[210].mxu0  ;;  %14986 = vmatpush3.bf16.msra.mxu0 %v3325_v50  ;;  %v3365_v50 = vunpack.c.h.s8.bf16 %v1222_v42  ;;  %v3373_v58 = vunpack.c.h.s8.bf16 %v1226_v48  ;;  %v1219_v51 = vld [vmem:[%s16178_s23 + $0x1e18] sm:$0xff] }
 0x7d3   : > { %v14707_v6 = vadd.f32 %v14706_v59, %v14705_v34  ;;  %15008 = vmatpush3.bf16.msra.mxu1 %v3341_v39  ;;  %v14708_v2 = vpop.f32.mrb[210].mxu1  ;;  %v14687_v55 = vpop.f32.mrb[211].mxu0  ;;  %14987 = vmatprep.subr.bf16.mxu0 %v3334_v52  ;;  %v3381_v39 = vunpack.c.h.s8.bf16 %v1230_v25  ;;  %v1223_v52 = vld [vmem:[%s16178_s23 + $0x1e38] sm:$0xff]  ;;  %v3382_v59 = vunpack.c.l.s8.bf16 %v1231_v15 }
 0x7d4   : > { %15009 = vmatprep.subr.bf16.mxu1 %v3350_v53  ;;  %v14709_v3 = vpop.f32.mrb[211].mxu1  ;;  %v10121_v8 = vadd.f32 %v14685_v60, %v17944_v4  ;;  %v1216_v4 = vld [vmem:[%s16178_s23 + $0x1e00] sm:$0xff]  ;;  %v5291_v53 = vcombine.high %v17960_v43, %v17960_v43  ;;  %v3366_v34 = vunpack.c.l.s8.bf16 %v1223_v52  ;;  %v1227_v60 = vld [vmem:[%s16178_s23 + $0x1e58] sm:$0xff]  ;;  %v3367_v38 = vunpack.c.h.s8.bf16 %v1223_v52 }
 0x7d5   : > { %v3352_v46 = vunpack.c.l.s8.bf16 %v1216_v4  ;;  %v3353_v29 = vunpack.c.h.s8.bf16 %v1216_v4  ;;  %v3374_v3 = vunpack.c.l.s8.bf16 %v1227_v60 }
 0x7d6   : > { %v17975_v57 = vadd.f32 %v14707_v6, %v10121_v8  ;;  %14988 = vmatpush3.bf16.msra.mxu0 %v3326_v54  ;;  %v17995_v54 = vrot.slane %v5291_v53, %v16209_v37 }
 0x7d7   : > { %15010 = vmatpush3.bf16.msra.mxu1 %v3342_v62  ;;  %14989 = vmatprep.subr.bf16.mxu0 %v3335_v1 }
 0x7d8   : > { %15011 = vmatprep.subr.bf16.mxu1 %v3351_v47  ;;  %v3358_v47 = vunpack.c.l.s8.bf16 %v1219_v51  ;;  %v5307_v4 = vcombine.high %v17995_v54, %v17995_v54 }
 0x7da   : > { %14990 = vmatpush3.bf16.msra.mxu0 %v3327_v12 }
 0x7db   : > { %15012 = vmatpush3.bf16.msra.mxu1 %v3343_v13  ;;  %15019 = vmatprep.subr.bf16.mxu0 %v3360_v10  ;;  %v1236_v13 = vld [vmem:[%s16178_s23 + $0x1ea0] sm:$0xff] }
 0x7dc   : > { %15041 = vmatprep.subr.bf16.mxu1 %v3376_v16  ;;  %v1244_v10 = vld [vmem:[%s16178_s23 + $0x1ee0] sm:$0xff]  ;;  %v5314_v16 = vrot.slane %v17966_v24, %v16209_v37 }
 0x7dd   : > { %10679 = vmatmul.mubr.bf16.vlgmr.msra.gmra.mrb[236].mxu0 %v5272_v7 }
 0x7de   : > { %10719 = vmatmul.mubr.bf16.vlgmr.msra.gmra.mrb[236].mxu1 %v5288_v20  ;;  %15020 = vmatpush3.bf16.msra.mxu0 %v3352_v46  ;;  %v3375_v20 = vunpack.c.h.s8.bf16 %v1227_v60  ;;  %v3392_v46 = vunpack.c.l.s8.bf16 %v1236_v13  ;;  %v5336_v14 = vcombine.high %v5314_v16, %v5314_v16 }
 0x7df   : > { %15042 = vmatpush3.bf16.msra.mxu1 %v3368_v21  ;;  %15021 = vmatprep.subr.bf16.mxu0 %v3361_v0  ;;  %v3408_v21 = vunpack.c.l.s8.bf16 %v1244_v10  ;;  %v1240_v0 = vld [vmem:[%s16178_s23 + $0x1ec0] sm:$0xff] }
 0x7e0   : > { %15043 = vmatprep.subr.bf16.mxu1 %v3377_v23  ;;  %10758 = vmatprep.mubr.bf16.mxu0 %v5328_v19  ;;  %v3359_v19 = vunpack.c.h.s8.bf16 %v1219_v51  ;;  %v5335_v23 = vrot.slane %v5307_v4, %v16209_v37  ;;  %v3400_v27 = vunpack.c.l.s8.bf16 %v1240_v0  ;;  %v3401_v22 = vunpack.c.h.s8.bf16 %v1240_v0  ;;  %v18020_v51 = vld [vmem:[%s16192_s25 + $0xf8] sm:$0xff] }
 0x7e1   : > { %10798 = vmatprep.mubr.bf16.mxu1 %v5338_v28  ;;  %v3393_v28 = vunpack.c.h.s8.bf16 %v1236_v13 }
 0x7e2   : > { %15022 = vmatpush3.bf16.msra.mxu0 %v3353_v29  ;;  %v3409_v29 = vunpack.c.h.s8.bf16 %v1244_v10  ;;  %v5339_v11 = vcombine.high %v5335_v23, %v5335_v23 }
 0x7e3   : > { %15044 = vmatpush3.bf16.msra.mxu1 %v3369_v31  ;;  %15023 = vmatprep.subr.bf16.mxu0 %v3362_v32  ;;  %v1237_v31 = vld [vmem:[%s16178_s23 + $0x1ea8] sm:$0xff] }
 0x7e4   : > { %15045 = vmatprep.subr.bf16.mxu1 %v3378_v33  ;;  %v1245_v32 = vld [vmem:[%s16178_s23 + $0x1ee8] sm:$0xff] }
 0x7e6   : > { %15024 = vmatpush3.bf16.msra.mxu0 %v3354_v35  ;;  %v3394_v35 = vunpack.c.l.s8.bf16 %v1237_v31 }
 0x7e7   : > { %15046 = vmatpush3.bf16.msra.mxu1 %v3370_v5  ;;  %15025 = vmatprep.subr.bf16.mxu0 %v3363_v36  ;;  %v1233_v5 = vld [vmem:[%s16178_s23 + $0x1e88] sm:$0xff]  ;;  %v3410_v36 = vunpack.c.l.s8.bf16 %v1245_v32 }
 0x7e8   : > { %15047 = vmatprep.subr.bf16.mxu1 %v3379_v41  ;;  %v1241_v41 = vld [vmem:[%s16178_s23 + $0x1ec8] sm:$0xff]  ;;  %v3386_v42 = vunpack.c.l.s8.bf16 %v1233_v5 }
 0x7e9   : > { %v3402_v25 = vunpack.c.l.s8.bf16 %v1241_v41  ;;  %v3403_v48 = vunpack.c.h.s8.bf16 %v1241_v41 }
 0x7ea   : > { %15026 = vmatpush3.bf16.msra.mxu0 %v3355_v40  ;;  %v3395_v40 = vunpack.c.h.s8.bf16 %v1237_v31 }
 0x7eb   : > { %15048 = vmatpush3.bf16.msra.mxu1 %v3371_v30  ;;  %15027 = vmatprep.subr.bf16.mxu0 %v3364_v44  ;;  %v3411_v30 = vunpack.c.h.s8.bf16 %v1245_v32  ;;  %v1238_v44 = vld [vmem:[%s16178_s23 + $0x1eb0] sm:$0xff] }
 0x7ec   : > { %15049 = vmatprep.subr.bf16.mxu1 %v3380_v45  ;;  %v3387_v45 = vunpack.c.h.s8.bf16 %v1233_v5  ;;  %v3397_v53 = vunpack.c.h.s8.bf16 %v1238_v44 }
 0x7ee   : > { %15028 = vmatpush3.bf16.msra.mxu0 %v3356_v49  ;;  %v3396_v49 = vunpack.c.l.s8.bf16 %v1238_v44 }
 0x7ef   : > { %15050 = vmatpush3.bf16.msra.mxu1 %v3372_v26  ;;  %15029 = vmatprep.subr.bf16.mxu0 %v3365_v50  ;;  %v1234_v26 = vld [vmem:[%s16178_s23 + $0x1e90] sm:$0xff]  ;;  %v3412_v50 = vunpack.c.l.s8.bf16 %v1246_v18 }
 0x7f0   : > { %15051 = vmatprep.subr.bf16.mxu1 %v3381_v39  ;;  %v14727_v61 = vpop.f32.mrb[212].mxu0  ;;  %v1242_v39 = vld [vmem:[%s16178_s23 + $0x1ed0] sm:$0xff]  ;;  %v3388_v52 = vunpack.c.l.s8.bf16 %v1234_v26 }
 0x7f1   : > { %v14749_v6 = vpop.f32.mrb[212].mxu1  ;;  %v14728_v62 = vpop.f32.mrb[213].mxu0  ;;  %v3404_v15 = vunpack.c.l.s8.bf16 %v1242_v39  ;;  %v3405_v60 = vunpack.c.h.s8.bf16 %v1242_v39 }
 0x7f2   : > { %v14750_v2 = vpop.f32.mrb[213].mxu1  ;;  %v14729_v55 = vadd.f32 %v14728_v62, %v14727_v61  ;;  %v14730_v43 = vpop.f32.mrb[214].mxu0  ;;  %15030 = vmatpush3.bf16.msra.mxu0 %v3357_v56  ;;  %v3413_v56 = vunpack.c.h.s8.bf16 %v1246_v18 }
 0x7f3   : > { %v14751_v1 = vadd.f32 %v14750_v2, %v14749_v6  ;;  %15052 = vmatpush3.bf16.msra.mxu1 %v3373_v58  ;;  %v14752_v8 = vpop.f32.mrb[214].mxu1  ;;  %v14731_v9 = vpop.f32.mrb[215].mxu0  ;;  %15031 = vmatprep.subr.bf16.mxu0 %v3366_v34  ;;  %v1239_v58 = vld [vmem:[%s16178_s23 + $0x1eb8] sm:$0xff] }
 0x7f4   : > { %15053 = vmatprep.subr.bf16.mxu1 %v3382_v59  ;;  %v14753_v7 = vpop.f32.mrb[215].mxu1  ;;  %v10201_v12 = vadd.f32 %v14729_v55, %v17975_v57  ;;  %v1232_v57 = vld [vmem:[%s16178_s23 + $0x1e80] sm:$0xff]  ;;  %v1247_v34 = vld [vmem:[%s16178_s23 + $0x1ef8] sm:$0xff]  ;;  %v3389_v59 = vunpack.c.h.s8.bf16 %v1234_v26  ;;  %v3398_v61 = vunpack.c.l.s8.bf16 %v1239_v58  ;;  %v3399_v10 = vunpack.c.h.s8.bf16 %v1239_v58  ;;  %v1262_v26 = vld [vmem:[%s16178_s23 + $0x1f70] sm:$0xff] }
 0x7f5   : > { %v3384_v24 = vunpack.c.l.s8.bf16 %v1232_v57  ;;  %v3385_v33 = vunpack.c.h.s8.bf16 %v1232_v57  ;;  %v1235_v6 = vld [vmem:[%s16178_s23 + $0x1e98] sm:$0xff]  ;;  %v3414_v62 = vunpack.c.l.s8.bf16 %v1247_v34  ;;  %v3415_v4 = vunpack.c.h.s8.bf16 %v1247_v34 }
 0x7f6   : > { %v18004_v17 = vadd.f32 %v14751_v1, %v10201_v12  ;;  %15032 = vmatpush3.bf16.msra.mxu0 %v3358_v47  ;;  %v1243_v2 = vld [vmem:[%s16178_s23 + $0x1ed8] sm:$0xff]  ;;  %v18026_v1 = vrot.slane %v18020_v51, %v16209_v37 }
 0x7f7   : > { %15054 = vmatpush3.bf16.msra.mxu1 %v3374_v3  ;;  %15033 = vmatprep.subr.bf16.mxu0 %v3367_v38  ;;  %v3406_v7 = vunpack.c.l.s8.bf16 %v1243_v2 }
 0x7f8   : > { %15055 = vmatprep.subr.bf16.mxu1 %v3383_v63  ;;  %v3390_v63 = vunpack.c.l.s8.bf16 %v1235_v6  ;;  %v5355_v57 = vcombine.high %v18026_v1, %v18026_v1 }
 0x7fa   : > { %15034 = vmatpush3.bf16.msra.mxu0 %v3359_v19 }
 0x7fb   : > { %15056 = vmatpush3.bf16.msra.mxu1 %v3375_v20  ;;  %15063 = vmatprep.subr.bf16.mxu0 %v3392_v46  ;;  %v1252_v20 = vld [vmem:[%s16178_s23 + $0x1f20] sm:$0xff] }
 0x7fc   : > { %15085 = vmatprep.subr.bf16.mxu1 %v3408_v21  ;;  %v1260_v46 = vld [vmem:[%s16178_s23 + $0x1f60] sm:$0xff]  ;;  %v5321_v21 = vrot.slane %v17995_v54, %v16209_v37 }
 0x7fd   : > { %10759 = vmatmul.mubr.bf16.vlgmr.msra.gmra.mrb[240].mxu0 %v5314_v16 }
 0x7fe   : > { %10799 = vmatmul.mubr.bf16.vlgmr.msra.gmra.mrb[240].mxu1 %v5336_v14  ;;  %15064 = vmatpush3.bf16.msra.mxu0 %v3384_v24  ;;  %v3407_v14 = vunpack.c.h.s8.bf16 %v1243_v2  ;;  %v3424_v24 = vunpack.c.l.s8.bf16 %v1252_v20  ;;  %v5337_v31 = vcombine.high %v5321_v21, %v5321_v21 }
 0x7ff   : > { %15086 = vmatpush3.bf16.msra.mxu1 %v3400_v27  ;;  %15065 = vmatprep.subr.bf16.mxu0 %v3393_v28  ;;  %v3440_v27 = vunpack.c.l.s8.bf16 %v1260_v46  ;;  %v1256_v28 = vld [vmem:[%s16178_s23 + $0x1f40] sm:$0xff] }
 0x800   : > { %15087 = vmatprep.subr.bf16.mxu1 %v3409_v29  ;;  %10838 = vmatprep.mubr.bf16.mxu0 %v5335_v23  ;;  %v3391_v23 = vunpack.c.h.s8.bf16 %v1235_v6  ;;  %v5377_v29 = vrot.slane %v5355_v57, %v16209_v37  ;;  %v3432_v32 = vunpack.c.l.s8.bf16 %v1256_v28  ;;  %v3433_v41 = vunpack.c.h.s8.bf16 %v1256_v28  ;;  %v1263_v6 = vld [vmem:[%s16178_s23 + $0x1f78] sm:$0xff] }
 0x801   : > { %10878 = vmatprep.mubr.bf16.mxu1 %v5339_v11  ;;  %v3425_v11 = vunpack.c.h.s8.bf16 %v1252_v20  ;;  %v3447_v57 = vunpack.c.h.s8.bf16 %v1263_v6 }
 0x802   : > { %15066 = vmatpush3.bf16.msra.mxu0 %v3385_v33  ;;  %v3441_v33 = vunpack.c.h.s8.bf16 %v1260_v46  ;;  %v5387_v5 = vcombine.high %v5377_v29, %v5377_v29 }
 0x803   : > { %15088 = vmatpush3.bf16.msra.mxu1 %v3401_v22  ;;  %15067 = vmatprep.subr.bf16.mxu0 %v3394_v35  ;;  %v1253_v22 = vld [vmem:[%s16178_s23 + $0x1f28] sm:$0xff] }
 0x804   : > { %15089 = vmatprep.subr.bf16.mxu1 %v3410_v36  ;;  %v1261_v35 = vld [vmem:[%s16178_s23 + $0x1f68] sm:$0xff] }
 0x806   : > { %15068 = vmatpush3.bf16.msra.mxu0 %v3386_v42  ;;  %v3426_v42 = vunpack.c.l.s8.bf16 %v1253_v22 }
 0x807   : > { %15090 = vmatpush3.bf16.msra.mxu1 %v3402_v25  ;;  %15069 = vmatprep.subr.bf16.mxu0 %v3395_v40  ;;  %v1249_v25 = vld [vmem:[%s16178_s23 + $0x1f08] sm:$0xff]  ;;  %v3442_v40 = vunpack.c.l.s8.bf16 %v1261_v35 }
 0x808   : > { %15091 = vmatprep.subr.bf16.mxu1 %v3411_v30  ;;  %v1257_v30 = vld [vmem:[%s16178_s23 + $0x1f48] sm:$0xff]  ;;  %v3418_v44 = vunpack.c.l.s8.bf16 %v1249_v25 }
 0x809   : > { %v3434_v18 = vunpack.c.l.s8.bf16 %v1257_v30  ;;  %v3435_v39 = vunpack.c.h.s8.bf16 %v1257_v30 }
 0x80a   : > { %15070 = vmatpush3.bf16.msra.mxu0 %v3387_v45  ;;  %v3427_v45 = vunpack.c.h.s8.bf16 %v1253_v22 }
 0x80b   : > { %15092 = vmatpush3.bf16.msra.mxu1 %v3403_v48  ;;  %15071 = vmatprep.subr.bf16.mxu0 %v3396_v49  ;;  %v3443_v48 = vunpack.c.h.s8.bf16 %v1261_v35  ;;  %v1254_v49 = vld [vmem:[%s16178_s23 + $0x1f30] sm:$0xff] }
 0x80c   : > { %15093 = vmatprep.subr.bf16.mxu1 %v3412_v50  ;;  %v3419_v50 = vunpack.c.h.s8.bf16 %v1249_v25 }
 0x80e   : > { %15072 = vmatpush3.bf16.msra.mxu0 %v3388_v52  ;;  %v3428_v52 = vunpack.c.l.s8.bf16 %v1254_v49 }
 0x80f   : > { %15094 = vmatpush3.bf16.msra.mxu1 %v3404_v15  ;;  %15073 = vmatprep.subr.bf16.mxu0 %v3397_v53  ;;  %v1250_v15 = vld [vmem:[%s16178_s23 + $0x1f10] sm:$0xff]  ;;  %v3444_v53 = vunpack.c.l.s8.bf16 %v1262_v26 }
 0x810   : > { %15095 = vmatprep.subr.bf16.mxu1 %v3413_v56  ;;  %v14771_v55 = vpop.f32.mrb[216].mxu0  ;;  %v1258_v56 = vld [vmem:[%s16178_s23 + $0x1f50] sm:$0xff]  ;;  %v3420_v58 = vunpack.c.l.s8.bf16 %v1250_v15  ;;  %v3421_v2 = vunpack.c.h.s8.bf16 %v1250_v15 }
 0x811   : > { %v14793_v43 = vpop.f32.mrb[216].mxu1  ;;  %v14772_v47 = vpop.f32.mrb[217].mxu0  ;;  %v3436_v34 = vunpack.c.l.s8.bf16 %v1258_v56  ;;  %v1278_v15 = vld [vmem:[%s16178_s23 + $0x1ff0] sm:$0xff] }
 0x812   : > { %v14794_v3 = vpop.f32.mrb[217].mxu1  ;;  %v14773_v8 = vadd.f32 %v14772_v47, %v14771_v55  ;;  %v14774_v9 = vpop.f32.mrb[218].mxu0  ;;  %15074 = vmatpush3.bf16.msra.mxu0 %v3389_v59  ;;  %v3429_v59 = vunpack.c.h.s8.bf16 %v1254_v49  ;;  %v3437_v55 = vunpack.c.h.s8.bf16 %v1258_v56  ;;  %v1251_v47 = vld [vmem:[%s16178_s23 + $0x1f18] sm:$0xff] }
 0x813   : > { %v14795_v38 = vadd.f32 %v14794_v3, %v14793_v43  ;;  %15096 = vmatpush3.bf16.msra.mxu1 %v3405_v60  ;;  %v14796_v12 = vpop.f32.mrb[218].mxu1  ;;  %v14775_v13 = vpop.f32.mrb[219].mxu0  ;;  %15075 = vmatprep.subr.bf16.mxu0 %v3398_v61  ;;  %v3445_v60 = vunpack.c.h.s8.bf16 %v1262_v26  ;;  %v1255_v61 = vld [vmem:[%s16178_s23 + $0x1f38] sm:$0xff]  ;;  %v3446_v3 = vunpack.c.l.s8.bf16 %v1263_v6 }
 0x814   : > { %15097 = vmatprep.subr.bf16.mxu1 %v3414_v62  ;;  %v14797_v16 = vpop.f32.mrb[219].mxu1  ;;  %v10281_v19 = vadd.f32 %v14773_v8, %v18004_v17  ;;  %v1248_v17 = vld [vmem:[%s16178_s23 + $0x1f00] sm:$0xff]  ;;  %v5340_v62 = vcombine.high %v18020_v51, %v18020_v51  ;;  %v3430_v43 = vunpack.c.l.s8.bf16 %v1255_v61  ;;  %v1259_v8 = vld [vmem:[%s16178_s23 + $0x1f58] sm:$0xff]  ;;  %v3431_v46 = vunpack.c.h.s8.bf16 %v1255_v61 }
 0x815   : > { %v3416_v54 = vunpack.c.l.s8.bf16 %v1248_v17  ;;  %v3417_v36 = vunpack.c.h.s8.bf16 %v1248_v17  ;;  %v3438_v16 = vunpack.c.l.s8.bf16 %v1259_v8 }
 0x816   : > { %v18035_v0 = vadd.f32 %v14795_v38, %v10281_v19  ;;  %15076 = vmatpush3.bf16.msra.mxu0 %v3390_v63  ;;  %v18055_v63 = vrot.slane %v5340_v62, %v16209_v37 }
 0x817   : > { %15098 = vmatpush3.bf16.msra.mxu1 %v3406_v7  ;;  %15077 = vmatprep.subr.bf16.mxu0 %v3399_v10 }
 0x818   : > { %15099 = vmatprep.subr.bf16.mxu1 %v3415_v4  ;;  %v3422_v4 = vunpack.c.l.s8.bf16 %v1251_v47  ;;  %v5356_v17 = vcombine.high %v18055_v63, %v18055_v63 }
 0x81a   : > { %15078 = vmatpush3.bf16.msra.mxu0 %v3391_v23 }
 0x81b   : > { %15100 = vmatpush3.bf16.msra.mxu1 %v3407_v14  ;;  %15107 = vmatprep.subr.bf16.mxu0 %v3424_v24  ;;  %v1268_v14 = vld [vmem:[%s16178_s23 + $0x1fa0] sm:$0xff] }
 0x81c   : > { %15129 = vmatprep.subr.bf16.mxu1 %v3440_v27  ;;  %v1276_v24 = vld [vmem:[%s16178_s23 + $0x1fe0] sm:$0xff]  ;;  %v5363_v27 = vrot.slane %v18026_v1, %v16209_v37 }
 0x81d   : > { %10839 = vmatmul.mubr.bf16.vlgmr.msra.gmra.mrb[244].mxu0 %v5321_v21 }
 0x81e   : > { %10879 = vmatmul.mubr.bf16.vlgmr.msra.gmra.mrb[244].mxu1 %v5337_v31  ;;  %15108 = vmatpush3.bf16.msra.mxu0 %v3416_v54  ;;  %v3439_v31 = vunpack.c.h.s8.bf16 %v1259_v8  ;;  %v3456_v54 = vunpack.c.l.s8.bf16 %v1268_v14  ;;  %v5385_v22 = vcombine.high %v5363_v27, %v5363_v27 }
 0x81f   : > { %15130 = vmatpush3.bf16.msra.mxu1 %v3432_v32  ;;  %15109 = vmatprep.subr.bf16.mxu0 %v3425_v11  ;;  %v3472_v32 = vunpack.c.l.s8.bf16 %v1276_v24  ;;  %v1272_v11 = vld [vmem:[%s16178_s23 + $0x1fc0] sm:$0xff] }
 0x820   : > { %15131 = vmatprep.subr.bf16.mxu1 %v3441_v33  ;;  %10918 = vmatprep.mubr.bf16.mxu0 %v5377_v29  ;;  %v3423_v29 = vunpack.c.h.s8.bf16 %v1251_v47  ;;  %v5384_v33 = vrot.slane %v5356_v17, %v16209_v37  ;;  %v3464_v35 = vunpack.c.l.s8.bf16 %v1272_v11  ;;  %v3465_v30 = vunpack.c.h.s8.bf16 %v1272_v11  ;;  %v18080_v47 = vld [vmem:[%s16192_s25 + $0x100] sm:$0xff] }
 0x821   : > { %10958 = vmatprep.mubr.bf16.mxu1 %v5387_v5  ;;  %v3457_v5 = vunpack.c.h.s8.bf16 %v1268_v14 }
 0x822   : > { %15110 = vmatpush3.bf16.msra.mxu0 %v3417_v36  ;;  %v3473_v36 = vunpack.c.h.s8.bf16 %v1276_v24  ;;  %v5388_v25 = vcombine.high %v5384_v33, %v5384_v33 }
 0x823   : > { %15132 = vmatpush3.bf16.msra.mxu1 %v3433_v41  ;;  %15111 = vmatprep.subr.bf16.mxu0 %v3426_v42  ;;  %v1269_v41 = vld [vmem:[%s16178_s23 + $0x1fa8] sm:$0xff] }
 0x824   : > { %15133 = vmatprep.subr.bf16.mxu1 %v3442_v40  ;;  %v1277_v42 = vld [vmem:[%s16178_s23 + $0x1fe8] sm:$0xff] }
 0x826   : > { %15112 = vmatpush3.bf16.msra.mxu0 %v3418_v44  ;;  %v3458_v44 = vunpack.c.l.s8.bf16 %v1269_v41 }
 0x827   : > { %15134 = vmatpush3.bf16.msra.mxu1 %v3434_v18  ;;  %15113 = vmatprep.subr.bf16.mxu0 %v3427_v45  ;;  %v1265_v18 = vld [vmem:[%s16178_s23 + $0x1f88] sm:$0xff]  ;;  %v3474_v45 = vunpack.c.l.s8.bf16 %v1277_v42 }
 0x828   : > { %15135 = vmatprep.subr.bf16.mxu1 %v3443_v48  ;;  %v1273_v48 = vld [vmem:[%s16178_s23 + $0x1fc8] sm:$0xff]  ;;  %v3450_v49 = vunpack.c.l.s8.bf16 %v1265_v18 }
 0x829   : > { %v3466_v26 = vunpack.c.l.s8.bf16 %v1273_v48  ;;  %v3467_v56 = vunpack.c.h.s8.bf16 %v1273_v48 }
 0x82a   : > { %15114 = vmatpush3.bf16.msra.mxu0 %v3419_v50  ;;  %v3459_v50 = vunpack.c.h.s8.bf16 %v1269_v41 }
 0x82b   : > { %15136 = vmatpush3.bf16.msra.mxu1 %v3435_v39  ;;  %15115 = vmatprep.subr.bf16.mxu0 %v3428_v52  ;;  %v3475_v39 = vunpack.c.h.s8.bf16 %v1277_v42  ;;  %v1270_v52 = vld [vmem:[%s16178_s23 + $0x1fb0] sm:$0xff] }
 0x82c   : > { %15137 = vmatprep.subr.bf16.mxu1 %v3444_v53  ;;  %v3451_v53 = vunpack.c.h.s8.bf16 %v1265_v18  ;;  %v3461_v62 = vunpack.c.h.s8.bf16 %v1270_v52 }
 0x82e   : > { %15116 = vmatpush3.bf16.msra.mxu0 %v3420_v58  ;;  %v3460_v58 = vunpack.c.l.s8.bf16 %v1270_v52 }
 0x82f   : > { %15138 = vmatpush3.bf16.msra.mxu1 %v3436_v34  ;;  %15117 = vmatprep.subr.bf16.mxu0 %v3429_v59  ;;  %v1266_v34 = vld [vmem:[%s16178_s23 + $0x1f90] sm:$0xff]  ;;  %v3476_v59 = vunpack.c.l.s8.bf16 %v1278_v15 }
 0x830   : > { %15139 = vmatprep.subr.bf16.mxu1 %v3445_v60  ;;  %v14815_v9 = vpop.f32.mrb[220].mxu0  ;;  %v1274_v60 = vld [vmem:[%s16178_s23 + $0x1fd0] sm:$0xff]  ;;  %v3452_v61 = vunpack.c.l.s8.bf16 %v1266_v34 }
 0x831   : > { %v14837_v38 = vpop.f32.mrb[220].mxu1  ;;  %v14816_v7 = vpop.f32.mrb[221].mxu0  ;;  %v3468_v6 = vunpack.c.l.s8.bf16 %v1274_v60  ;;  %v3469_v8 = vunpack.c.h.s8.bf16 %v1274_v60 }
 0x832   : > { %v14838_v12 = vpop.f32.mrb[221].mxu1  ;;  %v14817_v13 = vadd.f32 %v14816_v7, %v14815_v9  ;;  %v14818_v51 = vpop.f32.mrb[222].mxu0  ;;  %15118 = vmatpush3.bf16.msra.mxu0 %v3421_v2  ;;  %v3477_v2 = vunpack.c.h.s8.bf16 %v1278_v15 }
 0x833   : > { %v14839_v10 = vadd.f32 %v14838_v12, %v14837_v38  ;;  %15140 = vmatpush3.bf16.msra.mxu1 %v3437_v55  ;;  %v14840_v19 = vpop.f32.mrb[222].mxu1  ;;  %v14819_v20 = vpop.f32.mrb[223].mxu0  ;;  %15119 = vmatprep.subr.bf16.mxu0 %v3430_v43  ;;  %v1271_v55 = vld [vmem:[%s16178_s23 + $0x1fb8] sm:$0xff] }
 0x834   : > { %15141 = vmatprep.subr.bf16.mxu1 %v3446_v3  ;;  %v14841_v21 = vpop.f32.mrb[223].mxu1  ;;  %v10361_v23 = vadd.f32 %v14817_v13, %v18035_v0  ;;  %v1264_v0 = vld [vmem:[%s16178_s23 + $0x1f80] sm:$0xff]  ;;  %v1279_v43 = vld [vmem:[%s16178_s23 + $0x1ff8] sm:$0xff]  ;;  %v3453_v3 = vunpack.c.h.s8.bf16 %v1266_v34  ;;  %v3462_v9 = vunpack.c.l.s8.bf16 %v1271_v55  ;;  %v3463_v24 = vunpack.c.h.s8.bf16 %v1271_v55  ;;  %v1294_v34 = vld [vmem:[%s16178_s23 + $0x2070] sm:$0xff] }
 0x835   : > { %v3448_v1 = vunpack.c.l.s8.bf16 %v1264_v0  ;;  %v3449_v40 = vunpack.c.h.s8.bf16 %v1264_v0  ;;  %v1267_v38 = vld [vmem:[%s16178_s23 + $0x1f98] sm:$0xff]  ;;  %v3478_v7 = vunpack.c.l.s8.bf16 %v1279_v43  ;;  %v3479_v17 = vunpack.c.h.s8.bf16 %v1279_v43 }
 0x836   : > { %v18064_v28 = vadd.f32 %v14839_v10, %v10361_v23  ;;  %15120 = vmatpush3.bf16.msra.mxu0 %v3422_v4  ;;  %v1275_v12 = vld [vmem:[%s16178_s23 + $0x1fd8] sm:$0xff]  ;;  %v18086_v10 = vrot.slane %v18080_v47, %v16209_v37 }
 0x837   : > { %15142 = vmatpush3.bf16.msra.mxu1 %v3438_v16  ;;  %15121 = vmatprep.subr.bf16.mxu0 %v3431_v46  ;;  %v3470_v21 = vunpack.c.l.s8.bf16 %v1275_v12 }
 0x838   : > { %15143 = vmatprep.subr.bf16.mxu1 %v3447_v57  ;;  %v3454_v57 = vunpack.c.l.s8.bf16 %v1267_v38  ;;  %v5404_v0 = vcombine.high %v18086_v10, %v18086_v10 }
 0x83a   : > { %15122 = vmatpush3.bf16.msra.mxu0 %v3423_v29 }
 0x83b   : > { %15144 = vmatpush3.bf16.msra.mxu1 %v3439_v31  ;;  %15151 = vmatprep.subr.bf16.mxu0 %v3456_v54  ;;  %v1284_v31 = vld [vmem:[%s16178_s23 + $0x2020] sm:$0xff] }
 0x83c   : > { %15173 = vmatprep.subr.bf16.mxu1 %v3472_v32  ;;  %v1292_v54 = vld [vmem:[%s16178_s23 + $0x2060] sm:$0xff]  ;;  %v5370_v32 = vrot.slane %v18055_v63, %v16209_v37 }
 0x83d   : > { %10919 = vmatmul.mubr.bf16.vlgmr.msra.gmra.mrb[248].mxu0 %v5363_v27 }
 0x83e   : > { %10959 = vmatmul.mubr.bf16.vlgmr.msra.gmra.mrb[248].mxu1 %v5385_v22  ;;  %15152 = vmatpush3.bf16.msra.mxu0 %v3448_v1  ;;  %v3471_v22 = vunpack.c.h.s8.bf16 %v1275_v12  ;;  %v3488_v1 = vunpack.c.l.s8.bf16 %v1284_v31  ;;  %v5386_v41 = vcombine.high %v5370_v32, %v5370_v32 }
 0x83f   : > { %15174 = vmatpush3.bf16.msra.mxu1 %v3464_v35  ;;  %15153 = vmatprep.subr.bf16.mxu0 %v3457_v5  ;;  %v3504_v35 = vunpack.c.l.s8.bf16 %v1292_v54  ;;  %v1288_v5 = vld [vmem:[%s16178_s23 + $0x2040] sm:$0xff] }
 0x840   : > { %15175 = vmatprep.subr.bf16.mxu1 %v3473_v36  ;;  %10998 = vmatprep.mubr.bf16.mxu0 %v5384_v33  ;;  %v3455_v33 = vunpack.c.h.s8.bf16 %v1267_v38  ;;  %v5426_v36 = vrot.slane %v5404_v0, %v16209_v37  ;;  %v3496_v42 = vunpack.c.l.s8.bf16 %v1288_v5  ;;  %v3497_v48 = vunpack.c.h.s8.bf16 %v1288_v5  ;;  %v1295_v38 = vld [vmem:[%s16178_s23 + $0x2078] sm:$0xff] }
 0x841   : > { %11038 = vmatprep.mubr.bf16.mxu1 %v5388_v25  ;;  %v3489_v25 = vunpack.c.h.s8.bf16 %v1284_v31  ;;  %v3511_v0 = vunpack.c.h.s8.bf16 %v1295_v38 }
 0x842   : > { %15154 = vmatpush3.bf16.msra.mxu0 %v3449_v40  ;;  %v3505_v40 = vunpack.c.h.s8.bf16 %v1292_v54  ;;  %v5436_v18 = vcombine.high %v5426_v36, %v5426_v36 }
 0x843   : > { %15176 = vmatpush3.bf16.msra.mxu1 %v3465_v30  ;;  %15155 = vmatprep.subr.bf16.mxu0 %v3458_v44  ;;  %v1285_v30 = vld [vmem:[%s16178_s23 + $0x2028] sm:$0xff] }
 0x844   : > { %15177 = vmatprep.subr.bf16.mxu1 %v3474_v45  ;;  %v1293_v44 = vld [vmem:[%s16178_s23 + $0x2068] sm:$0xff] }
 0x846   : > { %15156 = vmatpush3.bf16.msra.mxu0 %v3450_v49  ;;  %v3490_v49 = vunpack.c.l.s8.bf16 %v1285_v30 }
 0x847   : > { %15178 = vmatpush3.bf16.msra.mxu1 %v3466_v26  ;;  %15157 = vmatprep.subr.bf16.mxu0 %v3459_v50  ;;  %v1281_v26 = vld [vmem:[%s16178_s23 + $0x2008] sm:$0xff]  ;;  %v3506_v50 = vunpack.c.l.s8.bf16 %v1293_v44 }
 0x848   : > { %15179 = vmatprep.subr.bf16.mxu1 %v3475_v39  ;;  %v1289_v39 = vld [vmem:[%s16178_s23 + $0x2048] sm:$0xff]  ;;  %v3482_v52 = vunpack.c.l.s8.bf16 %v1281_v26 }
 0x849   : > { %v3498_v15 = vunpack.c.l.s8.bf16 %v1289_v39  ;;  %v3499_v60 = vunpack.c.h.s8.bf16 %v1289_v39 }
 0x84a   : > { %15158 = vmatpush3.bf16.msra.mxu0 %v3451_v53  ;;  %v3491_v53 = vunpack.c.h.s8.bf16 %v1285_v30 }
 0x84b   : > { %15180 = vmatpush3.bf16.msra.mxu1 %v3467_v56  ;;  %15159 = vmatprep.subr.bf16.mxu0 %v3460_v58  ;;  %v3507_v56 = vunpack.c.h.s8.bf16 %v1293_v44  ;;  %v1286_v58 = vld [vmem:[%s16178_s23 + $0x2030] sm:$0xff] }
 0x84c   : > { %15181 = vmatprep.subr.bf16.mxu1 %v3476_v59  ;;  %v3483_v59 = vunpack.c.h.s8.bf16 %v1281_v26 }
 0x84e   : > { %15160 = vmatpush3.bf16.msra.mxu0 %v3452_v61  ;;  %v3492_v61 = vunpack.c.l.s8.bf16 %v1286_v58 }
 0x84f   : > { %15182 = vmatpush3.bf16.msra.mxu1 %v3468_v6  ;;  %15161 = vmatprep.subr.bf16.mxu0 %v3461_v62  ;;  %v1282_v6 = vld [vmem:[%s16178_s23 + $0x2010] sm:$0xff]  ;;  %v3508_v62 = vunpack.c.l.s8.bf16 %v1294_v34 }
 0x850   : > { %15183 = vmatprep.subr.bf16.mxu1 %v3477_v2  ;;  %v14859_v13 = vpop.f32.mrb[224].mxu0  ;;  %v1290_v2 = vld [vmem:[%s16178_s23 + $0x2050] sm:$0xff]  ;;  %v3484_v55 = vunpack.c.l.s8.bf16 %v1282_v6  ;;  %v3485_v12 = vunpack.c.h.s8.bf16 %v1282_v6 }
 0x851   : > { %v14881_v51 = vpop.f32.mrb[224].mxu1  ;;  %v14860_v4 = vpop.f32.mrb[225].mxu0  ;;  %v3500_v43 = vunpack.c.l.s8.bf16 %v1290_v2  ;;  %v1310_v6 = vld [vmem:[%s16178_s23 + $0x20f0] sm:$0xff] }
 0x852   : > { %v14882_v16 = vpop.f32.mrb[225].mxu1  ;;  %v14861_v19 = vadd.f32 %v14860_v4, %v14859_v13  ;;  %v14862_v20 = vpop.f32.mrb[226].mxu0  ;;  %15162 = vmatpush3.bf16.msra.mxu0 %v3453_v3  ;;  %v3493_v3 = vunpack.c.h.s8.bf16 %v1286_v58  ;;  %v3501_v13 = vunpack.c.h.s8.bf16 %v1290_v2  ;;  %v1283_v4 = vld [vmem:[%s16178_s23 + $0x2018] sm:$0xff] }
 0x853   : > { %v14883_v46 = vadd.f32 %v14882_v16, %v14881_v51  ;;  %15184 = vmatpush3.bf16.msra.mxu1 %v3469_v8  ;;  %v14884_v23 = vpop.f32.mrb[226].mxu1  ;;  %v14863_v14 = vpop.f32.mrb[227].mxu0  ;;  %15163 = vmatprep.subr.bf16.mxu0 %v3462_v9  ;;  %v3509_v8 = vunpack.c.h.s8.bf16 %v1294_v34  ;;  %v1287_v9 = vld [vmem:[%s16178_s23 + $0x2038] sm:$0xff]  ;;  %v3510_v16 = vunpack.c.l.s8.bf16 %v1295_v38 }
 0x854   : > { %15185 = vmatprep.subr.bf16.mxu1 %v3478_v7  ;;  %v14885_v27 = vpop.f32.mrb[227].mxu1  ;;  %v10441_v29 = vadd.f32 %v14861_v19, %v18064_v28  ;;  %v1280_v28 = vld [vmem:[%s16178_s23 + $0x2000] sm:$0xff]  ;;  %v5389_v7 = vcombine.high %v18080_v47, %v18080_v47  ;;  %v3494_v51 = vunpack.c.l.s8.bf16 %v1287_v9  ;;  %v1291_v19 = vld [vmem:[%s16178_s23 + $0x2058] sm:$0xff]  ;;  %v3495_v54 = vunpack.c.h.s8.bf16 %v1287_v9 }
 0x855   : > { %v3480_v63 = vunpack.c.l.s8.bf16 %v1280_v28  ;;  %v3481_v45 = vunpack.c.h.s8.bf16 %v1280_v28  ;;  %v3502_v27 = vunpack.c.l.s8.bf16 %v1291_v19 }
 0x856   : > { %v18095_v11 = vadd.f32 %v14883_v46, %v10441_v29  ;;  %15164 = vmatpush3.bf16.msra.mxu0 %v3454_v57  ;;  %v18115_v57 = vrot.slane %v5389_v7, %v16209_v37 }
 0x857   : > { %15186 = vmatpush3.bf16.msra.mxu1 %v3470_v21  ;;  %15165 = vmatprep.subr.bf16.mxu0 %v3463_v24 }
 0x858   : > { %15187 = vmatprep.subr.bf16.mxu1 %v3479_v17  ;;  %v3486_v17 = vunpack.c.l.s8.bf16 %v1283_v4  ;;  %v5405_v28 = vcombine.high %v18115_v57, %v18115_v57 }
 0x85a   : > { %15166 = vmatpush3.bf16.msra.mxu0 %v3455_v33 }
 0x85b   : > { %15188 = vmatpush3.bf16.msra.mxu1 %v3471_v22  ;;  %15195 = vmatprep.subr.bf16.mxu0 %v3488_v1  ;;  %v1300_v22 = vld [vmem:[%s16178_s23 + $0x20a0] sm:$0xff] }
 0x85c   : > { %15217 = vmatprep.subr.bf16.mxu1 %v3504_v35  ;;  %v1308_v1 = vld [vmem:[%s16178_s23 + $0x20e0] sm:$0xff]  ;;  %v5412_v35 = vrot.slane %v18086_v10, %v16209_v37 }
 0x85d   : > { %10999 = vmatmul.mubr.bf16.vlgmr.msra.gmra.mrb[252].mxu0 %v5370_v32 }
 0x85e   : > { %11039 = vmatmul.mubr.bf16.vlgmr.msra.gmra.mrb[252].mxu1 %v5386_v41  ;;  %15196 = vmatpush3.bf16.msra.mxu0 %v3480_v63  ;;  %v3503_v41 = vunpack.c.h.s8.bf16 %v1291_v19  ;;  %v3520_v63 = vunpack.c.l.s8.bf16 %v1300_v22  ;;  %v5434_v30 = vcombine.high %v5412_v35, %v5412_v35 }
 0x85f   : > { %15218 = vmatpush3.bf16.msra.mxu1 %v3496_v42  ;;  %15197 = vmatprep.subr.bf16.mxu0 %v3489_v25  ;;  %v3536_v42 = vunpack.c.l.s8.bf16 %v1308_v1  ;;  %v1304_v25 = vld [vmem:[%s16178_s23 + $0x20c0] sm:$0xff] }
 0x860   : > { %15219 = vmatprep.subr.bf16.mxu1 %v3505_v40  ;;  %11078 = vmatprep.mubr.bf16.mxu0 %v5426_v36  ;;  %v3487_v36 = vunpack.c.h.s8.bf16 %v1283_v4  ;;  %v5433_v40 = vrot.slane %v5405_v28, %v16209_v37  ;;  %v3528_v44 = vunpack.c.l.s8.bf16 %v1304_v25  ;;  %v3529_v39 = vunpack.c.h.s8.bf16 %v1304_v25  ;;  %v18140_v4 = vld [vmem:[%s16192_s25 + $0x108] sm:$0xff] }
 0x861   : > { %11118 = vmatprep.mubr.bf16.mxu1 %v5436_v18  ;;  %v3521_v18 = vunpack.c.h.s8.bf16 %v1300_v22 }
 0x862   : > { %15198 = vmatpush3.bf16.msra.mxu0 %v3481_v45  ;;  %v3537_v45 = vunpack.c.h.s8.bf16 %v1308_v1  ;;  %v5437_v26 = vcombine.high %v5433_v40, %v5433_v40 }
 0x863   : > { %15220 = vmatpush3.bf16.msra.mxu1 %v3497_v48  ;;  %15199 = vmatprep.subr.bf16.mxu0 %v3490_v49  ;;  %v1301_v48 = vld [vmem:[%s16178_s23 + $0x20a8] sm:$0xff] }
 0x864   : > { %15221 = vmatprep.subr.bf16.mxu1 %v3506_v50  ;;  %v1309_v49 = vld [vmem:[%s16178_s23 + $0x20e8] sm:$0xff] }
 0x866   : > { %15200 = vmatpush3.bf16.msra.mxu0 %v3482_v52  ;;  %v3522_v52 = vunpack.c.l.s8.bf16 %v1301_v48 }
 0x867   : > { %15222 = vmatpush3.bf16.msra.mxu1 %v3498_v15  ;;  %15201 = vmatprep.subr.bf16.mxu0 %v3491_v53  ;;  %v1297_v15 = vld [vmem:[%s16178_s23 + $0x2088] sm:$0xff]  ;;  %v3538_v53 = vunpack.c.l.s8.bf16 %v1309_v49 }
 0x868   : > { %15223 = vmatprep.subr.bf16.mxu1 %v3507_v56  ;;  %v1305_v56 = vld [vmem:[%s16178_s23 + $0x20c8] sm:$0xff]  ;;  %v3514_v58 = vunpack.c.l.s8.bf16 %v1297_v15 }
 0x869   : > { %v3530_v34 = vunpack.c.l.s8.bf16 %v1305_v56  ;;  %v3531_v2 = vunpack.c.h.s8.bf16 %v1305_v56 }
 0x86a   : > { %15202 = vmatpush3.bf16.msra.mxu0 %v3483_v59  ;;  %v3523_v59 = vunpack.c.h.s8.bf16 %v1301_v48 }
 0x86b   : > { %15224 = vmatpush3.bf16.msra.mxu1 %v3499_v60  ;;  %15203 = vmatprep.subr.bf16.mxu0 %v3492_v61  ;;  %v3539_v60 = vunpack.c.h.s8.bf16 %v1309_v49  ;;  %v1302_v61 = vld [vmem:[%s16178_s23 + $0x20b0] sm:$0xff] }
 0x86c   : > { %15225 = vmatprep.subr.bf16.mxu1 %v3508_v62  ;;  %v3515_v62 = vunpack.c.h.s8.bf16 %v1297_v15  ;;  %v3525_v7 = vunpack.c.h.s8.bf16 %v1302_v61 }
 0x86e   : > { %15204 = vmatpush3.bf16.msra.mxu0 %v3484_v55  ;;  %v3524_v55 = vunpack.c.l.s8.bf16 %v1302_v61 }
 0x86f   : > { %15226 = vmatpush3.bf16.msra.mxu1 %v3500_v43  ;;  %15205 = vmatprep.subr.bf16.mxu0 %v3493_v3  ;;  %v1298_v43 = vld [vmem:[%s16178_s23 + $0x2090] sm:$0xff]  ;;  %v3540_v3 = vunpack.c.l.s8.bf16 %v1310_v6 }
 0x870   : > { %15227 = vmatprep.subr.bf16.mxu1 %v3509_v8  ;;  %v14903_v20 = vpop.f32.mrb[228].mxu0  ;;  %v1306_v8 = vld [vmem:[%s16178_s23 + $0x20d0] sm:$0xff]  ;;  %v3516_v9 = vunpack.c.l.s8.bf16 %v1298_v43 }
 0x871   : > { %v14925_v46 = vpop.f32.mrb[228].mxu1  ;;  %v14904_v21 = vpop.f32.mrb[229].mxu0  ;;  %v3532_v38 = vunpack.c.l.s8.bf16 %v1306_v8  ;;  %v3533_v19 = vunpack.c.h.s8.bf16 %v1306_v8 }
 0x872   : > { %v14926_v23 = vpop.f32.mrb[229].mxu1  ;;  %v14905_v14 = vadd.f32 %v14904_v21, %v14903_v20  ;;  %v14906_v47 = vpop.f32.mrb[230].mxu0  ;;  %15206 = vmatpush3.bf16.msra.mxu0 %v3485_v12  ;;  %v3541_v12 = vunpack.c.h.s8.bf16 %v1310_v6 }
 0x873   : > { %v14927_v24 = vadd.f32 %v14926_v23, %v14925_v46  ;;  %15228 = vmatpush3.bf16.msra.mxu1 %v3501_v13  ;;  %v14928_v29 = vpop.f32.mrb[230].mxu1  ;;  %v14907_v31 = vpop.f32.mrb[231].mxu0  ;;  %15207 = vmatprep.subr.bf16.mxu0 %v3494_v51  ;;  %v1303_v13 = vld [vmem:[%s16178_s23 + $0x20b8] sm:$0xff] }
 0x874   : > { %15229 = vmatprep.subr.bf16.mxu1 %v3510_v16  ;;  %v14929_v32 = vpop.f32.mrb[231].mxu1  ;;  %v10521_v33 = vadd.f32 %v14905_v14, %v18095_v11  ;;  %v1296_v11 = vld [vmem:[%s16178_s23 + $0x2080] sm:$0xff]  ;;  %v1311_v51 = vld [vmem:[%s16178_s23 + $0x20f8] sm:$0xff]  ;;  %v3517_v16 = vunpack.c.h.s8.bf16 %v1298_v43  ;;  %v3526_v20 = vunpack.c.l.s8.bf16 %v1303_v13  ;;  %v3527_v1 = vunpack.c.h.s8.bf16 %v1303_v13  ;;  %v1326_v43 = vld [vmem:[%s16178_s23 + $0x2170] sm:$0xff] }
 0x875   : > { %v3512_v10 = vunpack.c.l.s8.bf16 %v1296_v11  ;;  %v3513_v50 = vunpack.c.h.s8.bf16 %v1296_v11  ;;  %v1299_v46 = vld [vmem:[%s16178_s23 + $0x2098] sm:$0xff]  ;;  %v3542_v21 = vunpack.c.l.s8.bf16 %v1311_v51  ;;  %v3543_v28 = vunpack.c.h.s8.bf16 %v1311_v51 }
 0x876   : > { %v18124_v5 = vadd.f32 %v14927_v24, %v10521_v33  ;;  %15208 = vmatpush3.bf16.msra.mxu0 %v3486_v17  ;;  %v1307_v23 = vld [vmem:[%s16178_s23 + $0x20d8] sm:$0xff]  ;;  %v18146_v24 = vrot.slane %v18140_v4, %v16209_v37 }
 0x877   : > { %15230 = vmatpush3.bf16.msra.mxu1 %v3502_v27  ;;  %15209 = vmatprep.subr.bf16.mxu0 %v3495_v54  ;;  %v3534_v32 = vunpack.c.l.s8.bf16 %v1307_v23 }
 0x878   : > { %15231 = vmatprep.subr.bf16.mxu1 %v3511_v0  ;;  %v3518_v0 = vunpack.c.l.s8.bf16 %v1299_v46  ;;  %v5453_v11 = vcombine.high %v18146_v24, %v18146_v24 }
 0x87a   : > { %15210 = vmatpush3.bf16.msra.mxu0 %v3487_v36 }
 0x87b   : > { %15232 = vmatpush3.bf16.msra.mxu1 %v3503_v41  ;;  %15239 = vmatprep.subr.bf16.mxu0 %v3520_v63  ;;  %v1316_v41 = vld [vmem:[%s16178_s23 + $0x2120] sm:$0xff] }
 0x87c   : > { %15261 = vmatprep.subr.bf16.mxu1 %v3536_v42  ;;  %v1324_v63 = vld [vmem:[%s16178_s23 + $0x2160] sm:$0xff]  ;;  %v5419_v42 = vrot.slane %v18115_v57, %v16209_v37 }
 0x87d   : > { %11079 = vmatmul.mubr.bf16.vlgmr.msra.gmra.mrb[0].mxu0 %v5412_v35 }
 0x87e   : > { %11119 = vmatmul.mubr.bf16.vlgmr.msra.gmra.mrb[0].mxu1 %v5434_v30  ;;  %15240 = vmatpush3.bf16.msra.mxu0 %v3512_v10  ;;  %v3535_v30 = vunpack.c.h.s8.bf16 %v1307_v23  ;;  %v3552_v10 = vunpack.c.l.s8.bf16 %v1316_v41  ;;  %v5435_v48 = vcombine.high %v5419_v42, %v5419_v42 }
 0x87f   : > { %15262 = vmatpush3.bf16.msra.mxu1 %v3528_v44  ;;  %15241 = vmatprep.subr.bf16.mxu0 %v3521_v18  ;;  %v3568_v44 = vunpack.c.l.s8.bf16 %v1324_v63  ;;  %v1320_v18 = vld [vmem:[%s16178_s23 + $0x2140] sm:$0xff] }
 0x880   : > { %15263 = vmatprep.subr.bf16.mxu1 %v3537_v45  ;;  %11158 = vmatprep.mubr.bf16.mxu0 %v5433_v40  ;;  %v3519_v40 = vunpack.c.h.s8.bf16 %v1299_v46  ;;  %v5475_v45 = vrot.slane %v5453_v11, %v16209_v37  ;;  %v3560_v49 = vunpack.c.l.s8.bf16 %v1320_v18  ;;  %v3561_v56 = vunpack.c.h.s8.bf16 %v1320_v18  ;;  %v1327_v46 = vld [vmem:[%s16178_s23 + $0x2178] sm:$0xff] }
 0x881   : > { %11198 = vmatprep.mubr.bf16.mxu1 %v5437_v26  ;;  %v3553_v26 = vunpack.c.h.s8.bf16 %v1316_v41  ;;  %v3575_v11 = vunpack.c.h.s8.bf16 %v1327_v46 }
 0x882   : > { %15242 = vmatpush3.bf16.msra.mxu0 %v3513_v50  ;;  %v3569_v50 = vunpack.c.h.s8.bf16 %v1324_v63  ;;  %v5485_v15 = vcombine.high %v5475_v45, %v5475_v45 }
 0x883   : > { %15264 = vmatpush3.bf16.msra.mxu1 %v3529_v39  ;;  %15243 = vmatprep.subr.bf16.mxu0 %v3522_v52  ;;  %v1317_v39 = vld [vmem:[%s16178_s23 + $0x2128] sm:$0xff] }
 0x884   : > { %15265 = vmatprep.subr.bf16.mxu1 %v3538_v53  ;;  %v1325_v52 = vld [vmem:[%s16178_s23 + $0x2168] sm:$0xff] }
 0x886   : > { %15244 = vmatpush3.bf16.msra.mxu0 %v3514_v58  ;;  %v3554_v58 = vunpack.c.l.s8.bf16 %v1317_v39 }
 0x887   : > { %15266 = vmatpush3.bf16.msra.mxu1 %v3530_v34  ;;  %15245 = vmatprep.subr.bf16.mxu0 %v3523_v59  ;;  %v1313_v34 = vld [vmem:[%s16178_s23 + $0x2108] sm:$0xff]  ;;  %v3570_v59 = vunpack.c.l.s8.bf16 %v1325_v52 }
 0x888   : > { %15267 = vmatprep.subr.bf16.mxu1 %v3539_v60  ;;  %v1321_v60 = vld [vmem:[%s16178_s23 + $0x2148] sm:$0xff]  ;;  %v3546_v61 = vunpack.c.l.s8.bf16 %v1313_v34 }
 0x889   : > { %v3562_v6 = vunpack.c.l.s8.bf16 %v1321_v60  ;;  %v3563_v8 = vunpack.c.h.s8.bf16 %v1321_v60 }
 0x88a   : > { %15246 = vmatpush3.bf16.msra.mxu0 %v3515_v62  ;;  %v3555_v62 = vunpack.c.h.s8.bf16 %v1317_v39 }
 0x88b   : > { %15268 = vmatpush3.bf16.msra.mxu1 %v3531_v2  ;;  %15247 = vmatprep.subr.bf16.mxu0 %v3524_v55  ;;  %v3571_v2 = vunpack.c.h.s8.bf16 %v1325_v52  ;;  %v1318_v55 = vld [vmem:[%s16178_s23 + $0x2130] sm:$0xff] }
 0x88c   : > { %15269 = vmatprep.subr.bf16.mxu1 %v3540_v3  ;;  %v3547_v3 = vunpack.c.h.s8.bf16 %v1313_v34 }
 0x88e   : > { %15248 = vmatpush3.bf16.msra.mxu0 %v3516_v9  ;;  %v3556_v9 = vunpack.c.l.s8.bf16 %v1318_v55 }
 0x88f   : > { %15270 = vmatpush3.bf16.msra.mxu1 %v3532_v38  ;;  %15249 = vmatprep.subr.bf16.mxu0 %v3525_v7  ;;  %v1314_v38 = vld [vmem:[%s16178_s23 + $0x2110] sm:$0xff]  ;;  %v3572_v7 = vunpack.c.l.s8.bf16 %v1326_v43 }
 0x890   : > { %15271 = vmatprep.subr.bf16.mxu1 %v3541_v12  ;;  %v14947_v14 = vpop.f32.mrb[232].mxu0  ;;  %v1322_v12 = vld [vmem:[%s16178_s23 + $0x2150] sm:$0xff]  ;;  %v3548_v13 = vunpack.c.l.s8.bf16 %v1314_v38  ;;  %v3549_v23 = vunpack.c.h.s8.bf16 %v1314_v38 }
 0x891   : > { %v14969_v47 = vpop.f32.mrb[232].mxu1  ;;  %v14948_v17 = vpop.f32.mrb[233].mxu0  ;;  %v3564_v51 = vunpack.c.l.s8.bf16 %v1322_v12  ;;  %v1342_v38 = vld [vmem:[%s16178_s23 + $0x21f0] sm:$0xff] }
 0x892   : > { %v14970_v27 = vpop.f32.mrb[233].mxu1  ;;  %v14949_v29 = vadd.f32 %v14948_v17, %v14947_v14  ;;  %v14950_v31 = vpop.f32.mrb[234].mxu0  ;;  %15250 = vmatpush3.bf16.msra.mxu0 %v3517_v16  ;;  %v3557_v16 = vunpack.c.h.s8.bf16 %v1318_v55  ;;  %v3565_v14 = vunpack.c.h.s8.bf16 %v1322_v12  ;;  %v1315_v17 = vld [vmem:[%s16178_s23 + $0x2118] sm:$0xff] }
 0x893   : > { %v14971_v54 = vadd.f32 %v14970_v27, %v14969_v47  ;;  %15272 = vmatpush3.bf16.msra.mxu1 %v3533_v19  ;;  %v14972_v33 = vpop.f32.mrb[234].mxu1  ;;  %v14951_v22 = vpop.f32.mrb[235].mxu0  ;;  %15251 = vmatprep.subr.bf16.mxu0 %v3526_v20  ;;  %v3573_v19 = vunpack.c.h.s8.bf16 %v1326_v43  ;;  %v1319_v20 = vld [vmem:[%s16178_s23 + $0x2138] sm:$0xff]  ;;  %v3574_v27 = vunpack.c.l.s8.bf16 %v1327_v46 }
 0x894   : > { %15273 = vmatprep.subr.bf16.mxu1 %v3542_v21  ;;  %v14973_v35 = vpop.f32.mrb[235].mxu1  ;;  %v10601_v36 = vadd.f32 %v14949_v29, %v18124_v5  ;;  %v1312_v5 = vld [vmem:[%s16178_s23 + $0x2100] sm:$0xff]  ;;  %v5438_v21 = vcombine.high %v18140_v4, %v18140_v4  ;;  %v3558_v47 = vunpack.c.l.s8.bf16 %v1319_v20  ;;  %v1323_v29 = vld [vmem:[%s16178_s23 + $0x2158] sm:$0xff]  ;;  %v3559_v63 = vunpack.c.h.s8.bf16 %v1319_v20 }
 0x895   : > { %v3544_v57 = vunpack.c.l.s8.bf16 %v1312_v5  ;;  %v3545_v53 = vunpack.c.h.s8.bf16 %v1312_v5  ;;  %v3566_v35 = vunpack.c.l.s8.bf16 %v1323_v29 }
 0x896   : > { %v18155_v25 = vadd.f32 %v14971_v54, %v10601_v36  ;;  %15252 = vmatpush3.bf16.msra.mxu0 %v3518_v0  ;;  %v18175_v0 = vrot.slane %v5438_v21, %v16209_v37 }
 0x897   : > { %15274 = vmatpush3.bf16.msra.mxu1 %v3534_v32  ;;  %15253 = vmatprep.subr.bf16.mxu0 %v3527_v1 }
 0x898   : > { %15275 = vmatprep.subr.bf16.mxu1 %v3543_v28  ;;  %v3550_v28 = vunpack.c.l.s8.bf16 %v1315_v17  ;;  %v5454_v5 = vcombine.high %v18175_v0, %v18175_v0 }
 0x89a   : > { %15254 = vmatpush3.bf16.msra.mxu0 %v3519_v40 }
 0x89b   : > { %15276 = vmatpush3.bf16.msra.mxu1 %v3535_v30  ;;  %15283 = vmatprep.subr.bf16.mxu0 %v3552_v10  ;;  %v1332_v30 = vld [vmem:[%s16178_s23 + $0x21a0] sm:$0xff] }
 0x89c   : > { %15305 = vmatprep.subr.bf16.mxu1 %v3568_v44  ;;  %v1340_v10 = vld [vmem:[%s16178_s23 + $0x21e0] sm:$0xff]  ;;  %v5461_v44 = vrot.slane %v18146_v24, %v16209_v37 }
 0x89d   : > { %11159 = vmatmul.mubr.bf16.vlgmr.msra.gmra.mrb[4].mxu0 %v5419_v42 }
 0x89e   : > { %11199 = vmatmul.mubr.bf16.vlgmr.msra.gmra.mrb[4].mxu1 %v5435_v48  ;;  %15284 = vmatpush3.bf16.msra.mxu0 %v3544_v57  ;;  %v3567_v48 = vunpack.c.h.s8.bf16 %v1323_v29  ;;  %v3584_v57 = vunpack.c.l.s8.bf16 %v1332_v30  ;;  %v5483_v39 = vcombine.high %v5461_v44, %v5461_v44 }
 0x89f   : > { %15306 = vmatpush3.bf16.msra.mxu1 %v3560_v49  ;;  %15285 = vmatprep.subr.bf16.mxu0 %v3553_v26  ;;  %v3600_v49 = vunpack.c.l.s8.bf16 %v1340_v10  ;;  %v1336_v26 = vld [vmem:[%s16178_s23 + $0x21c0] sm:$0xff] }
 0x8a0   : > { %15307 = vmatprep.subr.bf16.mxu1 %v3569_v50  ;;  %11238 = vmatprep.mubr.bf16.mxu0 %v5475_v45  ;;  %v3551_v45 = vunpack.c.h.s8.bf16 %v1315_v17  ;;  %v5482_v50 = vrot.slane %v5454_v5, %v16209_v37  ;;  %v3592_v52 = vunpack.c.l.s8.bf16 %v1336_v26  ;;  %v3593_v60 = vunpack.c.h.s8.bf16 %v1336_v26  ;;  %v18200_v17 = vld [vmem:[%s16192_s25 + $0x110] sm:$0xff] }
 0x8a1   : > { %11278 = vmatprep.mubr.bf16.mxu1 %v5485_v15  ;;  %v3585_v15 = vunpack.c.h.s8.bf16 %v1332_v30 }
 0x8a2   : > { %15286 = vmatpush3.bf16.msra.mxu0 %v3545_v53  ;;  %v3601_v53 = vunpack.c.h.s8.bf16 %v1340_v10  ;;  %v5486_v34 = vcombine.high %v5482_v50, %v5482_v50 }
 0x8a3   : > { %15308 = vmatpush3.bf16.msra.mxu1 %v3561_v56  ;;  %15287 = vmatprep.subr.bf16.mxu0 %v3554_v58  ;;  %v1333_v56 = vld [vmem:[%s16178_s23 + $0x21a8] sm:$0xff] }
 0x8a4   : > { %15309 = vmatprep.subr.bf16.mxu1 %v3570_v59  ;;  %v1341_v58 = vld [vmem:[%s16178_s23 + $0x21e8] sm:$0xff] }
 0x8a6   : > { %15288 = vmatpush3.bf16.msra.mxu0 %v3546_v61  ;;  %v3586_v61 = vunpack.c.l.s8.bf16 %v1333_v56 }
 0x8a7   : > { %15310 = vmatpush3.bf16.msra.mxu1 %v3562_v6  ;;  %15289 = vmatprep.subr.bf16.mxu0 %v3555_v62  ;;  %v1329_v6 = vld [vmem:[%s16178_s23 + $0x2188] sm:$0xff]  ;;  %v3602_v62 = vunpack.c.l.s8.bf16 %v1341_v58 }
 0x8a8   : > { %15311 = vmatprep.subr.bf16.mxu1 %v3571_v2  ;;  %v1337_v2 = vld [vmem:[%s16178_s23 + $0x21c8] sm:$0xff]  ;;  %v3578_v55 = vunpack.c.l.s8.bf16 %v1329_v6 }
 0x8a9   : > { %v3594_v43 = vunpack.c.l.s8.bf16 %v1337_v2  ;;  %v3595_v12 = vunpack.c.h.s8.bf16 %v1337_v2 }
 0x8aa   : > { %15290 = vmatpush3.bf16.msra.mxu0 %v3547_v3  ;;  %v3587_v3 = vunpack.c.h.s8.bf16 %v1333_v56 }
 0x8ab   : > { %15312 = vmatpush3.bf16.msra.mxu1 %v3563_v8  ;;  %15291 = vmatprep.subr.bf16.mxu0 %v3556_v9  ;;  %v3603_v8 = vunpack.c.h.s8.bf16 %v1341_v58  ;;  %v1334_v9 = vld [vmem:[%s16178_s23 + $0x21b0] sm:$0xff] }
 0x8ac   : > { %15313 = vmatprep.subr.bf16.mxu1 %v3572_v7  ;;  %v3579_v7 = vunpack.c.h.s8.bf16 %v1329_v6  ;;  %v3589_v21 = vunpack.c.h.s8.bf16 %v1334_v9 }
 0x8ae   : > { %15292 = vmatpush3.bf16.msra.mxu0 %v3548_v13  ;;  %v3588_v13 = vunpack.c.l.s8.bf16 %v1334_v9 }
 0x8af   : > { %15314 = vmatpush3.bf16.msra.mxu1 %v3564_v51  ;;  %15293 = vmatprep.subr.bf16.mxu0 %v3557_v16  ;;  %v1330_v51 = vld [vmem:[%s16178_s23 + $0x2190] sm:$0xff]  ;;  %v3604_v16 = vunpack.c.l.s8.bf16 %v1342_v38 }
 0x8b0   : > { %15315 = vmatprep.subr.bf16.mxu1 %v3573_v19  ;;  %v14991_v31 = vpop.f32.mrb[236].mxu0  ;;  %v1338_v19 = vld [vmem:[%s16178_s23 + $0x21d0] sm:$0xff]  ;;  %v3580_v20 = vunpack.c.l.s8.bf16 %v1330_v51 }
 0x8b1   : > { %v15013_v54 = vpop.f32.mrb[236].mxu1  ;;  %v14992_v32 = vpop.f32.mrb[237].mxu0  ;;  %v3596_v46 = vunpack.c.l.s8.bf16 %v1338_v19  ;;  %v3597_v29 = vunpack.c.h.s8.bf16 %v1338_v19 }
 0x8b2   : > { %v15014_v33 = vpop.f32.mrb[237].mxu1  ;;  %v14993_v22 = vadd.f32 %v14992_v32, %v14991_v31  ;;  %v14994_v4 = vpop.f32.mrb[238].mxu0  ;;  %15294 = vmatpush3.bf16.msra.mxu0 %v3549_v23  ;;  %v3605_v23 = vunpack.c.h.s8.bf16 %v1342_v38 }
 0x8b3   : > { %v15015_v1 = vadd.f32 %v15014_v33, %v15013_v54  ;;  %15316 = vmatpush3.bf16.msra.mxu1 %v3565_v14  ;;  %v15016_v36 = vpop.f32.mrb[238].mxu1  ;;  %v14995_v41 = vpop.f32.mrb[239].mxu0  ;;  %15295 = vmatprep.subr.bf16.mxu0 %v3558_v47  ;;  %v1335_v14 = vld [vmem:[%s16178_s23 + $0x21b8] sm:$0xff] }
 0x8b4   : > { %15317 = vmatprep.subr.bf16.mxu1 %v3574_v27  ;;  %v15017_v42 = vpop.f32.mrb[239].mxu1  ;;  %v10681_v40 = vadd.f32 %v14993_v22, %v18155_v25  ;;  %v1328_v25 = vld [vmem:[%s16178_s23 + $0x2180] sm:$0xff]  ;;  %v1343_v47 = vld [vmem:[%s16178_s23 + $0x21f8] sm:$0xff]  ;;  %v3581_v27 = vunpack.c.h.s8.bf16 %v1330_v51  ;;  %v3590_v31 = vunpack.c.l.s8.bf16 %v1335_v14  ;;  %v3591_v10 = vunpack.c.h.s8.bf16 %v1335_v14  ;;  %v1358_v51 = vld [vmem:[%s16178_s23 + $0x2270] sm:$0xff] }
 0x8b5   : > { %v3576_v24 = vunpack.c.l.s8.bf16 %v1328_v25  ;;  %v3577_v59 = vunpack.c.h.s8.bf16 %v1328_v25  ;;  %v1331_v54 = vld [vmem:[%s16178_s23 + $0x2198] sm:$0xff]  ;;  %v3606_v32 = vunpack.c.l.s8.bf16 %v1343_v47  ;;  %v3607_v5 = vunpack.c.h.s8.bf16 %v1343_v47 }
 0x8b6   : > { %v18184_v18 = vadd.f32 %v15015_v1, %v10681_v40  ;;  %15296 = vmatpush3.bf16.msra.mxu0 %v3550_v28  ;;  %v1339_v33 = vld [vmem:[%s16178_s23 + $0x21d8] sm:$0xff]  ;;  %v18206_v1 = vrot.slane %v18200_v17, %v16209_v37 }
 0x8b7   : > { %15318 = vmatpush3.bf16.msra.mxu1 %v3566_v35  ;;  %15297 = vmatprep.subr.bf16.mxu0 %v3559_v63  ;;  %v3598_v42 = vunpack.c.l.s8.bf16 %v1339_v33 }
 0x8b8   : > { %15319 = vmatprep.subr.bf16.mxu1 %v3575_v11  ;;  %v3582_v11 = vunpack.c.l.s8.bf16 %v1331_v54  ;;  %v5502_v25 = vcombine.high %v18206_v1, %v18206_v1 }
 0x8ba   : > { %15298 = vmatpush3.bf16.msra.mxu0 %v3551_v45 }
 0x8bb   : > { %15320 = vmatpush3.bf16.msra.mxu1 %v3567_v48  ;;  %15327 = vmatprep.subr.bf16.mxu0 %v3584_v57  ;;  %v1348_v48 = vld [vmem:[%s16178_s23 + $0x2220] sm:$0xff] }
 0x8bc   : > { %15349 = vmatprep.subr.bf16.mxu1 %v3600_v49  ;;  %v1356_v57 = vld [vmem:[%s16178_s23 + $0x2260] sm:$0xff]  ;;  %v5468_v49 = vrot.slane %v18175_v0, %v16209_v37 }
 0x8bd   : > { %11239 = vmatmul.mubr.bf16.vlgmr.msra.gmra.mrb[8].mxu0 %v5461_v44 }
 0x8be   : > { %11279 = vmatmul.mubr.bf16.vlgmr.msra.gmra.mrb[8].mxu1 %v5483_v39  ;;  %15328 = vmatpush3.bf16.msra.mxu0 %v3576_v24  ;;  %v3599_v39 = vunpack.c.h.s8.bf16 %v1339_v33  ;;  %v3616_v24 = vunpack.c.l.s8.bf16 %v1348_v48  ;;  %v5484_v56 = vcombine.high %v5468_v49, %v5468_v49 }
 0x8bf   : > { %15350 = vmatpush3.bf16.msra.mxu1 %v3592_v52  ;;  %15329 = vmatprep.subr.bf16.mxu0 %v3585_v15  ;;  %v3632_v52 = vunpack.c.l.s8.bf16 %v1356_v57  ;;  %v1352_v15 = vld [vmem:[%s16178_s23 + $0x2240] sm:$0xff] }
 0x8c0   : > { %15351 = vmatprep.subr.bf16.mxu1 %v3601_v53  ;;  %11318 = vmatprep.mubr.bf16.mxu0 %v5482_v50  ;;  %v3583_v50 = vunpack.c.h.s8.bf16 %v1331_v54  ;;  %v5524_v53 = vrot.slane %v5502_v25, %v16209_v37  ;;  %v3624_v58 = vunpack.c.l.s8.bf16 %v1352_v15  ;;  %v3625_v2 = vunpack.c.h.s8.bf16 %v1352_v15  ;;  %v1359_v54 = vld [vmem:[%s16178_s23 + $0x2278] sm:$0xff] }
 0x8c1   : > { %11358 = vmatprep.mubr.bf16.mxu1 %v5486_v34  ;;  %v3617_v34 = vunpack.c.h.s8.bf16 %v1348_v48  ;;  %v3639_v25 = vunpack.c.h.s8.bf16 %v1359_v54 }
 0x8c2   : > { %15330 = vmatpush3.bf16.msra.mxu0 %v3577_v59  ;;  %v3633_v59 = vunpack.c.h.s8.bf16 %v1356_v57  ;;  %v5534_v6 = vcombine.high %v5524_v53, %v5524_v53 }
 0x8c3   : > { %15352 = vmatpush3.bf16.msra.mxu1 %v3593_v60  ;;  %15331 = vmatprep.subr.bf16.mxu0 %v3586_v61  ;;  %v1349_v60 = vld [vmem:[%s16178_s23 + $0x2228] sm:$0xff] }
 0x8c4   : > { %15353 = vmatprep.subr.bf16.mxu1 %v3602_v62  ;;  %v1357_v61 = vld [vmem:[%s16178_s23 + $0x2268] sm:$0xff] }
 0x8c6   : > { %15332 = vmatpush3.bf16.msra.mxu0 %v3578_v55  ;;  %v3618_v55 = vunpack.c.l.s8.bf16 %v1349_v60 }
 0x8c7   : > { %15354 = vmatpush3.bf16.msra.mxu1 %v3594_v43  ;;  %15333 = vmatprep.subr.bf16.mxu0 %v3587_v3  ;;  %v1345_v43 = vld [vmem:[%s16178_s23 + $0x2208] sm:$0xff]  ;;  %v3634_v3 = vunpack.c.l.s8.bf16 %v1357_v61 }
 0x8c8   : > { %15355 = vmatprep.subr.bf16.mxu1 %v3603_v8  ;;  %v1353_v8 = vld [vmem:[%s16178_s23 + $0x2248] sm:$0xff]  ;;  %v3610_v9 = vunpack.c.l.s8.bf16 %v1345_v43 }
 0x8c9   : > { %v3626_v38 = vunpack.c.l.s8.bf16 %v1353_v8  ;;  %v3627_v19 = vunpack.c.h.s8.bf16 %v1353_v8 }
 0x8ca   : > { %15334 = vmatpush3.bf16.msra.mxu0 %v3579_v7  ;;  %v3619_v7 = vunpack.c.h.s8.bf16 %v1349_v60 }
 0x8cb   : > { %15356 = vmatpush3.bf16.msra.mxu1 %v3595_v12  ;;  %15335 = vmatprep.subr.bf16.mxu0 %v3588_v13  ;;  %v3635_v12 = vunpack.c.h.s8.bf16 %v1357_v61  ;;  %v1350_v13 = vld [vmem:[%s16178_s23 + $0x2230] sm:$0xff] }
 0x8cc   : > { %15357 = vmatprep.subr.bf16.mxu1 %v3604_v16  ;;  %v3611_v16 = vunpack.c.h.s8.bf16 %v1345_v43 }
 0x8ce   : > { %15336 = vmatpush3.bf16.msra.mxu0 %v3580_v20  ;;  %v3620_v20 = vunpack.c.l.s8.bf16 %v1350_v13 }
 0x8cf   : > { %15358 = vmatpush3.bf16.msra.mxu1 %v3596_v46  ;;  %15337 = vmatprep.subr.bf16.mxu0 %v3589_v21  ;;  %v1346_v46 = vld [vmem:[%s16178_s23 + $0x2210] sm:$0xff]  ;;  %v3636_v21 = vunpack.c.l.s8.bf16 %v1358_v51 }
 0x8d0   : > { %15359 = vmatprep.subr.bf16.mxu1 %v3605_v23  ;;  %v15035_v22 = vpop.f32.mrb[240].mxu0  ;;  %v1354_v23 = vld [vmem:[%s16178_s23 + $0x2250] sm:$0xff]  ;;  %v3612_v14 = vunpack.c.l.s8.bf16 %v1346_v46  ;;  %v3613_v33 = vunpack.c.h.s8.bf16 %v1346_v46 }
 0x8d1   : > { %v15057_v4 = vpop.f32.mrb[240].mxu1  ;;  %v15036_v28 = vpop.f32.mrb[241].mxu0  ;;  %v3628_v47 = vunpack.c.l.s8.bf16 %v1354_v23  ;;  %v1374_v46 = vld [vmem:[%s16178_s23 + $0x22f0] sm:$0xff] }
 0x8d2   : > { %v15058_v35 = vpop.f32.mrb[241].mxu1  ;;  %v15037_v36 = vadd.f32 %v15036_v28, %v15035_v22  ;;  %v15038_v41 = vpop.f32.mrb[242].mxu0  ;;  %15338 = vmatpush3.bf16.msra.mxu0 %v3581_v27  ;;  %v3621_v27 = vunpack.c.h.s8.bf16 %v1350_v13  ;;  %v3629_v22 = vunpack.c.h.s8.bf16 %v1354_v23  ;;  %v1347_v28 = vld [vmem:[%s16178_s23 + $0x2218] sm:$0xff] }
 0x8d3   : > { %v15059_v63 = vadd.f32 %v15058_v35, %v15057_v4  ;;  %15360 = vmatpush3.bf16.msra.mxu1 %v3597_v29  ;;  %v15060_v40 = vpop.f32.mrb[242].mxu1  ;;  %v15039_v30 = vpop.f32.mrb[243].mxu0  ;;  %15339 = vmatprep.subr.bf16.mxu0 %v3590_v31  ;;  %v3637_v29 = vunpack.c.h.s8.bf16 %v1358_v51  ;;  %v1351_v31 = vld [vmem:[%s16178_s23 + $0x2238] sm:$0xff]  ;;  %v3638_v35 = vunpack.c.l.s8.bf16 %v1359_v54 }
 0x8d4   : > { %15361 = vmatprep.subr.bf16.mxu1 %v3606_v32  ;;  %v15061_v44 = vpop.f32.mrb[243].mxu1  ;;  %v10761_v45 = vadd.f32 %v15037_v36, %v18184_v18  ;;  %v1344_v18 = vld [vmem:[%s16178_s23 + $0x2200] sm:$0xff]  ;;  %v5487_v32 = vcombine.high %v18200_v17, %v18200_v17  ;;  %v3622_v4 = vunpack.c.l.s8.bf16 %v1351_v31  ;;  %v1355_v36 = vld [vmem:[%s16178_s23 + $0x2258] sm:$0xff]  ;;  %v3623_v57 = vunpack.c.h.s8.bf16 %v1351_v31 }
 0x8d5   : > { %v3608_v0 = vunpack.c.l.s8.bf16 %v1344_v18  ;;  %v3609_v62 = vunpack.c.h.s8.bf16 %v1344_v18  ;;  %v3630_v44 = vunpack.c.l.s8.bf16 %v1355_v36 }
 0x8d6   : > { %v18215_v26 = vadd.f32 %v15059_v63, %v10761_v45  ;;  %15340 = vmatpush3.bf16.msra.mxu0 %v3582_v11  ;;  %v18235_v11 = vrot.slane %v5487_v32, %v16209_v37 }
 0x8d7   : > { %15362 = vmatpush3.bf16.msra.mxu1 %v3598_v42  ;;  %15341 = vmatprep.subr.bf16.mxu0 %v3591_v10 }
 0x8d8   : > { %15363 = vmatprep.subr.bf16.mxu1 %v3607_v5  ;;  %v3614_v5 = vunpack.c.l.s8.bf16 %v1347_v28  ;;  %v5503_v18 = vcombine.high %v18235_v11, %v18235_v11 }
 0x8da   : > { %15342 = vmatpush3.bf16.msra.mxu0 %v3583_v50 }
 0x8db   : > { %15364 = vmatpush3.bf16.msra.mxu1 %v3599_v39  ;;  %15371 = vmatprep.subr.bf16.mxu0 %v3616_v24  ;;  %v1364_v39 = vld [vmem:[%s16178_s23 + $0x22a0] sm:$0xff] }
 0x8dc   : > { %15393 = vmatprep.subr.bf16.mxu1 %v3632_v52  ;;  %v1372_v24 = vld [vmem:[%s16178_s23 + $0x22e0] sm:$0xff]  ;;  %v5510_v52 = vrot.slane %v18206_v1, %v16209_v37 }
 0x8dd   : > { %11319 = vmatmul.mubr.bf16.vlgmr.msra.gmra.mrb[12].mxu0 %v5468_v49 }
 0x8de   : > { %11359 = vmatmul.mubr.bf16.vlgmr.msra.gmra.mrb[12].mxu1 %v5484_v56  ;;  %15372 = vmatpush3.bf16.msra.mxu0 %v3608_v0  ;;  %v3631_v56 = vunpack.c.h.s8.bf16 %v1355_v36  ;;  %v3648_v0 = vunpack.c.l.s8.bf16 %v1364_v39  ;;  %v5532_v60 = vcombine.high %v5510_v52, %v5510_v52 }
 0x8df   : > { %15394 = vmatpush3.bf16.msra.mxu1 %v3624_v58  ;;  %15373 = vmatprep.subr.bf16.mxu0 %v3617_v34  ;;  %v3664_v58 = vunpack.c.l.s8.bf16 %v1372_v24  ;;  %v1368_v34 = vld [vmem:[%s16178_s23 + $0x22c0] sm:$0xff] }
 0x8e0   : > { %15395 = vmatprep.subr.bf16.mxu1 %v3633_v59  ;;  %11398 = vmatprep.mubr.bf16.mxu0 %v5524_v53  ;;  %v3615_v53 = vunpack.c.h.s8.bf16 %v1347_v28  ;;  %v5531_v59 = vrot.slane %v5503_v18, %v16209_v37  ;;  %v3656_v61 = vunpack.c.l.s8.bf16 %v1368_v34  ;;  %v3657_v8 = vunpack.c.h.s8.bf16 %v1368_v34  ;;  %v18260_v28 = vld [vmem:[%s16192_s25 + $0x118] sm:$0xff] }
 0x8e1   : > { %11438 = vmatprep.mubr.bf16.mxu1 %v5534_v6  ;;  %v3649_v6 = vunpack.c.h.s8.bf16 %v1364_v39 }
 0x8e2   : > { %15374 = vmatpush3.bf16.msra.mxu0 %v3609_v62  ;;  %v3665_v62 = vunpack.c.h.s8.bf16 %v1372_v24  ;;  %v5535_v43 = vcombine.high %v5531_v59, %v5531_v59 }
 0x8e3   : > { %15396 = vmatpush3.bf16.msra.mxu1 %v3625_v2  ;;  %15375 = vmatprep.subr.bf16.mxu0 %v3618_v55  ;;  %v1365_v2 = vld [vmem:[%s16178_s23 + $0x22a8] sm:$0xff] }
 0x8e4   : > { %15397 = vmatprep.subr.bf16.mxu1 %v3634_v3  ;;  %v1373_v55 = vld [vmem:[%s16178_s23 + $0x22e8] sm:$0xff] }
 0x8e6   : > { %15376 = vmatpush3.bf16.msra.mxu0 %v3610_v9  ;;  %v3650_v9 = vunpack.c.l.s8.bf16 %v1365_v2 }
 0x8e7   : > { %15398 = vmatpush3.bf16.msra.mxu1 %v3626_v38  ;;  %15377 = vmatprep.subr.bf16.mxu0 %v3619_v7  ;;  %v1361_v38 = vld [vmem:[%s16178_s23 + $0x2288] sm:$0xff]  ;;  %v3666_v7 = vunpack.c.l.s8.bf16 %v1373_v55 }
 0x8e8   : > { %15399 = vmatprep.subr.bf16.mxu1 %v3635_v12  ;;  %v1369_v12 = vld [vmem:[%s16178_s23 + $0x22c8] sm:$0xff]  ;;  %v3642_v13 = vunpack.c.l.s8.bf16 %v1361_v38 }
 0x8e9   : > { %v3658_v51 = vunpack.c.l.s8.bf16 %v1369_v12  ;;  %v3659_v23 = vunpack.c.h.s8.bf16 %v1369_v12 }
 0x8ea   : > { %15378 = vmatpush3.bf16.msra.mxu0 %v3611_v16  ;;  %v3651_v16 = vunpack.c.h.s8.bf16 %v1365_v2 }
 0x8eb   : > { %15400 = vmatpush3.bf16.msra.mxu1 %v3627_v19  ;;  %15379 = vmatprep.subr.bf16.mxu0 %v3620_v20  ;;  %v3667_v19 = vunpack.c.h.s8.bf16 %v1373_v55  ;;  %v1366_v20 = vld [vmem:[%s16178_s23 + $0x22b0] sm:$0xff] }
 0x8ec   : > { %15401 = vmatprep.subr.bf16.mxu1 %v3636_v21  ;;  %v3643_v21 = vunpack.c.h.s8.bf16 %v1361_v38  ;;  %v3653_v32 = vunpack.c.h.s8.bf16 %v1366_v20 }
 0x8ee   : > { %15380 = vmatpush3.bf16.msra.mxu0 %v3612_v14  ;;  %v3652_v14 = vunpack.c.l.s8.bf16 %v1366_v20 }
 0x8ef   : > { %15402 = vmatpush3.bf16.msra.mxu1 %v3628_v47  ;;  %15381 = vmatprep.subr.bf16.mxu0 %v3621_v27  ;;  %v1362_v47 = vld [vmem:[%s16178_s23 + $0x2290] sm:$0xff]  ;;  %v3668_v27 = vunpack.c.l.s8.bf16 %v1374_v46 }
 0x8f0   : > { %15403 = vmatprep.subr.bf16.mxu1 %v3637_v29  ;;  %v15079_v41 = vpop.f32.mrb[244].mxu0  ;;  %v1370_v29 = vld [vmem:[%s16178_s23 + $0x22d0] sm:$0xff]  ;;  %v3644_v31 = vunpack.c.l.s8.bf16 %v1362_v47 }
 0x8f1   : > { %v15101_v63 = vpop.f32.mrb[244].mxu1  ;;  %v15080_v42 = vpop.f32.mrb[245].mxu0  ;;  %v3660_v54 = vunpack.c.l.s8.bf16 %v1370_v29  ;;  %v3661_v36 = vunpack.c.h.s8.bf16 %v1370_v29 }
 0x8f2   : > { %v15102_v40 = vpop.f32.mrb[245].mxu1  ;;  %v15081_v30 = vadd.f32 %v15080_v42, %v15079_v41  ;;  %v15082_v17 = vpop.f32.mrb[246].mxu0  ;;  %15382 = vmatpush3.bf16.msra.mxu0 %v3613_v33  ;;  %v3669_v33 = vunpack.c.h.s8.bf16 %v1374_v46 }
 0x8f3   : > { %v15103_v10 = vadd.f32 %v15102_v40, %v15101_v63  ;;  %15404 = vmatpush3.bf16.msra.mxu1 %v3629_v22  ;;  %v15104_v45 = vpop.f32.mrb[246].mxu1  ;;  %v15083_v48 = vpop.f32.mrb[247].mxu0  ;;  %15383 = vmatprep.subr.bf16.mxu0 %v3622_v4  ;;  %v1367_v22 = vld [vmem:[%s16178_s23 + $0x22b8] sm:$0xff] }
 0x8f4   : > { %15405 = vmatprep.subr.bf16.mxu1 %v3638_v35  ;;  %v15105_v49 = vpop.f32.mrb[247].mxu1  ;;  %v10841_v50 = vadd.f32 %v15081_v30, %v18215_v26  ;;  %v1360_v26 = vld [vmem:[%s16178_s23 + $0x2280] sm:$0xff]  ;;  %v1375_v4 = vld [vmem:[%s16178_s23 + $0x22f8] sm:$0xff]  ;;  %v3645_v35 = vunpack.c.h.s8.bf16 %v1362_v47  ;;  %v3654_v41 = vunpack.c.l.s8.bf16 %v1367_v22  ;;  %v3655_v24 = vunpack.c.h.s8.bf16 %v1367_v22  ;;  %v1390_v47 = vld [vmem:[%s16178_s23 + $0x2370] sm:$0xff] }
 0x8f5   : > { %v3640_v1 = vunpack.c.l.s8.bf16 %v1360_v26  ;;  %v3641_v3 = vunpack.c.h.s8.bf16 %v1360_v26  ;;  %v1363_v63 = vld [vmem:[%s16178_s23 + $0x2298] sm:$0xff]  ;;  %v3670_v42 = vunpack.c.l.s8.bf16 %v1375_v4  ;;  %v3671_v18 = vunpack.c.h.s8.bf16 %v1375_v4 }
 0x8f6   : > { %v18244_v15 = vadd.f32 %v15103_v10, %v10841_v50  ;;  %15384 = vmatpush3.bf16.msra.mxu0 %v3614_v5  ;;  %v1371_v40 = vld [vmem:[%s16178_s23 + $0x22d8] sm:$0xff]  ;;  %v18266_v10 = vrot.slane %v18260_v28, %v16209_v37 }
 0x8f7   : > { %15406 = vmatpush3.bf16.msra.mxu1 %v3630_v44  ;;  %15385 = vmatprep.subr.bf16.mxu0 %v3623_v57  ;;  %v3662_v49 = vunpack.c.l.s8.bf16 %v1371_v40 }
 0x8f8   : > { %15407 = vmatprep.subr.bf16.mxu1 %v3639_v25  ;;  %v3646_v25 = vunpack.c.l.s8.bf16 %v1363_v63  ;;  %v5551_v26 = vcombine.high %v18266_v10, %v18266_v10 }
 0x8fa   : > { %15386 = vmatpush3.bf16.msra.mxu0 %v3615_v53 }
 0x8fb   : > { %15408 = vmatpush3.bf16.msra.mxu1 %v3631_v56  ;;  %15415 = vmatprep.subr.bf16.mxu0 %v3648_v0  ;;  %v1380_v56 = vld [vmem:[%s16178_s23 + $0x2320] sm:$0xff] }
 0x8fc   : > { %15437 = vmatprep.subr.bf16.mxu1 %v3664_v58  ;;  %v1388_v0 = vld [vmem:[%s16178_s23 + $0x2360] sm:$0xff]  ;;  %v5517_v58 = vrot.slane %v18235_v11, %v16209_v37 }
 0x8fd   : > { %11399 = vmatmul.mubr.bf16.vlgmr.msra.gmra.mrb[16].mxu0 %v5510_v52 }
 0x8fe   : > { %11439 = vmatmul.mubr.bf16.vlgmr.msra.gmra.mrb[16].mxu1 %v5532_v60  ;;  %15416 = vmatpush3.bf16.msra.mxu0 %v3640_v1  ;;  %v3663_v60 = vunpack.c.h.s8.bf16 %v1371_v40  ;;  %v3680_v1 = vunpack.c.l.s8.bf16 %v1380_v56  ;;  %v5533_v2 = vcombine.high %v5517_v58, %v5517_v58 }
 0x8ff   : > { %15438 = vmatpush3.bf16.msra.mxu1 %v3656_v61  ;;  %15417 = vmatprep.subr.bf16.mxu0 %v3649_v6  ;;  %v3696_v61 = vunpack.c.l.s8.bf16 %v1388_v0  ;;  %v1384_v6 = vld [vmem:[%s16178_s23 + $0x2340] sm:$0xff] }
 0x900   : > { %15439 = vmatprep.subr.bf16.mxu1 %v3665_v62  ;;  %11478 = vmatprep.mubr.bf16.mxu0 %v5531_v59  ;;  %v3647_v59 = vunpack.c.h.s8.bf16 %v1363_v63  ;;  %v5573_v62 = vrot.slane %v5551_v26, %v16209_v37  ;;  %v3688_v55 = vunpack.c.l.s8.bf16 %v1384_v6  ;;  %v3689_v12 = vunpack.c.h.s8.bf16 %v1384_v6  ;;  %v1391_v63 = vld [vmem:[%s16178_s23 + $0x2378] sm:$0xff] }
 0x901   : > { %11518 = vmatprep.mubr.bf16.mxu1 %v5535_v43  ;;  %v3681_v43 = vunpack.c.h.s8.bf16 %v1380_v56  ;;  %v3703_v26 = vunpack.c.h.s8.bf16 %v1391_v63 }
 0x902   : > { %15418 = vmatpush3.bf16.msra.mxu0 %v3641_v3  ;;  %v3697_v3 = vunpack.c.h.s8.bf16 %v1388_v0  ;;  %v5583_v38 = vcombine.high %v5573_v62, %v5573_v62 }
 0x903   : > { %15440 = vmatpush3.bf16.msra.mxu1 %v3657_v8  ;;  %15419 = vmatprep.subr.bf16.mxu0 %v3650_v9  ;;  %v1381_v8 = vld [vmem:[%s16178_s23 + $0x2328] sm:$0xff] }
 0x904   : > { %15441 = vmatprep.subr.bf16.mxu1 %v3666_v7  ;;  %v1389_v9 = vld [vmem:[%s16178_s23 + $0x2368] sm:$0xff] }
 0x906   : > { %15420 = vmatpush3.bf16.msra.mxu0 %v3642_v13  ;;  %v3682_v13 = vunpack.c.l.s8.bf16 %v1381_v8 }
 0x907   : > { %15442 = vmatpush3.bf16.msra.mxu1 %v3658_v51  ;;  %15421 = vmatprep.subr.bf16.mxu0 %v3651_v16  ;;  %v1377_v51 = vld [vmem:[%s16178_s23 + $0x2308] sm:$0xff]  ;;  %v3698_v16 = vunpack.c.l.s8.bf16 %v1389_v9 }
 0x908   : > { %15443 = vmatprep.subr.bf16.mxu1 %v3667_v19  ;;  %v1385_v19 = vld [vmem:[%s16178_s23 + $0x2348] sm:$0xff]  ;;  %v3674_v20 = vunpack.c.l.s8.bf16 %v1377_v51 }
 0x909   : > { %v3690_v46 = vunpack.c.l.s8.bf16 %v1385_v19  ;;  %v3691_v29 = vunpack.c.h.s8.bf16 %v1385_v19 }
 0x90a   : > { %15422 = vmatpush3.bf16.msra.mxu0 %v3643_v21  ;;  %v3683_v21 = vunpack.c.h.s8.bf16 %v1381_v8 }
 0x90b   : > { %15444 = vmatpush3.bf16.msra.mxu1 %v3659_v23  ;;  %15423 = vmatprep.subr.bf16.mxu0 %v3652_v14  ;;  %v3699_v23 = vunpack.c.h.s8.bf16 %v1389_v9  ;;  %v1382_v14 = vld [vmem:[%s16178_s23 + $0x2330] sm:$0xff] }
 0x90c   : > { %15445 = vmatprep.subr.bf16.mxu1 %v3668_v27  ;;  %v3675_v27 = vunpack.c.h.s8.bf16 %v1377_v51 }
 0x90e   : > { %15424 = vmatpush3.bf16.msra.mxu0 %v3644_v31  ;;  %v3684_v31 = vunpack.c.l.s8.bf16 %v1382_v14 }
 0x90f   : > { %15446 = vmatpush3.bf16.msra.mxu1 %v3660_v54  ;;  %15425 = vmatprep.subr.bf16.mxu0 %v3653_v32  ;;  %v1378_v54 = vld [vmem:[%s16178_s23 + $0x2310] sm:$0xff]  ;;  %v3700_v32 = vunpack.c.l.s8.bf16 %v1390_v47 }
 0x910   : > { %15447 = vmatprep.subr.bf16.mxu1 %v3669_v33  ;;  %v15123_v30 = vpop.f32.mrb[248].mxu0  ;;  %v1386_v33 = vld [vmem:[%s16178_s23 + $0x2350] sm:$0xff]  ;;  %v3676_v22 = vunpack.c.l.s8.bf16 %v1378_v54  ;;  %v3677_v40 = vunpack.c.h.s8.bf16 %v1378_v54 }
 0x911   : > { %v15145_v17 = vpop.f32.mrb[248].mxu1  ;;  %v15124_v5 = vpop.f32.mrb[249].mxu0  ;;  %v3692_v4 = vunpack.c.l.s8.bf16 %v1386_v33  ;;  %v1406_v54 = vld [vmem:[%s16178_s23 + $0x23f0] sm:$0xff] }
 0x912   : > { %v15146_v44 = vpop.f32.mrb[249].mxu1  ;;  %v15125_v45 = vadd.f32 %v15124_v5, %v15123_v30  ;;  %v15126_v48 = vpop.f32.mrb[250].mxu0  ;;  %15426 = vmatpush3.bf16.msra.mxu0 %v3645_v35  ;;  %v3685_v35 = vunpack.c.h.s8.bf16 %v1382_v14  ;;  %v3693_v30 = vunpack.c.h.s8.bf16 %v1386_v33  ;;  %v1379_v5 = vld [vmem:[%s16178_s23 + $0x2318] sm:$0xff] }
 0x913   : > { %v15147_v57 = vadd.f32 %v15146_v44, %v15145_v17  ;;  %15448 = vmatpush3.bf16.msra.mxu1 %v3661_v36  ;;  %v15148_v50 = vpop.f32.mrb[250].mxu1  ;;  %v15127_v39 = vpop.f32.mrb[251].mxu0  ;;  %15427 = vmatprep.subr.bf16.mxu0 %v3654_v41  ;;  %v3701_v36 = vunpack.c.h.s8.bf16 %v1390_v47  ;;  %v1383_v41 = vld [vmem:[%s16178_s23 + $0x2338] sm:$0xff]  ;;  %v3702_v44 = vunpack.c.l.s8.bf16 %v1391_v63 }
 0x914   : > { %15449 = vmatprep.subr.bf16.mxu1 %v3670_v42  ;;  %v15149_v52 = vpop.f32.mrb[251].mxu1  ;;  %v10921_v53 = vadd.f32 %v15125_v45, %v18244_v15  ;;  %v1376_v15 = vld [vmem:[%s16178_s23 + $0x2300] sm:$0xff]  ;;  %v5536_v42 = vcombine.high %v18260_v28, %v18260_v28  ;;  %v3686_v17 = vunpack.c.l.s8.bf16 %v1383_v41  ;;  %v1387_v45 = vld [vmem:[%s16178_s23 + $0x2358] sm:$0xff]  ;;  %v3687_v0 = vunpack.c.h.s8.bf16 %v1383_v41 }
 0x915   : > { %v3672_v11 = vunpack.c.l.s8.bf16 %v1376_v15  ;;  %v3673_v7 = vunpack.c.h.s8.bf16 %v1376_v15  ;;  %v3694_v52 = vunpack.c.l.s8.bf16 %v1387_v45 }
 0x916   : > { %v18275_v34 = vadd.f32 %v15147_v57, %v10921_v53  ;;  %15428 = vmatpush3.bf16.msra.mxu0 %v3646_v25  ;;  %v18295_v25 = vrot.slane %v5536_v42, %v16209_v37 }
 0x917   : > { %15450 = vmatpush3.bf16.msra.mxu1 %v3662_v49  ;;  %15429 = vmatprep.subr.bf16.mxu0 %v3655_v24 }
 0x918   : > { %15451 = vmatprep.subr.bf16.mxu1 %v3671_v18  ;;  %v3678_v18 = vunpack.c.l.s8.bf16 %v1379_v5  ;;  %v5552_v15 = vcombine.high %v18295_v25, %v18295_v25 }
 0x91a   : > { %15430 = vmatpush3.bf16.msra.mxu0 %v3647_v59 }
 0x91b   : > { %15452 = vmatpush3.bf16.msra.mxu1 %v3663_v60  ;;  %15459 = vmatprep.subr.bf16.mxu0 %v3680_v1  ;;  %v1396_v60 = vld [vmem:[%s16178_s23 + $0x23a0] sm:$0xff] }
 0x91c   : > { %15481 = vmatprep.subr.bf16.mxu1 %v3696_v61  ;;  %v1404_v1 = vld [vmem:[%s16178_s23 + $0x23e0] sm:$0xff]  ;;  %v5559_v61 = vrot.slane %v18266_v10, %v16209_v37 }
 0x91d   : > { %11479 = vmatmul.mubr.bf16.vlgmr.msra.gmra.mrb[20].mxu0 %v5517_v58 }
 0x91e   : > { %11519 = vmatmul.mubr.bf16.vlgmr.msra.gmra.mrb[20].mxu1 %v5533_v2  ;;  %15460 = vmatpush3.bf16.msra.mxu0 %v3672_v11  ;;  %v3695_v2 = vunpack.c.h.s8.bf16 %v1387_v45  ;;  %v3712_v11 = vunpack.c.l.s8.bf16 %v1396_v60  ;;  %v5581_v8 = vcombine.high %v5559_v61, %v5559_v61 }
 0x91f   : > { %15482 = vmatpush3.bf16.msra.mxu1 %v3688_v55  ;;  %15461 = vmatprep.subr.bf16.mxu0 %v3681_v43  ;;  %v3728_v55 = vunpack.c.l.s8.bf16 %v1404_v1  ;;  %v1400_v43 = vld [vmem:[%s16178_s23 + $0x23c0] sm:$0xff] }
 0x920   : > { %15483 = vmatprep.subr.bf16.mxu1 %v3697_v3  ;;  %11558 = vmatprep.mubr.bf16.mxu0 %v5573_v62  ;;  %v3679_v62 = vunpack.c.h.s8.bf16 %v1379_v5  ;;  %v5580_v3 = vrot.slane %v5552_v15, %v16209_v37  ;;  %v3720_v9 = vunpack.c.l.s8.bf16 %v1400_v43  ;;  %v3721_v19 = vunpack.c.h.s8.bf16 %v1400_v43  ;;  %v18320_v5 = vld [vmem:[%s16192_s25 + $0x120] sm:$0x3f] }
 0x921   : > { %11598 = vmatprep.mubr.bf16.mxu1 %v5583_v38  ;;  %v3713_v38 = vunpack.c.h.s8.bf16 %v1396_v60 }
 0x922   : > { %15462 = vmatpush3.bf16.msra.mxu0 %v3673_v7  ;;  %v3729_v7 = vunpack.c.h.s8.bf16 %v1404_v1  ;;  %v5584_v51 = vcombine.high %v5580_v3, %v5580_v3 }
 0x923   : > { %15484 = vmatpush3.bf16.msra.mxu1 %v3689_v12  ;;  %15463 = vmatprep.subr.bf16.mxu0 %v3682_v13  ;;  %v1397_v12 = vld [vmem:[%s16178_s23 + $0x23a8] sm:$0xff] }
 0x924   : > { %15485 = vmatprep.subr.bf16.mxu1 %v3698_v16  ;;  %v1405_v13 = vld [vmem:[%s16178_s23 + $0x23e8] sm:$0xff] }
 0x926   : > { %15464 = vmatpush3.bf16.msra.mxu0 %v3674_v20  ;;  %v3714_v20 = vunpack.c.l.s8.bf16 %v1397_v12 }
 0x927   : > { %15486 = vmatpush3.bf16.msra.mxu1 %v3690_v46  ;;  %15465 = vmatprep.subr.bf16.mxu0 %v3683_v21  ;;  %v1393_v46 = vld [vmem:[%s16178_s23 + $0x2388] sm:$0xff]  ;;  %v3730_v21 = vunpack.c.l.s8.bf16 %v1405_v13 }
 0x928   : > { %15487 = vmatprep.subr.bf16.mxu1 %v3699_v23  ;;  %v1401_v23 = vld [vmem:[%s16178_s23 + $0x23c8] sm:$0xff]  ;;  %v3706_v14 = vunpack.c.l.s8.bf16 %v1393_v46 }
 0x929   : > { %v3722_v47 = vunpack.c.l.s8.bf16 %v1401_v23  ;;  %v3723_v33 = vunpack.c.h.s8.bf16 %v1401_v23 }
 0x92a   : > { %15466 = vmatpush3.bf16.msra.mxu0 %v3675_v27  ;;  %v3715_v27 = vunpack.c.h.s8.bf16 %v1397_v12 }
 0x92b   : > { %15488 = vmatpush3.bf16.msra.mxu1 %v3691_v29  ;;  %15467 = vmatprep.subr.bf16.mxu0 %v3684_v31  ;;  %v3731_v29 = vunpack.c.h.s8.bf16 %v1405_v13  ;;  %v1398_v31 = vld [vmem:[%s16178_s23 + $0x23b0] sm:$0xff] }
 0x92c   : > { %15489 = vmatprep.subr.bf16.mxu1 %v3700_v32  ;;  %v3707_v32 = vunpack.c.h.s8.bf16 %v1393_v46  ;;  %v3717_v42 = vunpack.c.h.s8.bf16 %v1398_v31 }
 0x92e   : > { %15468 = vmatpush3.bf16.msra.mxu0 %v3676_v22  ;;  %v3716_v22 = vunpack.c.l.s8.bf16 %v1398_v31 }
 0x92f   : > { %15490 = vmatpush3.bf16.msra.mxu1 %v3692_v4  ;;  %15469 = vmatprep.subr.bf16.mxu0 %v3685_v35  ;;  %v1394_v4 = vld [vmem:[%s16178_s23 + $0x2390] sm:$0xff]  ;;  %v3732_v35 = vunpack.c.l.s8.bf16 %v1406_v54 }
 0x930   : > { %15491 = vmatprep.subr.bf16.mxu1 %v3701_v36  ;;  %v15167_v48 = vpop.f32.mrb[252].mxu0  ;;  %v1402_v36 = vld [vmem:[%s16178_s23 + $0x23d0] sm:$0xff]  ;;  %v3708_v41 = vunpack.c.l.s8.bf16 %v1394_v4 }
 0x931   : > { %v15189_v57 = vpop.f32.mrb[252].mxu1  ;;  %v15168_v49 = vpop.f32.mrb[253].mxu0  ;;  %v3724_v63 = vunpack.c.l.s8.bf16 %v1402_v36  ;;  %v3725_v45 = vunpack.c.h.s8.bf16 %v1402_v36 }
 0x932   : > { %v15190_v50 = vpop.f32.mrb[253].mxu1  ;;  %v15169_v39 = vadd.f32 %v15168_v49, %v15167_v48  ;;  %v15170_v28 = vpop.f32.mrb[254].mxu0  ;;  %15470 = vmatpush3.bf16.msra.mxu0 %v3677_v40  ;;  %v3733_v40 = vunpack.c.h.s8.bf16 %v1406_v54 }
 0x933   : > { %v15191_v24 = vadd.f32 %v15190_v50, %v15189_v57  ;;  %15492 = vmatpush3.bf16.msra.mxu1 %v3693_v30  ;;  %v15192_v53 = vpop.f32.mrb[254].mxu1  ;;  %v15171_v56 = vpop.f32.mrb[255].mxu0  ;;  %15471 = vmatprep.subr.bf16.mxu0 %v3686_v17  ;;  %v1399_v30 = vld [vmem:[%s16178_s23 + $0x23b8] sm:$0xff] }
 0x934   : > { %15493 = vmatprep.subr.bf16.mxu1 %v3702_v44  ;;  %v15193_v58 = vpop.f32.mrb[255].mxu1  ;;  %v11001_v59 = vadd.f32 %v15169_v39, %v18275_v34  ;;  %v1392_v34 = vld [vmem:[%s16178_s23 + $0x2380] sm:$0xff]  ;;  %v1407_v17 = vld [vmem:[%s16178_s23 + $0x23f8] sm:$0xff]  ;;  %v3709_v44 = vunpack.c.h.s8.bf16 %v1394_v4  ;;  %v3718_v48 = vunpack.c.l.s8.bf16 %v1399_v30  ;;  %v3719_v1 = vunpack.c.h.s8.bf16 %v1399_v30  ;;  %v1422_v4 = vld [vmem:[%s16178_s23 + $0x2470] sm:$0xff] }
 0x935   : > { %v3704_v10 = vunpack.c.l.s8.bf16 %v1392_v34  ;;  %v3705_v16 = vunpack.c.h.s8.bf16 %v1392_v34  ;;  %v1395_v57 = vld [vmem:[%s16178_s23 + $0x2398] sm:$0xff]  ;;  %v3734_v49 = vunpack.c.l.s8.bf16 %v1407_v17  ;;  %v3735_v15 = vunpack.c.h.s8.bf16 %v1407_v17 }
 0x936   : > { %v18304_v6 = vadd.f32 %v15191_v24, %v11001_v59  ;;  %15472 = vmatpush3.bf16.msra.mxu0 %v3678_v18  ;;  %v1403_v50 = vld [vmem:[%s16178_s23 + $0x23d8] sm:$0xff]  ;;  %v18326_v24 = vrot.slane %v18320_v5, %v16209_v37 }
 0x937   : > { %15494 = vmatpush3.bf16.msra.mxu1 %v3694_v52  ;;  %15473 = vmatprep.subr.bf16.mxu0 %v3687_v0  ;;  %v3726_v58 = vunpack.c.l.s8.bf16 %v1403_v50 }
 0x938   : > { %15495 = vmatprep.subr.bf16.mxu1 %v3703_v26  ;;  %v3710_v26 = vunpack.c.l.s8.bf16 %v1395_v57  ;;  %v5600_v34 = vcombine.high %v18326_v24, %v18326_v24 }
 0x93a   : > { %15474 = vmatpush3.bf16.msra.mxu0 %v3679_v62 }
 0x93b   : > { %15496 = vmatpush3.bf16.msra.mxu1 %v3695_v2  ;;  %15503 = vmatprep.subr.bf16.mxu0 %v3712_v11  ;;  %v1412_v2 = vld [vmem:[%s16178_s23 + $0x2420] sm:$0xff] }
 0x93c   : > { %15525 = vmatprep.subr.bf16.mxu1 %v3728_v55  ;;  %v1420_v11 = vld [vmem:[%s16178_s23 + $0x2460] sm:$0xff]  ;;  %v5566_v55 = vrot.slane %v18295_v25, %v16209_v37 }
 0x93d   : > { %11559 = vmatmul.mubr.bf16.vlgmr.msra.gmra.mrb[24].mxu0 %v5559_v61 }
 0x93e   : > { %11599 = vmatmul.mubr.bf16.vlgmr.msra.gmra.mrb[24].mxu1 %v5581_v8  ;;  %15504 = vmatpush3.bf16.msra.mxu0 %v3704_v10  ;;  %v3727_v8 = vunpack.c.h.s8.bf16 %v1403_v50  ;;  %v3744_v10 = vunpack.c.l.s8.bf16 %v1412_v2  ;;  %v5582_v12 = vcombine.high %v5566_v55, %v5566_v55 }
 0x93f   : > { %15526 = vmatpush3.bf16.msra.mxu1 %v3720_v9  ;;  %15505 = vmatprep.subr.bf16.mxu0 %v3713_v38  ;;  %v3760_v9 = vunpack.c.l.s8.bf16 %v1420_v11  ;;  %v1416_v38 = vld [vmem:[%s16178_s23 + $0x2440] sm:$0xff] }
 0x940   : > { %15527 = vmatprep.subr.bf16.mxu1 %v3729_v7  ;;  %11638 = vmatprep.mubr.bf16.mxu0 %v5580_v3  ;;  %v3711_v3 = vunpack.c.h.s8.bf16 %v1395_v57  ;;  %v5622_v7 = vrot.slane %v5600_v34, %v16209_v37  ;;  %v3752_v13 = vunpack.c.l.s8.bf16 %v1416_v38  ;;  %v3753_v23 = vunpack.c.h.s8.bf16 %v1416_v38  ;;  %v1423_v57 = vld [vmem:[%s16178_s23 + $0x2478] sm:$0xff] }
 0x941   : > { %11678 = vmatprep.mubr.bf16.mxu1 %v5584_v51  ;;  %v3745_v51 = vunpack.c.h.s8.bf16 %v1412_v2  ;;  %v3767_v34 = vunpack.c.h.s8.bf16 %v1423_v57 }
 0x942   : > { %15506 = vmatpush3.bf16.msra.mxu0 %v3705_v16  ;;  %v3761_v16 = vunpack.c.h.s8.bf16 %v1420_v11  ;;  %v5631_v46 = vcombine.high %v5622_v7, %v5622_v7 }
 0x943   : > { %15528 = vmatpush3.bf16.msra.mxu1 %v3721_v19  ;;  %15507 = vmatprep.subr.bf16.mxu0 %v3714_v20  ;;  %v1413_v19 = vld [vmem:[%s16178_s23 + $0x2428] sm:$0xff] }
 0x944   : > { %15529 = vmatprep.subr.bf16.mxu1 %v3730_v21  ;;  %v1421_v20 = vld [vmem:[%s16178_s23 + $0x2468] sm:$0xff] }
 0x946   : > { %15508 = vmatpush3.bf16.msra.mxu0 %v3706_v14  ;;  %v3746_v14 = vunpack.c.l.s8.bf16 %v1413_v19 }
 0x947   : > { %15530 = vmatpush3.bf16.msra.mxu1 %v3722_v47  ;;  %15509 = vmatprep.subr.bf16.mxu0 %v3715_v27  ;;  %v1409_v47 = vld [vmem:[%s16178_s23 + $0x2408] sm:$0xff]  ;;  %v3762_v27 = vunpack.c.l.s8.bf16 %v1421_v20 }
 0x948   : > { %15531 = vmatprep.subr.bf16.mxu1 %v3731_v29  ;;  %v1417_v29 = vld [vmem:[%s16178_s23 + $0x2448] sm:$0xff]  ;;  %v3738_v31 = vunpack.c.l.s8.bf16 %v1409_v47 }
 0x949   : > { %v3754_v54 = vunpack.c.l.s8.bf16 %v1417_v29  ;;  %v3755_v36 = vunpack.c.h.s8.bf16 %v1417_v29  ;;  %v1426_v29 = vld [vmem:[%s16178_s23 + $0x2490] sm:$0xff] }
 0x94a   : > { %15510 = vmatpush3.bf16.msra.mxu0 %v3707_v32  ;;  %v3747_v32 = vunpack.c.h.s8.bf16 %v1413_v19 }
 0x94b   : > { %15532 = vmatpush3.bf16.msra.mxu1 %v3723_v33  ;;  %15511 = vmatprep.subr.bf16.mxu0 %v3716_v22  ;;  %v3763_v33 = vunpack.c.h.s8.bf16 %v1421_v20  ;;  %v1414_v22 = vld [vmem:[%s16178_s23 + $0x2430] sm:$0xff] }
 0x94c   : > { %15533 = vmatprep.subr.bf16.mxu1 %v3732_v35  ;;  %v3739_v35 = vunpack.c.h.s8.bf16 %v1409_v47 }
 0x94e   : > { %15512 = vmatpush3.bf16.msra.mxu0 %v3708_v41  ;;  %v3748_v41 = vunpack.c.l.s8.bf16 %v1414_v22 }
 0x94f   : > { %15534 = vmatpush3.bf16.msra.mxu1 %v3724_v63  ;;  %15513 = vmatprep.subr.bf16.mxu0 %v3717_v42  ;;  %v1410_v63 = vld [vmem:[%s16178_s23 + $0x2410] sm:$0xff]  ;;  %v3764_v42 = vunpack.c.l.s8.bf16 %v1422_v4 }
 0x950   : > { %15535 = vmatprep.subr.bf16.mxu1 %v3733_v40  ;;  %v15211_v39 = vpop.f32.mrb[0].mxu0  ;;  %v1418_v40 = vld [vmem:[%s16178_s23 + $0x2450] sm:$0xff]  ;;  %v3740_v30 = vunpack.c.l.s8.bf16 %v1410_v63 }
 0x951   : > { %v15233_v28 = vpop.f32.mrb[0].mxu1  ;;  %v15212_v18 = vpop.f32.mrb[1].mxu0  ;;  %v3756_v17 = vunpack.c.l.s8.bf16 %v1418_v40  ;;  %v3757_v50 = vunpack.c.h.s8.bf16 %v1418_v40 }
 0x952   : > { %v15234_v52 = vpop.f32.mrb[1].mxu1  ;;  %v15213_v53 = vadd.f32 %v15212_v18, %v15211_v39  ;;  %v15214_v56 = vpop.f32.mrb[2].mxu0  ;;  %15514 = vmatpush3.bf16.msra.mxu0 %v3709_v44  ;;  %v3749_v44 = vunpack.c.h.s8.bf16 %v1414_v22  ;;  %v1411_v39 = vld [vmem:[%s16178_s23 + $0x2418] sm:$0xff] }
 0x953   : > { %v15235_v0 = vadd.f32 %v15234_v52, %v15233_v28  ;;  %15536 = vmatpush3.bf16.msra.mxu1 %v3725_v45  ;;  %v15236_v59 = vpop.f32.mrb[2].mxu1  ;;  %v15215_v60 = vpop.f32.mrb[3].mxu0  ;;  %15515 = vmatprep.subr.bf16.mxu0 %v3718_v48  ;;  %v3765_v45 = vunpack.c.h.s8.bf16 %v1422_v4  ;;  %v1415_v48 = vld [vmem:[%s16178_s23 + $0x2438] sm:$0xff]  ;;  %v5585_v28 = vcombine.high %v18320_v5, %v18320_v5  ;;  %v3766_v52 = vunpack.c.l.s8.bf16 %v1423_v57 }
 0x954   : > { %15537 = vmatprep.subr.bf16.mxu1 %v3734_v49  ;;  %v15237_v61 = vpop.f32.mrb[3].mxu1  ;;  %v11081_v62 = vadd.f32 %v15213_v53, %v18304_v6  ;;  %v1408_v6 = vld [vmem:[%s16178_s23 + $0x2400] sm:$0xff]  ;;  %v3741_v49 = vunpack.c.h.s8.bf16 %v1410_v63  ;;  %v3750_v18 = vunpack.c.l.s8.bf16 %v1415_v48  ;;  %v1419_v53 = vld [vmem:[%s16178_s23 + $0x2458] sm:$0xff]  ;;  %v3742_v59 = vunpack.c.l.s8.bf16 %v1411_v39 }
 0x955   : > { %v3736_v25 = vunpack.c.l.s8.bf16 %v1408_v6  ;;  %v3737_v21 = vunpack.c.h.s8.bf16 %v1408_v6  ;;  %v3758_v61 = vunpack.c.l.s8.bf16 %v1419_v53  ;;  %v18355_v5 = vrot.slane %v5585_v28, %v16209_v37  ;;  %v1427_v4 = vld [vmem:[%s16178_s23 + $0x2498] sm:$0xff] }
 0x956   : > { %v18335_v43 = vadd.f32 %v15235_v0, %v11081_v62  ;;  %15516 = vmatpush3.bf16.msra.mxu0 %v3710_v26  ;;  %v3751_v11 = vunpack.c.h.s8.bf16 %v1415_v48  ;;  %v3759_v38 = vunpack.c.h.s8.bf16 %v1419_v53 }
 0x957   : > { %15538 = vmatpush3.bf16.msra.mxu1 %v3726_v58  ;;  %15517 = vmatprep.subr.bf16.mxu0 %v3719_v1  ;;  %v5615_v28 = vrot.slane %v18355_v5, %v16209_v37 }
 0x958   : > { %15539 = vmatprep.subr.bf16.mxu1 %v3735_v15 }
 0x95a   : > { %15518 = vmatpush3.bf16.msra.mxu0 %v3711_v3 }
 0x95b   : > { %15540 = vmatpush3.bf16.msra.mxu1 %v3727_v8  ;;  %15547 = vmatprep.subr.bf16.mxu0 %v3744_v10  ;;  %v1428_v8 = vld [vmem:[%s16178_s23 + $0x24a0] sm:$0xff]  ;;  %v5608_v10 = vrot.slane %v18326_v24, %v16209_v37 }
 0x95c   : > { %15569 = vmatprep.subr.bf16.mxu1 %v3760_v9  ;;  %v3743_v9 = vunpack.c.h.s8.bf16 %v1411_v39  ;;  %v3775_v39 = vunpack.c.h.s8.bf16 %v1427_v4 }
 0x95d   : > { %11639 = vmatmul.mubr.bf16.vlgmr.msra.gmra.mrb[28].mxu0 %v5566_v55 }
 0x95e   : > { %11679 = vmatmul.mubr.bf16.vlgmr.msra.gmra.mrb[28].mxu1 %v5582_v12  ;;  %15548 = vmatpush3.bf16.msra.mxu0 %v3736_v25  ;;  %v3776_v12 = vunpack.c.l.s8.bf16 %v1428_v8  ;;  %v1424_v25 = vld [vmem:[%s16178_s23 + $0x2480] sm:$0xff] }
 0x95f   : > { %15570 = vmatpush3.bf16.msra.mxu1 %v3752_v13  ;;  %15549 = vmatprep.subr.bf16.mxu0 %v3745_v51  ;;  %v5630_v13 = vcombine.high %v5608_v10, %v5608_v10  ;;  %v3777_v51 = vunpack.c.h.s8.bf16 %v1428_v8  ;;  %v3769_v19 = vunpack.c.h.s8.bf16 %v1424_v25 }
 0x960   : > { %15571 = vmatprep.subr.bf16.mxu1 %v3761_v16  ;;  %11718 = vmatprep.mubr.bf16.mxu0 %v5622_v7  ;;  %v5601_v7 = vcombine.high %v18355_v5, %v18355_v5  ;;  %v1429_v16 = vld [vmem:[%s16178_s23 + $0x24a8] sm:$0xff] }
 0x961   : > { %11758 = vmatprep.mubr.bf16.mxu1 %v5631_v46  ;;  %v3778_v20 = vunpack.c.l.s8.bf16 %v1429_v16  ;;  %v1425_v46 = vld [vmem:[%s16178_s23 + $0x2488] sm:$0xff] }
 0x962   : > { %15550 = vmatpush3.bf16.msra.mxu0 %v3737_v21  ;;  %v5629_v24 = vrot.slane %v5601_v7, %v16209_v37  ;;  %v3770_v21 = vunpack.c.l.s8.bf16 %v1425_v46  ;;  %v3771_v47 = vunpack.c.h.s8.bf16 %v1425_v46 }
 0x963   : > { %15572 = vmatpush3.bf16.msra.mxu1 %v3753_v23  ;;  %15551 = vmatprep.subr.bf16.mxu0 %v3746_v14  ;;  %v3779_v23 = vunpack.c.h.s8.bf16 %v1429_v16  ;;  %v1430_v14 = vld [vmem:[%s16178_s23 + $0x24b0] sm:$0xff] }
 0x964   : > { %15573 = vmatprep.subr.bf16.mxu1 %v3762_v27  ;;  %v3780_v27 = vunpack.c.l.s8.bf16 %v1430_v14 }
 0x966   : > { %15552 = vmatpush3.bf16.msra.mxu0 %v3738_v31  ;;  %v3772_v31 = vunpack.c.l.s8.bf16 %v1426_v29 }
 0x967   : > { %15574 = vmatpush3.bf16.msra.mxu1 %v3754_v54  ;;  %15553 = vmatprep.subr.bf16.mxu0 %v3747_v32  ;;  %v3781_v54 = vunpack.c.h.s8.bf16 %v1430_v14  ;;  %v1431_v32 = vld [vmem:[%s16178_s23 + $0x24b8] sm:$0xff] }
 0x968   : > { %15575 = vmatprep.subr.bf16.mxu1 %v3763_v33  ;;  %v3773_v33 = vunpack.c.h.s8.bf16 %v1426_v29  ;;  %v3782_v22 = vunpack.c.l.s8.bf16 %v1431_v32  ;;  %v3783_v48 = vunpack.c.h.s8.bf16 %v1431_v32 }
 0x96a   : > { %15554 = vmatpush3.bf16.msra.mxu0 %v3739_v35 }
 0x96b   : > { %15576 = vmatpush3.bf16.msra.mxu1 %v3755_v36  ;;  %15555 = vmatprep.subr.bf16.mxu0 %v3748_v41 }
 0x96c   : > { %15577 = vmatprep.subr.bf16.mxu1 %v3764_v42 }
 0x96e   : > { %15556 = vmatpush3.bf16.msra.mxu0 %v3740_v30 }
 0x96f   : > { %15578 = vmatpush3.bf16.msra.mxu1 %v3756_v17  ;;  %15557 = vmatprep.subr.bf16.mxu0 %v3749_v44  ;;  %v3774_v17 = vunpack.c.l.s8.bf16 %v1427_v4 }
 0x970   : > { %15579 = vmatprep.subr.bf16.mxu1 %v3765_v45  ;;  %v15255_v56 = vpop.f32.mrb[4].mxu0 }
 0x971   : > { %v15277_v0 = vpop.f32.mrb[4].mxu1  ;;  %v15256_v26 = vpop.f32.mrb[5].mxu0 }
 0x972   : > { %v15278_v58 = vpop.f32.mrb[5].mxu1  ;;  %v15257_v60 = vadd.f32 %v15256_v26, %v15255_v56  ;;  %v15258_v1 = vpop.f32.mrb[6].mxu0  ;;  %15558 = vmatpush3.bf16.msra.mxu0 %v3741_v49 }
 0x973   : > { %v15279_v15 = vadd.f32 %v15278_v58, %v15277_v0  ;;  %15580 = vmatpush3.bf16.msra.mxu1 %v3757_v50  ;;  %v15280_v62 = vpop.f32.mrb[6].mxu1  ;;  %v15259_v2 = vpop.f32.mrb[7].mxu0  ;;  %15559 = vmatprep.subr.bf16.mxu0 %v3750_v18 }
 0x974   : > { %15581 = vmatprep.subr.bf16.mxu1 %v3766_v52  ;;  %v15281_v55 = vpop.f32.mrb[7].mxu1  ;;  %v11161_v3 = vadd.f32 %v15257_v60, %v18335_v43  ;;  %v3768_v43 = vunpack.c.l.s8.bf16 %v1424_v25 }
 0x976   : > { %v11201_v6 = vadd.f32 %v15279_v15, %v11161_v3  ;;  %15560 = vmatpush3.bf16.msra.mxu0 %v3742_v59 }
 0x977   : > { %15582 = vmatpush3.bf16.msra.mxu1 %v3758_v61  ;;  %15561 = vmatprep.subr.bf16.mxu0 %v3751_v11 }
 0x978   : > { %15583 = vmatprep.subr.bf16.mxu1 %v3767_v34 }
 0x97a   : > { %15562 = vmatpush3.bf16.msra.mxu0 %v3743_v9 }
 0x97b   : > { %15584 = vmatpush3.bf16.msra.mxu1 %v3759_v38  ;;  %15591 = vmatprep.subr.bf16.mxu0 %v3776_v12 }
 0x97d   : > { %11719 = vmatmul.mubr.bf16.vlgmr.msra.gmra.mrb[32].mxu0 %v5608_v10 }
 0x97e   : > { %11759 = vmatmul.mubr.bf16.vlgmr.msra.gmra.mrb[32].mxu1 %v5630_v13  ;;  %15592 = vmatpush3.bf16.msra.mxu0 %v3768_v43 }
 0x97f   : > { %11798 = vmatprep.mubr.bf16.mxu0 %v5629_v24  ;;  %15593 = vmatprep.subr.bf16.mxu0 %v3777_v51 }
 0x982   : > { %15594 = vmatpush3.bf16.msra.mxu0 %v3769_v19 }
 0x983   : > { %15595 = vmatprep.subr.bf16.mxu0 %v3778_v20 }
 0x986   : > { %15596 = vmatpush3.bf16.msra.mxu0 %v3770_v21 }
 0x987   : > { %15597 = vmatprep.subr.bf16.mxu0 %v3779_v23 }
 0x98a   : > { %15598 = vmatpush3.bf16.msra.mxu0 %v3771_v47 }
 0x98b   : > { %15599 = vmatprep.subr.bf16.mxu0 %v3780_v27 }
 0x98e   : > { %15600 = vmatpush3.bf16.msra.mxu0 %v3772_v31 }
 0x98f   : > { %15601 = vmatprep.subr.bf16.mxu0 %v3781_v54 }
 0x990   : > { %v15299_v35 = vpop.f32.mrb[8].mxu0 }
 0x991   : > { %v15321_v36 = vpop.f32.mrb[8].mxu1  ;;  %v15300_v41 = vpop.f32.mrb[9].mxu0 }
 0x992   : > { %v15322_v63 = vpop.f32.mrb[9].mxu1  ;;  %v15301_v42 = vadd.f32 %v15300_v41, %v15299_v35  ;;  %v15302_v40 = vpop.f32.mrb[10].mxu0  ;;  %15602 = vmatpush3.bf16.msra.mxu0 %v3773_v33 }
 0x993   : > { %v15323_v30 = vadd.f32 %v15322_v63, %v15321_v36  ;;  %v15324_v44 = vpop.f32.mrb[10].mxu1  ;;  %v15303_v45 = vpop.f32.mrb[11].mxu0  ;;  %15603 = vmatprep.subr.bf16.mxu0 %v3782_v22 }
 0x994   : > { %v15325_v57 = vpop.f32.mrb[11].mxu1  ;;  %v11241_v49 = vadd.f32 %v15301_v42, %v11201_v6 }
 0x996   : > { %v11281_v50 = vadd.f32 %v15323_v30, %v11241_v49  ;;  %15604 = vmatpush3.bf16.msra.mxu0 %v3774_v17 }
 0x997   : > { %15605 = vmatprep.subr.bf16.mxu0 %v3783_v48 }
 0x99a   : > { %15606 = vmatpush3.bf16.msra.mxu0 %v3775_v39 }
 0x99d   : > { %11799 = vmatmul.mubr.bf16.vlgmr.msra.gmra.mrb[36].mxu0 %v5615_v28 }
 0x9b0   : > { %v15343_v18 = vpop.f32.mrb[12].mxu0 }
 0x9b1   : > { %v15365_v52 = vpop.f32.mrb[12].mxu1  ;;  %v15344_v53 = vpop.f32.mrb[13].mxu0 }
 0x9b2   : > { %v15366_v56 = vpop.f32.mrb[13].mxu1  ;;  %v15345_v0 = vadd.f32 %v15344_v53, %v15343_v18  ;;  %v15346_v26 = vpop.f32.mrb[14].mxu0 }
 0x9b3   : > { %v15367_v58 = vadd.f32 %v15366_v56, %v15365_v52  ;;  %v15368_v59 = vpop.f32.mrb[14].mxu1  ;;  %v15347_v60 = vpop.f32.mrb[15].mxu0 }
 0x9b4   : > { %v15369_v1 = vpop.f32.mrb[15].mxu1  ;;  %v11321_v15 = vadd.f32 %v15345_v0, %v11281_v50 }
 0x9b6   : > { %v11361_v61 = vadd.f32 %v15367_v58, %v11321_v15 }
 0x9d0   : > { %v15387_v62 = vpop.f32.mrb[16].mxu0 }
 0x9d1   : > { %v15409_v2 = vpop.f32.mrb[16].mxu1  ;;  %v15388_v11 = vpop.f32.mrb[17].mxu0 }
 0x9d2   : > { %v15410_v34 = vpop.f32.mrb[17].mxu1  ;;  %v15389_v55 = vadd.f32 %v15388_v11, %v15387_v62  ;;  %v15390_v37 = vpop.f32.mrb[18].mxu0  ;;  %v218_v62 = vld [vmem:[#allocation2] sm:$0x3] }
 0x9d3   : > { %v15411_v5 = vadd.f32 %v15410_v34, %v15409_v2  ;;  %v15412_v3 = vpop.f32.mrb[18].mxu1  ;;  %v15391_v8 = vpop.f32.mrb[19].mxu0  ;;  %v11827_v37 = vld [vmem:[#allocation6 + $0x18] sm:$0xff] (!%p12358_p4) }
 0x9d4   : > { %v15413_v10 = vpop.f32.mrb[19].mxu1  ;;  %v11401_v6 = vadd.f32 %v15389_v55, %v11361_v61  ;;  %v11826_v55 = vld [vmem:[#allocation6 + $0x10] sm:$0xff] (!%p12358_p4)  ;;  %v16030_v3 = vmov (!%p12358_p4), 0.0|0.0  }
 0x9d5   : > { %15738 = vmatprep.subr.bf16.mxu0 (!%p12358_p4), %v16030_v3  ;;  %v15739_v8 = vpack.c.bf16 (!%p12358_p4), %v11827_v37, %v11826_v55  ;;  %v11829_v10 = vld [vmem:[#allocation6 + $0x28] sm:$0xff] (!%p12358_p4)  ;;  %15762 = vmatprep.subr.bf16.mxu1 (!%p12358_p4), %v16030_v3 }
 0x9d6   : > { %v11441_v9 = vadd.f32 %v15411_v5, %v11401_v6  ;;  %v11828_v5 = vld [vmem:[#allocation6 + $0x20] sm:$0xff] (!%p12358_p4)  ;;  %v16032_v6 = vmov (!%p12358_p4), 0.0  }
 0x9d7   : > { %15685 = vmatprep.mubr.msk.f32.mxu0 (!%p12358_p4), %vm16031_vm0, %v16032_v6  ;;  %15708 = vmatprep.mubr.msk.f32.mxu1 (!%p12358_p4), %vm16031_vm0, %v16032_v6 }
 0x9d8   : > { %15740 = vmatpush3.bf16.msra.mxu0 (!%p12358_p4), %v15739_v8 }
 0x9d9   : > { %15741 = vmatprep.subr.bf16.mxu0 (!%p12358_p4), %v16030_v3 }
 0x9f0   : > { %v15431_v38 = vpop.f32.mrb[20].mxu0 }
 0x9f1   : > { %v15453_v7 = vpop.f32.mrb[20].mxu1  ;;  %v15432_v12 = vpop.f32.mrb[21].mxu0 }
 0x9f2   : > { %v15454_v25 = vpop.f32.mrb[21].mxu1  ;;  %v15433_v13 = vadd.f32 %v15432_v12, %v15431_v38  ;;  %v15434_v43 = vpop.f32.mrb[22].mxu0  ;;  %v11830_v38 = vld [vmem:[#allocation6 + $0x30] sm:$0xff] (!%p12358_p4)  ;;  %v11918_v12 = vld [vmem:[#allocation6 + $0x98] sm:$0xff] (!%p12358_p4) }
 0x9f3   : > { %v15455_v24 = vadd.f32 %v15454_v25, %v15453_v7  ;;  %v15456_v51 = vpop.f32.mrb[22].mxu1  ;;  %v15435_v16 = vpop.f32.mrb[23].mxu0  ;;  %v11831_v7 = vld [vmem:[#allocation6 + $0x38] sm:$0xff] (!%p12358_p4)  ;;  %v11919_v25 = vld [vmem:[#allocation6 + $0xa0] sm:$0xff] (!%p12358_p4) }
 0x9f4   : > { %v15457_v19 = vpop.f32.mrb[23].mxu1  ;;  %v11481_v20 = vadd.f32 %v15433_v13, %v11441_v9  ;;  %v15742_v9 = vpack.c.bf16 (!%p12358_p4), %v11829_v10, %v11828_v5  ;;  %v15745_v13 = vpack.c.bf16 (!%p12358_p4), %v11831_v7, %v11830_v38  ;;  %v15763_v43 = vpack.c.bf16 (!%p12358_p4), %v11919_v25, %v11918_v12  ;;  %v11921_v51 = vld [vmem:[#allocation6 + $0xb0] sm:$0xff] (!%p12358_p4)  ;;  %v11832_v16 = vld [vmem:[#allocation6 + $0x40] sm:$0xff] (!%p12358_p4)  ;;  %v12102_v5 = vld [vmem:[#allocation6 + $0x128] sm:$0xf] (!%p12358_p4) }
 0x9f5   : > { %v11833_v19 = vld [vmem:[#allocation6 + $0x48] sm:$0xff] (!%p12358_p4)  ;;  %v12187_v7 = vld [vmem:[#allocation6 + $0x138] sm:$0xff] (!%p12358_p4)  ;;  %v12188_v12 = vld [vmem:[#allocation6 + $0x140] sm:$0x7f] (!%p12358_p4) }
 0x9f6   : > { %v11521_v46 = vadd.f32 %v15455_v24, %v11481_v20  ;;  %15743 = vmatpush3.bf16.msra.mxu0 (!%p12358_p4), %v15742_v9  ;;  %v11920_v24 = vld [vmem:[#allocation6 + $0xa8] sm:$0xff] (!%p12358_p4)  ;;  %15764 = vmatpush3.bf16.msra.mxu1 (!%p12358_p4), %v15763_v43  ;;  %v15789_v25 = vpack.c.bf16 (!%p12358_p4), %v12188_v12, %v12187_v7 }
 0x9f7   : > { %15744 = vmatprep.subr.bf16.mxu0 (!%p12358_p4), %v16030_v3  ;;  %v15766_v20 = vpack.c.bf16 (!%p12358_p4), %v11921_v51, %v11920_v24  ;;  %15765 = vmatprep.subr.bf16.mxu1 (!%p12358_p4), %v16030_v3 }
 0x9fa   : > { %15746 = vmatpush3.bf16.msra.mxu0 (!%p12358_p4), %v15745_v13  ;;  %15767 = vmatpush3.bf16.msra.mxu1 (!%p12358_p4), %v15766_v20  ;;  %v12368_v13 = vld [vmem:[#allocation6 + $0x130] ss:$0 sm:$0xff] (!%p12358_p4) }
 0x9fb   : > { %15747 = vmatprep.subr.bf16.mxu0 (!%p12358_p4), %v16030_v3  ;;  %15768 = vmatprep.subr.bf16.mxu1 (!%p12358_p4), %v16030_v3 }
 0xa10   : > { %v15475_v21 = vpop.f32.mrb[24].mxu0 }
 0xa11   : > { %v15497_v23 = vpop.f32.mrb[24].mxu1  ;;  %v15476_v14 = vpop.f32.mrb[25].mxu0 }
 0xa12   : > { %v15498_v47 = vpop.f32.mrb[25].mxu1  ;;  %v15477_v27 = vadd.f32 %v15476_v14, %v15475_v21  ;;  %v15478_v29 = vpop.f32.mrb[26].mxu0  ;;  %v11923_v21 = vld [vmem:[#allocation6 + $0xc0] sm:$0xff] (!%p12358_p4)  ;;  %v11834_v14 = vld [vmem:[#allocation6 + $0x50] sm:$0xff] (!%p12358_p4) }
 0xa13   : > { %v15499_v31 = vadd.f32 %v15498_v47, %v15497_v23  ;;  %v15500_v54 = vpop.f32.mrb[26].mxu1  ;;  %v15479_v32 = vpop.f32.mrb[27].mxu0  ;;  %v15748_v23 = vpack.c.bf16 (!%p12358_p4), %v11833_v19, %v11832_v16  ;;  %v11835_v47 = vld [vmem:[#allocation6 + $0x58] sm:$0xff] (!%p12358_p4)  ;;  %v11924_v29 = vld [vmem:[#allocation6 + $0xc8] sm:$0xff] (!%p12358_p4) }
 0xa14   : > { %v15501_v33 = vpop.f32.mrb[27].mxu1  ;;  %v11561_v22 = vadd.f32 %v15477_v27, %v11521_v46  ;;  %v11922_v46 = vld [vmem:[#allocation6 + $0xb8] sm:$0xff] (!%p12358_p4)  ;;  %v15751_v54 = vpack.c.bf16 (!%p12358_p4), %v11835_v47, %v11834_v14  ;;  %v11836_v32 = vld [vmem:[#allocation6 + $0x60] sm:$0xff] (!%p12358_p4)  ;;  %v12371_v16 = vld [vmem:[#allocation6 + $0x148] ss:$0 sm:$0xff] (!%p12358_p4) }
 0xa15   : > { %v15769_v27 = vpack.c.bf16 (!%p12358_p4), %v11923_v21, %v11922_v46  ;;  %15749 = vmatpush3.bf16.msra.mxu0 (!%p12358_p4), %v15748_v23  ;;  %v11837_v33 = vld [vmem:[#allocation6 + $0x68] sm:$0xff] (!%p12358_p4) }
 0xa16   : > { %v11601_v4 = vadd.f32 %v15499_v31, %v11561_v22  ;;  %v11925_v31 = vld [vmem:[#allocation6 + $0xd0] sm:$0xff] (!%p12358_p4)  ;;  %15750 = vmatprep.subr.bf16.mxu0 (!%p12358_p4), %v16030_v3 }
 0xa17   : > { %15770 = vmatpush3.bf16.msra.mxu1 (!%p12358_p4), %v15769_v27  ;;  %v15772_v22 = vpack.c.bf16 (!%p12358_p4), %v11925_v31, %v11924_v29 }
 0xa18   : > { %15771 = vmatprep.subr.bf16.mxu1 (!%p12358_p4), %v16030_v3 }
 0xa19   : > { %15752 = vmatpush3.bf16.msra.mxu0 (!%p12358_p4), %v15751_v54 }
 0xa1a   : > { %15753 = vmatprep.subr.bf16.mxu0 (!%p12358_p4), %v16030_v3 }
 0xa1b   : > { %15773 = vmatpush3.bf16.msra.mxu1 (!%p12358_p4), %v15772_v22 }
 0xa1c   : > { %15774 = vmatprep.subr.bf16.mxu1 (!%p12358_p4), %v16030_v3 }
 0xa30   : > { %v15519_v35 = vpop.f32.mrb[28].mxu0 }
 0xa31   : > { %v15541_v36 = vpop.f32.mrb[28].mxu1  ;;  %v15520_v41 = vpop.f32.mrb[29].mxu0 }
 0xa32   : > { %v15542_v63 = vpop.f32.mrb[29].mxu1  ;;  %v15521_v42 = vadd.f32 %v15520_v41, %v15519_v35  ;;  %v15522_v40 = vpop.f32.mrb[30].mxu0  ;;  %v12359_v35 = vld [vmem:[#allocation6] ss:$0 sm:$0xff] (!%p12358_p4)  ;;  %v11838_v41 = vld [vmem:[#allocation6 + $0x70] sm:$0xff] (!%p12358_p4) }
 0xa33   : > { %v15543_v30 = vadd.f32 %v15542_v63, %v15541_v36  ;;  %v15544_v17 = vpop.f32.mrb[30].mxu1  ;;  %v15523_v44 = vpop.f32.mrb[31].mxu0  ;;  %v11839_v63 = vld [vmem:[#allocation6 + $0x78] sm:$0xff] (!%p12358_p4) }
 0xa34   : > { %v15545_v45 = vpop.f32.mrb[31].mxu1  ;;  %v11641_v48 = vadd.f32 %v15521_v42, %v11601_v4  ;;  %v15754_v4 = vpack.c.bf16 (!%p12358_p4), %v11837_v33, %v11836_v32  ;;  %v15757_v40 = vpack.c.bf16 (!%p12358_p4), %v11839_v63, %v11838_v41  ;;  %v11840_v17 = vld [vmem:[#allocation6 + $0x80] sm:$0xff] (!%p12358_p4)  ;;  %v11841_v44 = vld [vmem:[#allocation6 + $0x88] sm:$0xff] (!%p12358_p4) }
 0xa36   : > { %v11681_v57 = vadd.f32 %v15543_v30, %v11641_v48  ;;  %15755 = vmatpush3.bf16.msra.mxu0 (!%p12358_p4), %v15754_v4  ;;  %v12360_v30 = vld [vmem:[#allocation6 + $0x8] ss:$0 sm:$0xff] (!%p12358_p4)  ;;  %v15760_v48 = vpack.c.bf16 (!%p12358_p4), %v11841_v44, %v11840_v17 }
 0xa37   : > { %15756 = vmatprep.subr.bf16.mxu0 (!%p12358_p4), %v16030_v3 }
 0xa3a   : > { %15758 = vmatpush3.bf16.msra.mxu0 (!%p12358_p4), %v15757_v40 }
 0xa3b   : > { %15759 = vmatprep.subr.bf16.mxu0 (!%p12358_p4), %v16030_v3 }
 0xa3e   : > { %15761 = vmatpush3.bf16.msra.mxu0 (!%p12358_p4), %v15760_v48 }
 0xa3f   : > { %15788 = vmatprep.subr.bf16.mxu0 (!%p12358_p4), %v16030_v3 }
 0xa50   : > { %v15563_v49 = vpop.f32.mrb[32].mxu0 }
 0xa51   : > { %v15585_v50 = vpop.f32.mrb[32].mxu1  ;;  %v15564_v39 = vpop.f32.mrb[33].mxu0 }
 0xa52   : > { %v15586_v28 = vpop.f32.mrb[33].mxu1  ;;  %v15565_v18 = vadd.f32 %v15564_v39, %v15563_v49  ;;  %v15566_v52 = vpop.f32.mrb[34].mxu0  ;;  %v11926_v49 = vld [vmem:[#allocation6 + $0xd8] sm:$0xff] (!%p12358_p4) }
 0xa53   : > { %v15587_v53 = vadd.f32 %v15586_v28, %v15585_v50  ;;  %v15588_v56 = vpop.f32.mrb[34].mxu1  ;;  %v15567_v0 = vpop.f32.mrb[35].mxu0  ;;  %v11927_v50 = vld [vmem:[#allocation6 + $0xe0] sm:$0x7] (!%p12358_p4)  ;;  %v12361_v28 = vld [vmem:[#allocation6 + $0x90] ss:$0 sm:$0xff] (!%p12358_p4) }
 0xa54   : > { %v15589_v26 = vpop.f32.mrb[35].mxu1  ;;  %v11721_v58 = vadd.f32 %v15565_v18, %v11681_v57  ;;  %v15775_v39 = vpack.c.bf16 (!%p12358_p4), %v11927_v50, %v11926_v49  ;;  %v12012_v18 = vld [vmem:[#allocation6 + $0xf0] sm:$0xff] (!%p12358_p4)  ;;  %v12013_v52 = vld [vmem:[#allocation6 + $0xf8] sm:$0xff] (!%p12358_p4) }
 0xa55   : > { %v15779_v26 = vpack.c.bf16 (!%p12358_p4), %v12013_v52, %v12012_v18 }
 0xa56   : > { %v11761_v59 = vadd.f32 %v15587_v53, %v11721_v58  ;;  %15777 = vmatpush3.bf16.msk.msra.mxu1 (!%p12358_p4), %vm15776_vm3, %v15775_v39 }
 0xa57   : > { %15778 = vmatprep.subr.bf16.mxu1 (!%p12358_p4), %v16030_v3 }
 0xa70   : > { %v15607_v60 = vpop.f32.mrb[36].mxu0 }
 0xa71   : > { %v15608_v1 = vpop.f32.mrb[37].mxu0 }
 0xa72   : > { %v15609_v15 = vadd.f32 %v15608_v1, %v15607_v60  ;;  %v15610_v61 = vpop.f32.mrb[38].mxu0  ;;  %11811 = sbr.rel (%p12358_p4) target bundleno = 3773 (0xebd), region = 48  ;;  %v12015_v60 = vld [vmem:[#allocation6 + $0x108] sm:$0x1] (!%p12358_p4) }
 0xa73   : > { %v15611_v2 = vpop.f32.mrb[39].mxu0  ;;  %v12100_v61 = vld [vmem:[#allocation6 + $0x118] sm:$0xff] (!%p12358_p4) }
 0xa74   : > { %v11801_v11 = vadd.f32 %v15609_v15, %v11761_v59  ;;  %v12014_v59 = vld [vmem:[#allocation6 + $0x100] sm:$0xff] (!%p12358_p4)  ;;  %v12362_v15 = vld [vmem:[#allocation6 + $0xe8] ss:$0 sm:$0xff] (!%p12358_p4) }
 0xa75   : > { %v15782_v1 = vpack.c.bf16 (!%p12358_p4), %v12015_v60, %v12014_v59 }
 0xa76   : > { %v11806_v34 = vadd.f32 %v11801_v11, %v218_v62  ;;  %v12101_v62 = vld [vmem:[#allocation6 + $0x120] sm:$0xff] (!%p12358_p4) }
 0xa77   : > { %v15786_v55 = vpack.c.bf16 (!%p12358_p4), %v12101_v62, %v12100_v61 }
 0xa78   : > { %11807 = vst [vmem:[#allocation2] sm:$0x3] %v11806_v34 }
 0xa7f   : > { %v11814_v36 = vld [vmem:[#allocation2] sm:$0x3] }
 0xa80   : > { %v11819_v42 = vmul.f32 %v12359_v35, %v11814_v36 }
 0xa82   : > { %v11824_v45 = vadd.f32 %v12360_v30, %v11819_v42 }
 0xa84   : > { %v11825_v57 = vmax.f32 %v11824_v45, 0.0 }
 0xa86   : > { %15686 = vmatmul.mubr.f32.vlgmr.msra.gmra.mrb[0].mxu0 %v11825_v57 }
 0xa87   : > { %15735 = vmatprep.mubr.msk.f32.mxu0 %vm16031_vm0, %v16032_v6  ;;  %15791 = vmatpush3.bf16.msk.msra.mxu0 %vm15790_vm11, %v15789_v25 }
 0xb59   : > { %v11913_v53 = vpop.f32.mrb[0].mxu0 }
 0xb5a   : > { %v11914_v56 = vadd.f32 %v12361_v28, %v11913_v53  ;;  %v15687_v0 = vpop.f32.mrb[1].mxu0 }
 0xb5c   : > { %v11917_v58 = vmax.f32 %v11914_v56, 0.0 }
 0xb5e   : > { %15709 = vmatmul.mubr.msk.f32.vlgmr.msra.gmra.mrb[0].mxu1 %vm11933_vm4, %v11917_v58 }
 0xb5f   : > { %15780 = vmatpush3.bf16.msra.mxu1 %v15779_v26  ;;  %15719 = vmatprep.mubr.msk.f32.mxu1 %vm16031_vm0, %v16032_v6 }
 0xb60   : > { %15781 = vmatprep.subr.bf16.mxu1 %v16030_v3 }
 0xb63   : > { %15784 = vmatpush3.bf16.msk.msra.mxu1 %vm15783_vm6, %v15782_v1 }
 0xb64   : > { %15785 = vmatprep.subr.bf16.mxu1 %v16030_v3  ;;  %v12365_v3 = vld [vmem:[#allocation6 + $0x110] ss:$0 sm:$0xff] }
 0xc31   : > { %v12007_v2 = vpop.f32.mrb[0].mxu1 }
 0xc32   : > { %v12008_v11 = vadd.f32 %v12362_v15, %v12007_v2  ;;  %v15710_v34 = vpop.f32.mrb[1].mxu1 }
 0xc34   : > { %v12011_v37 = vmax.f32 %v12008_v11, 0.0 }
 0xc36   : > { %15720 = vmatmul.mubr.msk.f32.vlgmr.msra.gmra.mrb[2].mxu1 %vm12021_vm7, %v12011_v37 }
 0xc37   : > { %15787 = vmatpush3.bf16.msra.mxu1 %v15786_v55  ;;  %15728 = vmatprep.mubr.msk.f32.mxu1 %vm16031_vm0, %v16032_v6 }
 0xc38   : > { %15726 = vmatprep.subr.mxu1 %v16032_v6 }
 0xc3b   : > { %15727 = vmatpush3.msk.msra.mxu1 %vm12112_vm8, %v12102_v5 }
 0xd09   : > { %v12095_v8 = vpop.f32.mrb[2].mxu1 }
 0xd0a   : > { %v12096_v10 = vadd.f32 %v12365_v3, %v12095_v8  ;;  %v15721_v9 = vpop.f32.mrb[3].mxu1 }
 0xd0c   : > { %v12099_v38 = vmax.f32 %v12096_v10, 0.0 }
 0xd0e   : > { %15729 = vmatmul.mubr.msk.f32.vlgmr.msra.gmra.mrb[4].mxu1 %vm12108_vm9, %v12099_v38 }
 0xde1   : > { %v12182_v43 = vpop.f32.mrb[4].mxu1 }
 0xde2   : > { %v12183_v6 = vadd.f32 %v12368_v13, %v12182_v43  ;;  %v15730_v24 = vpop.f32.mrb[5].mxu1 }
 0xde4   : > { %v12186_v51 = vmax.f32 %v12183_v6, 0.0 }
 0xde6   : > { %15736 = vmatmul.mubr.msk.f32.vlgmr.msra.gmra.mrb[2].mxu0 %vm12194_vm12, %v12186_v51 }
 0xeb9   : > { %v12268_v19 = vpop.f32.mrb[2].mxu0 }
 0xeba   : > { %v12269_v20 = vadd.f32 %v12371_v16, %v12268_v19  ;;  %v15737_v46 = vpop.f32.mrb[3].mxu0 }
 0xebc   : > { %12273 = vst.msk [vmem:[#allocation8] sm:$0x3] %vm12272_vm13, %v12269_v20 }
 0xebd PF: > { %p15815_p5 = scmp.eq.s32.totalorder %s16074_s16, 3  ;;  %s16034_s17 = smov [#allocation8]  }
 0xebe   : > { %s12281_s20 = sshll.u32 %s16034_s17, 4  ;;  %s12282_s20 = int_to_ptr.vmem [resolvable:$true] %s12281_s20 }
 0xebf   : > { %s15954_s24 = scalar_lea.vmem %s12282_s20, 32  ;;  %p15961_p12 = scmp.lt.s32.totalorder %s12282_s20, %s12282_s20 }
 0xec0   : > { %p15955_p6 = scmp.ne.s32.totalorder %s12282_s20, %s15954_s24  ;;  %p15962_p0 = scmp.lt.s32.totalorder %s15954_s24, %s15954_s24 }
 0xec2   : > { %p15956_p9 = pnand %p15955_p6, %p15815_p5  ;;  %p15963_p2 = por %p15962_p0, %p15961_p12 }
 0xec4   : > { %p15957_p8 = pneg %p15956_p9 }
 0xec6   : > { %p15964_p11 = pnand %p15963_p2, %p15957_p8 }
 0xec8   : > { %15967 = shalt.err (!%p15964_p11)
}
 0xec9   : > { %s15968_s28 = scalar_lea.hbm %s18444_s3, 32 }
 0xeca   : > { %p15969_p13 = scmp.ne.s32.totalorder %s18444_s3, %s15968_s28  ;;  %p15974_p7 = scmp.lt.u32.totalorder %s15968_s28, %s18444_s3 }
 0xecc   : > { %p15970_p3 = pnand %p15969_p13, %p15815_p5 }
 0xece   : > { %p15971_p10 = pneg %p15970_p3 }
 0xed0   : > { %p15976_p1 = pnand %p15974_p7, %p15971_p10 }
 0xed2   : > { %15979 = shalt.err (!%p15976_p1)
}
 0xed3   : > { %15801 = dma.vmem_to_hbm [thread:$0]  (%p15815_p5), %s12282_s20, 32, %s18444_s3, [#allocation5]  }
 0xed4   : > { %16005 = dma.done.wait (%p15815_p5), [#allocation5], 32  }
 0xed5   : > { %16007 = vsyncadd (%p15815_p5), [#allocation5], 4294967264 }
 0xed6 PF: > { %p15_p4 = scmp.ge.s32.totalorder %s16100_s22, 6   ;;  %s18457_s12 = smov %s16014_s13 }
 0xed7   : > { %s18458_s13 = smov %s16018_s14  ;;  %s18459_s14 = smov %s16129_s10 }
 0xed8   : > { %s18460_s15 = smov %s16100_s22  ;;  %17 = sbr.rel (!%p15_p4) target bundleno = 5 (0x5), region = 84 }
 0xedf   :  { %12294 = vsyncpa [#allocation4], 1 }
 0xee0   :  { %12296 = vsyncpa [#allocation4 + $0x1], 1 }
 0xee1   :  { %12297 = vsyncpa [#allocation7], 1 }
 0xee2   :  { %12298 = vsyncpa [#allocation5], 1 }
 0xee3   :  { %12300 = vsyncpa [#allocation5 + $0x1], 1 }

</bundles_post_ra>
